<compile_context>
chip_gen: v6e
topology: v6e:2x2x1
jax: 0.10.0
libtpu: 0.0.40
codegen_flags: <defaults>
</compile_context>

<pallas_src>
import functools

import numpy as np
import jax
import jax.numpy as jnp
from jax import lax
from jax.experimental import pallas as pl
from jax.experimental.pallas import tpu as pltpu

DIM_INPUT = 2
DIM_HIDDEN = 10
DIM_OUTPUT = 10          # number of lengthscales
JITTER = 1e-6
MIN_LENGTHSCALE = 0.01
MAX_LENGTHSCALE = 0.5
INIT_AMPLITUDE = 1.0
INIT_NOISE = 1.0
LANE = 128               # lane width; train axis is padded to this


def _vmem():
    return pl.BlockSpec(memory_space=pltpu.MemorySpace.VMEM)


def _smem():
    return pl.BlockSpec(memory_space=pltpu.MemorySpace.SMEM)


# ----------------------------------------------------------------------------
# softplus / inverse-softplus parameter (un)constraint helpers
# ----------------------------------------------------------------------------
def inv_softplus_np(y):
    _y = y - 1e-6
    return _y + np.log(-np.expm1(-_y))


def constraint_jax(free):
    # F.softplus(x, beta=1, threshold=20) + 1e-6
    sp = jnp.where(free > 20.0, free, jnp.log1p(jnp.exp(free)))
    return sp + 1e-6


# ----------------------------------------------------------------------------
# Representation network (two-hidden-layer tanh NN + softmax + L2 row norm),
# evaluated in two orientations to avoid any in-kernel transposes:
#   _rep_rows: points on sublanes  -> reps (N, D)
#   _rep_cols: points on lanes     -> reps^T (D, N)
# First layer (K=2) is a VPU broadcast-FMA; the K=10 layers stay on the MXU.
# ----------------------------------------------------------------------------
def _rep_rows(x, w1, b1, w2, b2, w3, b3):
    h = jnp.tanh(x[:, 0:1] * w1[0:1, :] + x[:, 1:2] * w1[1:2, :] + b1)
    h = jnp.tanh(jnp.dot(h, w2, preferred_element_type=jnp.float32) + b2)
    logits = jnp.dot(h, w3, preferred_element_type=jnp.float32) + b3
    m = jnp.max(logits, axis=1, keepdims=True)
    e = jnp.exp(logits - m)
    z = e * pl.reciprocal(jnp.sum(e, axis=1, keepdims=True), approx=True)
    return z * lax.rsqrt(jnp.sum(z * z, axis=1, keepdims=True))


def _rep_cols(xt, w1t, b1t, w2t, b2t, w3t, b3t):
    h = jnp.tanh(w1t[:, 0:1] * xt[0:1, :] + w1t[:, 1:2] * xt[1:2, :] + b1t)
    h = jnp.tanh(jnp.dot(w2t, h, preferred_element_type=jnp.float32) + b2t)
    logits = jnp.dot(w3t, h, preferred_element_type=jnp.float32) + b3t
    m = jnp.max(logits, axis=0, keepdims=True)
    e = jnp.exp(logits - m)
    z = e * pl.reciprocal(jnp.sum(e, axis=0, keepdims=True), approx=True)
    return z * lax.rsqrt(jnp.sum(z * z, axis=0, keepdims=True))


# ----------------------------------------------------------------------------
# Fused pre-Cholesky kernel:
#   representations + attentive-kernel covariance for
#     x1 = [train ; test]  (sublanes, padded to mult. of 8)
#     x2 = train           (lanes, zero-padded to 128)
#   with noise added on the diag of the K(train,train) block.
#
#   Inputs (5): x1 rows, x1 lanes (train only), packed weights (row / lane
#   orientation), 12 scalars in SMEM [coef_0..9, amplitude, noise].
#   Output: single lane-dense (N1p, 128) slab; lanes >= n_train are garbage
#   and every consumer must slice/mask to :n_train (documented invariant).
# ----------------------------------------------------------------------------
def _fused_cov_kernel(n_train, x_ref, xt_ref, wp_ref, wpt_ref, scal_ref, out_ref):
    x = x_ref[...]                           # (N1p, 2)
    xt = xt_ref[...]                         # (2, 128)   train coords on lanes
    wp = wp_ref[...]                         # (25, 10)   [w1;b1;w2;b2;w3;b3]
    wpt = wpt_ref[...]                       # (10, 25)   transpose of the above

    r1 = _rep_rows(x,
                   wp[0:2, :], wp[2:3, :],
                   wp[3:13, :], wp[13:14, :],
                   wp[14:24, :], wp[24:25, :])                    # (N1p, D)
    r2t = _rep_cols(xt,
                    wpt[:, 0:2], wpt[:, 2:3],
                    wpt[:, 3:13], wpt[:, 13:14],
                    wpt[:, 14:24], wpt[:, 24:25])                 # (D, 128)

    # pairwise SQUARED distances (no sqrt: folded into exp coefficient)
    d0 = x[:, 0:1] - xt[0:1, :]
    d1 = x[:, 1:2] - xt[1:2, :]
    sqd = d0 * d0 + d1 * d1                                       # (N1p, 128)

    cov = jnp.zeros(out_ref.shape, jnp.float32)
    # Static unroll over DIM_OUTPUT: 10x full-tile exp lands on the otherwise
    # idle EUP slot.  Do NOT vectorize into (N1p,128,10) — would spill vregs.
    for i in range(DIM_OUTPUT):
        w = jnp.exp(sqd * scal_ref[i])                 # rbf, c_i = -0.5/ls_i^2
        cov = cov + w * (r1[:, i:i + 1] * r2t[i:i + 1, :])        # attention ls

    attn = jnp.dot(r1, r2t, preferred_element_type=jnp.float32)   # r1 @ r2^T (MXU)
    out = scal_ref[DIM_OUTPUT] * attn * cov                       # amplitude

    # noise on the diagonal of the K(train,train) block only
    # (valid because train rows come first in the slab)
    row = lax.broadcasted_iota(jnp.int32, out.shape, 0)
    col = lax.broadcasted_iota(jnp.int32, out.shape, 1)
    out_ref[...] = out + jnp.where((row == col) & (row < n_train),
                                   scal_ref[DIM_OUTPUT + 1], 0.0)


def fused_cov(x1_pad, x1t_pad, wpack, wpackt, scal, n_train):
    n1p = x1_pad.shape[0]
    return pl.pallas_call(
        functools.partial(_fused_cov_kernel, n_train),
        out_shape=jax.ShapeDtypeStruct((n1p, LANE), jnp.float32),
        in_specs=[_vmem(), _vmem(), _vmem(), _vmem(), _smem()],
        out_specs=_vmem(),
    )(x1_pad, x1t_pad, wpack, wpackt, scal)


# ----------------------------------------------------------------------------
# GPR forward (glue: scalers, padding, cholesky, combined triangular solve,
# fused plain-JAX prediction reductions)
# ----------------------------------------------------------------------------
def gpr_forward(x_test_raw, params, data):
    x_min, x_ptp = data["x_min"], data["x_ptp"]
    y_mean, y_scale = data["y_mean"], data["y_scale"]
    x_train, y_train = data["x_train_n"], data["y_train_n"]

    n_train = x_train.shape[0]
    n_test = x_test_raw.shape[0]
    n_all = n_train + n_test
    n_all_pad = ((n_all + 7) // 8) * 8

    # lane-slab invariant: train axis must fit in the 128-lane slab
    assert n_train <= LANE, "n_train > 128: add a lane-block grid dim instead of widening the slab"
    # TODO(synk): for n_train > 128, add a lane-block grid ('arbitrary' axis) to fused_cov.

    # MinMaxScaler.preprocess to [-1, 1]
    x_test = ((x_test_raw - x_min) / x_ptp) * 2.0 - 1.0

    amplitude = constraint_jax(params["free_amplitude"])
    noise = constraint_jax(params["free_noise"])

    # x1 = [train ; test] rows (sublane axis, zero-padded to mult. of 8)
    x_all = jnp.concatenate([x_train, x_test], axis=0)
    x1_pad = jnp.zeros((n_all_pad, DIM_INPUT), jnp.float32).at[:n_all].set(x_all)
    # x2 = train points on the lane axis, zero-padded to 128 (pad lanes sliced off)
    x1t_pad = jnp.zeros((DIM_INPUT, LANE), jnp.float32).at[:, :n_train].set(x_train.T)

    # pack the six NN tensors into one VMEM slab (and its transpose)
    wpack = jnp.concatenate(
        [params["w1"], params["b1"], params["w2"], params["b2"],
         params["w3"], params["b3"]], axis=0).astype(jnp.float32)      # (25, 10)
    wpackt = wpack.T                                                   # (10, 25)

    # 12 scalars: [-0.5/ls_i^2 for i<10, amplitude, noise]
    coef = (-0.5 / jnp.square(params["lengthscales"])).astype(jnp.float32)
    scal = jnp.concatenate(
        [coef, jnp.stack([amplitude, noise])]).astype(jnp.float32)     # (12,)

    # single fused kernel: reps + K(train,train)+noise*I and Ksn(test,train)
    cov_slab = fused_cov(x1_pad, x1t_pad, wpack, wpackt, scal, n_train)

    K = cov_slab[:n_train, :n_train]
    Ksn = cov_slab[n_train:n_all, :n_train]

    # TODO(synk): Cholesky / triangular solve (and the robust_cholesky retry
    # loop) have no clean Pallas TPU equivalent; kept in plain JAX.  Longer
    # term: fuse N<=128 factorization + solve + prediction into one kernel.
    L = jnp.linalg.cholesky(K)
    # ONE combined forward solve: Z = L^-1 [y, Ksn^T]
    rhs = jnp.concatenate([y_train, Ksn.T], axis=1)                    # (N, 1+M)
    Z = jax.scipy.linalg.solve_triangular(L, rhs, lower=True)
    iL_y = Z[:, :1]                                                    # (N, 1)
    iL_Kns = Z[:, 1:]                                                  # (N, M)

    # mean = Ksn K^-1 y = (L^-1 Ksn^T)^T (L^-1 y)  -> no back-substitution needed
    mean_t = jnp.sum(iL_Kns * iL_y, axis=0).reshape(-1, 1)             # (M, 1)
    var = amplitude - jnp.sum(iL_Kns * iL_Kns, axis=0).reshape(-1, 1)  # (M, 1)
    var = jnp.maximum(var, JITTER) + noise        # noise_free=False path
    std_t = jnp.sqrt(var)

    # StandardScaler postprocess
    mean = mean_t * y_scale + y_mean
    std = std_t * y_scale
    return mean, std


gpr_forward_jit = jax.jit(gpr_forward)


# ----------------------------------------------------------------------------
# Deterministic parameter / data construction
# ----------------------------------------------------------------------------
def make_params(key):
    ks = jax.random.split(key, 6)

    def linear_init(kw, kb, fan_in, fan_out):
        bound = 1.0 / np.sqrt(fan_in)
        w = jax.random.uniform(kw, (fan_in, fan_out), jnp.float32, -bound, bound)
        b = jax.random.uniform(kb, (1, fan_out), jnp.float32, -bound, bound)
        return w, b

    w1, b1 = linear_init(ks[0], ks[1], DIM_INPUT, DIM_HIDDEN)
    w2, b2 = linear_init(ks[2], ks[3], DIM_HIDDEN, DIM_HIDDEN)
    w3, b3 = linear_init(ks[4], ks[5], DIM_HIDDEN, DIM_OUTPUT)

    return {
        "w1": w1, "b1": b1, "w2": w2, "b2": b2, "w3": w3, "b3": b3,
        "lengthscales": jnp.asarray(
            np.linspace(MIN_LENGTHSCALE, MAX_LENGTHSCALE, DIM_OUTPUT),
            dtype=jnp.float32),
        "free_amplitude": jnp.asarray(inv_softplus_np(INIT_AMPLITUDE),
                                      dtype=jnp.float32),
        "free_noise": jnp.asarray(inv_softplus_np(INIT_NOISE),
                                  dtype=jnp.float32),
    }


if __name__ == "__main__":
    num_train, num_test = 50, 16
    key = jax.random.PRNGKey(0)
    k_par, k_x, k_y, k_t = jax.random.split(key, 4)

    params = make_params(k_par)

    # synthetic sensing data (replaces image/Sonar pipeline)
    x_train_raw = jax.random.uniform(k_x, (num_train, DIM_INPUT), jnp.float32,
                                     -10.0, 10.0)
    y_train_raw = (jnp.sin(0.3 * x_train_raw[:, :1])
                   + jnp.cos(0.2 * x_train_raw[:, 1:2])
                   + 0.1 * jax.random.normal(k_y, (num_train, 1), jnp.float32))
    x_test_raw = jax.random.uniform(k_t, (num_test, DIM_INPUT), jnp.float32,
                                    -10.0, 10.0)

    # scalers (MinMaxScaler for x, StandardScaler for y) + preprocessed train set
    x_min = jnp.min(x_train_raw, axis=0, keepdims=True)
    x_max = jnp.max(x_train_raw, axis=0, keepdims=True)
    x_ptp = x_max - x_min
    y_mean = jnp.mean(y_train_raw, axis=0, keepdims=True)
    y_scale = jnp.std(y_train_raw, axis=0, keepdims=True)
    data = {
        "x_min": x_min, "x_ptp": x_ptp,
        "y_mean": y_mean, "y_scale": y_scale,
        "x_train_n": ((x_train_raw - x_min) / x_ptp) * 2.0 - 1.0,
        "y_train_n": (y_train_raw - y_mean) / y_scale,
    }

    mean, std = gpr_forward_jit(x_test_raw, params, data)
    jax.block_until_ready((mean, std))
    assert mean.shape == (num_test, 1) and std.shape == (num_test, 1)
    assert bool(jnp.all(jnp.isfinite(mean))) and bool(jnp.all(std > 0.0))
    print("KERNEL_OK")
</pallas_src>

<mosaic_0001>
module attributes {stable_mosaic.version = 11 : i64} {
  func.func @_fused_cov_kernel(%arg0: memref<72x2xf32, #tpu.memory_space<vmem>>, %arg1: memref<2x128xf32, #tpu.memory_space<vmem>>, %arg2: memref<25x10xf32, #tpu.memory_space<vmem>>, %arg3: memref<10x25xf32, #tpu.memory_space<vmem>>, %arg4: memref<12xf32, #tpu.memory_space<smem>>, %arg5: memref<72x128xf32, #tpu.memory_space<vmem>>) attributes {dimension_semantics = [], scalar_prefetch = 0 : i64, scratch_operands = 0 : i64, tpu.core_type = #tpu.core_type<tc>} {
    %c0 = arith.constant 0 : index
    %c0_0 = arith.constant 0 : index
    %0 = vector.load %arg0[%c0, %c0_0] : memref<72x2xf32, #tpu.memory_space<vmem>>, vector<72x2xf32>
    %c0_1 = arith.constant 0 : index
    %c0_2 = arith.constant 0 : index
    %1 = vector.load %arg1[%c0_1, %c0_2] : memref<2x128xf32, #tpu.memory_space<vmem>>, vector<2x128xf32>
    %c0_3 = arith.constant 0 : index
    %c0_4 = arith.constant 0 : index
    %2 = vector.load %arg2[%c0_3, %c0_4] : memref<25x10xf32, #tpu.memory_space<vmem>>, vector<25x10xf32>
    %c0_5 = arith.constant 0 : index
    %c0_6 = arith.constant 0 : index
    %3 = vector.load %arg3[%c0_5, %c0_6] : memref<10x25xf32, #tpu.memory_space<vmem>>, vector<10x25xf32>
    %4 = vector.extract_strided_slice %2 {offsets = [0, 0], sizes = [2, 10], strides = [1, 1]} : vector<25x10xf32> to vector<2x10xf32>
    %5 = vector.extract_strided_slice %2 {offsets = [2, 0], sizes = [1, 10], strides = [1, 1]} : vector<25x10xf32> to vector<1x10xf32>
    %6 = vector.extract_strided_slice %2 {offsets = [3, 0], sizes = [10, 10], strides = [1, 1]} : vector<25x10xf32> to vector<10x10xf32>
    %7 = vector.extract_strided_slice %2 {offsets = [13, 0], sizes = [1, 10], strides = [1, 1]} : vector<25x10xf32> to vector<1x10xf32>
    %8 = vector.extract_strided_slice %2 {offsets = [14, 0], sizes = [10, 10], strides = [1, 1]} : vector<25x10xf32> to vector<10x10xf32>
    %9 = vector.extract_strided_slice %2 {offsets = [24, 0], sizes = [1, 10], strides = [1, 1]} : vector<25x10xf32> to vector<1x10xf32>
    %10 = vector.extract_strided_slice %0 {offsets = [0, 0], sizes = [72, 1], strides = [1, 1]} : vector<72x2xf32> to vector<72x1xf32>
    %11 = vector.extract_strided_slice %4 {offsets = [0, 0], sizes = [1, 10], strides = [1, 1]} : vector<2x10xf32> to vector<1x10xf32>
    %12 = vector.broadcast %10 : vector<72x1xf32> to vector<72x10xf32>
    %13 = vector.broadcast %11 : vector<1x10xf32> to vector<72x10xf32>
    %14 = arith.mulf %12, %13 : vector<72x10xf32>
    %15 = vector.extract_strided_slice %0 {offsets = [0, 1], sizes = [72, 1], strides = [1, 1]} : vector<72x2xf32> to vector<72x1xf32>
    %16 = vector.extract_strided_slice %4 {offsets = [1, 0], sizes = [1, 10], strides = [1, 1]} : vector<2x10xf32> to vector<1x10xf32>
    %17 = vector.broadcast %15 : vector<72x1xf32> to vector<72x10xf32>
    %18 = vector.broadcast %16 : vector<1x10xf32> to vector<72x10xf32>
    %19 = arith.mulf %17, %18 : vector<72x10xf32>
    %20 = arith.addf %14, %19 : vector<72x10xf32>
    %21 = vector.broadcast %5 : vector<1x10xf32> to vector<72x10xf32>
    %22 = arith.addf %20, %21 : vector<72x10xf32>
    %23 = math.tanh %22 : vector<72x10xf32>
    %cst = arith.constant dense<0.000000e+00> : vector<72x10xf32>
    %24 = tpu.matmul %23, %6, %cst {dimension_numbers = #tpu.dot_dimension_numbers<[1], [0], [0], [1], [0, 0, 1, 1], [], []>} : vector<72x10xf32>, vector<10x10xf32>, vector<72x10xf32> -> vector<72x10xf32>
    %25 = vector.broadcast %7 : vector<1x10xf32> to vector<72x10xf32>
    %26 = arith.addf %24, %25 : vector<72x10xf32>
    %27 = math.tanh %26 : vector<72x10xf32>
    %cst_7 = arith.constant dense<0.000000e+00> : vector<72x10xf32>
    %28 = tpu.matmul %27, %8, %cst_7 {dimension_numbers = #tpu.dot_dimension_numbers<[1], [0], [0], [1], [0, 0, 1, 1], [], []>} : vector<72x10xf32>, vector<10x10xf32>, vector<72x10xf32> -> vector<72x10xf32>
    %29 = vector.broadcast %9 : vector<1x10xf32> to vector<72x10xf32>
    %30 = arith.addf %28, %29 : vector<72x10xf32>
    %cst_8 = arith.constant dense<0xFF800000> : vector<72xf32>
    %31 = vector.multi_reduction <maximumf>, %30, %cst_8 [1] : vector<72x10xf32> to vector<72xf32>
    %32 = vector.shape_cast %31 : vector<72xf32> to vector<72x1xf32>
    %33 = vector.broadcast %32 : vector<72x1xf32> to vector<72x10xf32>
    %34 = arith.subf %30, %33 : vector<72x10xf32>
    %35 = math.exp %34 : vector<72x10xf32>
    %cst_9 = arith.constant dense<0.000000e+00> : vector<72xf32>
    %36 = vector.multi_reduction <add>, %35, %cst_9 [1] : vector<72x10xf32> to vector<72xf32>
    %37 = vector.shape_cast %36 : vector<72xf32> to vector<72x1xf32>
    %38 = tpu.reciprocal %37 {approx = true} : vector<72x1xf32> -> vector<72x1xf32>
    %39 = vector.broadcast %38 : vector<72x1xf32> to vector<72x10xf32>
    %40 = arith.mulf %35, %39 : vector<72x10xf32>
    %41 = arith.mulf %40, %40 : vector<72x10xf32>
    %cst_10 = arith.constant dense<0.000000e+00> : vector<72xf32>
    %42 = vector.multi_reduction <add>, %41, %cst_10 [1] : vector<72x10xf32> to vector<72xf32>
    %43 = vector.shape_cast %42 : vector<72xf32> to vector<72x1xf32>
    %44 = math.rsqrt %43 : vector<72x1xf32>
    %45 = vector.broadcast %44 : vector<72x1xf32> to vector<72x10xf32>
    %46 = arith.mulf %40, %45 : vector<72x10xf32>
    %47 = vector.extract_strided_slice %3 {offsets = [0, 0], sizes = [10, 2], strides = [1, 1]} : vector<10x25xf32> to vector<10x2xf32>
    %48 = vector.extract_strided_slice %3 {offsets = [0, 2], sizes = [10, 1], strides = [1, 1]} : vector<10x25xf32> to vector<10x1xf32>
    %49 = vector.extract_strided_slice %3 {offsets = [0, 3], sizes = [10, 10], strides = [1, 1]} : vector<10x25xf32> to vector<10x10xf32>
    %50 = vector.extract_strided_slice %3 {offsets = [0, 13], sizes = [10, 1], strides = [1, 1]} : vector<10x25xf32> to vector<10x1xf32>
    %51 = vector.extract_strided_slice %3 {offsets = [0, 14], sizes = [10, 10], strides = [1, 1]} : vector<10x25xf32> to vector<10x10xf32>
    %52 = vector.extract_strided_slice %3 {offsets = [0, 24], sizes = [10, 1], strides = [1, 1]} : vector<10x25xf32> to vector<10x1xf32>
    %53 = vector.extract_strided_slice %47 {offsets = [0, 0], sizes = [10, 1], strides = [1, 1]} : vector<10x2xf32> to vector<10x1xf32>
    %54 = vector.extract_strided_slice %1 {offsets = [0, 0], sizes = [1, 128], strides = [1, 1]} : vector<2x128xf32> to vector<1x128xf32>
    %55 = vector.broadcast %53 : vector<10x1xf32> to vector<10x128xf32>
    %56 = vector.broadcast %54 : vector<1x128xf32> to vector<10x128xf32>
    %57 = arith.mulf %55, %56 : vector<10x128xf32>
    %58 = vector.extract_strided_slice %47 {offsets = [0, 1], sizes = [10, 1], strides = [1, 1]} : vector<10x2xf32> to vector<10x1xf32>
    %59 = vector.extract_strided_slice %1 {offsets = [1, 0], sizes = [1, 128], strides = [1, 1]} : vector<2x128xf32> to vector<1x128xf32>
    %60 = vector.broadcast %58 : vector<10x1xf32> to vector<10x128xf32>
    %61 = vector.broadcast %59 : vector<1x128xf32> to vector<10x128xf32>
    %62 = arith.mulf %60, %61 : vector<10x128xf32>
    %63 = arith.addf %57, %62 : vector<10x128xf32>
    %64 = vector.broadcast %48 : vector<10x1xf32> to vector<10x128xf32>
    %65 = arith.addf %63, %64 : vector<10x128xf32>
    %66 = math.tanh %65 : vector<10x128xf32>
    %cst_11 = arith.constant dense<0.000000e+00> : vector<10x128xf32>
    %67 = tpu.matmul %49, %66, %cst_11 {dimension_numbers = #tpu.dot_dimension_numbers<[1], [0], [0], [1], [0, 0, 1, 1], [], []>} : vector<10x10xf32>, vector<10x128xf32>, vector<10x128xf32> -> vector<10x128xf32>
    %68 = vector.broadcast %50 : vector<10x1xf32> to vector<10x128xf32>
    %69 = arith.addf %67, %68 : vector<10x128xf32>
    %70 = math.tanh %69 : vector<10x128xf32>
    %cst_12 = arith.constant dense<0.000000e+00> : vector<10x128xf32>
    %71 = tpu.matmul %51, %70, %cst_12 {dimension_numbers = #tpu.dot_dimension_numbers<[1], [0], [0], [1], [0, 0, 1, 1], [], []>} : vector<10x10xf32>, vector<10x128xf32>, vector<10x128xf32> -> vector<10x128xf32>
    %72 = vector.broadcast %52 : vector<10x1xf32> to vector<10x128xf32>
    %73 = arith.addf %71, %72 : vector<10x128xf32>
    %cst_13 = arith.constant dense<0xFF800000> : vector<128xf32>
    %74 = vector.multi_reduction <maximumf>, %73, %cst_13 [0] : vector<10x128xf32> to vector<128xf32>
    %75 = vector.shape_cast %74 : vector<128xf32> to vector<1x128xf32>
    %76 = vector.broadcast %75 : vector<1x128xf32> to vector<10x128xf32>
    %77 = arith.subf %73, %76 : vector<10x128xf32>
    %78 = math.exp %77 : vector<10x128xf32>
    %cst_14 = arith.constant dense<0.000000e+00> : vector<128xf32>
    %79 = vector.multi_reduction <add>, %78, %cst_14 [0] : vector<10x128xf32> to vector<128xf32>
    %80 = vector.shape_cast %79 : vector<128xf32> to vector<1x128xf32>
    %81 = tpu.reciprocal %80 {approx = true} : vector<1x128xf32> -> vector<1x128xf32>
    %82 = vector.broadcast %81 : vector<1x128xf32> to vector<10x128xf32>
    %83 = arith.mulf %78, %82 : vector<10x128xf32>
    %84 = arith.mulf %83, %83 : vector<10x128xf32>
    %cst_15 = arith.constant dense<0.000000e+00> : vector<128xf32>
    %85 = vector.multi_reduction <add>, %84, %cst_15 [0] : vector<10x128xf32> to vector<128xf32>
    %86 = vector.shape_cast %85 : vector<128xf32> to vector<1x128xf32>
    %87 = math.rsqrt %86 : vector<1x128xf32>
    %88 = vector.broadcast %87 : vector<1x128xf32> to vector<10x128xf32>
    %89 = arith.mulf %83, %88 : vector<10x128xf32>
    %90 = vector.extract_strided_slice %0 {offsets = [0, 0], sizes = [72, 1], strides = [1, 1]} : vector<72x2xf32> to vector<72x1xf32>
    %91 = vector.extract_strided_slice %1 {offsets = [0, 0], sizes = [1, 128], strides = [1, 1]} : vector<2x128xf32> to vector<1x128xf32>
    %92 = vector.broadcast %90 : vector<72x1xf32> to vector<72x128xf32>
    %93 = vector.broadcast %91 : vector<1x128xf32> to vector<72x128xf32>
    %94 = arith.subf %92, %93 : vector<72x128xf32>
    %95 = vector.extract_strided_slice %0 {offsets = [0, 1], sizes = [72, 1], strides = [1, 1]} : vector<72x2xf32> to vector<72x1xf32>
    %96 = vector.extract_strided_slice %1 {offsets = [1, 0], sizes = [1, 128], strides = [1, 1]} : vector<2x128xf32> to vector<1x128xf32>
    %97 = vector.broadcast %95 : vector<72x1xf32> to vector<72x128xf32>
    %98 = vector.broadcast %96 : vector<1x128xf32> to vector<72x128xf32>
    %99 = arith.subf %97, %98 : vector<72x128xf32>
    %100 = arith.mulf %94, %94 : vector<72x128xf32>
    %101 = arith.mulf %99, %99 : vector<72x128xf32>
    %102 = arith.addf %100, %101 : vector<72x128xf32>
    %cst_16 = arith.constant 0.000000e+00 : f32
    %103 = vector.broadcast %cst_16 : f32 to vector<72x128xf32>
    %c0_17 = arith.constant 0 : index
    %104 = memref.load %arg4[%c0_17] : memref<12xf32, #tpu.memory_space<smem>>
    %105 = vector.broadcast %104 : f32 to vector<72x128xf32>
    %106 = arith.mulf %102, %105 : vector<72x128xf32>
    %107 = math.exp %106 : vector<72x128xf32>
    %108 = vector.extract_strided_slice %46 {offsets = [0, 0], sizes = [72, 1], strides = [1, 1]} : vector<72x10xf32> to vector<72x1xf32>
    %109 = vector.extract_strided_slice %89 {offsets = [0, 0], sizes = [1, 128], strides = [1, 1]} : vector<10x128xf32> to vector<1x128xf32>
    %110 = vector.broadcast %108 : vector<72x1xf32> to vector<72x128xf32>
    %111 = vector.broadcast %109 : vector<1x128xf32> to vector<72x128xf32>
    %112 = arith.mulf %110, %111 : vector<72x128xf32>
    %113 = arith.mulf %107, %112 : vector<72x128xf32>
    %114 = arith.addf %103, %113 : vector<72x128xf32>
    %c1 = arith.constant 1 : index
    %115 = memref.load %arg4[%c1] : memref<12xf32, #tpu.memory_space<smem>>
    %116 = vector.broadcast %115 : f32 to vector<72x128xf32>
    %117 = arith.mulf %102, %116 : vector<72x128xf32>
    %118 = math.exp %117 : vector<72x128xf32>
    %119 = vector.extract_strided_slice %46 {offsets = [0, 1], sizes = [72, 1], strides = [1, 1]} : vector<72x10xf32> to vector<72x1xf32>
    %120 = vector.extract_strided_slice %89 {offsets = [1, 0], sizes = [1, 128], strides = [1, 1]} : vector<10x128xf32> to vector<1x128xf32>
    %121 = vector.broadcast %119 : vector<72x1xf32> to vector<72x128xf32>
    %122 = vector.broadcast %120 : vector<1x128xf32> to vector<72x128xf32>
    %123 = arith.mulf %121, %122 : vector<72x128xf32>
    %124 = arith.mulf %118, %123 : vector<72x128xf32>
    %125 = arith.addf %114, %124 : vector<72x128xf32>
    %c2 = arith.constant 2 : index
    %126 = memref.load %arg4[%c2] : memref<12xf32, #tpu.memory_space<smem>>
    %127 = vector.broadcast %126 : f32 to vector<72x128xf32>
    %128 = arith.mulf %102, %127 : vector<72x128xf32>
    %129 = math.exp %128 : vector<72x128xf32>
    %130 = vector.extract_strided_slice %46 {offsets = [0, 2], sizes = [72, 1], strides = [1, 1]} : vector<72x10xf32> to vector<72x1xf32>
    %131 = vector.extract_strided_slice %89 {offsets = [2, 0], sizes = [1, 128], strides = [1, 1]} : vector<10x128xf32> to vector<1x128xf32>
    %132 = vector.broadcast %130 : vector<72x1xf32> to vector<72x128xf32>
    %133 = vector.broadcast %131 : vector<1x128xf32> to vector<72x128xf32>
    %134 = arith.mulf %132, %133 : vector<72x128xf32>
    %135 = arith.mulf %129, %134 : vector<72x128xf32>
    %136 = arith.addf %125, %135 : vector<72x128xf32>
    %c3 = arith.constant 3 : index
    %137 = memref.load %arg4[%c3] : memref<12xf32, #tpu.memory_space<smem>>
    %138 = vector.broadcast %137 : f32 to vector<72x128xf32>
    %139 = arith.mulf %102, %138 : vector<72x128xf32>
    %140 = math.exp %139 : vector<72x128xf32>
    %141 = vector.extract_strided_slice %46 {offsets = [0, 3], sizes = [72, 1], strides = [1, 1]} : vector<72x10xf32> to vector<72x1xf32>
    %142 = vector.extract_strided_slice %89 {offsets = [3, 0], sizes = [1, 128], strides = [1, 1]} : vector<10x128xf32> to vector<1x128xf32>
    %143 = vector.broadcast %141 : vector<72x1xf32> to vector<72x128xf32>
    %144 = vector.broadcast %142 : vector<1x128xf32> to vector<72x128xf32>
    %145 = arith.mulf %143, %144 : vector<72x128xf32>
    %146 = arith.mulf %140, %145 : vector<72x128xf32>
    %147 = arith.addf %136, %146 : vector<72x128xf32>
    %c4 = arith.constant 4 : index
    %148 = memref.load %arg4[%c4] : memref<12xf32, #tpu.memory_space<smem>>
    %149 = vector.broadcast %148 : f32 to vector<72x128xf32>
    %150 = arith.mulf %102, %149 : vector<72x128xf32>
    %151 = math.exp %150 : vector<72x128xf32>
    %152 = vector.extract_strided_slice %46 {offsets = [0, 4], sizes = [72, 1], strides = [1, 1]} : vector<72x10xf32> to vector<72x1xf32>
    %153 = vector.extract_strided_slice %89 {offsets = [4, 0], sizes = [1, 128], strides = [1, 1]} : vector<10x128xf32> to vector<1x128xf32>
    %154 = vector.broadcast %152 : vector<72x1xf32> to vector<72x128xf32>
    %155 = vector.broadcast %153 : vector<1x128xf32> to vector<72x128xf32>
    %156 = arith.mulf %154, %155 : vector<72x128xf32>
    %157 = arith.mulf %151, %156 : vector<72x128xf32>
    %158 = arith.addf %147, %157 : vector<72x128xf32>
    %c5 = arith.constant 5 : index
    %159 = memref.load %arg4[%c5] : memref<12xf32, #tpu.memory_space<smem>>
    %160 = vector.broadcast %159 : f32 to vector<72x128xf32>
    %161 = arith.mulf %102, %160 : vector<72x128xf32>
    %162 = math.exp %161 : vector<72x128xf32>
    %163 = vector.extract_strided_slice %46 {offsets = [0, 5], sizes = [72, 1], strides = [1, 1]} : vector<72x10xf32> to vector<72x1xf32>
    %164 = vector.extract_strided_slice %89 {offsets = [5, 0], sizes = [1, 128], strides = [1, 1]} : vector<10x128xf32> to vector<1x128xf32>
    %165 = vector.broadcast %163 : vector<72x1xf32> to vector<72x128xf32>
    %166 = vector.broadcast %164 : vector<1x128xf32> to vector<72x128xf32>
    %167 = arith.mulf %165, %166 : vector<72x128xf32>
    %168 = arith.mulf %162, %167 : vector<72x128xf32>
    %169 = arith.addf %158, %168 : vector<72x128xf32>
    %c6 = arith.constant 6 : index
    %170 = memref.load %arg4[%c6] : memref<12xf32, #tpu.memory_space<smem>>
    %171 = vector.broadcast %170 : f32 to vector<72x128xf32>
    %172 = arith.mulf %102, %171 : vector<72x128xf32>
    %173 = math.exp %172 : vector<72x128xf32>
    %174 = vector.extract_strided_slice %46 {offsets = [0, 6], sizes = [72, 1], strides = [1, 1]} : vector<72x10xf32> to vector<72x1xf32>
    %175 = vector.extract_strided_slice %89 {offsets = [6, 0], sizes = [1, 128], strides = [1, 1]} : vector<10x128xf32> to vector<1x128xf32>
    %176 = vector.broadcast %174 : vector<72x1xf32> to vector<72x128xf32>
    %177 = vector.broadcast %175 : vector<1x128xf32> to vector<72x128xf32>
    %178 = arith.mulf %176, %177 : vector<72x128xf32>
    %179 = arith.mulf %173, %178 : vector<72x128xf32>
    %180 = arith.addf %169, %179 : vector<72x128xf32>
    %c7 = arith.constant 7 : index
    %181 = memref.load %arg4[%c7] : memref<12xf32, #tpu.memory_space<smem>>
    %182 = vector.broadcast %181 : f32 to vector<72x128xf32>
    %183 = arith.mulf %102, %182 : vector<72x128xf32>
    %184 = math.exp %183 : vector<72x128xf32>
    %185 = vector.extract_strided_slice %46 {offsets = [0, 7], sizes = [72, 1], strides = [1, 1]} : vector<72x10xf32> to vector<72x1xf32>
    %186 = vector.extract_strided_slice %89 {offsets = [7, 0], sizes = [1, 128], strides = [1, 1]} : vector<10x128xf32> to vector<1x128xf32>
    %187 = vector.broadcast %185 : vector<72x1xf32> to vector<72x128xf32>
    %188 = vector.broadcast %186 : vector<1x128xf32> to vector<72x128xf32>
    %189 = arith.mulf %187, %188 : vector<72x128xf32>
    %190 = arith.mulf %184, %189 : vector<72x128xf32>
    %191 = arith.addf %180, %190 : vector<72x128xf32>
    %c8 = arith.constant 8 : index
    %192 = memref.load %arg4[%c8] : memref<12xf32, #tpu.memory_space<smem>>
    %193 = vector.broadcast %192 : f32 to vector<72x128xf32>
    %194 = arith.mulf %102, %193 : vector<72x128xf32>
    %195 = math.exp %194 : vector<72x128xf32>
    %196 = vector.extract_strided_slice %46 {offsets = [0, 8], sizes = [72, 1], strides = [1, 1]} : vector<72x10xf32> to vector<72x1xf32>
    %197 = vector.extract_strided_slice %89 {offsets = [8, 0], sizes = [1, 128], strides = [1, 1]} : vector<10x128xf32> to vector<1x128xf32>
    %198 = vector.broadcast %196 : vector<72x1xf32> to vector<72x128xf32>
    %199 = vector.broadcast %197 : vector<1x128xf32> to vector<72x128xf32>
    %200 = arith.mulf %198, %199 : vector<72x128xf32>
    %201 = arith.mulf %195, %200 : vector<72x128xf32>
    %202 = arith.addf %191, %201 : vector<72x128xf32>
    %c9 = arith.constant 9 : index
    %203 = memref.load %arg4[%c9] : memref<12xf32, #tpu.memory_space<smem>>
    %204 = vector.broadcast %203 : f32 to vector<72x128xf32>
    %205 = arith.mulf %102, %204 : vector<72x128xf32>
    %206 = math.exp %205 : vector<72x128xf32>
    %207 = vector.extract_strided_slice %46 {offsets = [0, 9], sizes = [72, 1], strides = [1, 1]} : vector<72x10xf32> to vector<72x1xf32>
    %208 = vector.extract_strided_slice %89 {offsets = [9, 0], sizes = [1, 128], strides = [1, 1]} : vector<10x128xf32> to vector<1x128xf32>
    %209 = vector.broadcast %207 : vector<72x1xf32> to vector<72x128xf32>
    %210 = vector.broadcast %208 : vector<1x128xf32> to vector<72x128xf32>
    %211 = arith.mulf %209, %210 : vector<72x128xf32>
    %212 = arith.mulf %206, %211 : vector<72x128xf32>
    %213 = arith.addf %202, %212 : vector<72x128xf32>
    %cst_18 = arith.constant dense<0.000000e+00> : vector<72x128xf32>
    %214 = tpu.matmul %46, %89, %cst_18 {dimension_numbers = #tpu.dot_dimension_numbers<[1], [0], [0], [1], [0, 0, 1, 1], [], []>} : vector<72x10xf32>, vector<10x128xf32>, vector<72x128xf32> -> vector<72x128xf32>
    %c10 = arith.constant 10 : index
    %215 = memref.load %arg4[%c10] : memref<12xf32, #tpu.memory_space<smem>>
    %216 = vector.broadcast %215 : f32 to vector<72x128xf32>
    %217 = arith.mulf %216, %214 : vector<72x128xf32>
    %218 = arith.mulf %217, %213 : vector<72x128xf32>
    %219 = tpu.iota {dimensions = array<i32: 0>} : vector<72x128xi32>
    %220 = tpu.iota {dimensions = array<i32: 1>} : vector<72x128xi32>
    %221 = arith.cmpi eq, %219, %220 : vector<72x128xi32>
    %c50_i32 = arith.constant 50 : i32
    %222 = vector.broadcast %c50_i32 : i32 to vector<72x128xi32>
    %223 = arith.cmpi slt, %219, %222 : vector<72x128xi32>
    %224 = arith.andi %221, %223 : vector<72x128xi1>
    %c11 = arith.constant 11 : index
    %225 = memref.load %arg4[%c11] : memref<12xf32, #tpu.memory_space<smem>>
    %cst_19 = arith.constant 0.000000e+00 : f32
    %226 = vector.broadcast %225 : f32 to vector<72x128xf32>
    %227 = vector.broadcast %cst_19 : f32 to vector<72x128xf32>
    %228 = arith.select %224, %226, %227 : vector<72x128xi1>, vector<72x128xf32>
    %229 = arith.addf %218, %228 : vector<72x128xf32>
    %c0_20 = arith.constant 0 : index
    %c0_21 = arith.constant 0 : index
    %230 = vector.load %arg5[%c0_20, %c0_21] : memref<72x128xf32, #tpu.memory_space<vmem>>, vector<72x128xf32>
    tpu.vector_store %arg5[%c0_20, %c0_21], %229 {strides = array<i32>} : memref<72x128xf32, #tpu.memory_space<vmem>>, vector<72x128xf32>,
    return
  }
}

</mosaic_0001>

<bundles_post_ra>
// kernel: custom-call.4
= control target key start
LH: loop header
LB: loop body
LE: loop exit
PB: predicated region body
PF: predicated region fallthrough
CT: control target
= control target key end

     0   :  { %v3636_v0 = vmov 0.0   ;;  %vm72_vm0 = vcmask 7168   ;;  %vm168_vm1 = vcmask 15368   ;;  %vm185_vm2 = vcmask 1047553   ;;  %s4816_s0 = inlined_call_operand.vmem [shape: f32[50,50], index: 0, kind: input, shape index: {}]   ;;  %s4817_s1 = inlined_call_operand.vmem [shape: f32[50,50], index: 1, kind: output, shape index: {}]  }
   0x1   :  { %59 = vst [vmem:[#allocation1] sm:$0xff] %v3636_v0  ;;  %v3652_v4 = vld [vmem:[%s4816_s0] sm:$0xff]  ;;  %v3670_v16 = vld [vmem:[%s4816_s0 + $0x8] sm:$0xff]  ;;  %vm186_vm3 = vmand %vm168_vm1, %vm185_vm2  ;;  %vm268_vm4 = vcmask 23568   ;;  %vm285_vm5 = vcmask 1047554   ;;  %vm368_vm7 = vcmask 31768  }
   0x2   :  { %43 = vst [vmem:[#allocation0] sm:$0xff] %v3652_v4  ;;  %45 = vst [vmem:[#allocation0 + $0x8] sm:$0xff] %v3670_v16  ;;  %v3692_v34 = vld [vmem:[%s4816_s0 + $0x10] sm:$0xff]  ;;  %v3713_v55 = vld [vmem:[%s4816_s0 + $0x18] sm:$0xff]  ;;  %vm385_vm8 = vcmask 1047555   ;;  %vm468_vm10 = vcmask 39968  }
   0x3   :  { %47 = vst [vmem:[#allocation0 + $0x10] sm:$0xff] %v3692_v34  ;;  %vm286_vm6 = vmand %vm268_vm4, %vm285_vm5  ;;  %vm485_vm11 = vcmask 1047556   ;;  %vm568_vm13 = vcmask 48168   ;;  %vm585_vm14 = vcmask 1047557  }
   0x4   :  { %49 = vst [vmem:[#allocation0 + $0x18] sm:$0xff] %v3713_v55  ;;  %vm386_vm9 = vmand %vm368_vm7, %vm385_vm8 }
   0x5   :  { %vm486_vm12 = vmand %vm468_vm10, %vm485_vm11 }
   0x6   :  { %vm586_vm15 = vmand %vm568_vm13, %vm585_vm14 }
   0x8   :  { %v73_v1 = vld [vmem:[#allocation1] ss:$0 sm:$0xff] }
   0x9   :  { %v75_v2 = vmul.f32 %v73_v1, %v73_v1  ;;  %v3647_v3 = vmul.f32 0.0, %v73_v1  ;;  %v74_v5 = vld [vmem:[#allocation0] ss:$0 sm:$0xff]  ;;  %v172_v17 = vld [vmem:[#allocation0 + $0x1] ss:$0 sm:$0xff] }
   0xa   :  { %v272_v41 = vld [vmem:[#allocation0 + $0x2] ss:$0 sm:$0xff] }
   0xb   :  { %76 = vadd.xlane.f32.xlu0 %v75_v2 }
   0xf   :  { %83 = vadd.xlane.f32.xlu0 %v3647_v3 }
  0x94   :  { %v77_v6 = vpop.xlane.xlu0 %76 }
  0x95   :  { %v78_v7 = vsub.f32 %v74_v5, %v77_v6 }
  0x97   :  { %3532 = vrsqrt.f32 %v78_v7 }
  0x98   :  { %v84_v8 = vpop.xlane.xlu0 %83 }
  0x99   :  { %v85_v9 = vsub.f32 %v3652_v4, %v84_v8 }
  0xa4   :  { %v3657_v10 = vpop.eup %3532 }
  0xa5   :  { %v86_v11 = vmul.f32 %v3657_v10, %v85_v9  ;;  %v372_v9 = vld [vmem:[#allocation0 + $0x3] ss:$0 sm:$0xff] }
  0xa7   :  { %v87_v12 = vsel %vm72_vm0, %v86_v11, 0.0 }
  0xa8   :  { %89 = vst [vmem:[#allocation1] sm:$0xff] %v87_v12 }
  0xaf   :  { %v3661_v13 = vld [vmem:[#allocation1 + $0x1] ss:$0 sm:$0xff] }
  0xb0   :  { %v180_v14 = vmul.f32 %v3661_v13, %v87_v12  ;;  %v173_v15 = vmul.f32 %v3661_v13, %v3661_v13 }
  0xb2   :  { %181 = vadd.xlane.f32.xlu0 %v180_v14  ;;  %174 = vadd.xlane.f32.xlu1 %v173_v15 }
  0xb6   :  { %95 = vadd.xlane.f32.xlu1 %v3647_v3 }
 0x13b   :  { %v175_v18 = vpop.xlane.xlu1 %174  ;;  %v182_v24 = vpop.xlane.xlu0 %181 }
 0x13c   :  { %v176_v19 = vsub.f32 %v172_v17, %v175_v18  ;;  %v183_v26 = vsub.f32 %v3652_v4, %v182_v24 }
 0x13e   :  { %3534 = vrsqrt.f32 %v176_v19 }
 0x13f   :  { %v96_v20 = vpop.xlane.xlu1 %95 }
 0x140   :  { %v97_v21 = vsub.f32 %v3670_v16, %v96_v20 }
 0x142   :  { %v98_v22 = vmul.f32 %v3657_v10, %v97_v21 }
 0x144   :  { %v99_v23 = vsel %vm72_vm0, %v98_v22, 0.0 }
 0x145   :  { %v194_v25 = vmul.f32 %v3661_v13, %v99_v23 }
 0x147   :  { %195 = vadd.xlane.f32.xlu1 %v194_v25 }
 0x14b   :  { %v3678_v27 = vpop.eup %3534 }
 0x14c   :  { %v184_v28 = vmul.f32 %v3678_v27, %v183_v26 }
 0x14e   :  { %v187_v29 = vsel %vm186_vm3, %v184_v28, 0.0  ;;  %vm668_vm3 = vcmask 56368  }
 0x14f   :  { %v188_v30 = vadd.f32 %v187_v29, %v87_v12 }
 0x151   :  { %189 = vst [vmem:[#allocation1] sm:$0xff] %v188_v30 }
 0x158   :  { %v3683_v31 = vld [vmem:[#allocation1 + $0x2] ss:$0 sm:$0xff] }
 0x159   :  { %v273_v32 = vmul.f32 %v3683_v31, %v3683_v31  ;;  %v280_v33 = vmul.f32 %v3683_v31, %v188_v30 }
 0x15b   :  { %274 = vadd.xlane.f32.xlu0 %v273_v32  ;;  %281 = vadd.xlane.f32.xlu1 %v280_v33 }
 0x15f   :  { %108 = vadd.xlane.f32.xlu0 %v3647_v3 }
 0x1d0   :  { %v196_v35 = vpop.xlane.xlu1 %195 }
 0x1d1   :  { %v197_v36 = vsub.f32 %v3670_v16, %v196_v35 }
 0x1d3   :  { %v198_v37 = vmul.f32 %v3678_v27, %v197_v36 }
 0x1d5   :  { %v199_v38 = vsel %vm168_vm1, %v198_v37, 0.0 }
 0x1d6   :  { %v200_v39 = vadd.f32 %v199_v38, %v99_v23 }
 0x1d8   :  { %v294_v40 = vmul.f32 %v3683_v31, %v200_v39 }
 0x1da   :  { %295 = vadd.xlane.f32.xlu1 %v294_v40 }
 0x1e4   :  { %v275_v42 = vpop.xlane.xlu0 %274  ;;  %v282_v48 = vpop.xlane.xlu1 %281 }
 0x1e5   :  { %v276_v43 = vsub.f32 %v272_v41, %v275_v42  ;;  %v283_v50 = vsub.f32 %v3652_v4, %v282_v48 }
 0x1e7   :  { %3536 = vrsqrt.f32 %v276_v43 }
 0x1e8   :  { %v109_v44 = vpop.xlane.xlu0 %108 }
 0x1e9   :  { %v110_v45 = vsub.f32 %v3692_v34, %v109_v44 }
 0x1eb   :  { %v111_v46 = vmul.f32 %v3657_v10, %v110_v45  ;;  %v472_v45 = vld [vmem:[#allocation0 + $0x4] ss:$0 sm:$0xff] }
 0x1ed   :  { %v112_v47 = vsel %vm72_vm0, %v111_v46, 0.0 }
 0x1ee   :  { %v207_v49 = vmul.f32 %v3661_v13, %v112_v47 }
 0x1f0   :  { %208 = vadd.xlane.f32.xlu1 %v207_v49 }
 0x1f4   :  { %v3704_v51 = vpop.eup %3536  ;;  %121 = vadd.xlane.f32.xlu1 %v3647_v3 }
 0x1f5   :  { %v284_v52 = vmul.f32 %v3704_v51, %v283_v50 }
 0x1f7   :  { %v287_v53 = vsel %vm286_vm6, %v284_v52, 0.0  ;;  %vm685_vm6 = vcmask 1047558  }
 0x1f8   :  { %v288_v54 = vadd.f32 %v287_v53, %v188_v30  ;;  %v3748_v30 = vld [vmem:[%s4816_s0 + $0x20] sm:$0xff] }
 0x1f9   :  { %51 = vst [vmem:[#allocation0 + $0x20] sm:$0xff] %v3748_v30 }
 0x1fa   :  { %289 = vst [vmem:[#allocation1] sm:$0xff] %v288_v54 }
 0x201   :  { %v3716_v56 = vld [vmem:[#allocation1 + $0x3] ss:$0 sm:$0xff] }
 0x202   :  { %v373_v57 = vmul.f32 %v3716_v56, %v3716_v56  ;;  %v380_v58 = vmul.f32 %v3716_v56, %v288_v54 }
 0x204   :  { %374 = vadd.xlane.f32.xlu0 %v373_v57 }
 0x208   :  { %381 = vadd.xlane.f32.xlu0 %v380_v58 }
 0x263   :  { %v296_v59 = vpop.xlane.xlu1 %295 }
 0x264   :  { %v297_v60 = vsub.f32 %v3670_v16, %v296_v59 }
 0x266   :  { %v298_v61 = vmul.f32 %v3704_v51, %v297_v60 }
 0x268   :  { %v299_v62 = vsel %vm268_vm4, %v298_v61, 0.0 }
 0x269   :  { %v300_v63 = vadd.f32 %v299_v62, %v200_v39 }
 0x26b   :  { %v394_v0 = vmul.f32 %v3716_v56, %v300_v63 }
 0x26d   :  { %395 = vadd.xlane.f32.xlu0 %v394_v0 }
 0x279   :  { %v209_v1 = vpop.xlane.xlu1 %208 }
 0x27a   :  { %v210_v2 = vsub.f32 %v3692_v34, %v209_v1 }
 0x27c   :  { %v211_v5 = vmul.f32 %v3678_v27, %v210_v2 }
 0x27d   :  { %v122_v18 = vpop.xlane.xlu1 %121 }
 0x27e   :  { %v212_v6 = vsel %vm168_vm1, %v211_v5, 0.0  ;;  %v123_v20 = vsub.f32 %v3713_v55, %v122_v18 }
 0x27f   :  { %v213_v7 = vadd.f32 %v212_v6, %v112_v47 }
 0x280   :  { %v124_v23 = vmul.f32 %v3657_v10, %v123_v20 }
 0x281   :  { %v307_v8 = vmul.f32 %v3683_v31, %v213_v7 }
 0x282   :  { %v125_v24 = vsel %vm72_vm0, %v124_v23, 0.0 }
 0x283   :  { %308 = vadd.xlane.f32.xlu1 %v307_v8  ;;  %v220_v29 = vmul.f32 %v3661_v13, %v125_v24  ;;  %v3784_v8 = vld [vmem:[%s4816_s0 + $0x28] sm:$0xff] }
 0x284   :  { %53 = vst [vmem:[#allocation0 + $0x28] sm:$0xff] %v3784_v8 }
 0x28d   :  { %v375_v11 = vpop.xlane.xlu0 %374 }
 0x28e   :  { %v376_v12 = vsub.f32 %v372_v9, %v375_v11 }
 0x290   :  { %3538 = vrsqrt.f32 %v376_v12 }
 0x291   :  { %v382_v14 = vpop.xlane.xlu0 %381 }
 0x292   :  { %v383_v15 = vsub.f32 %v3652_v4, %v382_v14 }
 0x29d   :  { %v3730_v17 = vpop.eup %3538 }
 0x29e   :  { %v384_v19 = vmul.f32 %v3730_v17, %v383_v15 }
 0x2a0   :  { %v387_v21 = vsel %vm386_vm9, %v384_v19, 0.0  ;;  %vm686_vm9 = vmand %vm668_vm3, %vm685_vm6 }
 0x2a1   :  { %v388_v22 = vadd.f32 %v387_v21, %v288_v54 }
 0x2a3   :  { %389 = vst [vmem:[#allocation1] sm:$0xff] %v388_v22 }
 0x2aa   :  { %v3738_v25 = vld [vmem:[#allocation1 + $0x4] ss:$0 sm:$0xff] }
 0x2ab   :  { %v473_v26 = vmul.f32 %v3738_v25, %v3738_v25  ;;  %v480_v28 = vmul.f32 %v3738_v25, %v388_v22 }
 0x2ad   :  { %474 = vadd.xlane.f32.xlu0 %v473_v26  ;;  %481 = vadd.xlane.f32.xlu1 %v480_v28 }
 0x2b1   :  { %134 = vadd.xlane.f32.xlu1 %v3647_v3  ;;  %221 = vadd.xlane.f32.xlu0 %v220_v29 }
 0x2f6   :  { %v396_v32 = vpop.xlane.xlu0 %395 }
 0x2f7   :  { %v397_v33 = vsub.f32 %v3670_v16, %v396_v32 }
 0x2f9   :  { %v398_v35 = vmul.f32 %v3730_v17, %v397_v33 }
 0x2fb   :  { %v399_v36 = vsel %vm368_vm7, %v398_v35, 0.0 }
 0x2fc   :  { %v400_v37 = vadd.f32 %v399_v36, %v300_v63 }
 0x2fe   :  { %v494_v38 = vmul.f32 %v3738_v25, %v400_v37 }
 0x300   :  { %495 = vadd.xlane.f32.xlu0 %v494_v38 }
 0x30c   :  { %v309_v39 = vpop.xlane.xlu1 %308 }
 0x30d   :  { %v310_v40 = vsub.f32 %v3692_v34, %v309_v39 }
 0x30f   :  { %v311_v41 = vmul.f32 %v3704_v51, %v310_v40 }
 0x311   :  { %v312_v42 = vsel %vm268_vm4, %v311_v41, 0.0 }
 0x312   :  { %v313_v43 = vadd.f32 %v312_v42, %v213_v7 }
 0x314   :  { %v407_v44 = vmul.f32 %v3716_v56, %v313_v43 }
 0x316   :  { %408 = vadd.xlane.f32.xlu1 %v407_v44 }
 0x336   :  { %v475_v46 = vpop.xlane.xlu0 %474  ;;  %v482_v47 = vpop.xlane.xlu1 %481 }
 0x337   :  { %v476_v48 = vsub.f32 %v472_v45, %v475_v46  ;;  %v483_v62 = vsub.f32 %v3652_v4, %v482_v47 }
 0x339   :  { %3540 = vrsqrt.f32 %v476_v48 }
 0x33a   :  { %v222_v49 = vpop.xlane.xlu0 %221  ;;  %v135_v50 = vpop.xlane.xlu1 %134 }
 0x33b   :  { %v223_v52 = vsub.f32 %v3713_v55, %v222_v49  ;;  %v136_v53 = vsub.f32 %v3748_v30, %v135_v50 }
 0x33d   :  { %v224_v54 = vmul.f32 %v3678_v27, %v223_v52  ;;  %v137_v57 = vmul.f32 %v3657_v10, %v136_v53 }
 0x33f   :  { %v225_v58 = vsel %vm168_vm1, %v224_v54, 0.0  ;;  %v3765_v59 = vsel %vm72_vm0, %v137_v57, 0.0 }
 0x340   :  { %v226_v60 = vadd.f32 %v225_v58, %v125_v24  ;;  %v233_v0 = vmul.f32 %v3661_v13, %v3765_v59 }
 0x342   :  { %v320_v61 = vmul.f32 %v3683_v31, %v226_v60 }
 0x344   :  { %321 = vadd.xlane.f32.xlu1 %v320_v61 }
 0x346   :  { %v3769_v63 = vpop.eup %3540 }
 0x347   :  { %v484_v1 = vmul.f32 %v3769_v63, %v483_v62 }
 0x348   :  { %234 = vadd.xlane.f32.xlu1 %v233_v0 }
 0x349   :  { %v487_v2 = vsel %vm486_vm12, %v484_v1, 0.0 }
 0x34a   :  { %v488_v5 = vadd.f32 %v487_v2, %v388_v22 }
 0x34c   :  { %489 = vst [vmem:[#allocation1] sm:$0xff] %v488_v5  ;;  %147 = vadd.xlane.f32.xlu1 %v3647_v3 }
 0x353   :  { %v3777_v6 = vld [vmem:[#allocation1 + $0x5] ss:$0 sm:$0xff] }
 0x354   :  { %v573_v7 = vmul.f32 %v3777_v6, %v3777_v6  ;;  %v580_v9 = vmul.f32 %v3777_v6, %v488_v5 }
 0x356   :  { %574 = vadd.xlane.f32.xlu0 %v573_v7 }
 0x35a   :  { %581 = vadd.xlane.f32.xlu0 %v580_v9 }
 0x389   :  { %v496_v11 = vpop.xlane.xlu0 %495 }
 0x38a   :  { %v497_v12 = vsub.f32 %v3670_v16, %v496_v11 }
 0x38c   :  { %v498_v14 = vmul.f32 %v3769_v63, %v497_v12 }
 0x38e   :  { %v499_v15 = vsel %vm468_vm10, %v498_v14, 0.0 }
 0x38f   :  { %v500_v18 = vadd.f32 %v499_v15, %v400_v37  ;;  %v572_v37 = vld [vmem:[#allocation0 + $0x5] ss:$0 sm:$0xff] }
 0x391   :  { %v594_v19 = vmul.f32 %v3777_v6, %v500_v18 }
 0x393   :  { %595 = vadd.xlane.f32.xlu0 %v594_v19 }
 0x39f   :  { %v409_v20 = vpop.xlane.xlu1 %408 }
 0x3a0   :  { %v410_v21 = vsub.f32 %v3692_v34, %v409_v20 }
 0x3a2   :  { %v411_v22 = vmul.f32 %v3730_v17, %v410_v21 }
 0x3a4   :  { %v412_v23 = vsel %vm368_vm7, %v411_v22, 0.0 }
 0x3a5   :  { %v413_v24 = vadd.f32 %v412_v23, %v313_v43 }
 0x3a7   :  { %v507_v26 = vmul.f32 %v3738_v25, %v413_v24 }
 0x3a9   :  { %508 = vadd.xlane.f32.xlu0 %v507_v26 }
 0x3cd   :  { %v322_v28 = vpop.xlane.xlu1 %321 }
 0x3ce   :  { %v323_v29 = vsub.f32 %v3713_v55, %v322_v28 }
 0x3d0   :  { %v324_v32 = vmul.f32 %v3704_v51, %v323_v29  ;;  %v672_v29 = vld [vmem:[#allocation0 + $0x6] ss:$0 sm:$0xff] }
 0x3d1   :  { %v235_v41 = vpop.xlane.xlu1 %234 }
 0x3d2   :  { %v325_v33 = vsel %vm268_vm4, %v324_v32, 0.0  ;;  %v236_v45 = vsub.f32 %v3748_v30, %v235_v41 }
 0x3d3   :  { %v326_v35 = vadd.f32 %v325_v33, %v226_v60 }
 0x3d4   :  { %v237_v49 = vmul.f32 %v3678_v27, %v236_v45 }
 0x3d5   :  { %v420_v36 = vmul.f32 %v3716_v56, %v326_v35  ;;  %v148_v47 = vpop.xlane.xlu1 %147 }
 0x3d6   :  { %v149_v50 = vsub.f32 %v3784_v8, %v148_v47  ;;  %v238_v52 = vsel %vm168_vm1, %v237_v49, 0.0 }
 0x3d7   :  { %421 = vadd.xlane.f32.xlu1 %v420_v36  ;;  %v239_v57 = vadd.f32 %v238_v52, %v3765_v59  ;;  %v3828_v59 = vld [vmem:[%s4816_s0 + $0x30] sm:$0xff] }
 0x3d8   :  { %v150_v53 = vmul.f32 %v3657_v10, %v149_v50  ;;  %55 = vst [vmem:[#allocation0 + $0x30] sm:$0xff] %v3828_v59 }
 0x3d9   :  { %v333_v62 = vmul.f32 %v3683_v31, %v239_v57 }
 0x3da   :  { %v151_v61 = vsel %vm72_vm0, %v150_v53, 0.0 }
 0x3db   :  { %v246_v0 = vmul.f32 %v3661_v13, %v151_v61 }
 0x3df   :  { %v575_v38 = vpop.xlane.xlu0 %574 }
 0x3e0   :  { %v576_v39 = vsub.f32 %v572_v37, %v575_v38 }
 0x3e2   :  { %3542 = vrsqrt.f32 %v576_v39 }
 0x3e3   :  { %v582_v40 = vpop.xlane.xlu0 %581 }
 0x3e4   :  { %v583_v42 = vsub.f32 %v3652_v4, %v582_v40 }
 0x3ef   :  { %v3801_v43 = vpop.eup %3542 }
 0x3f0   :  { %v584_v44 = vmul.f32 %v3801_v43, %v583_v42 }
 0x3f2   :  { %v587_v46 = vsel %vm586_vm15, %v584_v44, 0.0 }
 0x3f3   :  { %v3807_v48 = vadd.f32 %v587_v46, %v488_v5 }
 0x3f5   :  { %589 = vst [vmem:[#allocation1] sm:$0xff] %v3807_v48 }
 0x3fc   :  { %v3814_v54 = vld [vmem:[#allocation1 + $0x6] ss:$0 sm:$0xff] }
 0x3fd   :  { %v673_v58 = vmul.f32 %v3814_v54, %v3814_v54  ;;  %v680_v60 = vmul.f32 %v3814_v54, %v3807_v48 }
 0x3ff   :  { %674 = vadd.xlane.f32.xlu0 %v673_v58  ;;  %681 = vadd.xlane.f32.xlu1 %v680_v60 }
 0x403   :  { %334 = vadd.xlane.f32.xlu0 %v333_v62 }
 0x407   :  { %247 = vadd.xlane.f32.xlu0 %v246_v0 }
 0x40b   :  { %160 = vadd.xlane.f32.xlu0 %v3647_v3 }
 0x41c   :  { %v596_v1 = vpop.xlane.xlu0 %595 }
 0x41d   :  { %v597_v2 = vsub.f32 %v3670_v16, %v596_v1 }
 0x41f   :  { %v598_v5 = vmul.f32 %v3801_v43, %v597_v2 }
 0x421   :  { %v599_v7 = vsel %vm568_vm13, %v598_v5, 0.0 }
 0x422   :  { %v600_v9 = vadd.f32 %v599_v7, %v500_v18 }
 0x424   :  { %v694_v11 = vmul.f32 %v3814_v54, %v600_v9 }
 0x426   :  { %695 = vadd.xlane.f32.xlu1 %v694_v11 }
 0x432   :  { %v509_v12 = vpop.xlane.xlu0 %508 }
 0x433   :  { %v510_v3 = vsub.f32 %v3692_v34, %v509_v12 }
 0x435   :  { %v511_v14 = vmul.f32 %v3769_v63, %v510_v3 }
 0x437   :  { %v512_v15 = vsel %vm468_vm10, %v511_v14, 0.0 }
 0x438   :  { %v513_v19 = vadd.f32 %v512_v15, %v413_v24 }
 0x43a   :  { %v607_v20 = vmul.f32 %v3777_v6, %v513_v19 }
 0x43c   :  { %608 = vadd.xlane.f32.xlu1 %v607_v20 }
 0x460   :  { %v422_v21 = vpop.xlane.xlu1 %421 }
 0x461   :  { %v423_v22 = vsub.f32 %v3713_v55, %v422_v21 }
 0x463   :  { %v424_v23 = vmul.f32 %v3730_v17, %v423_v22 }
 0x465   :  { %v425_v18 = vsel %vm368_vm7, %v424_v23, 0.0 }
 0x466   :  { %v426_v26 = vadd.f32 %v425_v18, %v326_v35 }
 0x468   :  { %v520_v28 = vmul.f32 %v3738_v25, %v426_v26 }
 0x46a   :  { %521 = vadd.xlane.f32.xlu1 %v520_v28 }
 0x488   :  { %v675_v32 = vpop.xlane.xlu0 %674  ;;  %v682_v42 = vpop.xlane.xlu1 %681 }
 0x489   :  { %v676_v33 = vsub.f32 %v672_v29, %v675_v32  ;;  %v683_v50 = vsub.f32 %v3652_v4, %v682_v42  ;;  %v772_v42 = vld [vmem:[#allocation0 + $0x7] ss:$0 sm:$0xff] }
 0x48b   :  { %3544 = vrsqrt.f32 %v676_v33 }
 0x48c   :  { %v335_v36 = vpop.xlane.xlu0 %334 }
 0x48d   :  { %v336_v24 = vsub.f32 %v3748_v30, %v335_v36 }
 0x48f   :  { %v337_v37 = vmul.f32 %v3704_v51, %v336_v24 }
 0x490   :  { %v248_v38 = vpop.xlane.xlu0 %247 }
 0x491   :  { %v338_v39 = vsel %vm268_vm4, %v337_v37, 0.0  ;;  %v249_v40 = vsub.f32 %v3784_v8, %v248_v38 }
 0x492   :  { %v339_v41 = vadd.f32 %v338_v39, %v239_v57 }
 0x493   :  { %v250_v35 = vmul.f32 %v3678_v27, %v249_v40 }
 0x494   :  { %v161_v44 = vpop.xlane.xlu0 %160  ;;  %v433_v45 = vmul.f32 %v3716_v56, %v339_v41 }
 0x495   :  { %v251_v46 = vsel %vm168_vm1, %v250_v35, 0.0  ;;  %v162_v47 = vsub.f32 %v3828_v59, %v161_v44 }
 0x496   :  { %v252_v49 = vadd.f32 %v251_v46, %v151_v61  ;;  %434 = vadd.xlane.f32.xlu1 %v433_v45 }
 0x497   :  { %v163_v52 = vmul.f32 %v3657_v10, %v162_v47 }
 0x498   :  { %v3853_v53 = vpop.eup %3544  ;;  %v346_v57 = vmul.f32 %v3683_v31, %v252_v49 }
 0x499   :  { %v684_v58 = vmul.f32 %v3853_v53, %v683_v50  ;;  %v3860_v60 = vsel %vm72_vm0, %v163_v52, 0.0  ;;  %vm768_vm0 = vcmask 64568  }
 0x49a   :  { %347 = vadd.xlane.f32.xlu1 %v346_v57  ;;  %v259_v4 = vmul.f32 %v3661_v13, %v3860_v60 }
 0x49b   :  { %v687_v62 = vsel %vm686_vm9, %v684_v58, 0.0 }
 0x49c   :  { %v688_v61 = vadd.f32 %v687_v62, %v3807_v48 }
 0x49e   :  { %689 = vst [vmem:[#allocation1] sm:$0xff] %v688_v61  ;;  %260 = vadd.xlane.f32.xlu1 %v259_v4 }
 0x4a5   :  { %v3865_v10 = vld [vmem:[#allocation1 + $0x7] ss:$0 sm:$0xff] }
 0x4a6   :  { %v773_v0 = vmul.f32 %v3865_v10, %v3865_v10 }
 0x4a8   :  { %774 = vadd.xlane.f32.xlu0 %v773_v0 }
 0x4af   :  { %v696_v1 = vpop.xlane.xlu1 %695 }
 0x4b0   :  { %v697_v2 = vsub.f32 %v3670_v16, %v696_v1 }
 0x4b2   :  { %v698_v5 = vmul.f32 %v3853_v53, %v697_v2 }
 0x4b4   :  { %v699_v7 = vsel %vm668_vm3, %v698_v5, 0.0 }
 0x4b5   :  { %v700_v11 = vadd.f32 %v699_v7, %v600_v9 }
 0x4b7   :  { %v794_v48 = vmul.f32 %v3865_v10, %v700_v11 }
 0x4b9   :  { %795 = vadd.xlane.f32.xlu0 %v794_v48 }
 0x4c5   :  { %v609_v13 = vpop.xlane.xlu1 %608 }
 0x4c6   :  { %v610_v12 = vsub.f32 %v3692_v34, %v609_v13 }
 0x4c8   :  { %v611_v3 = vmul.f32 %v3801_v43, %v610_v12 }
 0x4ca   :  { %v612_v14 = vsel %vm568_vm13, %v611_v3, 0.0 }
 0x4cb   :  { %v613_v15 = vadd.f32 %v612_v14, %v513_v19 }
 0x4cd   :  { %v707_v20 = vmul.f32 %v3814_v54, %v613_v15 }
 0x4cf   :  { %708 = vadd.xlane.f32.xlu0 %v707_v20 }
 0x4f3   :  { %v522_v21 = vpop.xlane.xlu1 %521 }
 0x4f4   :  { %v523_v22 = vsub.f32 %v3713_v55, %v522_v21 }
 0x4f6   :  { %v524_v23 = vmul.f32 %v3769_v63, %v523_v22 }
 0x4f8   :  { %v525_v9 = vsel %vm468_vm10, %v524_v23, 0.0 }
 0x4f9   :  { %v526_v18 = vadd.f32 %v525_v9, %v426_v26 }
 0x4fb   :  { %v620_v28 = vmul.f32 %v3777_v6, %v526_v18 }
 0x4fd   :  { %621 = vadd.xlane.f32.xlu0 %v620_v28 }
 0x51f   :  { %v435_v29 = vpop.xlane.xlu1 %434 }
 0x520   :  { %v436_v32 = vsub.f32 %v3748_v30, %v435_v29 }
 0x522   :  { %v437_v33 = vmul.f32 %v3730_v17, %v436_v32 }
 0x523   :  { %v348_v19 = vpop.xlane.xlu1 %347 }
 0x524   :  { %v438_v36 = vsel %vm368_vm7, %v437_v33, 0.0  ;;  %v349_v24 = vsub.f32 %v3784_v8, %v348_v19 }
 0x525   :  { %v439_v37 = vadd.f32 %v438_v36, %v339_v41 }
 0x526   :  { %v350_v38 = vmul.f32 %v3704_v51, %v349_v24 }
 0x527   :  { %v533_v39 = vmul.f32 %v3738_v25, %v439_v37  ;;  %v261_v57 = vpop.xlane.xlu1 %260 }
 0x528   :  { %v351_v26 = vsel %vm268_vm4, %v350_v38, 0.0  ;;  %v262_v58 = vsub.f32 %v3828_v59, %v261_v57  ;;  %v872_v38 = vld [vmem:[#allocation0 + $0x8] ss:$0 sm:$0xff] }
 0x529   :  { %v352_v40 = vadd.f32 %v351_v26, %v252_v49  ;;  %534 = vadd.xlane.f32.xlu1 %v533_v39 }
 0x52a   :  { %v263_v62 = vmul.f32 %v3678_v27, %v262_v58 }
 0x52b   :  { %v446_v35 = vmul.f32 %v3716_v56, %v352_v40 }
 0x52c   :  { %v264_v0 = vsel %vm168_vm1, %v263_v62, 0.0  ;;  %vm868_vm1 = vcmask 72768  }
 0x52d   :  { %447 = vadd.xlane.f32.xlu1 %v446_v35  ;;  %v265_v1 = vadd.f32 %v264_v0, %v3860_v60 }
 0x531   :  { %v775_v44 = vpop.xlane.xlu0 %774 }
 0x532   :  { %v776_v45 = vsub.f32 %v772_v42, %v775_v44 }
 0x534   :  { %3546 = vrsqrt.f32 %v776_v45 }
 0x541   :  { %v3890_v50 = vpop.eup %3546 }
 0x542   :  { %v796_v46 = vpop.xlane.xlu0 %795 }
 0x543   :  { %v797_v47 = vsub.f32 %v3670_v16, %v796_v46 }
 0x545   :  { %v798_v41 = vmul.f32 %v3890_v50, %v797_v47 }
 0x547   :  { %v799_v52 = vsel %vm768_vm0, %v798_v41, 0.0 }
 0x548   :  { %v800_v49 = vadd.f32 %v799_v52, %v700_v11  ;;  %v359_v11 = vmul.f32 %v3683_v31, %v265_v1 }
 0x54a   :  { %802 = vst [vmem:[#allocation1 + $0x8] sm:$0xff] %v800_v49 }
 0x551   :  { %v3896_v61 = vld [vmem:[#allocation1 + $0x8] ss:$0 sm:$0xff] }
 0x552   :  { %v873_v4 = vmul.f32 %v3896_v61, %v3896_v61  ;;  %v882_v2 = vmul.f32 %v3896_v61, %v800_v49 }
 0x554   :  { %874 = vadd.xlane.f32.xlu0 %v873_v4 }
 0x558   :  { %v709_v5 = vpop.xlane.xlu0 %708  ;;  %883 = vadd.xlane.f32.xlu0 %v882_v2 }
 0x559   :  { %v710_v7 = vsub.f32 %v3692_v34, %v709_v5 }
 0x55b   :  { %v711_v27 = vmul.f32 %v3853_v53, %v710_v7 }
 0x55c   :  { %360 = vadd.xlane.f32.xlu0 %v359_v11 }
 0x55d   :  { %v712_v48 = vsel %vm668_vm3, %v711_v27, 0.0 }
 0x55e   :  { %v713_v13 = vadd.f32 %v712_v48, %v613_v15 }
 0x560   :  { %v807_v12 = vmul.f32 %v3865_v10, %v713_v13 }
 0x562   :  { %808 = vadd.xlane.f32.xlu1 %v807_v12 }
 0x586   :  { %v622_v3 = vpop.xlane.xlu0 %621 }
 0x587   :  { %v623_v60 = vsub.f32 %v3713_v55, %v622_v3 }
 0x589   :  { %v624_v14 = vmul.f32 %v3801_v43, %v623_v60 }
 0x58b   :  { %v625_v20 = vsel %vm568_vm13, %v624_v14, 0.0 }
 0x58c   :  { %v626_v21 = vadd.f32 %v625_v20, %v526_v18 }
 0x58e   :  { %v720_v22 = vmul.f32 %v3814_v54, %v626_v21 }
 0x590   :  { %721 = vadd.xlane.f32.xlu1 %v720_v22 }
 0x5b2   :  { %v535_v31 = vpop.xlane.xlu1 %534 }
 0x5b3   :  { %v536_v23 = vsub.f32 %v3748_v30, %v535_v31 }
 0x5b5   :  { %v537_v9 = vmul.f32 %v3769_v63, %v536_v23 }
 0x5b6   :  { %v448_v15 = vpop.xlane.xlu1 %447 }
 0x5b7   :  { %v538_v28 = vsel %vm468_vm10, %v537_v9, 0.0  ;;  %v449_v29 = vsub.f32 %v3784_v8, %v448_v15 }
 0x5b8   :  { %v539_v32 = vadd.f32 %v538_v28, %v439_v37 }
 0x5b9   :  { %v450_v33 = vmul.f32 %v3730_v17, %v449_v29 }
 0x5ba   :  { %v633_v19 = vmul.f32 %v3777_v6, %v539_v32 }
 0x5bb   :  { %v451_v18 = vsel %vm368_vm7, %v450_v33, 0.0 }
 0x5bc   :  { %v452_v36 = vadd.f32 %v451_v18, %v352_v40  ;;  %634 = vadd.xlane.f32.xlu0 %v633_v19 }
 0x5be   :  { %v546_v24 = vmul.f32 %v3738_v25, %v452_v36 }
 0x5c0   :  { %547 = vadd.xlane.f32.xlu1 %v546_v24 }
 0x5dd   :  { %v875_v39 = vpop.xlane.xlu0 %874 }
 0x5de   :  { %v876_v26 = vsub.f32 %v872_v38, %v875_v39  ;;  %v960_v38 = vld [vmem:[#allocation0 + $0x9] ss:$0 sm:$0xff] }
 0x5e0   :  { %3548 = vrsqrt.f32 %v876_v26 }
 0x5e1   :  { %v884_v35 = vpop.xlane.xlu0 %883 }
 0x5e2   :  { %v885_v45 = vsub.f32 %v3670_v16, %v884_v35 }
 0x5e5   :  { %v361_v42 = vpop.xlane.xlu0 %360 }
 0x5e6   :  { %v362_v44 = vsub.f32 %v3828_v59, %v361_v42 }
 0x5e8   :  { %v363_v46 = vmul.f32 %v3704_v51, %v362_v44 }
 0x5ea   :  { %v364_v58 = vsel %vm268_vm4, %v363_v46, 0.0  ;;  %vm956_vm4 = vcmask 80968  }
 0x5eb   :  { %v809_v37 = vpop.xlane.xlu1 %808  ;;  %v365_v16 = vadd.f32 %v364_v58, %v265_v1  ;;  %vm976_vm12 = vmand %vm956_vm4, %vm185_vm2 }
 0x5ec   :  { %v810_v47 = vsub.f32 %v3692_v34, %v809_v37 }
 0x5ed   :  { %v3924_v40 = vpop.eup %3548  ;;  %v459_v2 = vmul.f32 %v3716_v56, %v365_v16 }
 0x5ee   :  { %v886_v41 = vmul.f32 %v3924_v40, %v885_v45  ;;  %v811_v52 = vmul.f32 %v3890_v50, %v810_v47  ;;  %v3958_v45 = vld [vmem:[#allocation0 + $0x8] sm:$0xff] }
 0x5f0   :  { %v887_v57 = vsel %vm868_vm1, %v886_v41, 0.0  ;;  %v812_v62 = vsel %vm768_vm0, %v811_v52, 0.0 }
 0x5f1   :  { %v888_v4 = vadd.f32 %v887_v57, %v800_v49  ;;  %v813_v0 = vadd.f32 %v812_v62, %v713_v13 }
 0x5f3   :  { %890 = vst [vmem:[#allocation1 + $0x8] sm:$0xff] %v888_v4  ;;  %v895_v51 = vmul.f32 %v3896_v61, %v813_v0 }
 0x5f5   :  { %896 = vadd.xlane.f32.xlu1 %v895_v51 }
 0x5f9   :  { %460 = vadd.xlane.f32.xlu1 %v459_v2 }
 0x5fa   :  { %v3933_v5 = vld [vmem:[#allocation1 + $0x9] ss:$0 sm:$0xff] }
 0x5fb   :  { %v961_v7 = vmul.f32 %v3933_v5, %v3933_v5  ;;  %v970_v11 = vmul.f32 %v3933_v5, %v888_v4 }
 0x5fd   :  { %962 = vadd.xlane.f32.xlu0 %v961_v7 }
 0x601   :  { %971 = vadd.xlane.f32.xlu0 %v970_v11 }
 0x619   :  { %v722_v27 = vpop.xlane.xlu1 %721 }
 0x61a   :  { %v723_v49 = vsub.f32 %v3713_v55, %v722_v27 }
 0x61c   :  { %v724_v1 = vmul.f32 %v3853_v53, %v723_v49 }
 0x61e   :  { %v725_v48 = vsel %vm668_vm3, %v724_v1, 0.0 }
 0x61f   :  { %v726_v13 = vadd.f32 %v725_v48, %v626_v21 }
 0x621   :  { %v820_v56 = vmul.f32 %v3865_v10, %v726_v13 }
 0x623   :  { %821 = vadd.xlane.f32.xlu0 %v820_v56 }
 0x645   :  { %v635_v12 = vpop.xlane.xlu0 %634 }
 0x646   :  { %v636_v3 = vsub.f32 %v3748_v30, %v635_v12 }
 0x648   :  { %v637_v60 = vmul.f32 %v3801_v43, %v636_v3 }
 0x649   :  { %v548_v14 = vpop.xlane.xlu1 %547 }
 0x64a   :  { %v638_v20 = vsel %vm568_vm13, %v637_v60, 0.0  ;;  %v549_v22 = vsub.f32 %v3784_v8, %v548_v14 }
 0x64b   :  { %v639_v31 = vadd.f32 %v638_v20, %v539_v32  ;;  %v3983_v20 = vld [vmem:[#allocation0 + $0x10] sm:$0xff] }
 0x64c   :  { %v550_v23 = vmul.f32 %v3769_v63, %v549_v22 }
 0x64d   :  { %v733_v9 = vmul.f32 %v3814_v54, %v639_v31 }
 0x64e   :  { %v551_v21 = vsel %vm468_vm10, %v550_v23, 0.0 }
 0x64f   :  { %v552_v15 = vadd.f32 %v551_v21, %v452_v36  ;;  %734 = vadd.xlane.f32.xlu1 %v733_v9 }
 0x651   :  { %v646_v28 = vmul.f32 %v3777_v6, %v552_v15 }
 0x653   :  { %647 = vadd.xlane.f32.xlu0 %v646_v28 }
 0x67e   :  { %v897_v29 = vpop.xlane.xlu1 %896 }
 0x67f   :  { %v898_v33 = vsub.f32 %v3692_v34, %v897_v29 }
 0x681   :  { %v899_v19 = vmul.f32 %v3924_v40, %v898_v33 }
 0x682   :  { %v461_v18 = vpop.xlane.xlu1 %460 }
 0x683   :  { %v900_v24 = vsel %vm868_vm1, %v899_v19, 0.0  ;;  %v462_v32 = vsub.f32 %v3828_v59, %v461_v18 }
 0x684   :  { %v901_v39 = vadd.f32 %v900_v24, %v813_v0 }
 0x685   :  { %v463_v26 = vmul.f32 %v3730_v17, %v462_v32  ;;  %v1050_v32 = vld [vmem:[#allocation0 + $0xa] ss:$0 sm:$0xff] }
 0x686   :  { %v963_v35 = vpop.xlane.xlu0 %962  ;;  %v985_v36 = vmul.f32 %v3933_v5, %v901_v39 }
 0x687   :  { %v964_v42 = vsub.f32 %v960_v38, %v963_v35  ;;  %v464_v44 = vsel %vm368_vm7, %v463_v26, 0.0  ;;  %vm1046_vm7 = vcmask 89168  }
 0x688   :  { %v465_v37 = vadd.f32 %v464_v44, %v365_v16  ;;  %986 = vadd.xlane.f32.xlu1 %v985_v36  ;;  %v3993_v36 = vld [vmem:[#allocation0 + $0x18] sm:$0xff] }
 0x689   :  { %3550 = vrsqrt.f32 %v964_v42 }
 0x68a   :  { %v559_v34 = vmul.f32 %v3738_v25, %v465_v37  ;;  %v972_v46 = vpop.xlane.xlu0 %971 }
 0x68b   :  { %v973_v47 = vsub.f32 %v3958_v45, %v972_v46 }
 0x68c   :  { %560 = vadd.xlane.f32.xlu1 %v559_v34 }
 0x696   :  { %v3961_v41 = vpop.eup %3550 }
 0x697   :  { %v974_v17 = vmul.f32 %v3961_v41, %v973_v47 }
 0x699   :  { %v977_v52 = vsel %vm976_vm12, %v974_v17, 0.0  ;;  %vm1316_vm12 = vcmask 113768  }
 0x69a   :  { %v978_v57 = vadd.f32 %v977_v52, %v888_v4 }
 0x69c   :  { %980 = vst [vmem:[#allocation1 + $0x8] sm:$0xff] %v978_v57 }
 0x6a3   :  { %v3966_v58 = vld [vmem:[#allocation1 + $0xa] ss:$0 sm:$0xff] }
 0x6a4   :  { %v1051_v25 = vmul.f32 %v3966_v58, %v3966_v58  ;;  %v1060_v62 = vmul.f32 %v3966_v58, %v978_v57 }
 0x6a6   :  { %1052 = vadd.xlane.f32.xlu0 %v1051_v25 }
 0x6aa   :  { %1061 = vadd.xlane.f32.xlu0 %v1060_v62 }
 0x6ac   :  { %v822_v0 = vpop.xlane.xlu0 %821 }
 0x6ad   :  { %v823_v16 = vsub.f32 %v3713_v55, %v822_v0 }
 0x6af   :  { %v824_v51 = vmul.f32 %v3890_v50, %v823_v16 }
 0x6b1   :  { %v825_v2 = vsel %vm768_vm0, %v824_v51, 0.0 }
 0x6b2   :  { %v826_v7 = vadd.f32 %v825_v2, %v726_v13 }
 0x6b4   :  { %v908_v4 = vmul.f32 %v3896_v61, %v826_v7 }
 0x6b6   :  { %909 = vadd.xlane.f32.xlu1 %v908_v4 }
 0x6d8   :  { %v735_v11 = vpop.xlane.xlu1 %734 }
 0x6d9   :  { %v736_v27 = vsub.f32 %v3748_v30, %v735_v11 }
 0x6db   :  { %v737_v49 = vmul.f32 %v3853_v53, %v736_v27 }
 0x6dc   :  { %v648_v1 = vpop.xlane.xlu0 %647 }
 0x6dd   :  { %v738_v48 = vsel %vm668_vm3, %v737_v49, 0.0  ;;  %v649_v56 = vsub.f32 %v3784_v8, %v648_v1 }
 0x6de   :  { %v739_v12 = vadd.f32 %v738_v48, %v639_v31 }
 0x6df   :  { %v650_v55 = vmul.f32 %v3801_v43, %v649_v56 }
 0x6e0   :  { %v833_v3 = vmul.f32 %v3865_v10, %v739_v12 }
 0x6e1   :  { %v651_v13 = vsel %vm568_vm13, %v650_v55, 0.0 }
 0x6e2   :  { %v652_v60 = vadd.f32 %v651_v13, %v552_v15  ;;  %834 = vadd.xlane.f32.xlu0 %v833_v3 }
 0x6e4   :  { %v746_v14 = vmul.f32 %v3814_v54, %v652_v60 }
 0x6e6   :  { %747 = vadd.xlane.f32.xlu1 %v746_v14 }
 0x711   :  { %v987_v22 = vpop.xlane.xlu1 %986 }
 0x712   :  { %v988_v23 = vsub.f32 %v3983_v20, %v987_v22 }
 0x714   :  { %v989_v9 = vmul.f32 %v3961_v41, %v988_v23 }
 0x715   :  { %v561_v21 = vpop.xlane.xlu1 %560 }
 0x716   :  { %v990_v31 = vsel %vm956_vm4, %v989_v9, 0.0  ;;  %v562_v28 = vsub.f32 %v3828_v59, %v561_v21 }
 0x717   :  { %v991_v29 = vadd.f32 %v990_v31, %v901_v39 }
 0x718   :  { %v563_v33 = vmul.f32 %v3769_v63, %v562_v28 }
 0x719   :  { %v1075_v15 = vmul.f32 %v3966_v58, %v991_v29 }
 0x71a   :  { %v564_v19 = vsel %vm468_vm10, %v563_v33, 0.0  ;;  %vm1066_vm10 = vmand %vm1046_vm7, %vm285_vm5 }
 0x71b   :  { %v565_v18 = vadd.f32 %v564_v19, %v465_v37  ;;  %1076 = vadd.xlane.f32.xlu0 %v1075_v15 }
 0x71d   :  { %v659_v24 = vmul.f32 %v3777_v6, %v565_v18 }
 0x71f   :  { %660 = vadd.xlane.f32.xlu1 %v659_v24  ;;  %v1140_v24 = vld [vmem:[#allocation0 + $0xb] ss:$0 sm:$0xff] }
 0x72f   :  { %v1053_v38 = vpop.xlane.xlu0 %1052 }
 0x730   :  { %v1054_v26 = vsub.f32 %v1050_v32, %v1053_v38 }
 0x732   :  { %3552 = vrsqrt.f32 %v1054_v26 }
 0x733   :  { %v1062_v35 = vpop.xlane.xlu0 %1061 }
 0x734   :  { %v1063_v63 = vsub.f32 %v3958_v45, %v1062_v35 }
 0x73f   :  { %v910_v39 = vpop.xlane.xlu1 %909  ;;  %v3997_v44 = vpop.eup %3552 }
 0x740   :  { %v911_v42 = vsub.f32 %v3993_v36, %v910_v39  ;;  %v1064_v6 = vmul.f32 %v3997_v44, %v1063_v63 }
 0x742   :  { %v912_v37 = vmul.f32 %v3924_v40, %v911_v42  ;;  %v1067_v34 = vsel %vm1066_vm10, %v1064_v6, 0.0  ;;  %vm1336_vm10 = vmand %vm1316_vm12, %vm585_vm14 }
 0x743   :  { %v1068_v47 = vadd.f32 %v1067_v34, %v978_v57  ;;  %v4041_v34 = vld [vmem:[#allocation0 + $0x20] sm:$0xff] }
 0x744   :  { %v913_v46 = vsel %vm868_vm1, %v912_v37, 0.0 }
 0x745   :  { %v914_v17 = vadd.f32 %v913_v46, %v826_v7  ;;  %1070 = vst [vmem:[#allocation1 + $0x8] sm:$0xff] %v1068_v47 }
 0x747   :  { %v998_v52 = vmul.f32 %v3933_v5, %v914_v17 }
 0x749   :  { %999 = vadd.xlane.f32.xlu1 %v998_v52 }
 0x74c   :  { %v4005_v25 = vld [vmem:[#allocation1 + $0xb] ss:$0 sm:$0xff] }
 0x74d   :  { %v1141_v62 = vmul.f32 %v4005_v25, %v4005_v25  ;;  %v1150_v0 = vmul.f32 %v4005_v25, %v1068_v47 }
 0x74f   :  { %1142 = vadd.xlane.f32.xlu0 %v1141_v62 }
 0x753   :  { %1151 = vadd.xlane.f32.xlu0 %v1150_v0 }
 0x76b   :  { %v835_v16 = vpop.xlane.xlu0 %834 }
 0x76c   :  { %v836_v51 = vsub.f32 %v3748_v30, %v835_v16 }
 0x76e   :  { %v837_v2 = vmul.f32 %v3890_v50, %v836_v51 }
 0x76f   :  { %v748_v57 = vpop.xlane.xlu1 %747 }
 0x770   :  { %v838_v7 = vsel %vm768_vm0, %v837_v2, 0.0  ;;  %v749_v4 = vsub.f32 %v3784_v8, %v748_v57 }
 0x771   :  { %v839_v11 = vadd.f32 %v838_v7, %v739_v12 }
 0x772   :  { %v750_v27 = vmul.f32 %v3853_v53, %v749_v4 }
 0x773   :  { %v921_v49 = vmul.f32 %v3896_v61, %v839_v11 }
 0x774   :  { %v751_v1 = vsel %vm668_vm3, %v750_v27, 0.0 }
 0x775   :  { %v752_v48 = vadd.f32 %v751_v1, %v652_v60  ;;  %922 = vadd.xlane.f32.xlu1 %v921_v49 }
 0x777   :  { %v846_v56 = vmul.f32 %v3865_v10, %v752_v48 }
 0x779   :  { %847 = vadd.xlane.f32.xlu0 %v846_v56 }
 0x7a4   :  { %v1077_v30 = vpop.xlane.xlu0 %1076 }
 0x7a5   :  { %v1078_v55 = vsub.f32 %v3983_v20, %v1077_v30 }
 0x7a7   :  { %v1079_v3 = vmul.f32 %v3997_v44, %v1078_v55 }
 0x7a8   :  { %v661_v13 = vpop.xlane.xlu1 %660 }
 0x7a9   :  { %v1080_v14 = vsel %vm1046_vm7, %v1079_v3, 0.0  ;;  %v662_v12 = vsub.f32 %v3828_v59, %v661_v13 }
 0x7aa   :  { %v1081_v22 = vadd.f32 %v1080_v14, %v991_v29 }
 0x7ab   :  { %v663_v23 = vmul.f32 %v3801_v43, %v662_v12 }
 0x7ac   :  { %v1165_v9 = vmul.f32 %v4005_v25, %v1081_v22 }
 0x7ad   :  { %v664_v60 = vsel %vm568_vm13, %v663_v23, 0.0  ;;  %vm1136_vm13 = vcmask 97368  }
 0x7ae   :  { %v665_v21 = vadd.f32 %v664_v60, %v565_v18  ;;  %1166 = vadd.xlane.f32.xlu1 %v1165_v9  ;;  %vm1156_vm15 = vmand %vm1136_vm13, %vm385_vm8 }
 0x7b0   :  { %v759_v31 = vmul.f32 %v3814_v54, %v665_v21 }
 0x7b2   :  { %760 = vadd.xlane.f32.xlu0 %v759_v31 }
 0x7d2   :  { %v1000_v28 = vpop.xlane.xlu1 %999 }
 0x7d3   :  { %v1001_v33 = vsub.f32 %v3993_v36, %v1000_v28 }
 0x7d5   :  { %v1002_v15 = vmul.f32 %v3961_v41, %v1001_v33 }
 0x7d7   :  { %v1003_v19 = vsel %vm956_vm4, %v1002_v15, 0.0 }
 0x7d8   :  { %v1004_v29 = vadd.f32 %v1003_v19, %v914_v17  ;;  %v1143_v32 = vpop.xlane.xlu0 %1142 }
 0x7d9   :  { %v1144_v38 = vsub.f32 %v1140_v24, %v1143_v32 }
 0x7da   :  { %v1088_v43 = vmul.f32 %v3966_v58, %v1004_v29 }
 0x7db   :  { %3554 = vrsqrt.f32 %v1144_v38 }
 0x7dc   :  { %1089 = vadd.xlane.f32.xlu1 %v1088_v43  ;;  %v1152_v18 = vpop.xlane.xlu0 %1151 }
 0x7dd   :  { %v1153_v54 = vsub.f32 %v3958_v45, %v1152_v18 }
 0x7e8   :  { %v4031_v26 = vpop.eup %3554 }
 0x7e9   :  { %v1154_v35 = vmul.f32 %v4031_v26, %v1153_v54 }
 0x7eb   :  { %v1157_v39 = vsel %vm1156_vm15, %v1154_v35, 0.0 }
 0x7ec   :  { %v1158_v63 = vadd.f32 %v1157_v39, %v1068_v47 }
 0x7ee   :  { %1160 = vst [vmem:[#allocation1 + $0x8] sm:$0xff] %v1158_v63 }
 0x7f5   :  { %v4036_v42 = vld [vmem:[#allocation1 + $0xc] ss:$0 sm:$0xff] }
 0x7f6   :  { %v1231_v6 = vmul.f32 %v4036_v42, %v4036_v42  ;;  %v1240_v37 = vmul.f32 %v4036_v42, %v1158_v63 }
 0x7f8   :  { %1232 = vadd.xlane.f32.xlu0 %v1231_v6  ;;  %1241 = vadd.xlane.f32.xlu1 %v1240_v37 }
 0x7fe   :  { %v923_v46 = vpop.xlane.xlu1 %922 }
 0x7ff   :  { %v924_v17 = vsub.f32 %v4041_v34, %v923_v46 }
 0x801   :  { %v925_v52 = vmul.f32 %v3924_v40, %v924_v17 }
 0x802   :  { %v848_v62 = vpop.xlane.xlu0 %847 }
 0x803   :  { %v926_v47 = vsel %vm868_vm1, %v925_v52, 0.0  ;;  %v849_v0 = vsub.f32 %v3784_v8, %v848_v62 }
 0x804   :  { %v927_v16 = vadd.f32 %v926_v47, %v839_v11 }
 0x805   :  { %v850_v51 = vmul.f32 %v3890_v50, %v849_v0 }
 0x806   :  { %v1011_v2 = vmul.f32 %v3933_v5, %v927_v16 }
 0x807   :  { %v851_v57 = vsel %vm768_vm0, %v850_v51, 0.0 }
 0x808   :  { %v852_v7 = vadd.f32 %v851_v57, %v752_v48  ;;  %1012 = vadd.xlane.f32.xlu0 %v1011_v2 }
 0x80a   :  { %v934_v4 = vmul.f32 %v3896_v61, %v852_v7 }
 0x80c   :  { %935 = vadd.xlane.f32.xlu1 %v934_v4 }
 0x837   :  { %v1167_v27 = vpop.xlane.xlu1 %1166 }
 0x838   :  { %v1168_v49 = vsub.f32 %v3983_v20, %v1167_v27 }
 0x83a   :  { %v1169_v1 = vmul.f32 %v4031_v26, %v1168_v49 }
 0x83b   :  { %v761_v56 = vpop.xlane.xlu0 %760 }
 0x83c   :  { %v1170_v8 = vsel %vm1136_vm13, %v1169_v1, 0.0  ;;  %v762_v11 = vsub.f32 %v3828_v59, %v761_v56 }
 0x83d   :  { %v1171_v30 = vadd.f32 %v1170_v8, %v1081_v22 }
 0x83e   :  { %v763_v55 = vmul.f32 %v3853_v53, %v762_v11  ;;  %v1230_v53 = vld [vmem:[#allocation0 + $0xc] ss:$0 sm:$0xff] }
 0x83f   :  { %v1255_v3 = vmul.f32 %v4036_v42, %v1171_v30 }
 0x840   :  { %v764_v48 = vsel %vm668_vm3, %v763_v55, 0.0  ;;  %vm1226_vm3 = vcmask 105568  }
 0x841   :  { %v765_v13 = vadd.f32 %v764_v48, %v665_v21  ;;  %1256 = vadd.xlane.f32.xlu0 %v1255_v3  ;;  %vm1246_vm9 = vmand %vm1226_vm3, %vm485_vm11 }
 0x843   :  { %v859_v14 = vmul.f32 %v3865_v10, %v765_v13 }
 0x845   :  { %860 = vadd.xlane.f32.xlu1 %v859_v14 }
 0x865   :  { %v1090_v12 = vpop.xlane.xlu1 %1089 }
 0x866   :  { %v1091_v23 = vsub.f32 %v3993_v36, %v1090_v12 }
 0x868   :  { %v1092_v9 = vmul.f32 %v3997_v44, %v1091_v23 }
 0x86a   :  { %v1093_v60 = vsel %vm1046_vm7, %v1092_v9, 0.0 }
 0x86b   :  { %v1094_v31 = vadd.f32 %v1093_v60, %v1004_v29  ;;  %v4069_v29 = vld [vmem:[#allocation0 + $0x28] sm:$0xff] }
 0x86c   :  { %v1320_v60 = vld [vmem:[#allocation0 + $0xd] ss:$0 sm:$0xff] }
 0x86d   :  { %v1178_v22 = vmul.f32 %v4005_v25, %v1094_v31 }
 0x86f   :  { %1179 = vadd.xlane.f32.xlu0 %v1178_v22 }
 0x881   :  { %v1233_v28 = vpop.xlane.xlu0 %1232  ;;  %v1242_v21 = vpop.xlane.xlu1 %1241 }
 0x882   :  { %v1234_v33 = vsub.f32 %v1230_v53, %v1233_v28  ;;  %v1243_v10 = vsub.f32 %v3958_v45, %v1242_v21 }
 0x884   :  { %3556 = vrsqrt.f32 %v1234_v33 }
 0x891   :  { %v1013_v15 = vpop.xlane.xlu0 %1012  ;;  %v4065_v24 = vpop.eup %3556 }
 0x892   :  { %v1014_v19 = vsub.f32 %v4041_v34, %v1013_v15  ;;  %v1244_v32 = vmul.f32 %v4065_v24, %v1243_v10 }
 0x894   :  { %v1015_v43 = vmul.f32 %v3961_v41, %v1014_v19  ;;  %v1247_v18 = vsel %vm1246_vm9, %v1244_v32, 0.0  ;;  %vm1738_vm9 = vcmask 154768  }
 0x895   :  { %v936_v38 = vpop.xlane.xlu1 %935  ;;  %v1248_v39 = vadd.f32 %v1247_v18, %v1158_v63 }
 0x896   :  { %v1016_v54 = vsel %vm956_vm4, %v1015_v43, 0.0  ;;  %v937_v35 = vsub.f32 %v4069_v29, %v936_v38 }
 0x897   :  { %v1017_v6 = vadd.f32 %v1016_v54, %v927_v16  ;;  %1250 = vst [vmem:[#allocation1 + $0x8] sm:$0xff] %v1248_v39 }
 0x898   :  { %v938_v37 = vmul.f32 %v3924_v40, %v937_v35 }
 0x899   :  { %v1101_v46 = vmul.f32 %v3966_v58, %v1017_v6 }
 0x89a   :  { %v939_v17 = vsel %vm868_vm1, %v938_v37, 0.0 }
 0x89b   :  { %v940_v52 = vadd.f32 %v939_v17, %v852_v7  ;;  %1102 = vadd.xlane.f32.xlu0 %v1101_v46 }
 0x89d   :  { %v1024_v62 = vmul.f32 %v3933_v5, %v940_v52 }
 0x89e   :  { %v4079_v47 = vld [vmem:[#allocation1 + $0xd] ss:$0 sm:$0xff] }
 0x89f   :  { %1025 = vadd.xlane.f32.xlu0 %v1024_v62  ;;  %v1321_v0 = vmul.f32 %v4079_v47, %v4079_v47  ;;  %v1330_v63 = vmul.f32 %v4079_v47, %v1248_v39  ;;  %v4116_v62 = vld [vmem:[#allocation0 + $0x30] sm:$0xff] }
 0x8a1   :  { %1322 = vadd.xlane.f32.xlu1 %v1321_v0 }
 0x8a5   :  { %1331 = vadd.xlane.f32.xlu1 %v1330_v63 }
 0x8ca   :  { %v1257_v16 = vpop.xlane.xlu0 %1256 }
 0x8cb   :  { %v1258_v51 = vsub.f32 %v3983_v20, %v1257_v16 }
 0x8cd   :  { %v1259_v2 = vmul.f32 %v4065_v24, %v1258_v51 }
 0x8ce   :  { %v861_v57 = vpop.xlane.xlu1 %860 }
 0x8cf   :  { %v1260_v7 = vsel %vm1226_vm3, %v1259_v2, 0.0  ;;  %v862_v4 = vsub.f32 %v3828_v59, %v861_v57 }
 0x8d0   :  { %v1261_v27 = vadd.f32 %v1260_v7, %v1171_v30 }
 0x8d1   :  { %v863_v49 = vmul.f32 %v3890_v50, %v862_v4 }
 0x8d2   :  { %v1345_v1 = vmul.f32 %v4079_v47, %v1261_v27 }
 0x8d3   :  { %v864_v56 = vsel %vm768_vm0, %v863_v49, 0.0 }
 0x8d4   :  { %v865_v8 = vadd.f32 %v864_v56, %v765_v13  ;;  %1346 = vadd.xlane.f32.xlu1 %v1345_v1 }
 0x8d6   :  { %v947_v11 = vmul.f32 %v3896_v61, %v865_v8 }
 0x8d8   :  { %948 = vadd.xlane.f32.xlu0 %v947_v11 }
 0x8f8   :  { %v1180_v55 = vpop.xlane.xlu0 %1179 }
 0x8f9   :  { %v1181_v3 = vsub.f32 %v3993_v36, %v1180_v55 }
 0x8fb   :  { %v1182_v48 = vmul.f32 %v4031_v26, %v1181_v3 }
 0x8fd   :  { %v1183_v14 = vsel %vm1136_vm13, %v1182_v48, 0.0 }
 0x8fe   :  { %v1184_v59 = vadd.f32 %v1183_v14, %v1094_v31 }
 0x900   :  { %v1268_v30 = vmul.f32 %v4036_v42, %v1184_v59 }
 0x902   :  { %1269 = vadd.xlane.f32.xlu1 %v1268_v30 }
 0x924   :  { %v1103_v12 = vpop.xlane.xlu0 %1102 }
 0x925   :  { %v1104_v23 = vsub.f32 %v4041_v34, %v1103_v12  ;;  %v1410_v12 = vld [vmem:[#allocation0 + $0xe] ss:$0 sm:$0xff] }
 0x927   :  { %v1105_v13 = vmul.f32 %v3997_v44, %v1104_v23 }
 0x928   :  { %v1026_v15 = vpop.xlane.xlu0 %1025 }
 0x929   :  { %v1106_v9 = vsel %vm1046_vm7, %v1105_v13, 0.0  ;;  %v1027_v19 = vsub.f32 %v4069_v29, %v1026_v15 }
 0x92a   :  { %v1107_v61 = vadd.f32 %v1106_v9, %v1017_v6  ;;  %v1323_v22 = vpop.xlane.xlu1 %1322 }
 0x92b   :  { %v1324_v28 = vsub.f32 %v1320_v60, %v1323_v22  ;;  %v1028_v38 = vmul.f32 %v3961_v41, %v1027_v19 }
 0x92c   :  { %v1191_v53 = vmul.f32 %v4005_v25, %v1107_v61 }
 0x92d   :  { %3558 = vrsqrt.f32 %v1324_v28  ;;  %v1029_v18 = vsel %vm956_vm4, %v1028_v38, 0.0 }
 0x92e   :  { %1192 = vadd.xlane.f32.xlu0 %v1191_v53  ;;  %v1332_v33 = vpop.xlane.xlu1 %1331  ;;  %v1030_v35 = vadd.f32 %v1029_v18, %v940_v52 }
 0x92f   :  { %v1333_v31 = vsub.f32 %v3958_v45, %v1332_v33 }
 0x930   :  { %v1114_v46 = vmul.f32 %v3966_v58, %v1030_v35 }
 0x93a   :  { %v4101_v21 = vpop.eup %3558 }
 0x93b   :  { %v1334_v10 = vmul.f32 %v4101_v21, %v1333_v31 }
 0x93d   :  { %v1337_v32 = vsel %vm1336_vm10, %v1334_v10, 0.0  ;;  %vm1815_vm10 = vcmask 162968  }
 0x93e   :  { %v1338_v43 = vadd.f32 %v1337_v32, %v1248_v39 }
 0x940   :  { %1340 = vst [vmem:[#allocation1 + $0x8] sm:$0xff] %v1338_v43 }
 0x947   :  { %v4109_v54 = vld [vmem:[#allocation1 + $0xe] ss:$0 sm:$0xff] }
 0x948   :  { %v1420_v6 = vmul.f32 %v4109_v54, %v1338_v43  ;;  %v1411_v37 = vmul.f32 %v4109_v54, %v4109_v54 }
 0x94a   :  { %1421 = vadd.xlane.f32.xlu0 %v1420_v6  ;;  %1412 = vadd.xlane.f32.xlu1 %v1411_v37 }
 0x94e   :  { %1115 = vadd.xlane.f32.xlu1 %v1114_v46 }
 0x95d   :  { %v1347_v17 = vpop.xlane.xlu1 %1346 }
 0x95e   :  { %v1348_v39 = vsub.f32 %v3983_v20, %v1347_v17 }
 0x960   :  { %v1349_v0 = vmul.f32 %v4101_v21, %v1348_v39 }
 0x961   :  { %v949_v63 = vpop.xlane.xlu0 %948 }
 0x962   :  { %v1350_v52 = vsel %vm1316_vm12, %v1349_v0, 0.0  ;;  %v950_v16 = vsub.f32 %v4116_v62, %v949_v63 }
 0x963   :  { %v1351_v51 = vadd.f32 %v1350_v52, %v1261_v27 }
 0x964   :  { %v951_v2 = vmul.f32 %v3924_v40, %v950_v16 }
 0x965   :  { %v1435_v57 = vmul.f32 %v4109_v54, %v1351_v51 }
 0x966   :  { %v952_v7 = vsel %vm868_vm1, %v951_v2, 0.0  ;;  %vm1406_vm1 = vcmask 121968  }
 0x967   :  { %v953_v4 = vadd.f32 %v952_v7, %v865_v8  ;;  %1436 = vadd.xlane.f32.xlu0 %v1435_v57  ;;  %vm1426_vm15 = vmand %vm1406_vm1, %vm685_vm6 }
 0x969   :  { %v1037_v49 = vmul.f32 %v3933_v5, %v953_v4 }
 0x96b   :  { %1038 = vadd.xlane.f32.xlu1 %v1037_v49 }
 0x98b   :  { %v1270_v1 = vpop.xlane.xlu1 %1269 }
 0x98c   :  { %v1271_v56 = vsub.f32 %v3993_v36, %v1270_v1 }
 0x98e   :  { %v1272_v11 = vmul.f32 %v4065_v24, %v1271_v56 }
 0x990   :  { %v1273_v55 = vsel %vm1226_vm3, %v1272_v11, 0.0 }
 0x991   :  { %v1274_v3 = vadd.f32 %v1273_v55, %v1184_v59 }
 0x993   :  { %v1358_v27 = vmul.f32 %v4079_v47, %v1274_v3 }
 0x995   :  { %1359 = vadd.xlane.f32.xlu0 %v1358_v27 }
 0x9b7   :  { %v1193_v40 = vpop.xlane.xlu0 %1192 }
 0x9b8   :  { %v1194_v48 = vsub.f32 %v4041_v34, %v1193_v40 }
 0x9ba   :  { %v1195_v8 = vmul.f32 %v4031_v26, %v1194_v48 }
 0x9bc   :  { %v1196_v14 = vsel %vm1136_vm13, %v1195_v8, 0.0 }
 0x9bd   :  { %v1197_v5 = vadd.f32 %v1196_v14, %v1107_v61  ;;  %v1500_v14 = vld [vmem:[#allocation0 + $0xf] ss:$0 sm:$0xff] }
 0x9bf   :  { %v1281_v30 = vmul.f32 %v4036_v42, %v1197_v5 }
 0x9c1   :  { %1282 = vadd.xlane.f32.xlu1 %v1281_v30 }
 0x9d3   :  { %v1413_v23 = vpop.xlane.xlu1 %1412  ;;  %v1422_v28 = vpop.xlane.xlu0 %1421 }
 0x9d4   :  { %v1414_v13 = vsub.f32 %v1410_v12, %v1413_v23  ;;  %v1423_v61 = vsub.f32 %v3958_v45, %v1422_v28 }
 0x9d6   :  { %3560 = vrsqrt.f32 %v1414_v13 }
 0x9d7   :  { %v1116_v9 = vpop.xlane.xlu1 %1115 }
 0x9d8   :  { %v1117_v59 = vsub.f32 %v4069_v29, %v1116_v9 }
 0x9da   :  { %v1118_v60 = vmul.f32 %v3997_v44, %v1117_v59 }
 0x9dc   :  { %v1119_v22 = vsel %vm1046_vm7, %v1118_v60, 0.0 }
 0x9dd   :  { %v1120_v53 = vadd.f32 %v1119_v22, %v1030_v35 }
 0x9df   :  { %v1204_v33 = vmul.f32 %v4005_v25, %v1120_v53 }
 0x9e1   :  { %1205 = vadd.xlane.f32.xlu1 %v1204_v33 }
 0x9e3   :  { %v4138_v31 = vpop.eup %3560 }
 0x9e4   :  { %v1424_v15 = vmul.f32 %v4138_v31, %v1423_v61 }
 0x9e6   :  { %v1427_v10 = vsel %vm1426_vm15, %v1424_v15, 0.0  ;;  %vm1892_vm15 = vcmask 171168  }
 0x9e7   :  { %v1428_v19 = vadd.f32 %v1427_v10, %v1338_v43 }
 0x9e9   :  { %1430 = vst [vmem:[#allocation1 + $0x8] sm:$0xff] %v1428_v19 }
 0x9f0   :  { %v4143_v32 = vld [vmem:[#allocation1 + $0xf] ss:$0 sm:$0xff]  ;;  %v1437_v38 = vpop.xlane.xlu0 %1436 }
 0x9f1   :  { %v1501_v18 = vmul.f32 %v4143_v32, %v4143_v32  ;;  %v1438_v35 = vsub.f32 %v3983_v20, %v1437_v38 }
 0x9f3   :  { %1502 = vadd.xlane.f32.xlu0 %v1501_v18  ;;  %v1439_v45 = vmul.f32 %v4138_v31, %v1438_v35 }
 0x9f4   :  { %v1039_v6 = vpop.xlane.xlu1 %1038 }
 0x9f5   :  { %v1440_v37 = vsel %vm1406_vm1, %v1439_v45, 0.0  ;;  %v1040_v46 = vsub.f32 %v4116_v62, %v1039_v6 }
 0x9f6   :  { %v1441_v17 = vadd.f32 %v1440_v37, %v1351_v51 }
 0x9f7   :  { %v1041_v43 = vmul.f32 %v3961_v41, %v1040_v46 }
 0x9f8   :  { %v1525_v39 = vmul.f32 %v4143_v32, %v1441_v17 }
 0x9f9   :  { %v1042_v0 = vsel %vm956_vm4, %v1041_v43, 0.0  ;;  %vm1496_vm4 = vcmask 130168  }
 0x9fa   :  { %v1043_v63 = vadd.f32 %v1042_v0, %v953_v4  ;;  %1526 = vadd.xlane.f32.xlu0 %v1525_v39 }
 0x9fc   :  { %v1127_v52 = vmul.f32 %v3966_v58, %v1043_v63 }
 0x9fe   :  { %1128 = vadd.xlane.f32.xlu1 %v1127_v52 }
 0xa1e   :  { %v1360_v16 = vpop.xlane.xlu0 %1359 }
 0xa1f   :  { %v1361_v2 = vsub.f32 %v3993_v36, %v1360_v16 }
 0xa21   :  { %v1362_v57 = vmul.f32 %v4101_v21, %v1361_v2 }
 0xa23   :  { %v1363_v7 = vsel %vm1316_vm12, %v1362_v57, 0.0 }
 0xa24   :  { %v1364_v49 = vadd.f32 %v1363_v7, %v1274_v3 }
 0xa26   :  { %v1448_v51 = vmul.f32 %v4109_v54, %v1364_v49 }
 0xa28   :  { %1449 = vadd.xlane.f32.xlu0 %v1448_v51 }
 0xa4a   :  { %v1283_v41 = vpop.xlane.xlu1 %1282 }
 0xa4b   :  { %v1284_v1 = vsub.f32 %v4041_v34, %v1283_v41 }
 0xa4d   :  { %v1285_v4 = vmul.f32 %v4065_v24, %v1284_v1 }
 0xa4f   :  { %v1286_v56 = vsel %vm1226_vm3, %v1285_v4, 0.0 }
 0xa50   :  { %v1287_v58 = vadd.f32 %v1286_v56, %v1197_v5 }
 0xa52   :  { %v1371_v11 = vmul.f32 %v4079_v47, %v1287_v58 }
 0xa54   :  { %1372 = vadd.xlane.f32.xlu1 %v1371_v11 }
 0xa6a   :  { %v1206_v55 = vpop.xlane.xlu1 %1205 }
 0xa6b   :  { %v1207_v27 = vsub.f32 %v4069_v29, %v1206_v55 }
 0xa6d   :  { %v1208_v40 = vmul.f32 %v4031_v26, %v1207_v27 }
 0xa6f   :  { %v1209_v3 = vsel %vm1136_vm13, %v1208_v40, 0.0 }
 0xa70   :  { %v1210_v48 = vadd.f32 %v1209_v3, %v1120_v53 }
 0xa72   :  { %v1294_v8 = vmul.f32 %v4036_v42, %v1210_v48 }
 0xa74   :  { %1295 = vadd.xlane.f32.xlu0 %v1294_v8 }
 0xa7c   :  { %v1503_v30 = vpop.xlane.xlu0 %1502 }
 0xa7d   :  { %v1504_v12 = vsub.f32 %v1500_v14, %v1503_v30 }
 0xa7f   :  { %3562 = vrsqrt.f32 %v1504_v12 }
 0xa83   :  { %v1527_v5 = vpop.xlane.xlu0 %1526 }
 0xa84   :  { %v1528_v59 = vsub.f32 %v3983_v20, %v1527_v5 }
 0xa87   :  { %v1129_v23 = vpop.xlane.xlu1 %1128 }
 0xa88   :  { %v1130_v13 = vsub.f32 %v4116_v62, %v1129_v23 }
 0xa8a   :  { %v1131_v9 = vmul.f32 %v3997_v44, %v1130_v13 }
 0xa8c   :  { %v4170_v60 = vpop.eup %3562  ;;  %v1132_v22 = vsel %vm1046_vm7, %v1131_v9, 0.0  ;;  %vm1586_vm7 = vcmask 138368  }
 0xa8d   :  { %v1529_v53 = vmul.f32 %v4170_v60, %v1528_v59  ;;  %v1133_v28 = vadd.f32 %v1132_v22, %v1043_v63 }
 0xa8f   :  { %v1530_v33 = vsel %vm1496_vm4, %v1529_v53, 0.0  ;;  %v1217_v61 = vmul.f32 %v4005_v25, %v1133_v28 }
 0xa90   :  { %v1531_v15 = vadd.f32 %v1530_v33, %v1441_v17 }
 0xa91   :  { %1218 = vadd.xlane.f32.xlu0 %v1217_v61 }
 0xa92   :  { %1533 = vst [vmem:[#allocation1 + $0x10] sm:$0xff] %v1531_v15 }
 0xa99   :  { %v4176_v10 = vld [vmem:[#allocation1 + $0x10] ss:$0 sm:$0xff] }
 0xa9a   :  { %v1591_v44 = vmul.f32 %v4176_v10, %v4176_v10  ;;  %v1600_v19 = vmul.f32 %v4176_v10, %v1531_v15 }
 0xa9c   :  { %1592 = vadd.xlane.f32.xlu1 %v1591_v44 }
 0xaa0   :  { %1601 = vadd.xlane.f32.xlu1 %v1600_v19 }
 0xab1   :  { %v1450_v38 = vpop.xlane.xlu0 %1449 }
 0xab2   :  { %v1451_v18 = vsub.f32 %v3993_v36, %v1450_v38 }
 0xab4   :  { %v1452_v35 = vmul.f32 %v4138_v31, %v1451_v18 }
 0xab6   :  { %v1453_v45 = vsel %vm1406_vm1, %v1452_v35, 0.0 }
 0xab7   :  { %v1454_v25 = vadd.f32 %v1453_v45, %v1364_v49 }
 0xab9   :  { %v1538_v6 = vmul.f32 %v4143_v32, %v1454_v25 }
 0xabb   :  { %1539 = vadd.xlane.f32.xlu0 %v1538_v6 }
 0xadd   :  { %v1373_v37 = vpop.xlane.xlu1 %1372 }
 0xade   :  { %v1374_v46 = vsub.f32 %v4041_v34, %v1373_v37 }
 0xae0   :  { %v1375_v17 = vmul.f32 %v4101_v21, %v1374_v46 }
 0xae2   :  { %v1376_v43 = vsel %vm1316_vm12, %v1375_v17, 0.0 }
 0xae3   :  { %v1377_v39 = vadd.f32 %v1376_v43, %v1287_v58  ;;  %v1590_v58 = vld [vmem:[#allocation0 + $0x10] ss:$0 sm:$0xff]  ;;  %v1665_v43 = vld [vmem:[#allocation0 + $0x11] ss:$0 sm:$0xff] }
 0xae5   :  { %v1461_v0 = vmul.f32 %v4109_v54, %v1377_v39 }
 0xae7   :  { %1462 = vadd.xlane.f32.xlu1 %v1461_v0 }
 0xafd   :  { %v1296_v63 = vpop.xlane.xlu0 %1295 }
 0xafe   :  { %v1297_v52 = vsub.f32 %v4069_v29, %v1296_v63 }
 0xb00   :  { %v1298_v16 = vmul.f32 %v4065_v24, %v1297_v52 }
 0xb02   :  { %v1299_v2 = vsel %vm1226_vm3, %v1298_v16, 0.0 }
 0xb03   :  { %v1300_v57 = vadd.f32 %v1299_v2, %v1210_v48  ;;  %v4225_v2 = vld [vmem:[#allocation0 + $0x10] sm:$0xff] }
 0xb05   :  { %v1384_v7 = vmul.f32 %v4079_v47, %v1300_v57 }
 0xb07   :  { %1385 = vadd.xlane.f32.xlu0 %v1384_v7 }
 0xb1a   :  { %v1219_v49 = vpop.xlane.xlu0 %1218 }
 0xb1b   :  { %v1220_v51 = vsub.f32 %v4116_v62, %v1219_v49 }
 0xb1d   :  { %v1221_v41 = vmul.f32 %v4031_v26, %v1220_v51 }
 0xb1f   :  { %v1222_v1 = vsel %vm1136_vm13, %v1221_v41, 0.0  ;;  %vm1661_vm13 = vcmask 146568  }
 0xb20   :  { %v1223_v4 = vadd.f32 %v1222_v1, %v1133_v28 }
 0xb22   :  { %v1307_v56 = vmul.f32 %v4036_v42, %v1223_v4 }
 0xb24   :  { %1308 = vadd.xlane.f32.xlu1 %v1307_v56 }
 0xb25   :  { %v1593_v11 = vpop.xlane.xlu1 %1592 }
 0xb26   :  { %v1594_v55 = vsub.f32 %v1590_v58, %v1593_v11 }
 0xb28   :  { %3564 = vrsqrt.f32 %v1594_v55 }
 0xb29   :  { %v1602_v27 = vpop.xlane.xlu1 %1601 }
 0xb2a   :  { %v1603_v40 = vsub.f32 %v3983_v20, %v1602_v27 }
 0xb35   :  { %v4198_v3 = vpop.eup %3564 }
 0xb36   :  { %v1604_v48 = vmul.f32 %v4198_v3, %v1603_v40 }
 0xb38   :  { %v1605_v26 = vsel %vm1586_vm7, %v1604_v48, 0.0 }
 0xb39   :  { %v1606_v8 = vadd.f32 %v1605_v26, %v1531_v15 }
 0xb3b   :  { %1608 = vst [vmem:[#allocation1 + $0x10] sm:$0xff] %v1606_v8 }
 0xb42   :  { %v4202_v30 = vld [vmem:[#allocation1 + $0x11] ss:$0 sm:$0xff] }
 0xb43   :  { %v1666_v12 = vmul.f32 %v4202_v30, %v4202_v30  ;;  %v1675_v5 = vmul.f32 %v4202_v30, %v1606_v8 }
 0xb44   :  { %v1540_v14 = vpop.xlane.xlu0 %1539 }
 0xb45   :  { %v1541_v42 = vsub.f32 %v3993_v36, %v1540_v14  ;;  %1667 = vadd.xlane.f32.xlu0 %v1666_v12 }
 0xb47   :  { %v1542_v23 = vmul.f32 %v4170_v60, %v1541_v42 }
 0xb49   :  { %v1543_v20 = vsel %vm1496_vm4, %v1542_v23, 0.0  ;;  %1676 = vadd.xlane.f32.xlu0 %v1675_v5 }
 0xb4a   :  { %v1544_v13 = vadd.f32 %v1543_v20, %v1454_v25 }
 0xb4c   :  { %v1613_v9 = vmul.f32 %v4176_v10, %v1544_v13 }
 0xb4e   :  { %1614 = vadd.xlane.f32.xlu1 %v1613_v9 }
 0xb70   :  { %v1463_v59 = vpop.xlane.xlu1 %1462 }
 0xb71   :  { %v1464_v22 = vsub.f32 %v4041_v34, %v1463_v59 }
 0xb73   :  { %v1465_v53 = vmul.f32 %v4138_v31, %v1464_v22 }
 0xb75   :  { %v1466_v28 = vsel %vm1406_vm1, %v1465_v53, 0.0 }
 0xb76   :  { %v1467_v33 = vadd.f32 %v1466_v28, %v1377_v39  ;;  %v4252_v28 = vld [vmem:[#allocation0 + $0x18] sm:$0xff] }
 0xb78   :  { %v1551_v61 = vmul.f32 %v4143_v32, %v1467_v33 }
 0xb7a   :  { %1552 = vadd.xlane.f32.xlu1 %v1551_v61 }
 0xb90   :  { %v1386_v15 = vpop.xlane.xlu0 %1385 }
 0xb91   :  { %v1387_v44 = vsub.f32 %v4069_v29, %v1386_v15 }
 0xb93   :  { %v1388_v19 = vmul.f32 %v4101_v21, %v1387_v44 }
 0xb95   :  { %v1389_v38 = vsel %vm1316_vm12, %v1388_v19, 0.0 }
 0xb96   :  { %v1390_v18 = vadd.f32 %v1389_v38, %v1300_v57 }
 0xb98   :  { %v1474_v35 = vmul.f32 %v4109_v54, %v1390_v18 }
 0xb9a   :  { %1475 = vadd.xlane.f32.xlu0 %v1474_v35 }
 0xbad   :  { %v1309_v45 = vpop.xlane.xlu1 %1308 }
 0xbae   :  { %v1310_v25 = vsub.f32 %v4116_v62, %v1309_v45 }
 0xbb0   :  { %v1311_v6 = vmul.f32 %v4065_v24, %v1310_v25 }
 0xbb2   :  { %v1312_v37 = vsel %vm1226_vm3, %v1311_v6, 0.0  ;;  %vm1681_vm3 = vmand %vm1661_vm13, %vm185_vm2 }
 0xbb3   :  { %v1313_v46 = vadd.f32 %v1312_v37, %v1223_v4 }
 0xbb5   :  { %v1397_v17 = vmul.f32 %v4079_v47, %v1313_v46 }
 0xbb7   :  { %1398 = vadd.xlane.f32.xlu1 %v1397_v17 }
 0xbce   :  { %v1668_v39 = vpop.xlane.xlu0 %1667 }
 0xbcf   :  { %v1669_v0 = vsub.f32 %v1665_v43, %v1668_v39 }
 0xbd1   :  { %3566 = vrsqrt.f32 %v1669_v0 }
 0xbd2   :  { %v1677_v57 = vpop.xlane.xlu0 %1676 }
 0xbd3   :  { %v1678_v49 = vsub.f32 %v4225_v2, %v1677_v57 }
 0xbd7   :  { %v1615_v63 = vpop.xlane.xlu1 %1614 }
 0xbd8   :  { %v1616_v52 = vsub.f32 %v3993_v36, %v1615_v63 }
 0xbda   :  { %v1617_v16 = vmul.f32 %v4198_v3, %v1616_v52 }
 0xbdc   :  { %v1618_v24 = vsel %vm1586_vm7, %v1617_v16, 0.0 }
 0xbdd   :  { %v1619_v7 = vadd.f32 %v1618_v24, %v1544_v13 }
 0xbde   :  { %v4230_v51 = vpop.eup %3566 }
 0xbdf   :  { %v1690_v47 = vmul.f32 %v4202_v30, %v1619_v7  ;;  %v1679_v36 = vmul.f32 %v4230_v51, %v1678_v49 }
 0xbe1   :  { %1691 = vadd.xlane.f32.xlu0 %v1690_v47  ;;  %v1682_v41 = vsel %vm1681_vm3, %v1679_v36, 0.0  ;;  %vm1912_vm3 = vmand %vm1892_vm15, %vm485_vm11 }
 0xbe2   :  { %v1683_v1 = vadd.f32 %v1682_v41, %v1606_v8 }
 0xbe4   :  { %1685 = vst [vmem:[#allocation1 + $0x10] sm:$0xff] %v1683_v1 }
 0xbeb   :  { %v4235_v4 = vld [vmem:[#allocation1 + $0x12] ss:$0 sm:$0xff] }
 0xbec   :  { %v1743_v56 = vmul.f32 %v4235_v4, %v4235_v4  ;;  %v1752_v58 = vmul.f32 %v4235_v4, %v1683_v1 }
 0xbee   :  { %1744 = vadd.xlane.f32.xlu1 %v1743_v56  ;;  %1753 = vadd.xlane.f32.xlu0 %v1752_v58 }
 0xc03   :  { %v1553_v11 = vpop.xlane.xlu1 %1552 }
 0xc04   :  { %v1554_v55 = vsub.f32 %v4041_v34, %v1553_v11 }
 0xc06   :  { %v1555_v27 = vmul.f32 %v4170_v60, %v1554_v55 }
 0xc08   :  { %v1556_v40 = vsel %vm1496_vm4, %v1555_v27, 0.0 }
 0xc09   :  { %v1557_v48 = vadd.f32 %v1556_v40, %v1467_v33 }
 0xc0b   :  { %v1626_v26 = vmul.f32 %v4176_v10, %v1557_v48 }
 0xc0d   :  { %1627 = vadd.xlane.f32.xlu1 %v1626_v26 }
 0xc23   :  { %v1476_v8 = vpop.xlane.xlu0 %1475 }
 0xc24   :  { %v1477_v14 = vsub.f32 %v4069_v29, %v1476_v8 }
 0xc26   :  { %v1478_v42 = vmul.f32 %v4138_v31, %v1477_v14 }
 0xc28   :  { %v1479_v12 = vsel %vm1406_vm1, %v1478_v42, 0.0 }
 0xc29   :  { %v1480_v23 = vadd.f32 %v1479_v12, %v1390_v18  ;;  %v1819_v12 = vld [vmem:[#allocation0 + $0x13] ss:$0 sm:$0xff] }
 0xc2b   :  { %v1564_v20 = vmul.f32 %v4143_v32, %v1480_v23 }
 0xc2d   :  { %1565 = vadd.xlane.f32.xlu0 %v1564_v20  ;;  %v4285_v20 = vld [vmem:[#allocation0 + $0x20] sm:$0xff] }
 0xc40   :  { %v1399_v5 = vpop.xlane.xlu1 %1398 }
 0xc41   :  { %v1400_v13 = vsub.f32 %v4116_v62, %v1399_v5 }
 0xc43   :  { %v1401_v9 = vmul.f32 %v4101_v21, %v1400_v13  ;;  %v1742_v21 = vld [vmem:[#allocation0 + $0x12] ss:$0 sm:$0xff] }
 0xc45   :  { %v1402_v59 = vsel %vm1316_vm12, %v1401_v9, 0.0  ;;  %vm1758_vm12 = vmand %vm1738_vm9, %vm285_vm5 }
 0xc46   :  { %v1403_v22 = vadd.f32 %v1402_v59, %v1313_v46 }
 0xc48   :  { %v1487_v53 = vmul.f32 %v4109_v54, %v1403_v22 }
 0xc4a   :  { %1488 = vadd.xlane.f32.xlu1 %v1487_v53 }
 0xc6a   :  { %v1692_v33 = vpop.xlane.xlu0 %1691 }
 0xc6b   :  { %v1693_v61 = vsub.f32 %v4252_v28, %v1692_v33 }
 0xc6d   :  { %v1694_v15 = vmul.f32 %v4230_v51, %v1693_v61 }
 0xc6f   :  { %v1695_v44 = vsel %vm1661_vm13, %v1694_v15, 0.0 }
 0xc70   :  { %v1696_v19 = vadd.f32 %v1695_v44, %v1619_v7 }
 0xc72   :  { %v1767_v38 = vmul.f32 %v4235_v4, %v1696_v19 }
 0xc74   :  { %1768 = vadd.xlane.f32.xlu0 %v1767_v38 }
 0xc77   :  { %v1745_v18 = vpop.xlane.xlu1 %1744  ;;  %v1754_v45 = vpop.xlane.xlu0 %1753 }
 0xc78   :  { %v1746_v35 = vsub.f32 %v1742_v21, %v1745_v18  ;;  %v1755_v54 = vsub.f32 %v4225_v2, %v1754_v45 }
 0xc7a   :  { %3568 = vrsqrt.f32 %v1746_v35 }
 0xc87   :  { %v4259_v25 = vpop.eup %3568 }
 0xc88   :  { %v1756_v6 = vmul.f32 %v4259_v25, %v1755_v54 }
 0xc8a   :  { %v1759_v37 = vsel %vm1758_vm12, %v1756_v6, 0.0 }
 0xc8b   :  { %v1760_v46 = vadd.f32 %v1759_v37, %v1683_v1 }
 0xc8d   :  { %1762 = vst [vmem:[#allocation1 + $0x10] sm:$0xff] %v1760_v46 }
 0xc94   :  { %v4264_v43 = vld [vmem:[#allocation1 + $0x13] ss:$0 sm:$0xff] }
 0xc95   :  { %v1820_v0 = vmul.f32 %v4264_v43, %v4264_v43  ;;  %v1829_v16 = vmul.f32 %v4264_v43, %v1760_v46 }
 0xc96   :  { %v1628_v17 = vpop.xlane.xlu1 %1627 }
 0xc97   :  { %v1629_v39 = vsub.f32 %v4041_v34, %v1628_v17  ;;  %1821 = vadd.xlane.f32.xlu1 %v1820_v0 }
 0xc99   :  { %v1630_v63 = vmul.f32 %v4198_v3, %v1629_v39 }
 0xc9b   :  { %v1631_v52 = vsel %vm1586_vm7, %v1630_v63, 0.0  ;;  %1830 = vadd.xlane.f32.xlu1 %v1829_v16 }
 0xc9c   :  { %v1632_v57 = vadd.f32 %v1631_v52, %v1557_v48 }
 0xc9e   :  { %v1703_v24 = vmul.f32 %v4202_v30, %v1632_v57 }
 0xca0   :  { %1704 = vadd.xlane.f32.xlu0 %v1703_v24 }
 0xcb6   :  { %v1566_v7 = vpop.xlane.xlu0 %1565 }
 0xcb7   :  { %v1567_v49 = vsub.f32 %v4069_v29, %v1566_v7 }
 0xcb9   :  { %v1568_v34 = vmul.f32 %v4170_v60, %v1567_v49 }
 0xcbb   :  { %v1569_v47 = vsel %vm1496_vm4, %v1568_v34, 0.0 }
 0xcbc   :  { %v1570_v36 = vadd.f32 %v1569_v47, %v1480_v23 }
 0xcbe   :  { %v1639_v41 = vmul.f32 %v4176_v10, %v1570_v36 }
 0xcc0   :  { %1640 = vadd.xlane.f32.xlu0 %v1639_v41 }
 0xcd3   :  { %v1489_v1 = vpop.xlane.xlu1 %1488 }
 0xcd4   :  { %v1490_v56 = vsub.f32 %v4116_v62, %v1489_v1 }
 0xcd6   :  { %v1491_v58 = vmul.f32 %v4138_v31, %v1490_v56 }
 0xcd8   :  { %v1492_v11 = vsel %vm1406_vm1, %v1491_v58, 0.0  ;;  %vm1835_vm1 = vmand %vm1815_vm10, %vm385_vm8  ;;  %v1896_v58 = vld [vmem:[#allocation0 + $0x14] ss:$0 sm:$0xff] }
 0xcd9   :  { %v1493_v55 = vadd.f32 %v1492_v11, %v1403_v22 }
 0xcdb   :  { %v1577_v27 = vmul.f32 %v4143_v32, %v1493_v55 }
 0xcdd   :  { %1578 = vadd.xlane.f32.xlu1 %v1577_v27 }
 0xcfd   :  { %v1769_v40 = vpop.xlane.xlu0 %1768 }
 0xcfe   :  { %v1770_v48 = vsub.f32 %v4252_v28, %v1769_v40 }
 0xd00   :  { %v1771_v26 = vmul.f32 %v4259_v25, %v1770_v48 }
 0xd02   :  { %v1772_v8 = vsel %vm1738_vm9, %v1771_v26, 0.0 }
 0xd03   :  { %v1773_v14 = vadd.f32 %v1772_v8, %v1696_v19  ;;  %v4324_v8 = vld [vmem:[#allocation0 + $0x28] sm:$0xff] }
 0xd05   :  { %v1844_v42 = vmul.f32 %v4264_v43, %v1773_v14 }
 0xd07   :  { %1845 = vadd.xlane.f32.xlu0 %v1844_v42 }
 0xd20   :  { %v1822_v23 = vpop.xlane.xlu1 %1821 }
 0xd21   :  { %v1823_v31 = vsub.f32 %v1819_v12, %v1822_v23 }
 0xd23   :  { %3570 = vrsqrt.f32 %v1823_v31 }
 0xd24   :  { %v1831_v9 = vpop.xlane.xlu1 %1830 }
 0xd25   :  { %v1832_v53 = vsub.f32 %v4225_v2, %v1831_v9 }
 0xd29   :  { %v1705_v5 = vpop.xlane.xlu0 %1704 }
 0xd2a   :  { %v1706_v32 = vsub.f32 %v4285_v20, %v1705_v5 }
 0xd2c   :  { %v1707_v13 = vmul.f32 %v4230_v51, %v1706_v32 }
 0xd2e   :  { %v1708_v59 = vsel %vm1661_vm13, %v1707_v13, 0.0 }
 0xd2f   :  { %v1709_v22 = vadd.f32 %v1708_v59, %v1632_v57 }
 0xd30   :  { %v4292_v61 = vpop.eup %3570 }
 0xd31   :  { %v1780_v33 = vmul.f32 %v4235_v4, %v1709_v22  ;;  %v1833_v15 = vmul.f32 %v4292_v61, %v1832_v53 }
 0xd33   :  { %1781 = vadd.xlane.f32.xlu1 %v1780_v33  ;;  %v1836_v44 = vsel %vm1835_vm1, %v1833_v15, 0.0 }
 0xd34   :  { %v1837_v19 = vadd.f32 %v1836_v44, %v1760_v46 }
 0xd36   :  { %1839 = vst [vmem:[#allocation1 + $0x10] sm:$0xff] %v1837_v19 }
 0xd3d   :  { %v4297_v38 = vld [vmem:[#allocation1 + $0x14] ss:$0 sm:$0xff] }
 0xd3e   :  { %v1897_v21 = vmul.f32 %v4297_v38, %v4297_v38  ;;  %v1906_v18 = vmul.f32 %v4297_v38, %v1837_v19 }
 0xd40   :  { %1898 = vadd.xlane.f32.xlu0 %v1897_v21  ;;  %1907 = vadd.xlane.f32.xlu1 %v1906_v18 }
 0xd49   :  { %v1641_v35 = vpop.xlane.xlu0 %1640 }
 0xd4a   :  { %v1642_v45 = vsub.f32 %v4069_v29, %v1641_v35 }
 0xd4c   :  { %v1643_v54 = vmul.f32 %v4198_v3, %v1642_v45 }
 0xd4e   :  { %v1644_v6 = vsel %vm1586_vm7, %v1643_v54, 0.0 }
 0xd4f   :  { %v1645_v37 = vadd.f32 %v1644_v6, %v1570_v36 }
 0xd51   :  { %v1716_v46 = vmul.f32 %v4202_v30, %v1645_v37 }
 0xd53   :  { %1717 = vadd.xlane.f32.xlu0 %v1716_v46 }
 0xd66   :  { %v1579_v17 = vpop.xlane.xlu1 %1578 }
 0xd67   :  { %v1580_v39 = vsub.f32 %v4116_v62, %v1579_v17 }
 0xd69   :  { %v1581_v0 = vmul.f32 %v4170_v60, %v1580_v39 }
 0xd6b   :  { %v1582_v63 = vsel %vm1496_vm4, %v1581_v0, 0.0 }
 0xd6c   :  { %v1583_v52 = vadd.f32 %v1582_v63, %v1493_v55  ;;  %v1973_v63 = vld [vmem:[#allocation0 + $0x15] ss:$0 sm:$0xff] }
 0xd6e   :  { %v1652_v16 = vmul.f32 %v4176_v10, %v1583_v52 }
 0xd70   :  { %1653 = vadd.xlane.f32.xlu1 %v1652_v16 }
 0xd90   :  { %v1846_v29 = vpop.xlane.xlu0 %1845 }
 0xd91   :  { %v1847_v57 = vsub.f32 %v4252_v28, %v1846_v29 }
 0xd93   :  { %v1848_v24 = vmul.f32 %v4292_v61, %v1847_v57 }
 0xd95   :  { %v1849_v7 = vsel %vm1815_vm10, %v1848_v24, 0.0 }
 0xd96   :  { %v1850_v49 = vadd.f32 %v1849_v7, %v1773_v14 }
 0xd98   :  { %v1921_v34 = vmul.f32 %v4297_v38, %v1850_v49 }
 0xd9a   :  { %1922 = vadd.xlane.f32.xlu0 %v1921_v34 }
 0xdbc   :  { %v1782_v47 = vpop.xlane.xlu1 %1781 }
 0xdbd   :  { %v1783_v36 = vsub.f32 %v4285_v20, %v1782_v47 }
 0xdbf   :  { %v1784_v41 = vmul.f32 %v4259_v25, %v1783_v36 }
 0xdc1   :  { %v1785_v1 = vsel %vm1738_vm9, %v1784_v41, 0.0 }
 0xdc2   :  { %v1786_v10 = vadd.f32 %v1785_v1, %v1709_v22 }
 0xdc4   :  { %v1857_v56 = vmul.f32 %v4264_v43, %v1786_v10 }
 0xdc6   :  { %1858 = vadd.xlane.f32.xlu1 %v1857_v56  ;;  %v4357_v56 = vld [vmem:[#allocation0 + $0x30] sm:$0xff] }
 0xdc9   :  { %v1899_v11 = vpop.xlane.xlu0 %1898  ;;  %v1908_v27 = vpop.xlane.xlu1 %1907 }
 0xdca   :  { %v1900_v55 = vsub.f32 %v1896_v58, %v1899_v11  ;;  %v1909_v40 = vsub.f32 %v4225_v2, %v1908_v27 }
 0xdcc   :  { %3572 = vrsqrt.f32 %v1900_v55 }
 0xdd9   :  { %v4319_v48 = vpop.eup %3572 }
 0xdda   :  { %v1910_v26 = vmul.f32 %v4319_v48, %v1909_v40 }
 0xddc   :  { %v1913_v14 = vsel %vm1912_vm3, %v1910_v26, 0.0  ;;  %v1718_v42 = vpop.xlane.xlu0 %1717 }
 0xddd   :  { %v1914_v12 = vadd.f32 %v1913_v14, %v1837_v19  ;;  %v1719_v23 = vsub.f32 %v4324_v8, %v1718_v42 }
 0xddf   :  { %1916 = vst [vmem:[#allocation1 + $0x10] sm:$0xff] %v1914_v12  ;;  %v1720_v31 = vmul.f32 %v4230_v51, %v1719_v23 }
 0xde1   :  { %v1721_v5 = vsel %vm1661_vm13, %v1720_v31, 0.0 }
 0xde2   :  { %v1722_v32 = vadd.f32 %v1721_v5, %v1645_v37 }
 0xde4   :  { %v1793_v13 = vmul.f32 %v4235_v4, %v1722_v32 }
 0xde6   :  { %v4330_v9 = vld [vmem:[#allocation1 + $0x15] ss:$0 sm:$0xff]  ;;  %1794 = vadd.xlane.f32.xlu1 %v1793_v13 }
 0xde7   :  { %v1974_v59 = vmul.f32 %v4330_v9, %v4330_v9  ;;  %v1983_v22 = vmul.f32 %v4330_v9, %v1914_v12 }
 0xde9   :  { %1975 = vadd.xlane.f32.xlu0 %v1974_v59 }
 0xded   :  { %1984 = vadd.xlane.f32.xlu0 %v1983_v22 }
 0xdf9   :  { %v1654_v53 = vpop.xlane.xlu1 %1653 }
 0xdfa   :  { %v1655_v33 = vsub.f32 %v4116_v62, %v1654_v53 }
 0xdfc   :  { %v1656_v15 = vmul.f32 %v4198_v3, %v1655_v33 }
 0xdfe   :  { %v1657_v44 = vsel %vm1586_vm7, %v1656_v15, 0.0  ;;  %vm1969_vm7 = vcmask 179368  }
 0xdff   :  { %v1658_v19 = vadd.f32 %v1657_v44, %v1583_v52  ;;  %vm1989_vm12 = vmand %vm1969_vm7, %vm585_vm14 }
 0xe01   :  { %v1729_v21 = vmul.f32 %v4202_v30, %v1658_v19 }
 0xe03   :  { %1730 = vadd.xlane.f32.xlu1 %v1729_v21 }
 0xe23   :  { %v1923_v18 = vpop.xlane.xlu0 %1922 }
 0xe24   :  { %v1924_v35 = vsub.f32 %v4252_v28, %v1923_v18 }
 0xe26   :  { %v1925_v45 = vmul.f32 %v4319_v48, %v1924_v35 }
 0xe28   :  { %v1926_v54 = vsel %vm1892_vm15, %v1925_v45, 0.0 }
 0xe29   :  { %v1927_v6 = vadd.f32 %v1926_v54, %v1850_v49  ;;  %v2050_v54 = vld [vmem:[#allocation0 + $0x16] ss:$0 sm:$0xff] }
 0xe2b   :  { %v1998_v37 = vmul.f32 %v4330_v9, %v1927_v6 }
 0xe2d   :  { %1999 = vadd.xlane.f32.xlu0 %v1998_v37 }
 0xe4f   :  { %v1859_v62 = vpop.xlane.xlu1 %1858 }
 0xe50   :  { %v1860_v3 = vsub.f32 %v4285_v20, %v1859_v62 }
 0xe52   :  { %v1861_v46 = vmul.f32 %v4292_v61, %v1860_v3 }
 0xe54   :  { %v1862_v17 = vsel %vm1815_vm10, %v1861_v46, 0.0 }
 0xe55   :  { %v1863_v30 = vadd.f32 %v1862_v17, %v1786_v10 }
 0xe57   :  { %v1934_v39 = vmul.f32 %v4297_v38, %v1863_v30 }
 0xe59   :  { %1935 = vadd.xlane.f32.xlu1 %v1934_v39 }
 0xe6f   :  { %v1795_v0 = vpop.xlane.xlu1 %1794 }
 0xe70   :  { %v1796_v52 = vsub.f32 %v4324_v8, %v1795_v0 }
 0xe72   :  { %v1976_v16 = vpop.xlane.xlu0 %1975  ;;  %v1797_v29 = vmul.f32 %v4259_v25, %v1796_v52 }
 0xe73   :  { %v1977_v57 = vsub.f32 %v1973_v63, %v1976_v16 }
 0xe74   :  { %v1798_v24 = vsel %vm1738_vm9, %v1797_v29, 0.0 }
 0xe75   :  { %3574 = vrsqrt.f32 %v1977_v57  ;;  %v1799_v7 = vadd.f32 %v1798_v24, %v1722_v32 }
 0xe76   :  { %v1985_v34 = vpop.xlane.xlu0 %1984 }
 0xe77   :  { %v1870_v49 = vmul.f32 %v4264_v43, %v1799_v7  ;;  %v1986_v47 = vsub.f32 %v4225_v2, %v1985_v34 }
 0xe79   :  { %1871 = vadd.xlane.f32.xlu0 %v1870_v49 }
 0xe82   :  { %v4352_v36 = vpop.eup %3574 }
 0xe83   :  { %v1987_v41 = vmul.f32 %v4352_v36, %v1986_v47 }
 0xe85   :  { %v1990_v1 = vsel %vm1989_vm12, %v1987_v41, 0.0 }
 0xe86   :  { %v1991_v10 = vadd.f32 %v1990_v1, %v1914_v12 }
 0xe88   :  { %1993 = vst [vmem:[#allocation1 + $0x10] sm:$0xff] %v1991_v10 }
 0xe8c   :  { %v1731_v58 = vpop.xlane.xlu1 %1730 }
 0xe8d   :  { %v1732_v11 = vsub.f32 %v4357_v56, %v1731_v58 }
 0xe8f   :  { %v4360_v55 = vld [vmem:[#allocation1 + $0x16] ss:$0 sm:$0xff]  ;;  %v1733_v27 = vmul.f32 %v4230_v51, %v1732_v11 }
 0xe90   :  { %v2051_v40 = vmul.f32 %v4360_v55, %v4360_v55  ;;  %v2060_v26 = vmul.f32 %v4360_v55, %v1991_v10 }
 0xe91   :  { %v1734_v14 = vsel %vm1661_vm13, %v1733_v27, 0.0  ;;  %vm2046_vm13 = vcmask 187568  }
 0xe92   :  { %2052 = vadd.xlane.f32.xlu1 %v2051_v40  ;;  %2061 = vadd.xlane.f32.xlu0 %v2060_v26  ;;  %v1735_v42 = vadd.f32 %v1734_v14, %v1658_v19  ;;  %vm2066_vm1 = vmand %vm2046_vm13, %vm685_vm6 }
 0xe94   :  { %v1806_v12 = vmul.f32 %v4235_v4, %v1735_v42 }
 0xe96   :  { %1807 = vadd.xlane.f32.xlu1 %v1806_v12 }
 0xeb6   :  { %v2000_v23 = vpop.xlane.xlu0 %1999 }
 0xeb7   :  { %v2001_v31 = vsub.f32 %v4252_v28, %v2000_v23 }
 0xeb9   :  { %v2002_v5 = vmul.f32 %v4352_v36, %v2001_v31 }
 0xebb   :  { %v2003_v51 = vsel %vm1969_vm7, %v2002_v5, 0.0 }
 0xebc   :  { %v2004_v32 = vadd.f32 %v2003_v51, %v1927_v6 }
 0xebe   :  { %v2075_v13 = vmul.f32 %v4360_v55, %v2004_v32 }
 0xec0   :  { %2076 = vadd.xlane.f32.xlu0 %v2075_v13 }
 0xee2   :  { %v1936_v59 = vpop.xlane.xlu1 %1935 }
 0xee3   :  { %v1937_v22 = vsub.f32 %v4285_v20, %v1936_v59 }
 0xee5   :  { %v1938_v53 = vmul.f32 %v4319_v48, %v1937_v22  ;;  %v2127_v22 = vld [vmem:[#allocation0 + $0x17] ss:$0 sm:$0xff] }
 0xee7   :  { %v1939_v33 = vsel %vm1892_vm15, %v1938_v53, 0.0 }
 0xee8   :  { %v1940_v4 = vadd.f32 %v1939_v33, %v1863_v30 }
 0xeea   :  { %v2011_v15 = vmul.f32 %v4330_v9, %v1940_v4 }
 0xeec   :  { %2012 = vadd.xlane.f32.xlu1 %v2011_v15 }
 0xf02   :  { %v1872_v44 = vpop.xlane.xlu0 %1871 }
 0xf03   :  { %v1873_v19 = vsub.f32 %v4324_v8, %v1872_v44 }
 0xf05   :  { %v1874_v21 = vmul.f32 %v4292_v61, %v1873_v19 }
 0xf07   :  { %v1875_v18 = vsel %vm1815_vm10, %v1874_v21, 0.0 }
 0xf08   :  { %v1876_v35 = vadd.f32 %v1875_v18, %v1799_v7 }
 0xf0a   :  { %v1947_v45 = vmul.f32 %v4297_v38, %v1876_v35 }
 0xf0c   :  { %1948 = vadd.xlane.f32.xlu0 %v1947_v45 }
 0xf1b   :  { %v2053_v6 = vpop.xlane.xlu1 %2052  ;;  %v2062_v39 = vpop.xlane.xlu0 %2061 }
 0xf1c   :  { %v2054_v37 = vsub.f32 %v2050_v54, %v2053_v6  ;;  %v2063_v63 = vsub.f32 %v4225_v2, %v2062_v39 }
 0xf1e   :  { %3576 = vrsqrt.f32 %v2054_v37 }
 0xf1f   :  { %v1808_v62 = vpop.xlane.xlu1 %1807 }
 0xf20   :  { %v1809_v3 = vsub.f32 %v4357_v56, %v1808_v62 }
 0xf22   :  { %v1810_v46 = vmul.f32 %v4259_v25, %v1809_v3 }
 0xf24   :  { %v1811_v17 = vsel %vm1738_vm9, %v1810_v46, 0.0  ;;  %vm2123_vm9 = vcmask 195768  }
 0xf25   :  { %v1812_v30 = vadd.f32 %v1811_v17, %v1735_v42 }
 0xf27   :  { %v1883_v0 = vmul.f32 %v4264_v43, %v1812_v30 }
 0xf29   :  { %1884 = vadd.xlane.f32.xlu0 %v1883_v0 }
 0xf2b   :  { %v4385_v52 = vpop.eup %3576 }
 0xf2c   :  { %v2064_v16 = vmul.f32 %v4385_v52, %v2063_v63 }
 0xf2e   :  { %v2067_v29 = vsel %vm2066_vm1, %v2064_v16, 0.0 }
 0xf2f   :  { %v2068_v57 = vadd.f32 %v2067_v29, %v1991_v10 }
 0xf31   :  { %2070 = vst [vmem:[#allocation1 + $0x10] sm:$0xff] %v2068_v57 }
 0xf38   :  { %v4390_v25 = vld [vmem:[#allocation1 + $0x17] ss:$0 sm:$0xff] }
 0xf39   :  { %v2128_v24 = vmul.f32 %v4390_v25, %v4390_v25 }
 0xf3b   :  { %2129 = vadd.xlane.f32.xlu1 %v2128_v24 }
 0xf49   :  { %v2077_v43 = vpop.xlane.xlu0 %2076 }
 0xf4a   :  { %v2078_v7 = vsub.f32 %v4252_v28, %v2077_v43 }
 0xf4c   :  { %v2079_v2 = vmul.f32 %v4385_v52, %v2078_v7 }
 0xf4e   :  { %v2080_v49 = vsel %vm2046_vm13, %v2079_v2, 0.0  ;;  %v2204_v2 = vld [vmem:[#allocation0 + $0x18] ss:$0 sm:$0xff] }
 0xf4f   :  { %v2081_v34 = vadd.f32 %v2080_v49, %v2004_v32 }
 0xf51   :  { %v2152_v47 = vmul.f32 %v4390_v25, %v2081_v34 }
 0xf53   :  { %2153 = vadd.xlane.f32.xlu1 %v2152_v47 }
 0xf75   :  { %v2013_v41 = vpop.xlane.xlu1 %2012 }
 0xf76   :  { %v2014_v1 = vsub.f32 %v4285_v20, %v2013_v41 }
 0xf78   :  { %v2015_v10 = vmul.f32 %v4352_v36, %v2014_v1 }
 0xf7a   :  { %v2016_v58 = vsel %vm1969_vm7, %v2015_v10, 0.0 }
 0xf7b   :  { %v2017_v11 = vadd.f32 %v2016_v58, %v1940_v4 }
 0xf7d   :  { %v2088_v27 = vmul.f32 %v4360_v55, %v2017_v11 }
 0xf7f   :  { %2089 = vadd.xlane.f32.xlu0 %v2088_v27 }
 0xf95   :  { %v1949_v40 = vpop.xlane.xlu0 %1948 }
 0xf96   :  { %v1950_v26 = vsub.f32 %v4324_v8, %v1949_v40 }
 0xf98   :  { %v1951_v14 = vmul.f32 %v4319_v48, %v1950_v26 }
 0xf9a   :  { %v1952_v42 = vsel %vm1892_vm15, %v1951_v14, 0.0 }
 0xf9b   :  { %v1953_v12 = vadd.f32 %v1952_v42, %v1876_v35 }
 0xf9d   :  { %v2024_v23 = vmul.f32 %v4330_v9, %v1953_v12 }
 0xf9f   :  { %2025 = vadd.xlane.f32.xlu1 %v2024_v23 }
 0xfb2   :  { %v1885_v31 = vpop.xlane.xlu0 %1884 }
 0xfb3   :  { %v1886_v5 = vsub.f32 %v4357_v56, %v1885_v31 }
 0xfb5   :  { %v1887_v51 = vmul.f32 %v4292_v61, %v1886_v5 }
 0xfb7   :  { %v1888_v32 = vsel %vm1815_vm10, %v1887_v51, 0.0  ;;  %vm2200_vm10 = vcmask 203968  }
 0xfb8   :  { %v1889_v13 = vadd.f32 %v1888_v32, %v1812_v30 }
 0xfba   :  { %v1960_v59 = vmul.f32 %v4297_v38, %v1889_v13 }
 0xfbc   :  { %1961 = vadd.xlane.f32.xlu0 %v1960_v59 }
 0xfc4   :  { %v2130_v53 = vpop.xlane.xlu1 %2129 }
 0xfc5   :  { %v2131_v33 = vsub.f32 %v2127_v22, %v2130_v53 }
 0xfc7   :  { %3578 = vrsqrt.f32 %v2131_v33 }
 0xfd4   :  { %v4411_v44 = vpop.eup %3578 }
 0xfdc   :  { %v2154_v4 = vpop.xlane.xlu1 %2153 }
 0xfdd   :  { %v2155_v15 = vsub.f32 %v4252_v28, %v2154_v4 }
 0xfdf   :  { %v2156_v19 = vmul.f32 %v4411_v44, %v2155_v15 }
 0xfe1   :  { %v2157_v61 = vsel %vm2123_vm9, %v2156_v19, 0.0 }
 0xfe2   :  { %v2158_v21 = vadd.f32 %v2157_v61, %v2081_v34  ;;  %v2266_v61 = vld [vmem:[#allocation0 + $0x19] ss:$0 sm:$0xff] }
 0xfe4   :  { %2160 = vst [vmem:[#allocation1 + $0x18] sm:$0xff] %v2158_v21 }
 0xfeb   :  { %v4415_v18 = vld [vmem:[#allocation1 + $0x18] ss:$0 sm:$0xff] }
 0xfec   :  { %v2214_v38 = vmul.f32 %v4415_v18, %v2158_v21  ;;  %v2205_v35 = vmul.f32 %v4415_v18, %v4415_v18 }
 0xfee   :  { %2215 = vadd.xlane.f32.xlu0 %v2214_v38  ;;  %2206 = vadd.xlane.f32.xlu1 %v2205_v35 }
0x1008   :  { %v2090_v45 = vpop.xlane.xlu0 %2089 }
0x1009   :  { %v2091_v54 = vsub.f32 %v4285_v20, %v2090_v45 }
0x100b   :  { %v2092_v6 = vmul.f32 %v4385_v52, %v2091_v54 }
0x100d   :  { %v2093_v37 = vsel %vm2046_vm13, %v2092_v6, 0.0 }
0x100e   :  { %v2094_v62 = vadd.f32 %v2093_v37, %v2017_v11 }
0x1010   :  { %v2165_v3 = vmul.f32 %v4390_v25, %v2094_v62 }
0x1012   :  { %2166 = vadd.xlane.f32.xlu1 %v2165_v3 }
0x1028   :  { %v2026_v46 = vpop.xlane.xlu1 %2025 }
0x1029   :  { %v2027_v17 = vsub.f32 %v4324_v8, %v2026_v46 }
0x102b   :  { %v2028_v30 = vmul.f32 %v4352_v36, %v2027_v17 }
0x102d   :  { %v2029_v39 = vsel %vm1969_vm7, %v2028_v30, 0.0 }
0x102e   :  { %v2030_v0 = vadd.f32 %v2029_v39, %v1953_v12 }
0x1030   :  { %v2101_v63 = vmul.f32 %v4360_v55, %v2030_v0 }
0x1032   :  { %2102 = vadd.xlane.f32.xlu0 %v2101_v63 }
0x1045   :  { %v1962_v16 = vpop.xlane.xlu0 %1961 }
0x1046   :  { %v1963_v29 = vsub.f32 %v4357_v56, %v1962_v16 }
0x1048   :  { %v1964_v57 = vmul.f32 %v4319_v48, %v1963_v29 }
0x104a   :  { %v1965_v24 = vsel %vm1892_vm15, %v1964_v57, 0.0  ;;  %vm2262_vm15 = vcmask 212168  }
0x104b   :  { %v1966_v43 = vadd.f32 %v1965_v24, %v1889_v13  ;;  %vm2282_vm3 = vmand %vm2262_vm15, %vm185_vm2 }
0x104d   :  { %v2037_v7 = vmul.f32 %v4330_v9, %v1966_v43 }
0x104f   :  { %2038 = vadd.xlane.f32.xlu1 %v2037_v7 }
0x1077   :  { %v2207_v49 = vpop.xlane.xlu1 %2206  ;;  %v2216_v47 = vpop.xlane.xlu0 %2215 }
0x1078   :  { %v2208_v34 = vsub.f32 %v2204_v2, %v2207_v49  ;;  %v2217_v41 = vsub.f32 %v4252_v28, %v2216_v47 }
0x107a   :  { %3580 = vrsqrt.f32 %v2208_v34 }
0x1087   :  { %v4433_v1 = vpop.eup %3580 }
0x1088   :  { %v2218_v10 = vmul.f32 %v4433_v1, %v2217_v41 }
0x108a   :  { %v2219_v48 = vsel %vm2200_vm10, %v2218_v10, 0.0 }
0x108b   :  { %v2220_v58 = vadd.f32 %v2219_v48, %v2158_v21 }
0x108d   :  { %2222 = vst [vmem:[#allocation1 + $0x18] sm:$0xff] %v2220_v58 }
0x1094   :  { %v4437_v11 = vld [vmem:[#allocation1 + $0x19] ss:$0 sm:$0xff] }
0x1095   :  { %v2267_v9 = vmul.f32 %v4437_v11, %v4437_v11  ;;  %v2276_v27 = vmul.f32 %v4437_v11, %v2220_v58 }
0x1097   :  { %2268 = vadd.xlane.f32.xlu0 %v2267_v9 }
0x109b   :  { %v2167_v40 = vpop.xlane.xlu1 %2166  ;;  %2277 = vadd.xlane.f32.xlu0 %v2276_v27 }
0x109c   :  { %v2168_v26 = vsub.f32 %v4285_v20, %v2167_v40  ;;  %v2330_v40 = vld [vmem:[#allocation0 + $0x1a] ss:$0 sm:$0xff] }
0x109e   :  { %v2169_v14 = vmul.f32 %v4411_v44, %v2168_v26 }
0x10a0   :  { %v2170_v42 = vsel %vm2123_vm9, %v2169_v14, 0.0 }
0x10a1   :  { %v2171_v12 = vadd.f32 %v2170_v42, %v2094_v62 }
0x10a3   :  { %v2227_v23 = vmul.f32 %v4415_v18, %v2171_v12 }
0x10a5   :  { %2228 = vadd.xlane.f32.xlu1 %v2227_v23 }
0x10bb   :  { %v2103_v31 = vpop.xlane.xlu0 %2102 }
0x10bc   :  { %v2104_v5 = vsub.f32 %v4324_v8, %v2103_v31 }
0x10be   :  { %v2105_v51 = vmul.f32 %v4385_v52, %v2104_v5 }
0x10c0   :  { %v2106_v32 = vsel %vm2046_vm13, %v2105_v51, 0.0 }
0x10c1   :  { %v2107_v13 = vadd.f32 %v2106_v32, %v2030_v0 }
0x10c3   :  { %v2178_v59 = vmul.f32 %v4390_v25, %v2107_v13 }
0x10c5   :  { %2179 = vadd.xlane.f32.xlu1 %v2178_v59 }
0x10d8   :  { %v2039_v22 = vpop.xlane.xlu1 %2038 }
0x10d9   :  { %v2040_v53 = vsub.f32 %v4357_v56, %v2039_v22 }
0x10db   :  { %v2041_v33 = vmul.f32 %v4352_v36, %v2040_v53 }
0x10dd   :  { %v2042_v4 = vsel %vm1969_vm7, %v2041_v33, 0.0  ;;  %vm2326_vm7 = vcmask 220368  }
0x10de   :  { %v2043_v15 = vadd.f32 %v2042_v4, %v1966_v43  ;;  %vm2346_vm12 = vmand %vm2326_vm7, %vm285_vm5 }
0x10e0   :  { %v2114_v19 = vmul.f32 %v4360_v55, %v2043_v15 }
0x10e2   :  { %2115 = vadd.xlane.f32.xlu0 %v2114_v19 }
0x1120   :  { %v2269_v21 = vpop.xlane.xlu0 %2268 }
0x1121   :  { %v2270_v38 = vsub.f32 %v2266_v61, %v2269_v21 }
0x1123   :  { %3582 = vrsqrt.f32 %v2270_v38 }
0x1124   :  { %v2278_v35 = vpop.xlane.xlu0 %2277 }
0x1125   :  { %v2279_v54 = vsub.f32 %v4252_v28, %v2278_v35 }
0x112e   :  { %v2229_v45 = vpop.xlane.xlu1 %2228 }
0x112f   :  { %v2230_v6 = vsub.f32 %v4285_v20, %v2229_v45 }
0x1130   :  { %v4456_v37 = vpop.eup %3582 }
0x1131   :  { %v2280_v36 = vmul.f32 %v4456_v37, %v2279_v54  ;;  %v2231_v55 = vmul.f32 %v4433_v1, %v2230_v6 }
0x1133   :  { %v2283_v62 = vsel %vm2282_vm3, %v2280_v36, 0.0  ;;  %v2232_v3 = vsel %vm2200_vm10, %v2231_v55, 0.0 }
0x1134   :  { %v2284_v46 = vadd.f32 %v2283_v62, %v2220_v58  ;;  %v2233_v17 = vadd.f32 %v2232_v3, %v2171_v12 }
0x1136   :  { %2286 = vst [vmem:[#allocation1 + $0x18] sm:$0xff] %v2284_v46  ;;  %v2291_v30 = vmul.f32 %v4437_v11, %v2233_v17 }
0x1138   :  { %2292 = vadd.xlane.f32.xlu1 %v2291_v30 }
0x113d   :  { %v4464_v39 = vld [vmem:[#allocation1 + $0x1a] ss:$0 sm:$0xff] }
0x113e   :  { %v2331_v0 = vmul.f32 %v4464_v39, %v4464_v39  ;;  %v2340_v63 = vmul.f32 %v4464_v39, %v2284_v46 }
0x1140   :  { %2332 = vadd.xlane.f32.xlu0 %v2331_v0  ;;  %2341 = vadd.xlane.f32.xlu1 %v2340_v63 }
0x114e   :  { %v2180_v16 = vpop.xlane.xlu1 %2179 }
0x114f   :  { %v2181_v29 = vsub.f32 %v4324_v8, %v2180_v16 }
0x1151   :  { %v2182_v57 = vmul.f32 %v4411_v44, %v2181_v29 }
0x1153   :  { %v2183_v24 = vsel %vm2123_vm9, %v2182_v57, 0.0  ;;  %v4507_v57 = vld [vmem:[#allocation0 + $0x18] sm:$0xff] }
0x1154   :  { %v2184_v43 = vadd.f32 %v2183_v24, %v2107_v13 }
0x1156   :  { %v2240_v7 = vmul.f32 %v4415_v18, %v2184_v43 }
0x1158   :  { %2241 = vadd.xlane.f32.xlu0 %v2240_v7 }
0x116b   :  { %v2116_v2 = vpop.xlane.xlu0 %2115 }
0x116c   :  { %v2117_v49 = vsub.f32 %v4357_v56, %v2116_v2 }
0x116e   :  { %v2118_v34 = vmul.f32 %v4385_v52, %v2117_v49 }
0x1170   :  { %v2119_v47 = vsel %vm2046_vm13, %v2118_v34, 0.0  ;;  %vm2390_vm13 = vcmask 228568  }
0x1171   :  { %v2120_v41 = vadd.f32 %v2119_v47, %v2043_v15  ;;  %vm2410_vm1 = vmand %vm2390_vm13, %vm385_vm8 }
0x1173   :  { %v2191_v10 = vmul.f32 %v4390_v25, %v2120_v41 }
0x1175   :  { %2192 = vadd.xlane.f32.xlu1 %v2191_v10 }
0x11c1   :  { %v2293_v48 = vpop.xlane.xlu1 %2292 }
0x11c2   :  { %v2294_v58 = vsub.f32 %v4285_v20, %v2293_v48 }
0x11c4   :  { %v2295_v9 = vmul.f32 %v4456_v37, %v2294_v58 }
0x11c6   :  { %v2296_v27 = vsel %vm2262_vm15, %v2295_v9, 0.0 }
0x11c7   :  { %v2297_v26 = vadd.f32 %v2296_v27, %v2233_v17 }
0x11c9   :  { %v2333_v14 = vpop.xlane.xlu0 %2332  ;;  %v2355_v42 = vmul.f32 %v4464_v39, %v2297_v26  ;;  %v2342_v52 = vpop.xlane.xlu1 %2341 }
0x11ca   :  { %v2334_v12 = vsub.f32 %v2330_v40, %v2333_v14  ;;  %v2343_v25 = vsub.f32 %v4252_v28, %v2342_v52 }
0x11cb   :  { %2356 = vadd.xlane.f32.xlu0 %v2355_v42 }
0x11cc   :  { %3584 = vrsqrt.f32 %v2334_v12 }
0x11d9   :  { %v4482_v23 = vpop.eup %3584 }
0x11da   :  { %v2344_v31 = vmul.f32 %v4482_v23, %v2343_v25 }
0x11dc   :  { %v2347_v5 = vsel %vm2346_vm12, %v2344_v31, 0.0 }
0x11dd   :  { %v2348_v51 = vadd.f32 %v2347_v5, %v2284_v46  ;;  %v2394_v46 = vld [vmem:[#allocation0 + $0x1b] ss:$0 sm:$0xff] }
0x11df   :  { %2350 = vst [vmem:[#allocation1 + $0x18] sm:$0xff] %v2348_v51 }
0x11e1   :  { %v2242_v32 = vpop.xlane.xlu0 %2241 }
0x11e2   :  { %v2243_v13 = vsub.f32 %v4324_v8, %v2242_v32 }
0x11e4   :  { %v2244_v59 = vmul.f32 %v4433_v1, %v2243_v13 }
0x11e6   :  { %v4489_v22 = vld [vmem:[#allocation1 + $0x1b] ss:$0 sm:$0xff]  ;;  %v2245_v53 = vsel %vm2200_vm10, %v2244_v59, 0.0 }
0x11e7   :  { %v2395_v28 = vmul.f32 %v4489_v22, %v4489_v22  ;;  %v2246_v33 = vadd.f32 %v2245_v53, %v2184_v43  ;;  %v2404_v15 = vmul.f32 %v4489_v22, %v2348_v51 }
0x11e9   :  { %2396 = vadd.xlane.f32.xlu1 %v2395_v28  ;;  %v2304_v4 = vmul.f32 %v4437_v11, %v2246_v33 }
0x11eb   :  { %2305 = vadd.xlane.f32.xlu0 %v2304_v4 }
0x11ed   :  { %2405 = vadd.xlane.f32.xlu1 %v2404_v15 }
0x11fe   :  { %v2193_v19 = vpop.xlane.xlu1 %2192 }
0x11ff   :  { %v2194_v61 = vsub.f32 %v4357_v56, %v2193_v19 }
0x1201   :  { %v2195_v21 = vmul.f32 %v4411_v44, %v2194_v61 }
0x1203   :  { %v2196_v38 = vsel %vm2123_vm9, %v2195_v21, 0.0 }
0x1204   :  { %v2197_v35 = vadd.f32 %v2196_v38, %v2120_v41 }
0x1206   :  { %v2253_v45 = vmul.f32 %v4415_v18, %v2197_v35 }
0x1208   :  { %2254 = vadd.xlane.f32.xlu0 %v2253_v45 }
0x1254   :  { %v2357_v54 = vpop.xlane.xlu0 %2356 }
0x1255   :  { %v2358_v6 = vsub.f32 %v4285_v20, %v2357_v54 }
0x1257   :  { %v2359_v36 = vmul.f32 %v4482_v23, %v2358_v6 }
0x1259   :  { %v2360_v55 = vsel %vm2326_vm7, %v2359_v36, 0.0 }
0x125a   :  { %v2361_v62 = vadd.f32 %v2360_v55, %v2297_v26 }
0x125c   :  { %v2419_v3 = vmul.f32 %v4489_v22, %v2361_v62 }
0x125e   :  { %2420 = vadd.xlane.f32.xlu1 %v2419_v3  ;;  %v4548_v3 = vld [vmem:[#allocation0 + $0x20] sm:$0xff] }
0x1272   :  { %v2397_v17 = vpop.xlane.xlu1 %2396 }
0x1273   :  { %v2398_v30 = vsub.f32 %v2394_v46, %v2397_v17 }
0x1274   :  { %v2306_v0 = vpop.xlane.xlu0 %2305 }
0x1275   :  { %3586 = vrsqrt.f32 %v2398_v30  ;;  %v2307_v63 = vsub.f32 %v4324_v8, %v2306_v0 }
0x1276   :  { %v2406_v24 = vpop.xlane.xlu1 %2405 }
0x1277   :  { %v2308_v18 = vmul.f32 %v4456_v37, %v2307_v63  ;;  %v2407_v7 = vsub.f32 %v4507_v57, %v2406_v24 }
0x1279   :  { %v2309_v16 = vsel %vm2262_vm15, %v2308_v18, 0.0 }
0x127a   :  { %v2310_v29 = vadd.f32 %v2309_v16, %v2246_v33 }
0x127c   :  { %v2368_v43 = vmul.f32 %v4464_v39, %v2310_v29 }
0x127e   :  { %2369 = vadd.xlane.f32.xlu0 %v2368_v43 }
0x1282   :  { %v4511_v2 = vpop.eup %3586 }
0x1283   :  { %v2408_v49 = vmul.f32 %v4511_v2, %v2407_v7 }
0x1285   :  { %v2411_v34 = vsel %vm2410_vm1, %v2408_v49, 0.0 }
0x1286   :  { %v2412_v47 = vadd.f32 %v2411_v34, %v2348_v51 }
0x1288   :  { %2414 = vst [vmem:[#allocation1 + $0x18] sm:$0xff] %v2412_v47 }
0x128f   :  { %v4516_v41 = vld [vmem:[#allocation1 + $0x1c] ss:$0 sm:$0xff] }
0x1290   :  { %v2468_v10 = vmul.f32 %v4516_v41, %v2412_v47  ;;  %v2459_v48 = vmul.f32 %v4516_v41, %v4516_v41 }
0x1291   :  { %v2255_v58 = vpop.xlane.xlu0 %2254 }
0x1292   :  { %2469 = vadd.xlane.f32.xlu0 %v2468_v10  ;;  %2460 = vadd.xlane.f32.xlu1 %v2459_v48  ;;  %v2256_v9 = vsub.f32 %v4357_v56, %v2255_v58 }
0x1294   :  { %v2257_v27 = vmul.f32 %v4433_v1, %v2256_v9  ;;  %v2522_v9 = vld [vmem:[#allocation0 + $0x1d] ss:$0 sm:$0xff] }
0x1296   :  { %v2258_v40 = vsel %vm2200_vm10, %v2257_v27, 0.0  ;;  %vm2454_vm10 = vcmask 236768  }
0x1297   :  { %v2259_v26 = vadd.f32 %v2258_v40, %v2197_v35  ;;  %vm2474_vm3 = vmand %vm2454_vm10, %vm485_vm11 }
0x1299   :  { %v2317_v14 = vmul.f32 %v4437_v11, %v2259_v26 }
0x129b   :  { %2318 = vadd.xlane.f32.xlu1 %v2317_v14 }
0x12e7   :  { %v2421_v42 = vpop.xlane.xlu1 %2420 }
0x12e8   :  { %v2422_v12 = vsub.f32 %v4285_v20, %v2421_v42  ;;  %v2458_v20 = vld [vmem:[#allocation0 + $0x1c] ss:$0 sm:$0xff] }
0x12ea   :  { %v2423_v52 = vmul.f32 %v4511_v2, %v2422_v12 }
0x12ec   :  { %v2424_v25 = vsel %vm2390_vm13, %v2423_v52, 0.0 }
0x12ed   :  { %v2425_v31 = vadd.f32 %v2424_v25, %v2361_v62 }
0x12ef   :  { %v2483_v5 = vmul.f32 %v4516_v41, %v2425_v31 }
0x12f1   :  { %2484 = vadd.xlane.f32.xlu0 %v2483_v5 }
0x1307   :  { %v2370_v51 = vpop.xlane.xlu0 %2369 }
0x1308   :  { %v2371_v1 = vsub.f32 %v4324_v8, %v2370_v51 }
0x130a   :  { %v2372_v32 = vmul.f32 %v4482_v23, %v2371_v1 }
0x130c   :  { %v2373_v13 = vsel %vm2326_vm7, %v2372_v32, 0.0 }
0x130d   :  { %v2374_v11 = vadd.f32 %v2373_v13, %v2310_v29 }
0x130f   :  { %v2432_v59 = vmul.f32 %v4489_v22, %v2374_v11 }
0x1311   :  { %2433 = vadd.xlane.f32.xlu1 %v2432_v59 }
0x131b   :  { %v2461_v28 = vpop.xlane.xlu1 %2460  ;;  %v2470_v4 = vpop.xlane.xlu0 %2469 }
0x131c   :  { %v2462_v53 = vsub.f32 %v2458_v20, %v2461_v28  ;;  %v2471_v61 = vsub.f32 %v4507_v57, %v2470_v4 }
0x131e   :  { %3588 = vrsqrt.f32 %v2462_v53 }
0x1324   :  { %v2319_v33 = vpop.xlane.xlu1 %2318 }
0x1325   :  { %v2320_v15 = vsub.f32 %v4357_v56, %v2319_v33 }
0x1327   :  { %v2321_v19 = vmul.f32 %v4456_v37, %v2320_v15 }
0x1329   :  { %v2322_v38 = vsel %vm2262_vm15, %v2321_v19, 0.0  ;;  %vm2518_vm15 = vcmask 244968  }
0x132a   :  { %v2323_v45 = vadd.f32 %v2322_v38, %v2259_v26  ;;  %vm2538_vm12 = vmand %vm2518_vm15, %vm585_vm14 }
0x132b   :  { %v4536_v21 = vpop.eup %3588 }
0x132c   :  { %v2472_v35 = vmul.f32 %v4536_v21, %v2471_v61  ;;  %v2381_v6 = vmul.f32 %v4464_v39, %v2323_v45 }
0x132e   :  { %v2475_v54 = vsel %vm2474_vm3, %v2472_v35, 0.0  ;;  %2382 = vadd.xlane.f32.xlu1 %v2381_v6  ;;  %vm2759_vm3 = vcmask 277768  }
0x132f   :  { %v2476_v36 = vadd.f32 %v2475_v54, %v2412_v47  ;;  %v2586_v54 = vld [vmem:[#allocation0 + $0x1e] ss:$0 sm:$0xff] }
0x1331   :  { %2478 = vst [vmem:[#allocation1 + $0x18] sm:$0xff] %v2476_v36 }
0x1338   :  { %v4543_v55 = vld [vmem:[#allocation1 + $0x1d] ss:$0 sm:$0xff] }
0x1339   :  { %v2523_v37 = vmul.f32 %v4543_v55, %v4543_v55  ;;  %v2532_v62 = vmul.f32 %v4543_v55, %v2476_v36 }
0x133b   :  { %2524 = vadd.xlane.f32.xlu0 %v2523_v37 }
0x133f   :  { %2533 = vadd.xlane.f32.xlu0 %v2532_v62 }
0x137a   :  { %v2485_v46 = vpop.xlane.xlu0 %2484 }
0x137b   :  { %v2486_v17 = vsub.f32 %v4548_v3, %v2485_v46 }
0x137d   :  { %v2487_v30 = vmul.f32 %v4536_v21, %v2486_v17 }
0x137f   :  { %v2488_v39 = vsel %vm2454_vm10, %v2487_v30, 0.0 }
0x1380   :  { %v2489_v0 = vadd.f32 %v2488_v39, %v2425_v31 }
0x1382   :  { %v2547_v63 = vmul.f32 %v4543_v55, %v2489_v0 }
0x1384   :  { %2548 = vadd.xlane.f32.xlu1 %v2547_v63 }
0x139a   :  { %v2434_v18 = vpop.xlane.xlu1 %2433 }
0x139b   :  { %v2435_v16 = vsub.f32 %v4324_v8, %v2434_v18 }
0x139d   :  { %v2436_v29 = vmul.f32 %v4511_v2, %v2435_v16 }
0x139f   :  { %v2437_v24 = vsel %vm2390_vm13, %v2436_v29, 0.0 }
0x13a0   :  { %v2438_v43 = vadd.f32 %v2437_v24, %v2374_v11  ;;  %v4577_v11 = vld [vmem:[#allocation0 + $0x28] sm:$0xff] }
0x13a2   :  { %v2496_v7 = vmul.f32 %v4516_v41, %v2438_v43 }
0x13a4   :  { %2497 = vadd.xlane.f32.xlu0 %v2496_v7 }
0x13b7   :  { %v2383_v49 = vpop.xlane.xlu1 %2382 }
0x13b8   :  { %v2384_v34 = vsub.f32 %v4357_v56, %v2383_v49 }
0x13ba   :  { %v2385_v47 = vmul.f32 %v4482_v23, %v2384_v34 }
0x13bc   :  { %v2386_v10 = vsel %vm2326_vm7, %v2385_v47, 0.0  ;;  %vm2582_vm7 = vcmask 253168  }
0x13bd   :  { %v2387_v48 = vadd.f32 %v2386_v10, %v2323_v45  ;;  %vm2602_vm1 = vmand %vm2582_vm7, %vm685_vm6 }
0x13bf   :  { %v2445_v58 = vmul.f32 %v4489_v22, %v2387_v48 }
0x13c1   :  { %2446 = vadd.xlane.f32.xlu1 %v2445_v58 }
0x13c4   :  { %v2525_v8 = vpop.xlane.xlu0 %2524 }
0x13c5   :  { %v2526_v27 = vsub.f32 %v2522_v9, %v2525_v8 }
0x13c7   :  { %3590 = vrsqrt.f32 %v2526_v27 }
0x13c8   :  { %v2534_v40 = vpop.xlane.xlu0 %2533 }
0x13c9   :  { %v2535_v26 = vsub.f32 %v4507_v57, %v2534_v40  ;;  %v2650_v40 = vld [vmem:[#allocation0 + $0x1f] ss:$0 sm:$0xff] }
0x13d4   :  { %v4563_v14 = vpop.eup %3590 }
0x13d5   :  { %v2536_v23 = vmul.f32 %v4563_v14, %v2535_v26 }
0x13d7   :  { %v2539_v42 = vsel %vm2538_vm12, %v2536_v23, 0.0  ;;  %vm2810_vm12 = vcmask 285968  }
0x13d8   :  { %v2540_v12 = vadd.f32 %v2539_v42, %v2476_v36 }
0x13da   :  { %2542 = vst [vmem:[#allocation1 + $0x18] sm:$0xff] %v2540_v12 }
0x13e1   :  { %v4568_v22 = vld [vmem:[#allocation1 + $0x1e] ss:$0 sm:$0xff] }
0x13e2   :  { %v2587_v52 = vmul.f32 %v4568_v22, %v4568_v22  ;;  %v2596_v25 = vmul.f32 %v4568_v22, %v2540_v12 }
0x13e4   :  { %2588 = vadd.xlane.f32.xlu0 %v2587_v52  ;;  %2597 = vadd.xlane.f32.xlu1 %v2596_v25 }
0x140d   :  { %v2549_v31 = vpop.xlane.xlu1 %2548 }
0x140e   :  { %v2550_v5 = vsub.f32 %v4548_v3, %v2549_v31 }
0x1410   :  { %v2551_v51 = vmul.f32 %v4563_v14, %v2550_v5 }
0x1412   :  { %v2552_v1 = vsel %vm2518_vm15, %v2551_v51, 0.0 }
0x1413   :  { %v2553_v32 = vadd.f32 %v2552_v1, %v2489_v0 }
0x1415   :  { %v2611_v13 = vmul.f32 %v4568_v22, %v2553_v32 }
0x1417   :  { %2612 = vadd.xlane.f32.xlu0 %v2611_v13 }
0x142d   :  { %v2498_v59 = vpop.xlane.xlu0 %2497 }
0x142e   :  { %v2499_v20 = vsub.f32 %v4577_v11, %v2498_v59 }
0x1430   :  { %v2500_v28 = vmul.f32 %v4536_v21, %v2499_v20 }
0x1432   :  { %v2501_v53 = vsel %vm2454_vm10, %v2500_v28, 0.0  ;;  %v4623_v28 = vld [vmem:[#allocation0 + $0x30] sm:$0xff] }
0x1433   :  { %v2502_v33 = vadd.f32 %v2501_v53, %v2438_v43 }
0x1435   :  { %v2560_v4 = vmul.f32 %v4543_v55, %v2502_v33 }
0x1437   :  { %2561 = vadd.xlane.f32.xlu1 %v2560_v4 }
0x144a   :  { %v2447_v15 = vpop.xlane.xlu1 %2446 }
0x144b   :  { %v2448_v19 = vsub.f32 %v4357_v56, %v2447_v15 }
0x144d   :  { %v2449_v61 = vmul.f32 %v4511_v2, %v2448_v19 }
0x144f   :  { %v2450_v38 = vsel %vm2390_vm13, %v2449_v61, 0.0  ;;  %vm2646_vm13 = vcmask 261368  }
0x1450   :  { %v2451_v35 = vadd.f32 %v2450_v38, %v2387_v48  ;;  %v2714_v38 = vld [vmem:[#allocation0 + $0x20] ss:$0 sm:$0xff] }
0x1452   :  { %v2509_v45 = vmul.f32 %v4516_v41, %v2451_v35 }
0x1454   :  { %2510 = vadd.xlane.f32.xlu0 %v2509_v45 }
0x146d   :  { %v2589_v6 = vpop.xlane.xlu0 %2588  ;;  %v2598_v37 = vpop.xlane.xlu1 %2597 }
0x146e   :  { %v2590_v36 = vsub.f32 %v2586_v54, %v2589_v6  ;;  %v2599_v62 = vsub.f32 %v4507_v57, %v2598_v37 }
0x1470   :  { %3592 = vrsqrt.f32 %v2590_v36 }
0x147d   :  { %v4588_v46 = vpop.eup %3592 }
0x147e   :  { %v2600_v2 = vmul.f32 %v4588_v46, %v2599_v62 }
0x1480   :  { %v2603_v17 = vsel %vm2602_vm1, %v2600_v2, 0.0  ;;  %vm2861_vm1 = vcmask 294168  }
0x1481   :  { %v2604_v30 = vadd.f32 %v2603_v17, %v2540_v12 }
0x1483   :  { %2606 = vst [vmem:[#allocation1 + $0x18] sm:$0xff] %v2604_v30 }
0x148a   :  { %v4593_v41 = vld [vmem:[#allocation1 + $0x1f] ss:$0 sm:$0xff] }
0x148b   :  { %v2651_v39 = vmul.f32 %v4593_v41, %v4593_v41 }
0x148d   :  { %2652 = vadd.xlane.f32.xlu1 %v2651_v39 }
0x14a0   :  { %v2613_v0 = vpop.xlane.xlu0 %2612 }
0x14a1   :  { %v2614_v63 = vsub.f32 %v4548_v3, %v2613_v0 }
0x14a3   :  { %v2615_v57 = vmul.f32 %v4588_v46, %v2614_v63 }
0x14a5   :  { %v2616_v18 = vsel %vm2582_vm7, %v2615_v57, 0.0 }
0x14a6   :  { %v2617_v16 = vadd.f32 %v2616_v18, %v2553_v32 }
0x14a8   :  { %v2675_v29 = vmul.f32 %v4593_v41, %v2617_v16 }
0x14aa   :  { %2676 = vadd.xlane.f32.xlu0 %v2675_v29 }
0x14c0   :  { %v2562_v24 = vpop.xlane.xlu1 %2561 }
0x14c1   :  { %v2563_v43 = vsub.f32 %v4577_v11, %v2562_v24 }
0x14c3   :  { %v2564_v7 = vmul.f32 %v4563_v14, %v2563_v43 }
0x14c5   :  { %v2565_v49 = vsel %vm2518_vm15, %v2564_v7, 0.0 }
0x14c6   :  { %v2566_v34 = vadd.f32 %v2565_v49, %v2502_v33 }
0x14c8   :  { %v2624_v47 = vmul.f32 %v4568_v22, %v2566_v34 }
0x14ca   :  { %2625 = vadd.xlane.f32.xlu1 %v2624_v47 }
0x14dd   :  { %v2511_v10 = vpop.xlane.xlu0 %2510 }
0x14de   :  { %v2512_v48 = vsub.f32 %v4357_v56, %v2511_v10 }
0x14e0   :  { %v2513_v58 = vmul.f32 %v4536_v21, %v2512_v48 }
0x14e2   :  { %v2514_v9 = vsel %vm2454_vm10, %v2513_v58, 0.0  ;;  %vm2710_vm10 = vcmask 269568  }
0x14e3   :  { %v2515_v8 = vadd.f32 %v2514_v9, %v2451_v35 }
0x14e5   :  { %v2573_v27 = vmul.f32 %v4543_v55, %v2515_v8 }
0x14e7   :  { %2574 = vadd.xlane.f32.xlu0 %v2573_v27 }
0x1516   :  { %v2653_v26 = vpop.xlane.xlu1 %2652 }
0x1517   :  { %v2654_v23 = vsub.f32 %v2650_v40, %v2653_v26 }
0x1519   :  { %3594 = vrsqrt.f32 %v2654_v23 }
0x1526   :  { %v4610_v52 = vpop.eup %3594 }
0x1533   :  { %v2677_v42 = vpop.xlane.xlu0 %2676 }
0x1534   :  { %v2678_v12 = vsub.f32 %v4548_v3, %v2677_v42 }
0x1536   :  { %v2679_v56 = vmul.f32 %v4610_v52, %v2678_v12 }
0x1538   :  { %v2680_v21 = vsel %vm2646_vm13, %v2679_v56, 0.0 }
0x1539   :  { %v2681_v25 = vadd.f32 %v2680_v21, %v2617_v16 }
0x153b   :  { %2683 = vst [vmem:[#allocation1 + $0x20] sm:$0xff] %v2681_v25 }
0x1542   :  { %v4614_v31 = vld [vmem:[#allocation1 + $0x20] ss:$0 sm:$0xff] }
0x1543   :  { %v2724_v55 = vmul.f32 %v4614_v31, %v2681_v25  ;;  %v2715_v5 = vmul.f32 %v4614_v31, %v4614_v31 }
0x1545   :  { %2725 = vadd.xlane.f32.xlu0 %v2724_v55  ;;  %2716 = vadd.xlane.f32.xlu1 %v2715_v5 }
0x1553   :  { %v2626_v51 = vpop.xlane.xlu1 %2625 }
0x1554   :  { %v2627_v1 = vsub.f32 %v4577_v11, %v2626_v51 }
0x1556   :  { %v2628_v32 = vmul.f32 %v4588_v46, %v2627_v1 }
0x1558   :  { %v2629_v13 = vsel %vm2582_vm7, %v2628_v32, 0.0 }
0x1559   :  { %v2630_v59 = vadd.f32 %v2629_v13, %v2566_v34  ;;  %v2763_v34 = vld [vmem:[#allocation0 + $0x21] ss:$0 sm:$0xff] }
0x155b   :  { %v2688_v20 = vmul.f32 %v4593_v41, %v2630_v59 }
0x155d   :  { %2689 = vadd.xlane.f32.xlu1 %v2688_v20 }
0x1570   :  { %v2575_v53 = vpop.xlane.xlu0 %2574 }
0x1571   :  { %v2576_v33 = vsub.f32 %v4623_v28, %v2575_v53 }
0x1573   :  { %v2577_v4 = vmul.f32 %v4563_v14, %v2576_v33 }
0x1575   :  { %v2578_v15 = vsel %vm2518_vm15, %v2577_v4, 0.0  ;;  %vm2779_vm15 = vmand %vm2759_vm3, %vm185_vm2 }
0x1576   :  { %v2579_v19 = vadd.f32 %v2578_v15, %v2515_v8 }
0x1578   :  { %v2637_v61 = vmul.f32 %v4568_v22, %v2579_v19 }
0x157a   :  { %2638 = vadd.xlane.f32.xlu0 %v2637_v61 }
0x15ce   :  { %v2717_v35 = vpop.xlane.xlu1 %2716  ;;  %v2726_v54 = vpop.xlane.xlu0 %2725 }
0x15cf   :  { %v2718_v45 = vsub.f32 %v2714_v38, %v2717_v35  ;;  %v2727_v6 = vsub.f32 %v4548_v3, %v2726_v54 }
0x15d1   :  { %3596 = vrsqrt.f32 %v2718_v45 }
0x15de   :  { %v4630_v36 = vpop.eup %3596 }
0x15df   :  { %v2728_v37 = vmul.f32 %v4630_v36, %v2727_v6 }
0x15e1   :  { %v2729_v14 = vsel %vm2710_vm10, %v2728_v37, 0.0 }
0x15e2   :  { %v2730_v62 = vadd.f32 %v2729_v14, %v2681_v25 }
0x15e4   :  { %2732 = vst [vmem:[#allocation1 + $0x20] sm:$0xff] %v2730_v62 }
0x15e6   :  { %v2690_v2 = vpop.xlane.xlu1 %2689 }
0x15e7   :  { %v2691_v22 = vsub.f32 %v4577_v11, %v2690_v2 }
0x15e9   :  { %v2692_v17 = vmul.f32 %v4610_v52, %v2691_v22 }
0x15eb   :  { %v4636_v30 = vld [vmem:[#allocation1 + $0x21] ss:$0 sm:$0xff]  ;;  %v2693_v0 = vsel %vm2646_vm13, %v2692_v17, 0.0 }
0x15ec   :  { %v2764_v39 = vmul.f32 %v4636_v30, %v4636_v30  ;;  %v2694_v63 = vadd.f32 %v2693_v0, %v2630_v59  ;;  %v2773_v57 = vmul.f32 %v4636_v30, %v2730_v62 }
0x15ee   :  { %2765 = vadd.xlane.f32.xlu1 %v2764_v39  ;;  %v2737_v18 = vmul.f32 %v4614_v31, %v2694_v63 }
0x15f0   :  { %2738 = vadd.xlane.f32.xlu0 %v2737_v18 }
0x15f2   :  { %2774 = vadd.xlane.f32.xlu1 %v2773_v57 }
0x1603   :  { %v2639_v16 = vpop.xlane.xlu0 %2638 }
0x1604   :  { %v2640_v29 = vsub.f32 %v4623_v28, %v2639_v16 }
0x1606   :  { %v2641_v24 = vmul.f32 %v4588_v46, %v2640_v29 }
0x1608   :  { %v2642_v43 = vsel %vm2582_vm7, %v2641_v24, 0.0  ;;  %vm2830_vm7 = vmand %vm2810_vm12, %vm285_vm5 }
0x1609   :  { %v2643_v7 = vadd.f32 %v2642_v43, %v2579_v19  ;;  %v2814_v19 = vld [vmem:[#allocation0 + $0x22] ss:$0 sm:$0xff] }
0x160b   :  { %v2701_v49 = vmul.f32 %v4593_v41, %v2643_v7 }
0x160d   :  { %2702 = vadd.xlane.f32.xlu0 %v2701_v49 }
0x1677   :  { %v2766_v47 = vpop.xlane.xlu1 %2765 }
0x1678   :  { %v2767_v10 = vsub.f32 %v2763_v34, %v2766_v47 }
0x1679   :  { %v2739_v48 = vpop.xlane.xlu0 %2738 }
0x167a   :  { %3598 = vrsqrt.f32 %v2767_v10  ;;  %v2740_v58 = vsub.f32 %v4577_v11, %v2739_v48  ;;  %v2865_v48 = vld [vmem:[#allocation0 + $0x23] ss:$0 sm:$0xff] }
0x167b   :  { %v2775_v40 = vpop.xlane.xlu1 %2774 }
0x167c   :  { %v2741_v9 = vmul.f32 %v4630_v36, %v2740_v58  ;;  %v2776_v41 = vsub.f32 %v4548_v3, %v2775_v40 }
0x167e   :  { %v2742_v8 = vsel %vm2710_vm10, %v2741_v9, 0.0 }
0x167f   :  { %v2743_v27 = vadd.f32 %v2742_v8, %v2694_v63 }
0x1681   :  { %v2788_v46 = vmul.f32 %v4636_v30, %v2743_v27 }
0x1683   :  { %2789 = vadd.xlane.f32.xlu1 %v2788_v46 }
0x1687   :  { %v3599_v26 = vpop.eup %3598 }
0x1688   :  { %v2777_v23 = vmul.f32 %v3599_v26, %v2776_v41 }
0x168a   :  { %v2780_v42 = vsel %vm2779_vm15, %v2777_v23, 0.0 }
0x168b   :  { %v2781_v12 = vadd.f32 %v2780_v42, %v2730_v62 }
0x168d   :  { %2783 = vst [vmem:[#allocation1 + $0x20] sm:$0xff] %v2781_v12 }
0x1694   :  { %v2812_v56 = vld [vmem:[#allocation1 + $0x22] ss:$0 sm:$0xff] }
0x1695   :  { %v2824_v21 = vmul.f32 %v2812_v56, %v2781_v12  ;;  %v2815_v25 = vmul.f32 %v2812_v56, %v2812_v56 }
0x1696   :  { %v2703_v55 = vpop.xlane.xlu0 %2702 }
0x1697   :  { %2825 = vadd.xlane.f32.xlu1 %v2824_v21  ;;  %2816 = vadd.xlane.f32.xlu0 %v2815_v25  ;;  %v2704_v5 = vsub.f32 %v4623_v28, %v2703_v55 }
0x1699   :  { %v2705_v51 = vmul.f32 %v4610_v52, %v2704_v5 }
0x169b   :  { %v2706_v1 = vsel %vm2646_vm13, %v2705_v51, 0.0 }
0x169c   :  { %v2707_v32 = vadd.f32 %v2706_v1, %v2643_v7 }
0x169e   :  { %v2750_v13 = vmul.f32 %v4614_v31, %v2707_v32 }
0x16a0   :  { %2751 = vadd.xlane.f32.xlu0 %v2750_v13 }
0x170c   :  { %v2790_v59 = vpop.xlane.xlu1 %2789 }
0x170d   :  { %v2791_v20 = vsub.f32 %v4577_v11, %v2790_v59 }
0x170f   :  { %v2792_v53 = vmul.f32 %v3599_v26, %v2791_v20 }
0x1711   :  { %v2793_v33 = vsel %vm2759_vm3, %v2792_v53, 0.0 }
0x1712   :  { %v2794_v4 = vadd.f32 %v2793_v33, %v2743_v27  ;;  %v2916_v33 = vld [vmem:[#allocation0 + $0x24] ss:$0 sm:$0xff] }
0x1714   :  { %v2839_v15 = vmul.f32 %v2812_v56, %v2794_v4 }
0x1716   :  { %2840 = vadd.xlane.f32.xlu1 %v2839_v15 }
0x1720   :  { %v2817_v61 = vpop.xlane.xlu0 %2816  ;;  %v2826_v45 = vpop.xlane.xlu1 %2825 }
0x1721   :  { %v2818_v38 = vsub.f32 %v2814_v19, %v2817_v61  ;;  %v2827_v6 = vsub.f32 %v4548_v3, %v2826_v45 }
0x1723   :  { %3600 = vrsqrt.f32 %v2818_v38 }
0x1729   :  { %v2752_v35 = vpop.xlane.xlu0 %2751 }
0x172a   :  { %v2753_v54 = vsub.f32 %v4623_v28, %v2752_v35 }
0x172c   :  { %v2754_v31 = vmul.f32 %v4630_v36, %v2753_v54 }
0x172e   :  { %v2755_v14 = vsel %vm2710_vm10, %v2754_v31, 0.0  ;;  %vm2881_vm10 = vmand %vm2861_vm1, %vm385_vm8 }
0x172f   :  { %v2756_v2 = vadd.f32 %v2755_v14, %v2707_v32 }
0x1730   :  { %v3601_v37 = vpop.eup %3600 }
0x1731   :  { %v2828_v62 = vmul.f32 %v3601_v37, %v2827_v6  ;;  %v2801_v17 = vmul.f32 %v4636_v30, %v2756_v2 }
0x1733   :  { %v2831_v22 = vsel %vm2830_vm7, %v2828_v62, 0.0  ;;  %2802 = vadd.xlane.f32.xlu1 %v2801_v17 }
0x1734   :  { %v2832_v39 = vadd.f32 %v2831_v22, %v2781_v12 }
0x1736   :  { %2834 = vst [vmem:[#allocation1 + $0x20] sm:$0xff] %v2832_v39 }
0x173d   :  { %v2863_v0 = vld [vmem:[#allocation1 + $0x23] ss:$0 sm:$0xff] }
0x173e   :  { %v2866_v63 = vmul.f32 %v2863_v0, %v2863_v0  ;;  %v2875_v36 = vmul.f32 %v2863_v0, %v2832_v39 }
0x1740   :  { %2867 = vadd.xlane.f32.xlu0 %v2866_v63 }
0x1744   :  { %2876 = vadd.xlane.f32.xlu0 %v2875_v36 }
0x179f   :  { %v2841_v57 = vpop.xlane.xlu1 %2840 }
0x17a0   :  { %v2842_v18 = vsub.f32 %v4577_v11, %v2841_v57 }
0x17a2   :  { %v2843_v16 = vmul.f32 %v3601_v37, %v2842_v18 }
0x17a4   :  { %v2844_v29 = vsel %vm2810_vm12, %v2843_v16, 0.0 }
0x17a5   :  { %v2845_v24 = vadd.f32 %v2844_v29, %v2794_v4  ;;  %v2967_v29 = vld [vmem:[#allocation0 + $0x25] ss:$0 sm:$0xff] }
0x17a7   :  { %v2890_v43 = vmul.f32 %v2863_v0, %v2845_v24 }
0x17a9   :  { %2891 = vadd.xlane.f32.xlu1 %v2890_v43 }
0x17bc   :  { %v2803_v7 = vpop.xlane.xlu1 %2802 }
0x17bd   :  { %v2804_v30 = vsub.f32 %v4623_v28, %v2803_v7 }
0x17bf   :  { %v2805_v49 = vmul.f32 %v3599_v26, %v2804_v30 }
0x17c1   :  { %v2806_v34 = vsel %vm2759_vm3, %v2805_v49, 0.0  ;;  %vm2912_vm3 = vcmask 302368  }
0x17c2   :  { %v2807_v47 = vadd.f32 %v2806_v34, %v2756_v2  ;;  %vm2932_vm15 = vmand %vm2912_vm3, %vm485_vm11 }
0x17c4   :  { %v2852_v10 = vmul.f32 %v2812_v56, %v2807_v47 }
0x17c6   :  { %2853 = vadd.xlane.f32.xlu0 %v2852_v10 }
0x17c9   :  { %v2868_v58 = vpop.xlane.xlu0 %2867 }
0x17ca   :  { %v2869_v9 = vsub.f32 %v2865_v48, %v2868_v58 }
0x17cc   :  { %3602 = vrsqrt.f32 %v2869_v9 }
0x17cd   :  { %v2877_v8 = vpop.xlane.xlu0 %2876 }
0x17ce   :  { %v2878_v27 = vsub.f32 %v4548_v3, %v2877_v8 }
0x17d9   :  { %v3603_v40 = vpop.eup %3602 }
0x17da   :  { %v2879_v46 = vmul.f32 %v3603_v40, %v2878_v27 }
0x17dc   :  { %v2882_v41 = vsel %vm2881_vm10, %v2879_v46, 0.0 }
0x17dd   :  { %v2883_v26 = vadd.f32 %v2882_v41, %v2832_v39 }
0x17df   :  { %2885 = vst [vmem:[#allocation1 + $0x20] sm:$0xff] %v2883_v26 }
0x17e6   :  { %v2914_v23 = vld [vmem:[#allocation1 + $0x24] ss:$0 sm:$0xff] }
0x17e7   :  { %v2917_v42 = vmul.f32 %v2914_v23, %v2914_v23  ;;  %v2926_v12 = vmul.f32 %v2914_v23, %v2883_v26 }
0x17e9   :  { %2918 = vadd.xlane.f32.xlu1 %v2917_v42  ;;  %2927 = vadd.xlane.f32.xlu0 %v2926_v12 }
0x1832   :  { %v2892_v56 = vpop.xlane.xlu1 %2891 }
0x1833   :  { %v2893_v21 = vsub.f32 %v4577_v11, %v2892_v56 }
0x1835   :  { %v2894_v25 = vmul.f32 %v3603_v40, %v2893_v21 }
0x1837   :  { %v2895_v55 = vsel %vm2861_vm1, %v2894_v25, 0.0 }
0x1838   :  { %v2896_v5 = vadd.f32 %v2895_v55, %v2845_v24  ;;  %v3018_v55 = vld [vmem:[#allocation0 + $0x26] ss:$0 sm:$0xff] }
0x183a   :  { %v2941_v51 = vmul.f32 %v2914_v23, %v2896_v5 }
0x183c   :  { %2942 = vadd.xlane.f32.xlu1 %v2941_v51 }
0x184f   :  { %v2854_v1 = vpop.xlane.xlu0 %2853 }
0x1850   :  { %v2855_v32 = vsub.f32 %v4623_v28, %v2854_v1 }
0x1852   :  { %v2856_v13 = vmul.f32 %v3601_v37, %v2855_v32 }
0x1854   :  { %v2857_v59 = vsel %vm2810_vm12, %v2856_v13, 0.0  ;;  %vm2963_vm12 = vcmask 310568  }
0x1855   :  { %v2858_v20 = vadd.f32 %v2857_v59, %v2807_v47  ;;  %vm2983_vm7 = vmand %vm2963_vm12, %vm585_vm14 }
0x1857   :  { %v2903_v53 = vmul.f32 %v2863_v0, %v2858_v20 }
0x1859   :  { %2904 = vadd.xlane.f32.xlu0 %v2903_v53 }
0x1872   :  { %v2919_v4 = vpop.xlane.xlu1 %2918  ;;  %v2928_v19 = vpop.xlane.xlu0 %2927 }
0x1873   :  { %v2920_v15 = vsub.f32 %v2916_v33, %v2919_v4  ;;  %v2929_v61 = vsub.f32 %v4548_v3, %v2928_v19 }
0x1875   :  { %3604 = vrsqrt.f32 %v2920_v15 }
0x1882   :  { %v3605_v38 = vpop.eup %3604 }
0x1883   :  { %v2930_v35 = vmul.f32 %v3605_v38, %v2929_v61 }
0x1885   :  { %v2933_v45 = vsel %vm2932_vm15, %v2930_v35, 0.0  ;;  %vm3116_vm15 = vcmask 335168  }
0x1886   :  { %v2934_v54 = vadd.f32 %v2933_v45, %v2883_v26 }
0x1888   :  { %2936 = vst [vmem:[#allocation1 + $0x20] sm:$0xff] %v2934_v54 }
0x188f   :  { %v2965_v31 = vld [vmem:[#allocation1 + $0x25] ss:$0 sm:$0xff] }
0x1890   :  { %v2977_v6 = vmul.f32 %v2965_v31, %v2934_v54  ;;  %v2968_v37 = vmul.f32 %v2965_v31, %v2965_v31 }
0x1892   :  { %2978 = vadd.xlane.f32.xlu0 %v2977_v6  ;;  %2969 = vadd.xlane.f32.xlu1 %v2968_v37 }
0x18c5   :  { %v2943_v14 = vpop.xlane.xlu1 %2942 }
0x18c6   :  { %v2944_v62 = vsub.f32 %v4577_v11, %v2943_v14 }
0x18c8   :  { %v2945_v2 = vmul.f32 %v3605_v38, %v2944_v62  ;;  %v3069_v62 = vld [vmem:[#allocation0 + $0x27] ss:$0 sm:$0xff] }
0x18ca   :  { %v2946_v22 = vsel %vm2912_vm3, %v2945_v2, 0.0 }
0x18cb   :  { %v2947_v17 = vadd.f32 %v2946_v22, %v2896_v5 }
0x18cd   :  { %v2992_v39 = vmul.f32 %v2965_v31, %v2947_v17 }
0x18cf   :  { %2993 = vadd.xlane.f32.xlu1 %v2992_v39 }
0x18e2   :  { %v2905_v0 = vpop.xlane.xlu0 %2904 }
0x18e3   :  { %v2906_v63 = vsub.f32 %v4623_v28, %v2905_v0 }
0x18e5   :  { %v2907_v36 = vmul.f32 %v3603_v40, %v2906_v63 }
0x18e7   :  { %v2908_v57 = vsel %vm2861_vm1, %v2907_v36, 0.0  ;;  %vm3014_vm1 = vcmask 318768  }
0x18e8   :  { %v2909_v18 = vadd.f32 %v2908_v57, %v2858_v20  ;;  %vm3034_vm10 = vmand %vm3014_vm1, %vm685_vm6 }
0x18ea   :  { %v2954_v16 = vmul.f32 %v2914_v23, %v2909_v18 }
0x18ec   :  { %2955 = vadd.xlane.f32.xlu0 %v2954_v16 }
0x191b   :  { %v2970_v24 = vpop.xlane.xlu1 %2969  ;;  %v2979_v7 = vpop.xlane.xlu0 %2978 }
0x191c   :  { %v2971_v43 = vsub.f32 %v2967_v29, %v2970_v24  ;;  %v2980_v30 = vsub.f32 %v4548_v3, %v2979_v7 }
0x191e   :  { %3606 = vrsqrt.f32 %v2971_v43 }
0x192b   :  { %v3607_v49 = vpop.eup %3606 }
0x192c   :  { %v2981_v34 = vmul.f32 %v3607_v49, %v2980_v30 }
0x192e   :  { %v2984_v47 = vsel %vm2983_vm7, %v2981_v34, 0.0 }
0x192f   :  { %v2985_v10 = vadd.f32 %v2984_v47, %v2934_v54  ;;  %v3120_v47 = vld [vmem:[#allocation0 + $0x28] ss:$0 sm:$0xff] }
0x1931   :  { %2987 = vst [vmem:[#allocation1 + $0x20] sm:$0xff] %v2985_v10 }
0x1938   :  { %v3016_v48 = vld [vmem:[#allocation1 + $0x26] ss:$0 sm:$0xff] }
0x1939   :  { %v3028_v58 = vmul.f32 %v3016_v48, %v2985_v10  ;;  %v3019_v9 = vmul.f32 %v3016_v48, %v3016_v48 }
0x193b   :  { %3029 = vadd.xlane.f32.xlu0 %v3028_v58  ;;  %3020 = vadd.xlane.f32.xlu1 %v3019_v9 }
0x1958   :  { %v2994_v8 = vpop.xlane.xlu1 %2993 }
0x1959   :  { %v2995_v27 = vsub.f32 %v4577_v11, %v2994_v8 }
0x195b   :  { %v2996_v40 = vmul.f32 %v3607_v49, %v2995_v27 }
0x195d   :  { %v2997_v46 = vsel %vm2963_vm12, %v2996_v40, 0.0 }
0x195e   :  { %v2998_v41 = vadd.f32 %v2997_v46, %v2947_v17 }
0x1960   :  { %v3043_v26 = vmul.f32 %v3016_v48, %v2998_v41 }
0x1962   :  { %3044 = vadd.xlane.f32.xlu1 %v3043_v26 }
0x1975   :  { %v2956_v23 = vpop.xlane.xlu0 %2955 }
0x1976   :  { %v2957_v42 = vsub.f32 %v4623_v28, %v2956_v23 }
0x1978   :  { %v2958_v12 = vmul.f32 %v3605_v38, %v2957_v42 }
0x197a   :  { %v2959_v56 = vsel %vm2912_vm3, %v2958_v12, 0.0  ;;  %vm3065_vm3 = vcmask 326968  }
0x197b   :  { %v2960_v21 = vadd.f32 %v2959_v56, %v2909_v18 }
0x197d   :  { %v3005_v25 = vmul.f32 %v2965_v31, %v2960_v21 }
0x197f   :  { %3006 = vadd.xlane.f32.xlu0 %v3005_v25 }
0x19c4   :  { %v3021_v5 = vpop.xlane.xlu1 %3020  ;;  %v3030_v1 = vpop.xlane.xlu0 %3029 }
0x19c5   :  { %v3022_v51 = vsub.f32 %v3018_v55, %v3021_v5  ;;  %v3031_v32 = vsub.f32 %v4548_v3, %v3030_v1  ;;  %v3156_v5 = vld [vmem:[#allocation0 + $0x29] ss:$0 sm:$0xff] }
0x19c7   :  { %3608 = vrsqrt.f32 %v3022_v51 }
0x19d4   :  { %v3609_v13 = vpop.eup %3608 }
0x19d5   :  { %v3032_v59 = vmul.f32 %v3609_v13, %v3031_v32 }
0x19d7   :  { %v3035_v20 = vsel %vm3034_vm10, %v3032_v59, 0.0 }
0x19d8   :  { %v4695_v53 = vadd.f32 %v3035_v20, %v2985_v10 }
0x19da   :  { %3038 = vst [vmem:[#allocation1 + $0x20] sm:$0xff] %v4695_v53 }
0x19e1   :  { %v4698_v33 = vld [vmem:[#allocation1 + $0x27] ss:$0 sm:$0xff] }
0x19e2   :  { %v3070_v4 = vmul.f32 %v4698_v33, %v4698_v33 }
0x19e4   :  { %3071 = vadd.xlane.f32.xlu1 %v3070_v4 }
0x19eb   :  { %v3045_v15 = vpop.xlane.xlu1 %3044 }
0x19ec   :  { %v3046_v19 = vsub.f32 %v4577_v11, %v3045_v15 }
0x19ee   :  { %v3047_v3 = vmul.f32 %v3609_v13, %v3046_v19 }
0x19f0   :  { %v3048_v61 = vsel %vm3014_vm1, %v3047_v3, 0.0 }
0x19f1   :  { %v3049_v38 = vadd.f32 %v3048_v61, %v2998_v41 }
0x19f3   :  { %v3094_v35 = vmul.f32 %v4698_v33, %v3049_v38 }
0x19f5   :  { %3095 = vadd.xlane.f32.xlu0 %v3094_v35 }
0x1a08   :  { %v3007_v45 = vpop.xlane.xlu0 %3006 }
0x1a09   :  { %v3008_v54 = vsub.f32 %v4623_v28, %v3007_v45 }
0x1a0b   :  { %v3009_v31 = vmul.f32 %v3607_v49, %v3008_v54 }
0x1a0d   :  { %v3010_v6 = vsel %vm2963_vm12, %v3009_v31, 0.0  ;;  %vm3152_vm12 = vcmask 343368  }
0x1a0e   :  { %v3011_v37 = vadd.f32 %v3010_v6, %v2960_v21  ;;  %vm3172_vm7 = vmand %vm3152_vm12, %vm185_vm2 }
0x1a10   :  { %v3056_v14 = vmul.f32 %v3016_v48, %v3011_v37 }
0x1a12   :  { %3057 = vadd.xlane.f32.xlu1 %v3056_v14 }
0x1a6d   :  { %v3072_v2 = vpop.xlane.xlu1 %3071 }
0x1a6e   :  { %v3073_v22 = vsub.f32 %v3069_v62, %v3072_v2 }
0x1a70   :  { %3610 = vrsqrt.f32 %v3073_v22 }
0x1a7d   :  { %v4708_v0 = vpop.eup %3610 }
0x1a7e   :  { %v3096_v17 = vpop.xlane.xlu0 %3095 }
0x1a7f   :  { %v3097_v39 = vsub.f32 %v4577_v11, %v3096_v17 }
0x1a81   :  { %v3098_v63 = vmul.f32 %v4708_v0, %v3097_v39  ;;  %v3194_v39 = vld [vmem:[#allocation0 + $0x2a] ss:$0 sm:$0xff] }
0x1a83   :  { %v3099_v36 = vsel %vm3065_vm3, %v3098_v63, 0.0 }
0x1a84   :  { %v3100_v57 = vadd.f32 %v3099_v36, %v3049_v38 }
0x1a86   :  { %3102 = vst [vmem:[#allocation1 + $0x28] sm:$0xff] %v3100_v57 }
0x1a8d   :  { %v3118_v18 = vld [vmem:[#allocation1 + $0x28] ss:$0 sm:$0xff] }
0x1a8e   :  { %v3130_v16 = vmul.f32 %v3118_v18, %v3100_v57  ;;  %v3121_v29 = vmul.f32 %v3118_v18, %v3118_v18 }
0x1a90   :  { %3131 = vadd.xlane.f32.xlu1 %v3130_v16  ;;  %3122 = vadd.xlane.f32.xlu0 %v3121_v29 }
0x1a9b   :  { %v3058_v24 = vpop.xlane.xlu1 %3057 }
0x1a9c   :  { %v3059_v43 = vsub.f32 %v4623_v28, %v3058_v24 }
0x1a9e   :  { %v3060_v7 = vmul.f32 %v3609_v13, %v3059_v43 }
0x1aa0   :  { %v3061_v30 = vsel %vm3014_vm1, %v3060_v7, 0.0  ;;  %vm3190_vm1 = vcmask 351568  }
0x1aa1   :  { %v3062_v49 = vadd.f32 %v3061_v30, %v3011_v37  ;;  %vm3210_vm10 = vmand %vm3190_vm1, %vm285_vm5  ;;  %vm3228_vm5 = vcmask 359768  }
0x1aa3   :  { %v3107_v34 = vmul.f32 %v4698_v33, %v3062_v49 }
0x1aa5   :  { %3108 = vadd.xlane.f32.xlu0 %v3107_v34 }
0x1b19   :  { %v3123_v10 = vpop.xlane.xlu0 %3122  ;;  %v3132_v58 = vpop.xlane.xlu1 %3131 }
0x1b1a   :  { %v3124_v48 = vsub.f32 %v3120_v47, %v3123_v10  ;;  %v3133_v9 = vsub.f32 %v4577_v11, %v3132_v58 }
0x1b1c   :  { %3612 = vrsqrt.f32 %v3124_v48 }
0x1b29   :  { %v3613_v8 = vpop.eup %3612 }
0x1b2a   :  { %v3134_v27 = vmul.f32 %v3613_v8, %v3133_v9  ;;  %v3232_v9 = vld [vmem:[#allocation0 + $0x2b] ss:$0 sm:$0xff] }
0x1b2c   :  { %v3135_v40 = vsel %vm3116_vm15, %v3134_v27, 0.0 }
0x1b2d   :  { %v3136_v46 = vadd.f32 %v3135_v40, %v3100_v57  ;;  %v4732_v40 = vld [vmem:[#allocation0 + $0x28] sm:$0xff] }
0x1b2e   :  { %v3109_v41 = vpop.xlane.xlu0 %3108 }
0x1b2f   :  { %3138 = vst [vmem:[#allocation1 + $0x28] sm:$0xff] %v3136_v46  ;;  %v3110_v26 = vsub.f32 %v4623_v28, %v3109_v41 }
0x1b31   :  { %v3111_v23 = vmul.f32 %v4708_v0, %v3110_v26 }
0x1b33   :  { %v3112_v42 = vsel %vm3065_vm3, %v3111_v23, 0.0 }
0x1b34   :  { %v3113_v12 = vadd.f32 %v3112_v42, %v3062_v49 }
0x1b36   :  { %v3154_v56 = vld [vmem:[#allocation1 + $0x29] ss:$0 sm:$0xff]  ;;  %v3143_v21 = vmul.f32 %v3118_v18, %v3113_v12 }
0x1b37   :  { %v3157_v25 = vmul.f32 %v3154_v56, %v3154_v56  ;;  %v3166_v55 = vmul.f32 %v3154_v56, %v3136_v46 }
0x1b38   :  { %3144 = vadd.xlane.f32.xlu0 %v3143_v21 }
0x1b39   :  { %3158 = vadd.xlane.f32.xlu1 %v3157_v25 }
0x1b3d   :  { %3167 = vadd.xlane.f32.xlu1 %v3166_v55 }
0x1bc1   :  { %v3145_v51 = vpop.xlane.xlu0 %3144 }
0x1bc2   :  { %v3159_v1 = vpop.xlane.xlu1 %3158  ;;  %v3146_v32 = vsub.f32 %v4623_v28, %v3145_v51 }
0x1bc3   :  { %v3160_v13 = vsub.f32 %v3156_v5, %v3159_v1 }
0x1bc4   :  { %v3147_v59 = vmul.f32 %v3613_v8, %v3146_v32 }
0x1bc5   :  { %3614 = vrsqrt.f32 %v3160_v13 }
0x1bc6   :  { %v3148_v20 = vsel %vm3116_vm15, %v3147_v59, 0.0  ;;  %v3168_v19 = vpop.xlane.xlu1 %3167  ;;  %vm3248_vm15 = vmand %vm3228_vm5, %vm385_vm8  ;;  %v3270_v59 = vld [vmem:[#allocation0 + $0x2c] ss:$0 sm:$0xff]  ;;  %vm3266_vm8 = vcmask 367968  }
0x1bc7   :  { %v3149_v4 = vadd.f32 %v3148_v20, %v3113_v12  ;;  %v3169_v3 = vsub.f32 %v4577_v11, %v3168_v19 }
0x1bc9   :  { %v3181_v15 = vmul.f32 %v3154_v56, %v3149_v4 }
0x1bcb   :  { %3182 = vadd.xlane.f32.xlu0 %v3181_v15 }
0x1bd2   :  { %v3615_v61 = vpop.eup %3614 }
0x1bd3   :  { %v3170_v38 = vmul.f32 %v3615_v61, %v3169_v3 }
0x1bd5   :  { %v3173_v35 = vsel %vm3172_vm7, %v3170_v38, 0.0 }
0x1bd6   :  { %v3174_v45 = vadd.f32 %v3173_v35, %v3136_v46 }
0x1bd8   :  { %3176 = vst [vmem:[#allocation1 + $0x28] sm:$0xff] %v3174_v45 }
0x1bdf   :  { %v3192_v54 = vld [vmem:[#allocation1 + $0x2a] ss:$0 sm:$0xff] }
0x1be0   :  { %v3195_v31 = vmul.f32 %v3192_v54, %v3192_v54  ;;  %v3204_v6 = vmul.f32 %v3192_v54, %v3174_v45 }
0x1be2   :  { %3196 = vadd.xlane.f32.xlu1 %v3195_v31  ;;  %3205 = vadd.xlane.f32.xlu0 %v3204_v6 }
0x1c54   :  { %v3183_v37 = vpop.xlane.xlu0 %3182 }
0x1c55   :  { %v3184_v14 = vsub.f32 %v4623_v28, %v3183_v37 }
0x1c57   :  { %v3185_v62 = vmul.f32 %v3615_v61, %v3184_v14 }
0x1c59   :  { %v3186_v2 = vsel %vm3152_vm12, %v3185_v62, 0.0  ;;  %vm3286_vm12 = vmand %vm3266_vm8, %vm485_vm11  ;;  %vm3304_vm11 = vcmask 376168  }
0x1c5a   :  { %v3187_v22 = vadd.f32 %v3186_v2, %v3149_v4  ;;  %vm3324_vm7 = vmand %vm3304_vm11, %vm585_vm14  ;;  %vm3342_vm14 = vcmask 384368  }
0x1c5c   :  { %v3219_v17 = vmul.f32 %v3192_v54, %v3187_v22 }
0x1c5e   :  { %3220 = vadd.xlane.f32.xlu1 %v3219_v17  ;;  %v3308_v17 = vld [vmem:[#allocation0 + $0x2d] ss:$0 sm:$0xff] }
0x1c6b   :  { %v3197_v63 = vpop.xlane.xlu1 %3196  ;;  %v3206_v57 = vpop.xlane.xlu0 %3205 }
0x1c6c   :  { %v3198_v36 = vsub.f32 %v3194_v39, %v3197_v63  ;;  %v3207_v18 = vsub.f32 %v4577_v11, %v3206_v57 }
0x1c6e   :  { %3616 = vrsqrt.f32 %v3198_v36 }
0x1c7b   :  { %v3617_v16 = vpop.eup %3616 }
0x1c7c   :  { %v3208_v29 = vmul.f32 %v3617_v16, %v3207_v18 }
0x1c7e   :  { %v3211_v24 = vsel %vm3210_vm10, %v3208_v29, 0.0  ;;  %vm785_vm10 = vcmask 1047559  }
0x1c7f   :  { %v3212_v43 = vadd.f32 %v3211_v24, %v3174_v45 }
0x1c81   :  { %3214 = vst [vmem:[#allocation1 + $0x28] sm:$0xff] %v3212_v43 }
0x1c88   :  { %v3230_v7 = vld [vmem:[#allocation1 + $0x2b] ss:$0 sm:$0xff] }
0x1c89   :  { %v3242_v30 = vmul.f32 %v3230_v7, %v3212_v43  ;;  %v3233_v49 = vmul.f32 %v3230_v7, %v3230_v7 }
0x1c8b   :  { %3243 = vadd.xlane.f32.xlu1 %v3242_v30  ;;  %3234 = vadd.xlane.f32.xlu0 %v3233_v49 }
0x1ce7   :  { %v3221_v34 = vpop.xlane.xlu1 %3220 }
0x1ce8   :  { %v3222_v47 = vsub.f32 %v4623_v28, %v3221_v34 }
0x1cea   :  { %v3223_v10 = vmul.f32 %v3617_v16, %v3222_v47 }
0x1cec   :  { %v3224_v48 = vsel %vm3190_vm1, %v3223_v10, 0.0  ;;  %vm3362_vm1 = vmand %vm3342_vm14, %vm685_vm6  ;;  %vm3380_vm6 = vcmask 392568  }
0x1ced   :  { %v3225_v11 = vadd.f32 %v3224_v48, %v3187_v22 }
0x1cef   :  { %v3257_v58 = vmul.f32 %v3230_v7, %v3225_v11 }
0x1cf1   :  { %3258 = vadd.xlane.f32.xlu0 %v3257_v58  ;;  %v3346_v58 = vld [vmem:[#allocation0 + $0x2e] ss:$0 sm:$0xff] }
0x1d14   :  { %v3235_v8 = vpop.xlane.xlu0 %3234  ;;  %v3244_v46 = vpop.xlane.xlu1 %3243 }
0x1d15   :  { %v3236_v27 = vsub.f32 %v3232_v9, %v3235_v8  ;;  %v3245_v41 = vsub.f32 %v4732_v40, %v3244_v46 }
0x1d17   :  { %3618 = vrsqrt.f32 %v3236_v27 }
0x1d24   :  { %v3619_v26 = vpop.eup %3618 }
0x1d25   :  { %v3246_v23 = vmul.f32 %v3619_v26, %v3245_v41 }
0x1d27   :  { %v3249_v42 = vsel %vm3248_vm15, %v3246_v23, 0.0  ;;  %vm2143_vm15 = vmand %vm2123_vm9, %vm785_vm10  ;;  %vm3418_vm9 = vcmask 400768  }
0x1d28   :  { %v3250_v12 = vadd.f32 %v3249_v42, %v3212_v43 }
0x1d2a   :  { %3252 = vst [vmem:[#allocation1 + $0x28] sm:$0xff] %v3250_v12 }
0x1d31   :  { %v3268_v56 = vld [vmem:[#allocation1 + $0x2c] ss:$0 sm:$0xff] }
0x1d32   :  { %v3280_v21 = vmul.f32 %v3268_v56, %v3250_v12  ;;  %v3271_v25 = vmul.f32 %v3268_v56, %v3268_v56 }
0x1d34   :  { %3281 = vadd.xlane.f32.xlu0 %v3280_v21  ;;  %3272 = vadd.xlane.f32.xlu1 %v3271_v25 }
0x1d7a   :  { %v3259_v55 = vpop.xlane.xlu0 %3258 }
0x1d7b   :  { %v3260_v5 = vsub.f32 %v4623_v28, %v3259_v55 }
0x1d7d   :  { %v3261_v51 = vmul.f32 %v3619_v26, %v3260_v5 }
0x1d7f   :  { %v3262_v1 = vsel %vm3228_vm5, %v3261_v51, 0.0  ;;  %vm786_vm5 = vmand %vm768_vm0, %vm785_vm10 }
0x1d80   :  { %v3263_v32 = vadd.f32 %v3262_v1, %v3225_v11  ;;  %vm3085_vm0 = vmand %vm3065_vm3, %vm785_vm10 }
0x1d81   :  { %vm1516_vm3 = vmand %vm1496_vm4, %vm785_vm10  ;;  %vm3441_vm4 = vcmask 408968  }
0x1d82   :  { %v3295_v13 = vmul.f32 %v3268_v56, %v3263_v32  ;;  %v4758_v56 = vld [vmem:[#allocation0 + $0x30] sm:$0xff] }
0x1d84   :  { %3296 = vadd.xlane.f32.xlu1 %v3295_v13 }
0x1dbd   :  { %v3273_v20 = vpop.xlane.xlu1 %3272  ;;  %v3282_v15 = vpop.xlane.xlu0 %3281 }
0x1dbe   :  { %v3274_v4 = vsub.f32 %v3270_v59, %v3273_v20  ;;  %v3283_v19 = vsub.f32 %v4732_v40, %v3282_v15 }
0x1dc0   :  { %3620 = vrsqrt.f32 %v3274_v4 }
0x1dcd   :  { %v3621_v3 = vpop.eup %3620 }
0x1dce   :  { %v3284_v61 = vmul.f32 %v3621_v3, %v3283_v19 }
0x1dd0   :  { %v3287_v38 = vsel %vm3286_vm12, %v3284_v61, 0.0  ;;  %vm3400_vm12 = vmand %vm3380_vm6, %vm785_vm10 }
0x1dd1   :  { %v3288_v35 = vadd.f32 %v3287_v38, %v3250_v12 }
0x1dd3   :  { %3290 = vst [vmem:[#allocation1 + $0x28] sm:$0xff] %v3288_v35 }
0x1dda   :  { %v3306_v45 = vld [vmem:[#allocation1 + $0x2d] ss:$0 sm:$0xff] }
0x1ddb   :  { %v3318_v54 = vmul.f32 %v3306_v45, %v3288_v35  ;;  %v3309_v31 = vmul.f32 %v3306_v45, %v3306_v45 }
0x1ddd   :  { %3319 = vadd.xlane.f32.xlu1 %v3318_v54  ;;  %3310 = vadd.xlane.f32.xlu0 %v3309_v31  ;;  %v779_v54 = vld [vmem:[#allocation1] sm:$0xff] }
0x1dde   :  { %v3632_v31 = vld [vmem:[#allocation1 + $0x7] ss:$0 sm:$0xff] }
0x1e0d   :  { %v3297_v6 = vpop.xlane.xlu1 %3296 }
0x1e0e   :  { %v3298_v37 = vsub.f32 %v4623_v28, %v3297_v6  ;;  %v780_v6 = vmul.f32 %v3632_v31, %v779_v54 }
0x1e10   :  { %v3299_v14 = vmul.f32 %v3621_v3, %v3298_v37  ;;  %v2136_v37 = vld [vmem:[#allocation1 + $0x10] sm:$0xff] }
0x1e12   :  { %v3300_v62 = vsel %vm3266_vm8, %v3299_v14, 0.0  ;;  %v3633_v14 = vld [vmem:[#allocation1 + $0x17] ss:$0 sm:$0xff]  ;;  %vm2666_vm8 = vmand %vm2646_vm13, %vm785_vm10 }
0x1e13   :  { %v3301_v2 = vadd.f32 %v3300_v62, %v3263_v32  ;;  %v3384_v32 = vld [vmem:[#allocation0 + $0x2f] ss:$0 sm:$0xff]  ;;  %v2137_v62 = vmul.f32 %v3633_v14, %v2136_v37  ;;  %vm3461_vm13 = vmand %vm3441_vm4, %vm185_vm2 }
0x1e15   :  { %v3333_v22 = vmul.f32 %v3306_v45, %v3301_v2 }
0x1e17   :  { %3334 = vadd.xlane.f32.xlu0 %v3333_v22  ;;  %v3422_v22 = vld [vmem:[#allocation0 + $0x30] ss:$0 sm:$0xff] }
0x1e66   :  { %v3311_v39 = vpop.xlane.xlu0 %3310  ;;  %v3320_v36 = vpop.xlane.xlu1 %3319 }
0x1e67   :  { %v3312_v63 = vsub.f32 %v3308_v17, %v3311_v39  ;;  %v3321_v57 = vsub.f32 %v4732_v40, %v3320_v36  ;;  %v778_v36 = vld [vmem:[#allocation0] sm:$0xff] }
0x1e69   :  { %3622 = vrsqrt.f32 %v3312_v63 }
0x1e76   :  { %v3623_v18 = vpop.eup %3622 }
0x1e77   :  { %v3322_v16 = vmul.f32 %v3623_v18, %v3321_v57 }
0x1e79   :  { %v3325_v29 = vsel %vm3324_vm7, %v3322_v16, 0.0  ;;  %v2134_v16 = vld [vmem:[#allocation0 + $0x10] sm:$0xff] }
0x1e7a   :  { %v3326_v24 = vadd.f32 %v3325_v29, %v3288_v35 }
0x1e7c   :  { %3328 = vst [vmem:[#allocation1 + $0x28] sm:$0xff] %v3326_v24 }
0x1e83   :  { %v3344_v43 = vld [vmem:[#allocation1 + $0x2e] ss:$0 sm:$0xff] }
0x1e84   :  { %v3356_v7 = vmul.f32 %v3344_v43, %v3326_v24  ;;  %v3347_v30 = vmul.f32 %v3344_v43, %v3344_v43 }
0x1e86   :  { %3357 = vadd.xlane.f32.xlu0 %v3356_v7  ;;  %3348 = vadd.xlane.f32.xlu1 %v3347_v30  ;;  %v3076_v30 = vld [vmem:[#allocation0 + $0x20] sm:$0xff] }
0x1ea0   :  { %v3335_v49 = vpop.xlane.xlu0 %3334 }
0x1ea1   :  { %v3336_v34 = vsub.f32 %v4623_v28, %v3335_v49 }
0x1ea3   :  { %v3337_v47 = vmul.f32 %v3623_v18, %v3336_v34 }
0x1ea5   :  { %v3338_v10 = vsel %vm3304_vm11, %v3337_v47, 0.0 }
0x1ea6   :  { %v3339_v48 = vadd.f32 %v3338_v10, %v3301_v2  ;;  %v3079_v2 = vmul.f32 %v4698_v33, %v4695_v53 }
0x1ea8   :  { %v3371_v11 = vmul.f32 %v3344_v43, %v3339_v48 }
0x1eaa   :  { %3372 = vadd.xlane.f32.xlu1 %v3371_v11 }
0x1f0f   :  { %v3349_v9 = vpop.xlane.xlu1 %3348  ;;  %v3358_v27 = vpop.xlane.xlu0 %3357 }
0x1f10   :  { %v3350_v8 = vsub.f32 %v3346_v58, %v3349_v9  ;;  %v3359_v46 = vsub.f32 %v4732_v40, %v3358_v27 }
0x1f12   :  { %3624 = vrsqrt.f32 %v3350_v8 }
0x1f1f   :  { %v3625_v41 = vpop.eup %3624 }
0x1f20   :  { %v3360_v26 = vmul.f32 %v3625_v41, %v3359_v46 }
0x1f22   :  { %v3363_v23 = vsel %vm3362_vm1, %v3360_v26, 0.0 }
0x1f23   :  { %v4751_v28 = vadd.f32 %v3363_v23, %v3326_v24  ;;  %v1509_v23 = vld [vmem:[#allocation1 + $0x8] sm:$0xff] }
0x1f25   :  { %3366 = vst [vmem:[#allocation1 + $0x28] sm:$0xff] %v4751_v28 }
0x1f2c   :  { %v4754_v42 = vld [vmem:[#allocation1 + $0x2f] ss:$0 sm:$0xff] }
0x1f2d   :  { %v3385_v12 = vmul.f32 %v4754_v42, %v4754_v42 }
0x1f2f   :  { %3386 = vadd.xlane.f32.xlu0 %v3385_v12  ;;  %v3634_v12 = vld [vmem:[#allocation1 + $0xf] ss:$0 sm:$0xff] }
0x1f33   :  { %v3373_v21 = vpop.xlane.xlu1 %3372 }
0x1f34   :  { %v3374_v25 = vsub.f32 %v4758_v56, %v3373_v21  ;;  %v1510_v21 = vmul.f32 %v3634_v12, %v1509_v23 }
0x1f36   :  { %v3375_v55 = vmul.f32 %v3625_v41, %v3374_v25  ;;  %v2659_v25 = vld [vmem:[#allocation1 + $0x18] sm:$0xff] }
0x1f38   :  { %v3376_v5 = vsel %vm3342_vm14, %v3375_v55, 0.0  ;;  %v3635_v55 = vld [vmem:[#allocation1 + $0x1f] ss:$0 sm:$0xff] }
0x1f39   :  { %v3377_v51 = vadd.f32 %v3376_v5, %v3339_v48  ;;  %v3394_v5 = vmul.f32 %v4754_v42, %v4751_v28 }
0x1f3b   :  { %v3409_v1 = vmul.f32 %v4754_v42, %v3377_v51 }
0x1f3d   :  { %3410 = vadd.xlane.f32.xlu1 %v3409_v1 }
0x1fb8   :  { %v3387_v13 = vpop.xlane.xlu0 %3386 }
0x1fb9   :  { %v3388_v59 = vsub.f32 %v3384_v32, %v3387_v13  ;;  %v1507_v13 = vld [vmem:[#allocation0 + $0x8] sm:$0xff] }
0x1fbb   :  { %3626 = vrsqrt.f32 %v3388_v59 }
0x1fc6   :  { %v3411_v20 = vpop.xlane.xlu1 %3410 }
0x1fc7   :  { %v3412_v4 = vsub.f32 %v4758_v56, %v3411_v20 }
0x1fc8   :  { %v4763_v15 = vpop.eup %3626 }
0x1fc9   :  { %v3413_v19 = vmul.f32 %v4763_v15, %v3412_v4  ;;  %v2657_v4 = vld [vmem:[#allocation0 + $0x18] sm:$0xff] }
0x1fcb   :  { %v3414_v3 = vsel %vm3380_vm6, %v3413_v19, 0.0 }
0x1fcc   :  { %v3415_v61 = vadd.f32 %v3414_v3, %v3377_v51  ;;  %v3445_v51 = vld [vmem:[#allocation0 + $0x31] ss:$0 sm:$0xff] }
0x1fce   :  { %3417 = vst [vmem:[#allocation1 + $0x30] sm:$0xff] %v3415_v61 }
0x1fd5   :  { %v3420_v38 = vld [vmem:[#allocation1 + $0x30] ss:$0 sm:$0xff] }
0x1fd6   :  { %v3432_v35 = vmul.f32 %v3420_v38, %v3415_v61  ;;  %v3423_v45 = vmul.f32 %v3420_v38, %v3420_v38 }
0x1fd8   :  { %3433 = vadd.xlane.f32.xlu1 %v3432_v35  ;;  %3424 = vadd.xlane.f32.xlu0 %v3423_v45 }
0x1fdc   :  { %781 = vadd.xlane.f32.xlu1 %v780_v6 }
0x1fe0   :  { %2138 = vadd.xlane.f32.xlu1 %v2137_v62 }
0x1fe4   :  { %3080 = vadd.xlane.f32.xlu1 %v3079_v2 }
0x2061   :  { %v3434_v17 = vpop.xlane.xlu1 %3433  ;;  %v3425_v39 = vpop.xlane.xlu0 %3424 }
0x2062   :  { %v3426_v63 = vsub.f32 %v3422_v22, %v3425_v39 }
0x2064   :  { %3628 = vrsqrt.f32 %v3426_v63 }
0x2065   :  { %v782_v57 = vpop.xlane.xlu1 %781 }
0x2066   :  { %v783_v18 = vsub.f32 %v778_v36, %v782_v57 }
0x2068   :  { %v784_v29 = vmul.f32 %v3890_v50, %v783_v18  ;;  %v3435_v50 = vsub.f32 %v4758_v56, %v3434_v17 }
0x2069   :  { %v2139_v24 = vpop.xlane.xlu1 %2138 }
0x206a   :  { %v787_v43 = vsel %vm786_vm5, %v784_v29, 0.0  ;;  %v2140_v7 = vsub.f32 %v2134_v16, %v2139_v24 }
0x206b   :  { %v788_v33 = vadd.f32 %v787_v43, %v779_v54 }
0x206c   :  { %v2141_v49 = vmul.f32 %v4411_v44, %v2140_v7 }
0x206d   :  { %789 = vst [vmem:[#allocation1] sm:$0xff] %v788_v33  ;;  %3507 = vst [vmem:[%s4817_s1] sm:$0xff] %v788_v33  ;;  %v3081_v34 = vpop.xlane.xlu1 %3080 }
0x206e   :  { %v2144_v47 = vsel %vm2143_vm15, %v2141_v49, 0.0  ;;  %v3082_v10 = vsub.f32 %v3076_v30, %v3081_v34 }
0x206f   :  { %v2145_v48 = vadd.f32 %v2144_v47, %v2136_v37 }
0x2070   :  { %v3083_v11 = vmul.f32 %v4708_v0, %v3082_v10 }
0x2071   :  { %v3629_v58 = vpop.eup %3628  ;;  %2147 = vst [vmem:[#allocation1 + $0x10] sm:$0xff] %v2145_v48  ;;  %3511 = vst [vmem:[%s4817_s1 + $0x10] sm:$0xff] %v2145_v48 }
0x2072   :  { %v3436_v44 = vmul.f32 %v3629_v58, %v3435_v50  ;;  %v3086_v9 = vsel %vm3085_vm0, %v3083_v11, 0.0 }
0x2073   :  { %v3087_v8 = vadd.f32 %v3086_v9, %v4695_v53  ;;  %v2660_v53 = vmul.f32 %v3635_v55, %v2659_v25 }
0x2074   :  { %v3437_v27 = vsel %vm3418_vm9, %v3436_v44, 0.0 }
0x2075   :  { %v3438_v46 = vadd.f32 %v3437_v27, %v3415_v61  ;;  %3089 = vst [vmem:[#allocation1 + $0x20] sm:$0xff] %v3087_v8  ;;  %3515 = vst [vmem:[%s4817_s1 + $0x20] sm:$0xff] %v3087_v8 }
0x2077   :  { %3440 = vst [vmem:[#allocation1 + $0x30] sm:$0xff] %v3438_v46 }
0x207e   :  { %v3443_v0 = vld [vmem:[#allocation1 + $0x31] ss:$0 sm:$0xff] }
0x207f   :  { %v3455_v41 = vmul.f32 %v3443_v0, %v3438_v46  ;;  %v3446_v26 = vmul.f32 %v3443_v0, %v3443_v0 }
0x2081   :  { %3456 = vadd.xlane.f32.xlu1 %v3455_v41  ;;  %3447 = vadd.xlane.f32.xlu0 %v3446_v26 }
0x2085   :  { %1511 = vadd.xlane.f32.xlu0 %v1510_v21 }
0x2089   :  { %2661 = vadd.xlane.f32.xlu0 %v2660_v53 }
0x208d   :  { %3395 = vadd.xlane.f32.xlu0 %v3394_v5 }
0x210a   :  { %v3448_v1 = vpop.xlane.xlu0 %3447  ;;  %v3457_v45 = vpop.xlane.xlu1 %3456 }
0x210b   :  { %v3449_v32 = vsub.f32 %v3445_v51, %v3448_v1  ;;  %v3458_v37 = vsub.f32 %v4758_v56, %v3457_v45 }
0x210d   :  { %3630 = vrsqrt.f32 %v3449_v32 }
0x210e   :  { %v1512_v59 = vpop.xlane.xlu0 %1511 }
0x210f   :  { %v1513_v20 = vsub.f32 %v1507_v13, %v1512_v59 }
0x2111   :  { %v1514_v19 = vmul.f32 %v4170_v60, %v1513_v20 }
0x2112   :  { %v2662_v3 = vpop.xlane.xlu0 %2661 }
0x2113   :  { %v1517_v61 = vsel %vm1516_vm3, %v1514_v19, 0.0  ;;  %v2663_v38 = vsub.f32 %v2657_v4, %v2662_v3 }
0x2114   :  { %v1518_v35 = vadd.f32 %v1517_v61, %v1509_v23 }
0x2115   :  { %v2664_v42 = vmul.f32 %v4610_v52, %v2663_v38 }
0x2116   :  { %1520 = vst [vmem:[#allocation1 + $0x8] sm:$0xff] %v1518_v35  ;;  %3509 = vst [vmem:[%s4817_s1 + $0x8] sm:$0xff] %v1518_v35  ;;  %v3396_v54 = vpop.xlane.xlu0 %3395 }
0x2117   :  { %v2667_v31 = vsel %vm2666_vm8, %v2664_v42, 0.0  ;;  %v3397_v60 = vsub.f32 %v4732_v40, %v3396_v54 }
0x2118   :  { %v2668_v6 = vadd.f32 %v2667_v31, %v2659_v25 }
0x2119   :  { %v3398_v14 = vmul.f32 %v4763_v15, %v3397_v60 }
0x211a   :  { %v3631_v52 = vpop.eup %3630  ;;  %2670 = vst [vmem:[#allocation1 + $0x18] sm:$0xff] %v2668_v6  ;;  %3513 = vst [vmem:[%s4817_s1 + $0x18] sm:$0xff] %v2668_v6 }
0x211b   :  { %v3459_v62 = vmul.f32 %v3631_v52, %v3458_v37  ;;  %v3401_v2 = vsel %vm3400_vm12, %v3398_v14, 0.0 }
0x211c   :  { %v3402_v40 = vadd.f32 %v3401_v2, %v4751_v28 }
0x211d   :  { %v3462_v22 = vsel %vm3461_vm13, %v3459_v62, 0.0 }
0x211e   :  { %v3463_v17 = vadd.f32 %v3462_v22, %v3438_v46  ;;  %3404 = vst [vmem:[#allocation1 + $0x28] sm:$0xff] %v3402_v40  ;;  %3517 = vst [vmem:[%s4817_s1 + $0x28] sm:$0xff] %v3402_v40 }
0x2120   :  { %3465 = vst [vmem:[#allocation1 + $0x30] sm:$0xff] %v3463_v17  ;;  %3519 = vst [vmem:[%s4817_s1 + $0x30] sm:$0xff] %v3463_v17 }

// kernel: custom-call.5
= control target key start
LH: loop header
LB: loop body
LE: loop exit
PB: predicated region body
PF: predicated region fallthrough
CT: control target
= control target key end

     0   :  { %v59_v0 = vlaneseq  ;;  %v1365_v9 = vmov -1.0   ;;  %v1366_v53 = vmov 0.0   ;;  %s1814_s0 = inlined_call_operand.vmem [shape: f32[1,50,50], index: 0, kind: input, shape index: {}]   ;;  %s1815_s1 = inlined_call_operand.vmem [shape: f32[1,50,50], index: 1, kind: output, shape index: {}]  }
   0x1   :  { %v42_v1 = vld [vmem:[%s1814_s0] sm:$0xff]  ;;  %v44_v36 = vld [vmem:[%s1814_s0 + $0x8] sm:$0xff] }
   0x2   :  { %v1380_v2 = vand.u32 127, %v59_v0  ;;  %v1382_v3 = vshrl.u32 %v59_v0, 7 }
   0x4   :  { %vm65_vm0 = vcmp.eq.s32.totalorder %v1382_v3, %v1380_v2  ;;  %vm61_vm1 = vcmp.lt.s32.totalorder %v1380_v2, 50  ;;  %vm70_vm2 = vcmp.ge.s32.totalorder %v1382_v3, %v1380_v2  ;;  %vm180_vm4 = vcmp.eq.s32.totalorder %v1380_v2, 0 }
   0x5   :  { %v67_v4 = vsel %vm65_vm0, %v42_v1, 0.0  ;;  %vm71_vm3 = vmand %vm70_vm2, %vm61_vm1  ;;  %vm177_vm5 = vcmp.eq.s32.totalorder %v1380_v2, %v1382_v3  ;;  %v181_v10 = vsel %vm180_vm4, 1.0, %v1365_v9  ;;  %vm230_vm6 = vcmp.eq.s32.totalorder %v1380_v2, 1 }
   0x6   :  { %68 = vadd.xlane.f32.xlu0 %v67_v4  ;;  %v72_v6 = vsel %vm71_vm3, %v42_v1, 0.0  ;;  %v182_v11 = vsel %vm177_vm5, %v181_v10, 0.0  ;;  %vm240_vm7 = vcmp.eq.s32.totalorder %v1380_v2, 2  ;;  %vm250_vm8 = vcmp.eq.s32.totalorder %v1380_v2, 3 }
   0x7   :  { %vm260_vm9 = vcmp.eq.s32.totalorder %v1380_v2, 4  ;;  %v80_v31 = vadd.s32 8, %v1382_v3  ;;  %vm270_vm11 = vcmp.eq.s32.totalorder %v1380_v2, 5  ;;  %vm280_vm14 = vcmp.eq.s32.totalorder %v1380_v2, 6 }
   0x8   :  { %vm290_vm0 = vcmp.eq.s32.totalorder %v1380_v2, 7  ;;  %vm300_vm2 = vcmp.eq.s32.totalorder %v1380_v2, 8  ;;  %vm314_vm3 = vcmp.eq.s32.totalorder %v1380_v2, 9  ;;  %vm328_vm4 = vcmp.eq.s32.totalorder %v1380_v2, 10 }
   0x9   :  { %vm81_vm10 = vcmp.eq.s32.totalorder %v80_v31, %v1380_v2  ;;  %vm86_vm12 = vcmp.ge.s32.totalorder %v80_v31, %v1380_v2  ;;  %vm188_vm15 = vcmp.eq.s32.totalorder %v1380_v2, %v80_v31  ;;  %vm342_vm5 = vcmp.eq.s32.totalorder %v1380_v2, 11 }
   0xa   :  { %v83_v37 = vsel %vm81_vm10, %v44_v36, 0.0  ;;  %vm87_vm13 = vmand %vm86_vm12, %vm61_vm1  ;;  %v189_v54 = vsel %vm188_vm15, -1.0, %v1366_v53  ;;  %vm398_vm12 = vcmp.eq.s32.totalorder %v1380_v2, 15  ;;  %vm430_vm15 = vcmp.eq.s32.totalorder %v1380_v2, 17 }
   0xb   :  { %v88_v44 = vsel %vm87_vm13, %v44_v36, 0.0 }
  0x8f   :  { %v1386_v5 = vpop.xlane.xlu0 %68 }
  0x90   :  { %1351 = vrcp.f32 %v1386_v5 }
  0x9d   :  { %v1394_v7 = vpop.eup %1351 }
  0x9e   :  { %v74_v8 = vmul.f32 %v1394_v7, %v72_v6 }
  0xa0   :  { %75 = vst [vmem:[#allocation2] sm:$0xff] %v74_v8 }
  0xa7   :  { %v226_v12 = vld [vmem:[#allocation2 + $0x1] ss:$0 sm:$0xff]  ;;  %v236_v15 = vld [vmem:[#allocation2 + $0x2] ss:$0 sm:$0xff]  ;;  %v246_v20 = vld [vmem:[#allocation2 + $0x3] ss:$0 sm:$0xff] }
  0xa8   :  { %v227_v13 = vxor.u32 2147483648, %v226_v12  ;;  %v237_v17 = vxor.u32 2147483648, %v236_v15  ;;  %v247_v22 = vxor.u32 2147483648, %v246_v20  ;;  %v256_v25 = vld [vmem:[#allocation2 + $0x4] ss:$0 sm:$0xff] }
  0xa9   :  { %v257_v27 = vxor.u32 2147483648, %v256_v25  ;;  %v266_v30 = vld [vmem:[#allocation2 + $0x5] ss:$0 sm:$0xff]  ;;  %v276_v38 = vld [vmem:[#allocation2 + $0x6] ss:$0 sm:$0xff] }
  0xaa   :  { %v231_v14 = vmul.f32 %v227_v13, %v182_v11  ;;  %v267_v33 = vxor.u32 2147483648, %v266_v30  ;;  %v277_v40 = vxor.u32 2147483648, %v276_v38  ;;  %v286_v47 = vld [vmem:[#allocation2 + $0x7] ss:$0 sm:$0xff] }
  0xab   :  { %v287_v50 = vxor.u32 2147483648, %v286_v47  ;;  %v96_v47 = vadd.s32 16, %v1382_v3 }
  0xac   :  { %232 = vadd.xlane.f32.xlu0 %v231_v14 }
  0xad   :  { %vm102_vm10 = vcmp.ge.s32.totalorder %v96_v47, %v1380_v2  ;;  %vm195_vm13 = vcmp.eq.s32.totalorder %v1380_v2, %v96_v47 }
 0x135   :  { %v233_v16 = vpop.xlane.xlu0 %232 }
 0x136   :  { %v234_v18 = vsel %vm230_vm6, %v233_v16, %v182_v11  ;;  %vm356_vm6 = vcmp.eq.s32.totalorder %v1380_v2, 12 }
 0x137   :  { %v241_v19 = vmul.f32 %v237_v17, %v234_v18 }
 0x139   :  { %242 = vadd.xlane.f32.xlu1 %v241_v19 }
 0x1c2   :  { %v243_v21 = vpop.xlane.xlu1 %242 }
 0x1c3   :  { %v244_v23 = vsel %vm240_vm7, %v243_v21, %v234_v18  ;;  %vm370_vm7 = vcmp.eq.s32.totalorder %v1380_v2, 13 }
 0x1c4   :  { %v251_v24 = vmul.f32 %v247_v22, %v244_v23 }
 0x1c6   :  { %252 = vadd.xlane.f32.xlu1 %v251_v24 }
 0x24f   :  { %v253_v26 = vpop.xlane.xlu1 %252 }
 0x250   :  { %v254_v28 = vsel %vm250_vm8, %v253_v26, %v244_v23  ;;  %vm97_vm8 = vcmp.eq.s32.totalorder %v96_v47, %v1380_v2 }
 0x251   :  { %v261_v29 = vmul.f32 %v257_v27, %v254_v28 }
 0x253   :  { %262 = vadd.xlane.f32.xlu0 %v261_v29 }
 0x2dc   :  { %v263_v32 = vpop.xlane.xlu0 %262 }
 0x2dd   :  { %v264_v34 = vsel %vm260_vm9, %v263_v32, %v254_v28  ;;  %vm384_vm9 = vcmp.eq.s32.totalorder %v1380_v2, 14 }
 0x2de   :  { %v271_v35 = vmul.f32 %v267_v33, %v264_v34 }
 0x2e0   :  { %272 = vadd.xlane.f32.xlu1 %v271_v35 }
 0x2e4   :  { %84 = vadd.xlane.f32.xlu1 %v83_v37 }
 0x369   :  { %v273_v39 = vpop.xlane.xlu1 %272 }
 0x36a   :  { %v274_v41 = vsel %vm270_vm11, %v273_v39, %v264_v34  ;;  %vm103_vm11 = vmand %vm102_vm10, %vm61_vm1 }
 0x36b   :  { %v281_v42 = vmul.f32 %v277_v40, %v274_v41 }
 0x36d   :  { %282 = vadd.xlane.f32.xlu0 %v281_v42  ;;  %v1410_v43 = vpop.xlane.xlu1 %84 }
 0x36e   :  { %1353 = vrcp.f32 %v1410_v43 }
 0x37b   :  { %v1416_v45 = vpop.eup %1353 }
 0x37c   :  { %v90_v46 = vmul.f32 %v1416_v45, %v88_v44 }
 0x37e   :  { %91 = vst [vmem:[#allocation2 + $0x8] sm:$0xff] %v90_v46 }
 0x385   :  { %v296_v48 = vld [vmem:[#allocation2 + $0x8] ss:$0 sm:$0xff]  ;;  %v310_v59 = vld [vmem:[#allocation2 + $0x9] ss:$0 sm:$0xff]  ;;  %v324_v6 = vld [vmem:[#allocation2 + $0xa] ss:$0 sm:$0xff] }
 0x386   :  { %v297_v51 = vxor.u32 2147483648, %v296_v48  ;;  %v311_v62 = vxor.u32 2147483648, %v310_v59  ;;  %v325_v10 = vxor.u32 2147483648, %v324_v6  ;;  %v338_v15 = vld [vmem:[#allocation2 + $0xb] ss:$0 sm:$0xff] }
 0x387   :  { %v339_v18 = vxor.u32 2147483648, %v338_v15  ;;  %v352_v23 = vld [vmem:[#allocation2 + $0xc] ss:$0 sm:$0xff]  ;;  %v366_v31 = vld [vmem:[#allocation2 + $0xd] ss:$0 sm:$0xff] }
 0x388   :  { %v305_v56 = vmul.f32 %v297_v51, %v189_v54  ;;  %v353_v26 = vxor.u32 2147483648, %v352_v23  ;;  %v367_v34 = vxor.u32 2147483648, %v366_v31  ;;  %v380_v39 = vld [vmem:[#allocation2 + $0xe] ss:$0 sm:$0xff] }
 0x389   :  { %v381_v42 = vxor.u32 2147483648, %v380_v39 }
 0x3f6   :  { %v283_v49 = vpop.xlane.xlu0 %282 }
 0x3f7   :  { %v284_v52 = vsel %vm280_vm14, %v283_v49, %v274_v41  ;;  %vm412_vm14 = vcmp.eq.s32.totalorder %v1380_v2, 16 }
 0x3f8   :  { %v291_v55 = vmul.f32 %v287_v50, %v284_v52 }
 0x3fa   :  { %292 = vadd.xlane.f32.xlu0 %v291_v55  ;;  %v394_v55 = vld [vmem:[#allocation2 + $0xf] ss:$0 sm:$0xff] }
 0x3fe   :  { %306 = vadd.xlane.f32.xlu0 %v305_v56 }
 0x483   :  { %v293_v57 = vpop.xlane.xlu0 %292 }
 0x484   :  { %v294_v58 = vsel %vm290_vm0, %v293_v57, %v284_v52  ;;  %v395_v57 = vxor.u32 2147483648, %v394_v55  ;;  %vm448_vm0 = vcmp.eq.s32.totalorder %v1380_v2, 18 }
 0x485   :  { %v301_v60 = vmul.f32 %v297_v51, %v294_v58  ;;  %v46_v51 = vld [vmem:[%s1814_s0 + $0x10] sm:$0xff] }
 0x487   :  { %v307_v61 = vpop.xlane.xlu0 %306  ;;  %302 = vadd.xlane.f32.xlu1 %v301_v60 }
 0x488   :  { %v308_v63 = vsel %vm300_vm2, %v307_v61, %v189_v54  ;;  %v99_v54 = vsel %vm97_vm8, %v46_v51, 0.0 }
 0x489   :  { %v319_v0 = vmul.f32 %v311_v62, %v308_v63 }
 0x48b   :  { %320 = vadd.xlane.f32.xlu0 %v319_v0 }
 0x510   :  { %v303_v1 = vpop.xlane.xlu1 %302 }
 0x511   :  { %v304_v4 = vsel %vm300_vm2, %v303_v1, %v294_v58  ;;  %vm466_vm2 = vcmp.eq.s32.totalorder %v1380_v2, 19 }
 0x512   :  { %v315_v8 = vmul.f32 %v311_v62, %v304_v4 }
 0x514   :  { %v321_v9 = vpop.xlane.xlu0 %320  ;;  %316 = vadd.xlane.f32.xlu1 %v315_v8 }
 0x515   :  { %v322_v11 = vsel %vm314_vm3, %v321_v9, %v308_v63  ;;  %v104_v63 = vsel %vm103_vm11, %v46_v51, 0.0  ;;  %vm556_vm11 = vcmp.eq.s32.totalorder %v1380_v2, 24 }
 0x516   :  { %v333_v12 = vmul.f32 %v325_v10, %v322_v11 }
 0x518   :  { %334 = vadd.xlane.f32.xlu0 %v333_v12 }
 0x59d   :  { %v317_v13 = vpop.xlane.xlu1 %316 }
 0x59e   :  { %v318_v14 = vsel %vm314_vm3, %v317_v13, %v304_v4  ;;  %vm484_vm3 = vcmp.eq.s32.totalorder %v1380_v2, 20 }
 0x59f   :  { %v329_v16 = vmul.f32 %v325_v10, %v318_v14 }
 0x5a1   :  { %v335_v17 = vpop.xlane.xlu0 %334  ;;  %330 = vadd.xlane.f32.xlu1 %v329_v16 }
 0x5a2   :  { %v336_v19 = vsel %vm328_vm4, %v335_v17, %v322_v11 }
 0x5a3   :  { %v347_v20 = vmul.f32 %v339_v18, %v336_v19 }
 0x5a5   :  { %348 = vadd.xlane.f32.xlu0 %v347_v20 }
 0x62a   :  { %v331_v21 = vpop.xlane.xlu1 %330 }
 0x62b   :  { %v332_v22 = vsel %vm328_vm4, %v331_v21, %v318_v14  ;;  %v196_v14 = vsel %vm195_vm13, -1.0, %v1366_v53  ;;  %vm502_vm4 = vcmp.eq.s32.totalorder %v1380_v2, 21  ;;  %vm600_vm13 = vcmp.eq.s32.totalorder %v1380_v2, 26 }
 0x62c   :  { %v343_v24 = vmul.f32 %v339_v18, %v332_v22 }
 0x62e   :  { %v349_v25 = vpop.xlane.xlu0 %348  ;;  %344 = vadd.xlane.f32.xlu1 %v343_v24 }
 0x62f   :  { %v350_v27 = vsel %vm342_vm5, %v349_v25, %v336_v19 }
 0x630   :  { %v361_v28 = vmul.f32 %v353_v26, %v350_v27 }
 0x632   :  { %362 = vadd.xlane.f32.xlu0 %v361_v28 }
 0x6b7   :  { %v345_v29 = vpop.xlane.xlu1 %344 }
 0x6b8   :  { %v346_v30 = vsel %vm342_vm5, %v345_v29, %v332_v22 }
 0x6b9   :  { %v357_v32 = vmul.f32 %v353_v26, %v346_v30 }
 0x6bb   :  { %v363_v33 = vpop.xlane.xlu0 %362  ;;  %358 = vadd.xlane.f32.xlu1 %v357_v32 }
 0x6bc   :  { %v364_v35 = vsel %vm356_vm6, %v363_v33, %v350_v27 }
 0x6bd   :  { %v375_v36 = vmul.f32 %v367_v34, %v364_v35 }
 0x6bf   :  { %376 = vadd.xlane.f32.xlu0 %v375_v36 }
 0x744   :  { %v359_v37 = vpop.xlane.xlu1 %358 }
 0x745   :  { %v360_v38 = vsel %vm356_vm6, %v359_v37, %v346_v30  ;;  %vm520_vm6 = vcmp.eq.s32.totalorder %v1380_v2, 22 }
 0x746   :  { %v371_v40 = vmul.f32 %v367_v34, %v360_v38 }
 0x748   :  { %v377_v41 = vpop.xlane.xlu0 %376  ;;  %372 = vadd.xlane.f32.xlu1 %v371_v40 }
 0x749   :  { %v378_v44 = vsel %vm370_vm7, %v377_v41, %v364_v35 }
 0x74a   :  { %v389_v46 = vmul.f32 %v381_v42, %v378_v44 }
 0x74c   :  { %390 = vadd.xlane.f32.xlu0 %v389_v46 }
 0x7d1   :  { %v373_v48 = vpop.xlane.xlu1 %372 }
 0x7d2   :  { %v374_v49 = vsel %vm370_vm7, %v373_v48, %v360_v38 }
 0x7d3   :  { %v385_v50 = vmul.f32 %v381_v42, %v374_v49 }
 0x7d5   :  { %v391_v52 = vpop.xlane.xlu0 %390  ;;  %386 = vadd.xlane.f32.xlu1 %v385_v50 }
 0x7d6   :  { %v392_v56 = vsel %vm384_vm9, %v391_v52, %v378_v44 }
 0x7d7   :  { %v403_v58 = vmul.f32 %v395_v57, %v392_v56 }
 0x7d9   :  { %100 = vadd.xlane.f32.xlu1 %v99_v54 }
 0x7dd   :  { %404 = vadd.xlane.f32.xlu1 %v403_v58 }
 0x85e   :  { %v387_v59 = vpop.xlane.xlu1 %386 }
 0x85f   :  { %v388_v60 = vsel %vm384_vm9, %v387_v59, %v374_v49  ;;  %vm538_vm9 = vcmp.eq.s32.totalorder %v1380_v2, 23 }
 0x860   :  { %v399_v61 = vmul.f32 %v395_v57, %v388_v60 }
 0x862   :  { %400 = vadd.xlane.f32.xlu0 %v399_v61  ;;  %v1435_v62 = vpop.xlane.xlu1 %100 }
 0x863   :  { %1355 = vrcp.f32 %v1435_v62 }
 0x866   :  { %v405_v4 = vpop.xlane.xlu1 %404 }
 0x867   :  { %v406_v9 = vsel %vm398_vm12, %v405_v4, %v392_v56 }
 0x870   :  { %v1441_v0 = vpop.eup %1355 }
 0x871   :  { %v106_v1 = vmul.f32 %v1441_v0, %v104_v63 }
 0x873   :  { %107 = vst [vmem:[#allocation2 + $0x10] sm:$0xff] %v106_v1 }
 0x87a   :  { %v408_v6 = vld [vmem:[#allocation2 + $0x10] ss:$0 sm:$0xff]  ;;  %v426_v16 = vld [vmem:[#allocation2 + $0x11] ss:$0 sm:$0xff]  ;;  %v444_v27 = vld [vmem:[#allocation2 + $0x12] ss:$0 sm:$0xff] }
 0x87b   :  { %v409_v8 = vxor.u32 2147483648, %v408_v6  ;;  %v427_v18 = vxor.u32 2147483648, %v426_v16  ;;  %v445_v29 = vxor.u32 2147483648, %v444_v27  ;;  %v462_v38 = vld [vmem:[#allocation2 + $0x13] ss:$0 sm:$0xff] }
 0x87c   :  { %v463_v40 = vxor.u32 2147483648, %v462_v38  ;;  %v480_v51 = vld [vmem:[#allocation2 + $0x14] ss:$0 sm:$0xff]  ;;  %v498_v1 = vld [vmem:[#allocation2 + $0x15] ss:$0 sm:$0xff] }
 0x87d   :  { %v417_v10 = vmul.f32 %v409_v8, %v406_v9  ;;  %v421_v15 = vmul.f32 %v409_v8, %v196_v14  ;;  %v481_v54 = vxor.u32 2147483648, %v480_v51  ;;  %v499_v6 = vxor.u32 2147483648, %v498_v1  ;;  %v516_v16 = vld [vmem:[#allocation2 + $0x16] ss:$0 sm:$0xff] }
 0x87f   :  { %418 = vadd.xlane.f32.xlu1 %v417_v10 }
 0x8eb   :  { %v401_v11 = vpop.xlane.xlu0 %400 }
 0x8ec   :  { %v402_v12 = vsel %vm398_vm12, %v401_v11, %v388_v60  ;;  %vm578_vm12 = vcmp.eq.s32.totalorder %v1380_v2, 25 }
 0x8ed   :  { %v413_v13 = vmul.f32 %v409_v8, %v402_v12 }
 0x8ef   :  { %414 = vadd.xlane.f32.xlu0 %v413_v13 }
 0x8f3   :  { %422 = vadd.xlane.f32.xlu0 %v421_v15 }
 0x908   :  { %v419_v17 = vpop.xlane.xlu1 %418 }
 0x909   :  { %v420_v19 = vsel %vm412_vm14, %v419_v17, %v406_v9  ;;  %v112_v17 = vadd.s32 24, %v1382_v3 }
 0x90a   :  { %v435_v20 = vmul.f32 %v427_v18, %v420_v19 }
 0x90b   :  { %vm113_vm5 = vcmp.eq.s32.totalorder %v112_v17, %v1380_v2  ;;  %vm118_vm7 = vcmp.ge.s32.totalorder %v112_v17, %v1380_v2  ;;  %vm202_vm10 = vcmp.eq.s32.totalorder %v1380_v2, %v112_v17 }
 0x90c   :  { %436 = vadd.xlane.f32.xlu0 %v435_v20  ;;  %vm119_vm8 = vmand %vm118_vm7, %vm61_vm1  ;;  %v203_v51 = vsel %vm202_vm10, -1.0, %v1366_v53  ;;  %vm784_vm10 = vcmp.eq.s32.totalorder %v1380_v2, 34 }
 0x978   :  { %v415_v21 = vpop.xlane.xlu0 %414 }
 0x979   :  { %v416_v22 = vsel %vm412_vm14, %v415_v21, %v402_v12 }
 0x97a   :  { %v431_v23 = vmul.f32 %v427_v18, %v416_v22 }
 0x97c   :  { %v423_v24 = vpop.xlane.xlu0 %422  ;;  %432 = vadd.xlane.f32.xlu1 %v431_v23 }
 0x97d   :  { %v424_v25 = vsel %vm412_vm14, %v423_v24, %v196_v14  ;;  %vm622_vm14 = vcmp.eq.s32.totalorder %v1380_v2, 27 }
 0x97e   :  { %v439_v26 = vmul.f32 %v427_v18, %v424_v25 }
 0x980   :  { %440 = vadd.xlane.f32.xlu1 %v439_v26 }
 0x995   :  { %v437_v28 = vpop.xlane.xlu0 %436 }
 0x996   :  { %v438_v30 = vsel %vm430_vm15, %v437_v28, %v420_v19  ;;  %v517_v19 = vxor.u32 2147483648, %v516_v16 }
 0x997   :  { %v453_v31 = vmul.f32 %v445_v29, %v438_v30 }
 0x999   :  { %454 = vadd.xlane.f32.xlu1 %v453_v31 }
 0xa05   :  { %v433_v32 = vpop.xlane.xlu1 %432 }
 0xa06   :  { %v434_v33 = vsel %vm430_vm15, %v433_v32, %v416_v22  ;;  %v48_v22 = vld [vmem:[%s1814_s0 + $0x18] sm:$0xff] }
 0xa07   :  { %v449_v34 = vmul.f32 %v445_v29, %v434_v33  ;;  %v115_v23 = vsel %vm113_vm5, %v48_v22, 0.0 }
 0xa09   :  { %450 = vadd.xlane.f32.xlu0 %v449_v34  ;;  %v441_v35 = vpop.xlane.xlu1 %440 }
 0xa0a   :  { %v442_v36 = vsel %vm430_vm15, %v441_v35, %v424_v25  ;;  %vm644_vm15 = vcmp.eq.s32.totalorder %v1380_v2, 28 }
 0xa0b   :  { %v457_v37 = vmul.f32 %v445_v29, %v442_v36 }
 0xa0d   :  { %458 = vadd.xlane.f32.xlu0 %v457_v37 }
 0xa22   :  { %v455_v39 = vpop.xlane.xlu1 %454 }
 0xa23   :  { %v456_v41 = vsel %vm448_vm0, %v455_v39, %v438_v30  ;;  %v534_v30 = vld [vmem:[#allocation2 + $0x17] ss:$0 sm:$0xff] }
 0xa24   :  { %v471_v42 = vmul.f32 %v463_v40, %v456_v41  ;;  %v535_v32 = vxor.u32 2147483648, %v534_v30 }
 0xa26   :  { %472 = vadd.xlane.f32.xlu0 %v471_v42 }
 0xa92   :  { %v451_v44 = vpop.xlane.xlu0 %450 }
 0xa93   :  { %v452_v46 = vsel %vm448_vm0, %v451_v44, %v434_v33 }
 0xa94   :  { %v467_v47 = vmul.f32 %v463_v40, %v452_v46 }
 0xa96   :  { %468 = vadd.xlane.f32.xlu1 %v467_v47  ;;  %v459_v48 = vpop.xlane.xlu0 %458 }
 0xa97   :  { %v460_v49 = vsel %vm448_vm0, %v459_v48, %v442_v36  ;;  %v120_v36 = vsel %vm119_vm8, %v48_v22, 0.0  ;;  %vm666_vm0 = vcmp.eq.s32.totalorder %v1380_v2, 29  ;;  %vm732_vm8 = vcmp.eq.s32.totalorder %v1380_v2, 32 }
 0xa98   :  { %v475_v50 = vmul.f32 %v463_v40, %v460_v49 }
 0xa9a   :  { %476 = vadd.xlane.f32.xlu1 %v475_v50 }
 0xaaf   :  { %v473_v52 = vpop.xlane.xlu0 %472 }
 0xab0   :  { %v474_v55 = vsel %vm466_vm2, %v473_v52, %v456_v41 }
 0xab1   :  { %v489_v56 = vmul.f32 %v481_v54, %v474_v55 }
 0xab3   :  { %490 = vadd.xlane.f32.xlu1 %v489_v56 }
 0xb1f   :  { %v469_v57 = vpop.xlane.xlu1 %468 }
 0xb20   :  { %v470_v58 = vsel %vm466_vm2, %v469_v57, %v452_v46 }
 0xb21   :  { %v485_v59 = vmul.f32 %v481_v54, %v470_v58 }
 0xb23   :  { %486 = vadd.xlane.f32.xlu0 %v485_v59  ;;  %v477_v60 = vpop.xlane.xlu1 %476 }
 0xb24   :  { %v478_v61 = vsel %vm466_vm2, %v477_v60, %v460_v49 }
 0xb25   :  { %v493_v63 = vmul.f32 %v481_v54, %v478_v61 }
 0xb27   :  { %494 = vadd.xlane.f32.xlu0 %v493_v63 }
 0xb3c   :  { %v491_v4 = vpop.xlane.xlu1 %490 }
 0xb3d   :  { %v492_v8 = vsel %vm484_vm3, %v491_v4, %v474_v55 }
 0xb3e   :  { %v507_v9 = vmul.f32 %v499_v6, %v492_v8 }
 0xb40   :  { %508 = vadd.xlane.f32.xlu0 %v507_v9 }
 0xbac   :  { %v487_v10 = vpop.xlane.xlu0 %486 }
 0xbad   :  { %v488_v11 = vsel %vm484_vm3, %v487_v10, %v470_v58 }
 0xbae   :  { %v503_v12 = vmul.f32 %v499_v6, %v488_v11 }
 0xbb0   :  { %504 = vadd.xlane.f32.xlu1 %v503_v12  ;;  %v495_v13 = vpop.xlane.xlu0 %494 }
 0xbb1   :  { %v496_v14 = vsel %vm484_vm3, %v495_v13, %v478_v61  ;;  %vm688_vm3 = vcmp.eq.s32.totalorder %v1380_v2, 30 }
 0xbb2   :  { %v511_v15 = vmul.f32 %v499_v6, %v496_v14 }
 0xbb4   :  { %512 = vadd.xlane.f32.xlu1 %v511_v15 }
 0xbc9   :  { %v509_v18 = vpop.xlane.xlu0 %508 }
 0xbca   :  { %v510_v20 = vsel %vm502_vm4, %v509_v18, %v492_v8 }
 0xbcb   :  { %v525_v21 = vmul.f32 %v517_v19, %v510_v20 }
 0xbcd   :  { %526 = vadd.xlane.f32.xlu1 %v525_v21 }
 0xbd1   :  { %116 = vadd.xlane.f32.xlu1 %v115_v23 }
 0xc39   :  { %v505_v24 = vpop.xlane.xlu1 %504 }
 0xc3a   :  { %v506_v25 = vsel %vm502_vm4, %v505_v24, %v488_v11 }
 0xc3b   :  { %v521_v26 = vmul.f32 %v517_v19, %v506_v25 }
 0xc3d   :  { %522 = vadd.xlane.f32.xlu0 %v521_v26  ;;  %v513_v27 = vpop.xlane.xlu1 %512 }
 0xc3e   :  { %v514_v28 = vsel %vm502_vm4, %v513_v27, %v496_v14 }
 0xc3f   :  { %v529_v29 = vmul.f32 %v517_v19, %v514_v28 }
 0xc41   :  { %530 = vadd.xlane.f32.xlu0 %v529_v29 }
 0xc56   :  { %v527_v31 = vpop.xlane.xlu1 %526 }
 0xc57   :  { %v528_v33 = vsel %vm520_vm6, %v527_v31, %v510_v20 }
 0xc58   :  { %v543_v34 = vmul.f32 %v535_v32, %v528_v33 }
 0xc5a   :  { %544 = vadd.xlane.f32.xlu1 %v543_v34  ;;  %v1467_v35 = vpop.xlane.xlu1 %116 }
 0xc5b   :  { %1357 = vrcp.f32 %v1467_v35 }
 0xc68   :  { %v1473_v37 = vpop.eup %1357 }
 0xc69   :  { %v122_v38 = vmul.f32 %v1473_v37, %v120_v36 }
 0xc6b   :  { %123 = vst [vmem:[#allocation2 + $0x18] sm:$0xff] %v122_v38 }
 0xc72   :  { %v552_v47 = vld [vmem:[#allocation2 + $0x18] ss:$0 sm:$0xff]  ;;  %v574_v61 = vld [vmem:[#allocation2 + $0x19] ss:$0 sm:$0xff]  ;;  %v596_v17 = vld [vmem:[#allocation2 + $0x1a] ss:$0 sm:$0xff] }
 0xc73   :  { %v553_v48 = vxor.u32 2147483648, %v552_v47  ;;  %v575_v1 = vxor.u32 2147483648, %v574_v61  ;;  %v597_v19 = vxor.u32 2147483648, %v596_v17  ;;  %v618_v31 = vld [vmem:[#allocation2 + $0x1b] ss:$0 sm:$0xff] }
 0xc75   :  { %v569_v54 = vmul.f32 %v553_v48, %v203_v51 }
 0xcc6   :  { %v523_v39 = vpop.xlane.xlu0 %522 }
 0xcc7   :  { %v524_v40 = vsel %vm520_vm6, %v523_v39, %v506_v25 }
 0xcc8   :  { %v539_v41 = vmul.f32 %v535_v32, %v524_v40 }
 0xcca   :  { %540 = vadd.xlane.f32.xlu0 %v539_v41  ;;  %v531_v42 = vpop.xlane.xlu0 %530 }
 0xccb   :  { %v532_v44 = vsel %vm520_vm6, %v531_v42, %v514_v28  ;;  %vm710_vm6 = vcmp.eq.s32.totalorder %v1380_v2, 31 }
 0xccc   :  { %v547_v46 = vmul.f32 %v535_v32, %v532_v44 }
 0xcce   :  { %548 = vadd.xlane.f32.xlu0 %v547_v46 }
 0xce3   :  { %v545_v49 = vpop.xlane.xlu1 %544 }
 0xce4   :  { %v546_v50 = vsel %vm538_vm9, %v545_v49, %v528_v33  ;;  %v619_v33 = vxor.u32 2147483648, %v618_v31  ;;  %v640_v49 = vld [vmem:[#allocation2 + $0x1c] ss:$0 sm:$0xff]  ;;  %v128_v31 = vadd.s32 32, %v1382_v3 }
 0xce5   :  { %v561_v52 = vmul.f32 %v553_v48, %v546_v50 }
 0xce6   :  { %vm129_vm2 = vcmp.eq.s32.totalorder %v128_v31, %v1380_v2  ;;  %vm134_vm4 = vcmp.ge.s32.totalorder %v128_v31, %v1380_v2  ;;  %vm209_vm7 = vcmp.eq.s32.totalorder %v1380_v2, %v128_v31 }
 0xce7   :  { %562 = vadd.xlane.f32.xlu0 %v561_v52  ;;  %vm135_vm5 = vmand %vm134_vm4, %vm61_vm1 }
 0xceb   :  { %570 = vadd.xlane.f32.xlu0 %v569_v54 }
 0xd53   :  { %v541_v55 = vpop.xlane.xlu0 %540 }
 0xd54   :  { %v542_v56 = vsel %vm538_vm9, %v541_v55, %v524_v40 }
 0xd55   :  { %v557_v57 = vmul.f32 %v553_v48, %v542_v56 }
 0xd57   :  { %v549_v58 = vpop.xlane.xlu0 %548  ;;  %558 = vadd.xlane.f32.xlu1 %v557_v57 }
 0xd58   :  { %v550_v59 = vsel %vm538_vm9, %v549_v58, %v532_v44  ;;  %vm758_vm9 = vcmp.eq.s32.totalorder %v1380_v2, 33 }
 0xd59   :  { %v565_v60 = vmul.f32 %v553_v48, %v550_v59 }
 0xd5b   :  { %566 = vadd.xlane.f32.xlu1 %v565_v60 }
 0xd70   :  { %v563_v63 = vpop.xlane.xlu0 %562 }
 0xd71   :  { %v564_v4 = vsel %vm556_vm11, %v563_v63, %v546_v50 }
 0xd72   :  { %v583_v6 = vmul.f32 %v575_v1, %v564_v4 }
 0xd74   :  { %584 = vadd.xlane.f32.xlu0 %v583_v6  ;;  %v571_v8 = vpop.xlane.xlu0 %570 }
 0xd75   :  { %v572_v9 = vsel %vm556_vm11, %v571_v8, %v203_v51  ;;  %v641_v51 = vxor.u32 2147483648, %v640_v49 }
 0xd76   :  { %v591_v10 = vmul.f32 %v575_v1, %v572_v9 }
 0xd78   :  { %592 = vadd.xlane.f32.xlu0 %v591_v10 }
 0xde0   :  { %v559_v11 = vpop.xlane.xlu1 %558 }
 0xde1   :  { %v560_v12 = vsel %vm556_vm11, %v559_v11, %v542_v56 }
 0xde2   :  { %v579_v13 = vmul.f32 %v575_v1, %v560_v12 }
 0xde4   :  { %580 = vadd.xlane.f32.xlu1 %v579_v13  ;;  %v567_v14 = vpop.xlane.xlu1 %566 }
 0xde5   :  { %v568_v15 = vsel %vm556_vm11, %v567_v14, %v550_v59  ;;  %vm810_vm11 = vcmp.eq.s32.totalorder %v1380_v2, 35 }
 0xde6   :  { %v587_v16 = vmul.f32 %v575_v1, %v568_v15 }
 0xde8   :  { %588 = vadd.xlane.f32.xlu1 %v587_v16 }
 0xdfd   :  { %v585_v18 = vpop.xlane.xlu0 %584 }
 0xdfe   :  { %v586_v20 = vsel %vm578_vm12, %v585_v18, %v564_v4  ;;  %v662_v4 = vld [vmem:[#allocation2 + $0x1d] ss:$0 sm:$0xff] }
 0xdff   :  { %v605_v21 = vmul.f32 %v597_v19, %v586_v20  ;;  %v663_v8 = vxor.u32 2147483648, %v662_v4 }
 0xe01   :  { %606 = vadd.xlane.f32.xlu0 %v605_v21  ;;  %v593_v22 = vpop.xlane.xlu0 %592 }
 0xe02   :  { %v594_v23 = vsel %vm578_vm12, %v593_v22, %v572_v9 }
 0xe03   :  { %v613_v24 = vmul.f32 %v597_v19, %v594_v23 }
 0xe05   :  { %614 = vadd.xlane.f32.xlu0 %v613_v24 }
 0xe6d   :  { %v581_v25 = vpop.xlane.xlu1 %580 }
 0xe6e   :  { %v582_v26 = vsel %vm578_vm12, %v581_v25, %v560_v12 }
 0xe6f   :  { %v601_v27 = vmul.f32 %v597_v19, %v582_v26 }
 0xe71   :  { %602 = vadd.xlane.f32.xlu1 %v601_v27  ;;  %v589_v28 = vpop.xlane.xlu1 %588 }
 0xe72   :  { %v590_v29 = vsel %vm578_vm12, %v589_v28, %v568_v15  ;;  %vm836_vm12 = vcmp.eq.s32.totalorder %v1380_v2, 36 }
 0xe73   :  { %v609_v30 = vmul.f32 %v597_v19, %v590_v29 }
 0xe75   :  { %610 = vadd.xlane.f32.xlu1 %v609_v30 }
 0xe8a   :  { %v607_v32 = vpop.xlane.xlu0 %606 }
 0xe8b   :  { %v608_v34 = vsel %vm600_vm13, %v607_v32, %v586_v20  ;;  %v684_v20 = vld [vmem:[#allocation2 + $0x1e] ss:$0 sm:$0xff] }
 0xe8c   :  { %v627_v36 = vmul.f32 %v619_v33, %v608_v34  ;;  %v685_v22 = vxor.u32 2147483648, %v684_v20 }
 0xe8e   :  { %628 = vadd.xlane.f32.xlu0 %v627_v36  ;;  %v615_v38 = vpop.xlane.xlu0 %614  ;;  %v50_v36 = vld [vmem:[%s1814_s0 + $0x20] sm:$0xff] }
 0xe8f   :  { %v616_v39 = vsel %vm600_vm13, %v615_v38, %v594_v23  ;;  %v131_v38 = vsel %vm129_vm2, %v50_v36, 0.0 }
 0xe90   :  { %v635_v40 = vmul.f32 %v619_v33, %v616_v39 }
 0xe92   :  { %636 = vadd.xlane.f32.xlu0 %v635_v40 }
 0xefa   :  { %v603_v41 = vpop.xlane.xlu1 %602 }
 0xefb   :  { %v604_v42 = vsel %vm600_vm13, %v603_v41, %v582_v26 }
 0xefc   :  { %v623_v44 = vmul.f32 %v619_v33, %v604_v42 }
 0xefe   :  { %624 = vadd.xlane.f32.xlu1 %v623_v44  ;;  %v611_v46 = vpop.xlane.xlu1 %610 }
 0xeff   :  { %v612_v47 = vsel %vm600_vm13, %v611_v46, %v590_v29  ;;  %vm862_vm13 = vcmp.eq.s32.totalorder %v1380_v2, 37 }
 0xf00   :  { %v631_v48 = vmul.f32 %v619_v33, %v612_v47 }
 0xf02   :  { %632 = vadd.xlane.f32.xlu1 %v631_v48 }
 0xf17   :  { %v629_v50 = vpop.xlane.xlu0 %628 }
 0xf18   :  { %v630_v52 = vsel %vm622_vm14, %v629_v50, %v608_v34 }
 0xf19   :  { %v649_v54 = vmul.f32 %v641_v51, %v630_v52 }
 0xf1b   :  { %650 = vadd.xlane.f32.xlu0 %v649_v54  ;;  %v637_v55 = vpop.xlane.xlu0 %636 }
 0xf1c   :  { %v638_v56 = vsel %vm622_vm14, %v637_v55, %v616_v39  ;;  %v706_v39 = vld [vmem:[#allocation2 + $0x1f] ss:$0 sm:$0xff] }
 0xf1d   :  { %v657_v57 = vmul.f32 %v641_v51, %v638_v56  ;;  %v707_v41 = vxor.u32 2147483648, %v706_v39 }
 0xf1f   :  { %658 = vadd.xlane.f32.xlu0 %v657_v57  ;;  %v136_v57 = vsel %vm135_vm5, %v50_v36, 0.0  ;;  %vm940_vm5 = vcmp.eq.s32.totalorder %v1380_v2, 40 }
 0xf87   :  { %v625_v58 = vpop.xlane.xlu1 %624 }
 0xf88   :  { %v626_v59 = vsel %vm622_vm14, %v625_v58, %v604_v42 }
 0xf89   :  { %v645_v60 = vmul.f32 %v641_v51, %v626_v59 }
 0xf8b   :  { %646 = vadd.xlane.f32.xlu1 %v645_v60  ;;  %v633_v61 = vpop.xlane.xlu1 %632 }
 0xf8c   :  { %v634_v63 = vsel %vm622_vm14, %v633_v61, %v612_v47 }
 0xf8d   :  { %v653_v1 = vmul.f32 %v641_v51, %v634_v63 }
 0xf8f   :  { %654 = vadd.xlane.f32.xlu1 %v653_v1 }
 0xfa4   :  { %v651_v6 = vpop.xlane.xlu0 %650 }
 0xfa5   :  { %v652_v9 = vsel %vm644_vm15, %v651_v6, %v630_v52 }
 0xfa6   :  { %v671_v10 = vmul.f32 %v663_v8, %v652_v9 }
 0xfa8   :  { %672 = vadd.xlane.f32.xlu0 %v671_v10  ;;  %v659_v11 = vpop.xlane.xlu0 %658 }
 0xfa9   :  { %v660_v12 = vsel %vm644_vm15, %v659_v11, %v638_v56 }
 0xfaa   :  { %v679_v13 = vmul.f32 %v663_v8, %v660_v12 }
 0xfac   :  { %680 = vadd.xlane.f32.xlu0 %v679_v13 }
0x1014   :  { %v647_v14 = vpop.xlane.xlu1 %646 }
0x1015   :  { %v648_v15 = vsel %vm644_vm15, %v647_v14, %v626_v59 }
0x1016   :  { %v667_v16 = vmul.f32 %v663_v8, %v648_v15 }
0x1018   :  { %668 = vadd.xlane.f32.xlu1 %v667_v16  ;;  %v655_v17 = vpop.xlane.xlu1 %654  ;;  %v210_v16 = vsel %vm209_vm7, -1.0, %v1366_v53  ;;  %vm1000_vm7 = vcmp.eq.s32.totalorder %v1380_v2, 42 }
0x1019   :  { %v656_v18 = vsel %vm644_vm15, %v655_v17, %v634_v63  ;;  %vm888_vm15 = vcmp.eq.s32.totalorder %v1380_v2, 38 }
0x101a   :  { %v675_v19 = vmul.f32 %v663_v8, %v656_v18 }
0x101c   :  { %676 = vadd.xlane.f32.xlu1 %v675_v19 }
0x1031   :  { %v673_v21 = vpop.xlane.xlu0 %672 }
0x1032   :  { %v674_v23 = vsel %vm666_vm0, %v673_v21, %v652_v9 }
0x1033   :  { %v693_v24 = vmul.f32 %v685_v22, %v674_v23 }
0x1035   :  { %694 = vadd.xlane.f32.xlu0 %v693_v24  ;;  %v681_v25 = vpop.xlane.xlu0 %680 }
0x1036   :  { %v682_v26 = vsel %vm666_vm0, %v681_v25, %v660_v12 }
0x1037   :  { %v701_v27 = vmul.f32 %v685_v22, %v682_v26 }
0x1039   :  { %702 = vadd.xlane.f32.xlu0 %v701_v27 }
0x10a1   :  { %v669_v28 = vpop.xlane.xlu1 %668 }
0x10a2   :  { %v670_v29 = vsel %vm666_vm0, %v669_v28, %v648_v15 }
0x10a3   :  { %v689_v30 = vmul.f32 %v685_v22, %v670_v29 }
0x10a5   :  { %690 = vadd.xlane.f32.xlu1 %v689_v30  ;;  %v677_v32 = vpop.xlane.xlu1 %676 }
0x10a6   :  { %v678_v33 = vsel %vm666_vm0, %v677_v32, %v656_v18 }
0x10a7   :  { %v697_v34 = vmul.f32 %v685_v22, %v678_v33 }
0x10a9   :  { %698 = vadd.xlane.f32.xlu1 %v697_v34 }
0x10ad   :  { %132 = vadd.xlane.f32.xlu1 %v131_v38 }
0x10be   :  { %v695_v40 = vpop.xlane.xlu0 %694 }
0x10bf   :  { %v696_v42 = vsel %vm688_vm3, %v695_v40, %v674_v23 }
0x10c0   :  { %v715_v44 = vmul.f32 %v707_v41, %v696_v42 }
0x10c2   :  { %v703_v46 = vpop.xlane.xlu0 %702  ;;  %716 = vadd.xlane.f32.xlu1 %v715_v44 }
0x10c3   :  { %v704_v47 = vsel %vm688_vm3, %v703_v46, %v682_v26 }
0x10c4   :  { %v723_v48 = vmul.f32 %v707_v41, %v704_v47 }
0x10c6   :  { %724 = vadd.xlane.f32.xlu1 %v723_v48 }
0x112e   :  { %v691_v49 = vpop.xlane.xlu1 %690 }
0x112f   :  { %v692_v50 = vsel %vm688_vm3, %v691_v49, %v670_v29 }
0x1130   :  { %v711_v51 = vmul.f32 %v707_v41, %v692_v50 }
0x1132   :  { %712 = vadd.xlane.f32.xlu0 %v711_v51  ;;  %v699_v52 = vpop.xlane.xlu1 %698 }
0x1133   :  { %v700_v54 = vsel %vm688_vm3, %v699_v52, %v678_v33  ;;  %vm914_vm3 = vcmp.eq.s32.totalorder %v1380_v2, 39 }
0x1134   :  { %v719_v55 = vmul.f32 %v707_v41, %v700_v54 }
0x1136   :  { %720 = vadd.xlane.f32.xlu0 %v719_v55  ;;  %v1503_v56 = vpop.xlane.xlu1 %132 }
0x1137   :  { %1359 = vrcp.f32 %v1503_v56 }
0x1144   :  { %v1509_v58 = vpop.eup %1359 }
0x1145   :  { %v138_v59 = vmul.f32 %v1509_v58, %v136_v57 }
0x1147   :  { %139 = vst [vmem:[#allocation2 + $0x20] sm:$0xff] %v138_v59 }
0x114b   :  { %v717_v60 = vpop.xlane.xlu1 %716 }
0x114c   :  { %v718_v4 = vsel %vm710_vm6, %v717_v60, %v696_v42 }
0x114e   :  { %v728_v61 = vld [vmem:[#allocation2 + $0x20] ss:$0 sm:$0xff]  ;;  %v754_v18 = vld [vmem:[#allocation2 + $0x21] ss:$0 sm:$0xff]  ;;  %v780_v36 = vld [vmem:[#allocation2 + $0x22] ss:$0 sm:$0xff] }
0x114f   :  { %v725_v63 = vpop.xlane.xlu1 %724  ;;  %v729_v1 = vxor.u32 2147483648, %v728_v61  ;;  %v755_v20 = vxor.u32 2147483648, %v754_v18  ;;  %v781_v39 = vxor.u32 2147483648, %v780_v36  ;;  %v806_v59 = vld [vmem:[#allocation2 + $0x23] ss:$0 sm:$0xff] }
0x1150   :  { %v726_v8 = vsel %vm710_vm6, %v725_v63, %v704_v47  ;;  %v807_v60 = vxor.u32 2147483648, %v806_v59  ;;  %v832_v18 = vld [vmem:[#allocation2 + $0x24] ss:$0 sm:$0xff]  ;;  %v858_v36 = vld [vmem:[#allocation2 + $0x25] ss:$0 sm:$0xff] }
0x1151   :  { %v737_v6 = vmul.f32 %v729_v1, %v718_v4  ;;  %v745_v9 = vmul.f32 %v729_v1, %v726_v8  ;;  %v749_v17 = vmul.f32 %v729_v1, %v210_v16  ;;  %v884_v59 = vld [vmem:[#allocation2 + $0x26] ss:$0 sm:$0xff] }
0x1153   :  { %738 = vadd.xlane.f32.xlu1 %v737_v6 }
0x1157   :  { %746 = vadd.xlane.f32.xlu1 %v745_v9 }
0x11bb   :  { %v713_v10 = vpop.xlane.xlu0 %712 }
0x11bc   :  { %v714_v14 = vsel %vm710_vm6, %v713_v10, %v692_v50 }
0x11bd   :  { %v733_v15 = vmul.f32 %v729_v1, %v714_v14 }
0x11bf   :  { %v721_v11 = vpop.xlane.xlu0 %720 }
0x11c0   :  { %v722_v12 = vsel %vm710_vm6, %v721_v11, %v700_v54  ;;  %vm970_vm6 = vcmp.eq.s32.totalorder %v1380_v2, 41 }
0x11c1   :  { %v741_v13 = vmul.f32 %v729_v1, %v722_v12 }
0x11c3   :  { %742 = vadd.xlane.f32.xlu0 %v741_v13 }
0x11c7   :  { %734 = vadd.xlane.f32.xlu0 %v733_v15 }
0x11cb   :  { %750 = vadd.xlane.f32.xlu0 %v749_v17 }
0x11dc   :  { %v739_v19 = vpop.xlane.xlu1 %738 }
0x11dd   :  { %v740_v21 = vsel %vm732_vm8, %v739_v19, %v718_v4  ;;  %v833_v19 = vxor.u32 2147483648, %v832_v18 }
0x11de   :  { %v763_v22 = vmul.f32 %v755_v20, %v740_v21 }
0x11e0   :  { %764 = vadd.xlane.f32.xlu0 %v763_v22  ;;  %v747_v23 = vpop.xlane.xlu1 %746 }
0x11e1   :  { %v748_v24 = vsel %vm732_vm8, %v747_v23, %v726_v8 }
0x11e2   :  { %v771_v25 = vmul.f32 %v755_v20, %v748_v24 }
0x11e4   :  { %772 = vadd.xlane.f32.xlu0 %v771_v25 }
0x124c   :  { %v743_v26 = vpop.xlane.xlu0 %742 }
0x124d   :  { %v744_v27 = vsel %vm732_vm8, %v743_v26, %v722_v12 }
0x124e   :  { %v767_v28 = vmul.f32 %v755_v20, %v744_v27 }
0x1250   :  { %v735_v29 = vpop.xlane.xlu0 %734  ;;  %768 = vadd.xlane.f32.xlu1 %v767_v28 }
0x1251   :  { %v736_v30 = vsel %vm732_vm8, %v735_v29, %v714_v14 }
0x1252   :  { %v759_v31 = vmul.f32 %v755_v20, %v736_v30 }
0x1254   :  { %v751_v32 = vpop.xlane.xlu0 %750  ;;  %760 = vadd.xlane.f32.xlu1 %v759_v31 }
0x1255   :  { %v752_v33 = vsel %vm732_vm8, %v751_v32, %v210_v16  ;;  %vm1030_vm8 = vcmp.eq.s32.totalorder %v1380_v2, 43 }
0x1256   :  { %v775_v34 = vmul.f32 %v755_v20, %v752_v33 }
0x1258   :  { %776 = vadd.xlane.f32.xlu1 %v775_v34 }
0x1269   :  { %v765_v38 = vpop.xlane.xlu0 %764 }
0x126a   :  { %v766_v40 = vsel %vm758_vm9, %v765_v38, %v740_v21  ;;  %v859_v38 = vxor.u32 2147483648, %v858_v36 }
0x126b   :  { %v789_v41 = vmul.f32 %v781_v39, %v766_v40 }
0x126d   :  { %790 = vadd.xlane.f32.xlu1 %v789_v41  ;;  %v773_v42 = vpop.xlane.xlu0 %772 }
0x126e   :  { %v774_v44 = vsel %vm758_vm9, %v773_v42, %v748_v24 }
0x126f   :  { %v797_v46 = vmul.f32 %v781_v39, %v774_v44 }
0x1271   :  { %798 = vadd.xlane.f32.xlu1 %v797_v46 }
0x12d9   :  { %v769_v47 = vpop.xlane.xlu1 %768 }
0x12da   :  { %v770_v48 = vsel %vm758_vm9, %v769_v47, %v744_v27 }
0x12db   :  { %v793_v49 = vmul.f32 %v781_v39, %v770_v48 }
0x12dd   :  { %794 = vadd.xlane.f32.xlu0 %v793_v49  ;;  %v761_v50 = vpop.xlane.xlu1 %760 }
0x12de   :  { %v762_v51 = vsel %vm758_vm9, %v761_v50, %v736_v30 }
0x12df   :  { %v785_v52 = vmul.f32 %v781_v39, %v762_v51 }
0x12e1   :  { %786 = vadd.xlane.f32.xlu0 %v785_v52  ;;  %v777_v54 = vpop.xlane.xlu1 %776 }
0x12e2   :  { %v778_v55 = vsel %vm758_vm9, %v777_v54, %v752_v33  ;;  %vm1060_vm9 = vcmp.eq.s32.totalorder %v1380_v2, 44 }
0x12e3   :  { %v801_v57 = vmul.f32 %v781_v39, %v778_v55 }
0x12e5   :  { %802 = vadd.xlane.f32.xlu0 %v801_v57 }
0x12f6   :  { %v791_v61 = vpop.xlane.xlu1 %790 }
0x12f7   :  { %v792_v63 = vsel %vm784_vm10, %v791_v61, %v766_v40 }
0x12f8   :  { %v815_v1 = vmul.f32 %v807_v60, %v792_v63 }
0x12fa   :  { %816 = vadd.xlane.f32.xlu0 %v815_v1  ;;  %v799_v4 = vpop.xlane.xlu1 %798 }
0x12fb   :  { %v800_v6 = vsel %vm784_vm10, %v799_v4, %v774_v44  ;;  %v1574_v4 = vadd.s32 40, %v1382_v3 }
0x12fc   :  { %v823_v8 = vmul.f32 %v807_v60, %v800_v6 }
0x12fd   :  { %vm145_vm14 = vcmp.eq.s32.totalorder %v1574_v4, %v1380_v2  ;;  %vm150_vm0 = vcmp.ge.s32.totalorder %v1574_v4, %v1380_v2  ;;  %vm216_vm4 = vcmp.eq.s32.totalorder %v1380_v2, %v1574_v4 }
0x12fe   :  { %824 = vadd.xlane.f32.xlu0 %v823_v8  ;;  %vm151_vm2 = vmand %vm150_vm0, %vm61_vm1  ;;  %vm1180_vm0 = vcmp.eq.s32.totalorder %v1380_v2, 48 }
0x1366   :  { %v795_v9 = vpop.xlane.xlu0 %794 }
0x1367   :  { %v796_v10 = vsel %vm784_vm10, %v795_v9, %v770_v48 }
0x1368   :  { %v819_v11 = vmul.f32 %v807_v60, %v796_v10 }
0x136a   :  { %820 = vadd.xlane.f32.xlu1 %v819_v11  ;;  %v787_v12 = vpop.xlane.xlu0 %786 }
0x136b   :  { %v788_v13 = vsel %vm784_vm10, %v787_v12, %v762_v51 }
0x136c   :  { %v811_v14 = vmul.f32 %v807_v60, %v788_v13 }
0x136e   :  { %812 = vadd.xlane.f32.xlu1 %v811_v14  ;;  %v803_v15 = vpop.xlane.xlu0 %802 }
0x136f   :  { %v804_v16 = vsel %vm784_vm10, %v803_v15, %v778_v55  ;;  %vm1090_vm10 = vcmp.eq.s32.totalorder %v1380_v2, 45 }
0x1370   :  { %v827_v17 = vmul.f32 %v807_v60, %v804_v16  ;;  %v885_v60 = vxor.u32 2147483648, %v884_v59 }
0x1372   :  { %828 = vadd.xlane.f32.xlu1 %v827_v17 }
0x1383   :  { %v817_v20 = vpop.xlane.xlu0 %816 }
0x1384   :  { %v818_v21 = vsel %vm810_vm11, %v817_v20, %v792_v63 }
0x1385   :  { %v841_v22 = vmul.f32 %v833_v19, %v818_v21 }
0x1387   :  { %842 = vadd.xlane.f32.xlu1 %v841_v22  ;;  %v825_v23 = vpop.xlane.xlu0 %824 }
0x1388   :  { %v826_v24 = vsel %vm810_vm11, %v825_v23, %v800_v6 }
0x1389   :  { %v849_v25 = vmul.f32 %v833_v19, %v826_v24 }
0x138b   :  { %850 = vadd.xlane.f32.xlu1 %v849_v25 }
0x13f3   :  { %v821_v26 = vpop.xlane.xlu1 %820 }
0x13f4   :  { %v822_v27 = vsel %vm810_vm11, %v821_v26, %v796_v10  ;;  %v52_v10 = vld [vmem:[%s1814_s0 + $0x28] sm:$0xff] }
0x13f5   :  { %v845_v28 = vmul.f32 %v833_v19, %v822_v27  ;;  %v147_v11 = vsel %vm145_vm14, %v52_v10, 0.0 }
0x13f7   :  { %846 = vadd.xlane.f32.xlu0 %v845_v28  ;;  %v813_v29 = vpop.xlane.xlu1 %812 }
0x13f8   :  { %v814_v30 = vsel %vm810_vm11, %v813_v29, %v788_v13 }
0x13f9   :  { %v837_v31 = vmul.f32 %v833_v19, %v814_v30 }
0x13fb   :  { %838 = vadd.xlane.f32.xlu0 %v837_v31  ;;  %v829_v32 = vpop.xlane.xlu1 %828 }
0x13fc   :  { %v830_v33 = vsel %vm810_vm11, %v829_v32, %v804_v16 }
0x13fd   :  { %v853_v34 = vmul.f32 %v833_v19, %v830_v33 }
0x13ff   :  { %854 = vadd.xlane.f32.xlu0 %v853_v34 }
0x1410   :  { %v843_v39 = vpop.xlane.xlu1 %842 }
0x1411   :  { %v844_v40 = vsel %vm836_vm12, %v843_v39, %v818_v21  ;;  %v910_v21 = vld [vmem:[#allocation2 + $0x27] ss:$0 sm:$0xff] }
0x1412   :  { %v867_v41 = vmul.f32 %v859_v38, %v844_v40  ;;  %v911_v22 = vxor.u32 2147483648, %v910_v21 }
0x1414   :  { %868 = vadd.xlane.f32.xlu0 %v867_v41  ;;  %v851_v42 = vpop.xlane.xlu1 %850 }
0x1415   :  { %v852_v44 = vsel %vm836_vm12, %v851_v42, %v826_v24 }
0x1416   :  { %v875_v46 = vmul.f32 %v859_v38, %v852_v44 }
0x1418   :  { %876 = vadd.xlane.f32.xlu0 %v875_v46 }
0x1480   :  { %v847_v47 = vpop.xlane.xlu0 %846 }
0x1481   :  { %v848_v48 = vsel %vm836_vm12, %v847_v47, %v822_v27 }
0x1482   :  { %v871_v49 = vmul.f32 %v859_v38, %v848_v48 }
0x1484   :  { %872 = vadd.xlane.f32.xlu1 %v871_v49  ;;  %v839_v50 = vpop.xlane.xlu0 %838 }
0x1485   :  { %v840_v51 = vsel %vm836_vm12, %v839_v50, %v814_v30  ;;  %v152_v30 = vsel %vm151_vm2, %v52_v10, 0.0  ;;  %vm1214_vm2 = vcmp.eq.s32.totalorder %v1380_v2, 49 }
0x1486   :  { %v863_v52 = vmul.f32 %v859_v38, %v840_v51 }
0x1488   :  { %864 = vadd.xlane.f32.xlu1 %v863_v52  ;;  %v855_v54 = vpop.xlane.xlu0 %854 }
0x1489   :  { %v856_v55 = vsel %vm836_vm12, %v855_v54, %v830_v33  ;;  %v217_v54 = vsel %vm216_vm4, -1.0, %v1366_v53  ;;  %vm1120_vm12 = vcmp.eq.s32.totalorder %v1380_v2, 46  ;;  %vm1262_vm4 = vweird.f32 %v1467_v35 }
0x148a   :  { %v879_v57 = vmul.f32 %v859_v38, %v856_v55 }
0x148c   :  { %880 = vadd.xlane.f32.xlu1 %v879_v57 }
0x149d   :  { %v869_v61 = vpop.xlane.xlu0 %868 }
0x149e   :  { %v870_v63 = vsel %vm862_vm13, %v869_v61, %v844_v40 }
0x149f   :  { %v893_v1 = vmul.f32 %v885_v60, %v870_v63 }
0x14a1   :  { %894 = vadd.xlane.f32.xlu1 %v893_v1  ;;  %v877_v6 = vpop.xlane.xlu0 %876 }
0x14a2   :  { %v878_v8 = vsel %vm862_vm13, %v877_v6, %v852_v44 }
0x14a3   :  { %v901_v9 = vmul.f32 %v885_v60, %v878_v8 }
0x14a5   :  { %902 = vadd.xlane.f32.xlu1 %v901_v9 }
0x14a9   :  { %148 = vadd.xlane.f32.xlu1 %v147_v11 }
0x150d   :  { %v873_v12 = vpop.xlane.xlu1 %872 }
0x150e   :  { %v874_v13 = vsel %vm862_vm13, %v873_v12, %v848_v48 }
0x150f   :  { %v897_v14 = vmul.f32 %v885_v60, %v874_v13 }
0x1511   :  { %898 = vadd.xlane.f32.xlu0 %v897_v14  ;;  %v865_v15 = vpop.xlane.xlu1 %864 }
0x1512   :  { %v866_v16 = vsel %vm862_vm13, %v865_v15, %v840_v51 }
0x1513   :  { %v889_v17 = vmul.f32 %v885_v60, %v866_v16 }
0x1515   :  { %890 = vadd.xlane.f32.xlu0 %v889_v17  ;;  %v881_v18 = vpop.xlane.xlu1 %880 }
0x1516   :  { %v882_v19 = vsel %vm862_vm13, %v881_v18, %v856_v55 }
0x1517   :  { %v905_v20 = vmul.f32 %v885_v60, %v882_v19 }
0x1519   :  { %906 = vadd.xlane.f32.xlu0 %v905_v20 }
0x152a   :  { %v895_v23 = vpop.xlane.xlu1 %894 }
0x152b   :  { %v896_v24 = vsel %vm888_vm15, %v895_v23, %v870_v63 }
0x152c   :  { %v919_v25 = vmul.f32 %v911_v22, %v896_v24 }
0x152e   :  { %920 = vadd.xlane.f32.xlu1 %v919_v25  ;;  %v903_v26 = vpop.xlane.xlu1 %902 }
0x152f   :  { %v904_v27 = vsel %vm888_vm15, %v903_v26, %v878_v8 }
0x1530   :  { %v927_v28 = vmul.f32 %v911_v22, %v904_v27 }
0x1532   :  { %928 = vadd.xlane.f32.xlu1 %v927_v28  ;;  %v1594_v29 = vpop.xlane.xlu1 %148 }
0x1533   :  { %1361 = vrcp.f32 %v1594_v29 }
0x1540   :  { %v1601_v31 = vpop.eup %1361 }
0x1541   :  { %v154_v32 = vmul.f32 %v1601_v31, %v152_v30 }
0x1543   :  { %155 = vst [vmem:[#allocation2 + $0x28] sm:$0xff] %v154_v32 }
0x154a   :  { %v936_v46 = vld [vmem:[#allocation2 + $0x28] ss:$0 sm:$0xff]  ;;  %v966_v10 = vld [vmem:[#allocation2 + $0x29] ss:$0 sm:$0xff]  ;;  %v996_v32 = vld [vmem:[#allocation2 + $0x2a] ss:$0 sm:$0xff] }
0x154b   :  { %v937_v47 = vxor.u32 2147483648, %v936_v46  ;;  %v967_v11 = vxor.u32 2147483648, %v966_v10 }
0x154d   :  { %v961_v57 = vmul.f32 %v937_v47, %v217_v54 }
0x159a   :  { %v899_v33 = vpop.xlane.xlu0 %898 }
0x159b   :  { %v900_v34 = vsel %vm888_vm15, %v899_v33, %v874_v13  ;;  %v997_v33 = vxor.u32 2147483648, %v996_v32 }
0x159c   :  { %v923_v36 = vmul.f32 %v911_v22, %v900_v34 }
0x159e   :  { %v891_v38 = vpop.xlane.xlu0 %890  ;;  %924 = vadd.xlane.f32.xlu0 %v923_v36 }
0x159f   :  { %v892_v39 = vsel %vm888_vm15, %v891_v38, %v866_v16 }
0x15a0   :  { %v915_v40 = vmul.f32 %v911_v22, %v892_v39 }
0x15a2   :  { %916 = vadd.xlane.f32.xlu0 %v915_v40  ;;  %v907_v41 = vpop.xlane.xlu0 %906 }
0x15a3   :  { %v908_v42 = vsel %vm888_vm15, %v907_v41, %v882_v19  ;;  %vm1150_vm15 = vcmp.eq.s32.totalorder %v1380_v2, 47 }
0x15a4   :  { %v931_v44 = vmul.f32 %v911_v22, %v908_v42 }
0x15a6   :  { %932 = vadd.xlane.f32.xlu0 %v931_v44 }
0x15b7   :  { %v921_v48 = vpop.xlane.xlu1 %920 }
0x15b8   :  { %v922_v49 = vsel %vm914_vm3, %v921_v48, %v896_v24 }
0x15b9   :  { %v945_v50 = vmul.f32 %v937_v47, %v922_v49 }
0x15bb   :  { %946 = vadd.xlane.f32.xlu0 %v945_v50  ;;  %v929_v51 = vpop.xlane.xlu1 %928 }
0x15bc   :  { %v930_v52 = vsel %vm914_vm3, %v929_v51, %v904_v27 }
0x15bd   :  { %v953_v55 = vmul.f32 %v937_v47, %v930_v52 }
0x15bf   :  { %954 = vadd.xlane.f32.xlu0 %v953_v55 }
0x15c3   :  { %962 = vadd.xlane.f32.xlu0 %v961_v57 }
0x1627   :  { %v925_v59 = vpop.xlane.xlu0 %924 }
0x1628   :  { %v926_v60 = vsel %vm914_vm3, %v925_v59, %v900_v34  ;;  %v1026_v59 = vld [vmem:[#allocation2 + $0x2b] ss:$0 sm:$0xff] }
0x1629   :  { %v949_v61 = vmul.f32 %v937_v47, %v926_v60 }
0x162b   :  { %v917_v63 = vpop.xlane.xlu0 %916  ;;  %950 = vadd.xlane.f32.xlu1 %v949_v61 }
0x162c   :  { %v918_v1 = vsel %vm914_vm3, %v917_v63, %v892_v39 }
0x162d   :  { %v941_v4 = vmul.f32 %v937_v47, %v918_v1 }
0x162f   :  { %v933_v6 = vpop.xlane.xlu0 %932  ;;  %942 = vadd.xlane.f32.xlu1 %v941_v4 }
0x1630   :  { %v934_v8 = vsel %vm914_vm3, %v933_v6, %v908_v42  ;;  %vm1250_vm3 = vweird.f32 %v1410_v43 }
0x1631   :  { %v957_v9 = vmul.f32 %v937_v47, %v934_v8 }
0x1633   :  { %958 = vadd.xlane.f32.xlu1 %v957_v9 }
0x1644   :  { %v947_v12 = vpop.xlane.xlu0 %946 }
0x1645   :  { %v948_v13 = vsel %vm940_vm5, %v947_v12, %v922_v49 }
0x1646   :  { %v975_v14 = vmul.f32 %v967_v11, %v948_v13 }
0x1648   :  { %976 = vadd.xlane.f32.xlu0 %v975_v14  ;;  %v955_v15 = vpop.xlane.xlu0 %954 }
0x1649   :  { %v956_v16 = vsel %vm940_vm5, %v955_v15, %v930_v52 }
0x164a   :  { %v983_v17 = vmul.f32 %v967_v11, %v956_v16 }
0x164c   :  { %984 = vadd.xlane.f32.xlu0 %v983_v17  ;;  %v963_v18 = vpop.xlane.xlu0 %962 }
0x164d   :  { %v964_v19 = vsel %vm940_vm5, %v963_v18, %v217_v54 }
0x164e   :  { %v991_v20 = vmul.f32 %v967_v11, %v964_v19 }
0x1650   :  { %992 = vadd.xlane.f32.xlu0 %v991_v20 }
0x16b4   :  { %v951_v21 = vpop.xlane.xlu1 %950 }
0x16b5   :  { %v952_v22 = vsel %vm940_vm5, %v951_v21, %v926_v60  ;;  %v1027_v60 = vxor.u32 2147483648, %v1026_v59  ;;  %v1056_v21 = vld [vmem:[#allocation2 + $0x2c] ss:$0 sm:$0xff] }
0x16b6   :  { %v979_v23 = vmul.f32 %v967_v11, %v952_v22 }
0x16b8   :  { %980 = vadd.xlane.f32.xlu1 %v979_v23  ;;  %v943_v24 = vpop.xlane.xlu1 %942 }
0x16b9   :  { %v944_v25 = vsel %vm940_vm5, %v943_v24, %v918_v1 }
0x16ba   :  { %v971_v26 = vmul.f32 %v967_v11, %v944_v25 }
0x16bc   :  { %972 = vadd.xlane.f32.xlu1 %v971_v26  ;;  %v959_v27 = vpop.xlane.xlu1 %958 }
0x16bd   :  { %v960_v28 = vsel %vm940_vm5, %v959_v27, %v934_v8  ;;  %vm1274_vm5 = vweird.f32 %v1594_v29 }
0x16be   :  { %v987_v30 = vmul.f32 %v967_v11, %v960_v28 }
0x16c0   :  { %988 = vadd.xlane.f32.xlu1 %v987_v30 }
0x16d1   :  { %v977_v34 = vpop.xlane.xlu0 %976 }
0x16d2   :  { %v978_v36 = vsel %vm970_vm6, %v977_v34, %v948_v13 }
0x16d3   :  { %v1005_v38 = vmul.f32 %v997_v33, %v978_v36 }
0x16d5   :  { %1006 = vadd.xlane.f32.xlu0 %v1005_v38  ;;  %v985_v39 = vpop.xlane.xlu0 %984 }
0x16d6   :  { %v986_v40 = vsel %vm970_vm6, %v985_v39, %v956_v16 }
0x16d7   :  { %v1013_v41 = vmul.f32 %v997_v33, %v986_v40 }
0x16d9   :  { %1014 = vadd.xlane.f32.xlu0 %v1013_v41  ;;  %v993_v42 = vpop.xlane.xlu0 %992 }
0x16da   :  { %v994_v44 = vsel %vm970_vm6, %v993_v42, %v964_v19 }
0x16db   :  { %v1021_v46 = vmul.f32 %v997_v33, %v994_v44 }
0x16dd   :  { %1022 = vadd.xlane.f32.xlu0 %v1021_v46 }
0x1741   :  { %v981_v47 = vpop.xlane.xlu1 %980 }
0x1742   :  { %v982_v48 = vsel %vm970_vm6, %v981_v47, %v952_v22  ;;  %v1057_v22 = vxor.u32 2147483648, %v1056_v21  ;;  %v1086_v47 = vld [vmem:[#allocation2 + $0x2d] ss:$0 sm:$0xff] }
0x1743   :  { %v1009_v49 = vmul.f32 %v997_v33, %v982_v48 }
0x1745   :  { %1010 = vadd.xlane.f32.xlu1 %v1009_v49  ;;  %v973_v50 = vpop.xlane.xlu1 %972 }
0x1746   :  { %v974_v51 = vsel %vm970_vm6, %v973_v50, %v944_v25 }
0x1747   :  { %v1001_v52 = vmul.f32 %v997_v33, %v974_v51 }
0x1749   :  { %1002 = vadd.xlane.f32.xlu1 %v1001_v52  ;;  %v989_v54 = vpop.xlane.xlu1 %988 }
0x174a   :  { %v990_v55 = vsel %vm970_vm6, %v989_v54, %v960_v28  ;;  %vm1256_vm6 = vweird.f32 %v1435_v62 }
0x174b   :  { %v1017_v57 = vmul.f32 %v997_v33, %v990_v55 }
0x174d   :  { %1018 = vadd.xlane.f32.xlu1 %v1017_v57 }
0x175e   :  { %v1007_v61 = vpop.xlane.xlu0 %1006 }
0x175f   :  { %v1008_v63 = vsel %vm1000_vm7, %v1007_v61, %v978_v36 }
0x1760   :  { %v1035_v1 = vmul.f32 %v1027_v60, %v1008_v63 }
0x1762   :  { %1036 = vadd.xlane.f32.xlu0 %v1035_v1  ;;  %v1015_v4 = vpop.xlane.xlu0 %1014 }
0x1763   :  { %v1016_v6 = vsel %vm1000_vm7, %v1015_v4, %v986_v40 }
0x1764   :  { %v1043_v8 = vmul.f32 %v1027_v60, %v1016_v6 }
0x1766   :  { %1044 = vadd.xlane.f32.xlu0 %v1043_v8  ;;  %v1023_v9 = vpop.xlane.xlu0 %1022 }
0x1767   :  { %v1024_v10 = vsel %vm1000_vm7, %v1023_v9, %v994_v44 }
0x1768   :  { %v1051_v11 = vmul.f32 %v1027_v60, %v1024_v10 }
0x176a   :  { %1052 = vadd.xlane.f32.xlu0 %v1051_v11 }
0x17ce   :  { %v1011_v12 = vpop.xlane.xlu1 %1010 }
0x17cf   :  { %v1012_v13 = vsel %vm1000_vm7, %v1011_v12, %v982_v48  ;;  %v1087_v48 = vxor.u32 2147483648, %v1086_v47  ;;  %v1116_v12 = vld [vmem:[#allocation2 + $0x2e] ss:$0 sm:$0xff] }
0x17d0   :  { %v1039_v14 = vmul.f32 %v1027_v60, %v1012_v13 }
0x17d2   :  { %1040 = vadd.xlane.f32.xlu1 %v1039_v14  ;;  %v1003_v15 = vpop.xlane.xlu1 %1002 }
0x17d3   :  { %v1004_v16 = vsel %vm1000_vm7, %v1003_v15, %v974_v51 }
0x17d4   :  { %v1031_v17 = vmul.f32 %v1027_v60, %v1004_v16 }
0x17d6   :  { %1032 = vadd.xlane.f32.xlu1 %v1031_v17  ;;  %v1019_v18 = vpop.xlane.xlu1 %1018 }
0x17d7   :  { %v1020_v19 = vsel %vm1000_vm7, %v1019_v18, %v990_v55  ;;  %vm1268_vm7 = vweird.f32 %v1503_v56 }
0x17d8   :  { %v1047_v20 = vmul.f32 %v1027_v60, %v1020_v19 }
0x17da   :  { %1048 = vadd.xlane.f32.xlu1 %v1047_v20 }
0x17eb   :  { %v1037_v23 = vpop.xlane.xlu0 %1036 }
0x17ec   :  { %v1038_v24 = vsel %vm1030_vm8, %v1037_v23, %v1008_v63 }
0x17ed   :  { %v1065_v25 = vmul.f32 %v1057_v22, %v1038_v24 }
0x17ef   :  { %1066 = vadd.xlane.f32.xlu0 %v1065_v25  ;;  %v1045_v26 = vpop.xlane.xlu0 %1044 }
0x17f0   :  { %v1046_v27 = vsel %vm1030_vm8, %v1045_v26, %v1016_v6 }
0x17f1   :  { %v1073_v28 = vmul.f32 %v1057_v22, %v1046_v27 }
0x17f3   :  { %1074 = vadd.xlane.f32.xlu0 %v1073_v28  ;;  %v1053_v30 = vpop.xlane.xlu0 %1052 }
0x17f4   :  { %v1054_v32 = vsel %vm1030_vm8, %v1053_v30, %v1024_v10  ;;  %v1701_v30 = vadd.s32 48, %v1382_v3 }
0x17f5   :  { %v1081_v33 = vmul.f32 %v1057_v22, %v1054_v32 }
0x17f6   :  { %vm161_vm11 = vcmp.eq.s32.totalorder %v1701_v30, %v1380_v2  ;;  %vm166_vm13 = vcmp.ge.s32.totalorder %v1701_v30, %v1380_v2 }
0x17f7   :  { %1082 = vadd.xlane.f32.xlu0 %v1081_v33  ;;  %vm167_vm14 = vmand %vm166_vm13, %vm61_vm1  ;;  %vm223_vm1 = vcmp.eq.s32.totalorder %v1380_v2, %v1701_v30 }
0x185b   :  { %v1041_v34 = vpop.xlane.xlu1 %1040 }
0x185c   :  { %v1042_v36 = vsel %vm1030_vm8, %v1041_v34, %v1012_v13  ;;  %v1117_v13 = vxor.u32 2147483648, %v1116_v12 }
0x185d   :  { %v1069_v38 = vmul.f32 %v1057_v22, %v1042_v36 }
0x185f   :  { %1070 = vadd.xlane.f32.xlu1 %v1069_v38  ;;  %v1033_v39 = vpop.xlane.xlu1 %1032 }
0x1860   :  { %v1034_v40 = vsel %vm1030_vm8, %v1033_v39, %v1004_v16  ;;  %v1146_v39 = vld [vmem:[#allocation2 + $0x2f] ss:$0 sm:$0xff] }
0x1861   :  { %v1061_v41 = vmul.f32 %v1057_v22, %v1034_v40  ;;  %v1147_v3 = vxor.u32 2147483648, %v1146_v39 }
0x1863   :  { %1062 = vadd.xlane.f32.xlu1 %v1061_v41  ;;  %v1049_v42 = vpop.xlane.xlu1 %1048 }
0x1864   :  { %v1050_v44 = vsel %vm1030_vm8, %v1049_v42, %v1020_v19  ;;  %vm1245_vm8 = vweird.f32 %v1386_v5 }
0x1865   :  { %v1077_v46 = vmul.f32 %v1057_v22, %v1050_v44 }
0x1867   :  { %1078 = vadd.xlane.f32.xlu1 %v1077_v46 }
0x1878   :  { %v1067_v49 = vpop.xlane.xlu0 %1066 }
0x1879   :  { %v1068_v50 = vsel %vm1060_vm9, %v1067_v49, %v1038_v24 }
0x187a   :  { %v1095_v51 = vmul.f32 %v1087_v48, %v1068_v50 }
0x187c   :  { %1096 = vadd.xlane.f32.xlu0 %v1095_v51  ;;  %v1075_v52 = vpop.xlane.xlu0 %1074 }
0x187d   :  { %v1076_v54 = vsel %vm1060_vm9, %v1075_v52, %v1046_v27 }
0x187e   :  { %v1103_v55 = vmul.f32 %v1087_v48, %v1076_v54 }
0x1880   :  { %1104 = vadd.xlane.f32.xlu0 %v1103_v55  ;;  %v1083_v57 = vpop.xlane.xlu0 %1082 }
0x1881   :  { %v1084_v59 = vsel %vm1060_vm9, %v1083_v57, %v1054_v32 }
0x1882   :  { %v1111_v60 = vmul.f32 %v1087_v48, %v1084_v59 }
0x1884   :  { %1112 = vadd.xlane.f32.xlu0 %v1111_v60 }
0x18e8   :  { %v1071_v61 = vpop.xlane.xlu1 %1070 }
0x18e9   :  { %v1072_v63 = vsel %vm1060_vm9, %v1071_v61, %v1042_v36  ;;  %v54_v36 = vld [vmem:[%s1814_s0 + $0x30] sm:$0xff] }
0x18ea   :  { %v1099_v1 = vmul.f32 %v1087_v48, %v1072_v63  ;;  %v163_v38 = vsel %vm161_vm11, %v54_v36, 0.0 }
0x18ec   :  { %1100 = vadd.xlane.f32.xlu1 %v1099_v1  ;;  %v1063_v4 = vpop.xlane.xlu1 %1062 }
0x18ed   :  { %v1064_v6 = vsel %vm1060_vm9, %v1063_v4, %v1034_v40  ;;  %v168_v4 = vsel %vm167_vm14, %v54_v36, 0.0 }
0x18ee   :  { %v1091_v8 = vmul.f32 %v1087_v48, %v1064_v6 }
0x18f0   :  { %1092 = vadd.xlane.f32.xlu1 %v1091_v8  ;;  %v1079_v9 = vpop.xlane.xlu1 %1078 }
0x18f1   :  { %v1080_v10 = vsel %vm1060_vm9, %v1079_v9, %v1050_v44 }
0x18f2   :  { %v1107_v11 = vmul.f32 %v1087_v48, %v1080_v10 }
0x18f4   :  { %1108 = vadd.xlane.f32.xlu1 %v1107_v11 }
0x1905   :  { %v1097_v14 = vpop.xlane.xlu0 %1096 }
0x1906   :  { %v1098_v15 = vsel %vm1090_vm10, %v1097_v14, %v1068_v50 }
0x1907   :  { %v1125_v16 = vmul.f32 %v1117_v13, %v1098_v15 }
0x1909   :  { %1126 = vadd.xlane.f32.xlu0 %v1125_v16  ;;  %v1105_v17 = vpop.xlane.xlu0 %1104 }
0x190a   :  { %v1106_v18 = vsel %vm1090_vm10, %v1105_v17, %v1076_v54 }
0x190b   :  { %v1133_v19 = vmul.f32 %v1117_v13, %v1106_v18 }
0x190d   :  { %1134 = vadd.xlane.f32.xlu0 %v1133_v19  ;;  %v1113_v20 = vpop.xlane.xlu0 %1112 }
0x190e   :  { %v1114_v21 = vsel %vm1090_vm10, %v1113_v20, %v1084_v59 }
0x190f   :  { %v1141_v22 = vmul.f32 %v1117_v13, %v1114_v21 }
0x1911   :  { %1142 = vadd.xlane.f32.xlu0 %v1141_v22 }
0x1975   :  { %v1101_v23 = vpop.xlane.xlu1 %1100 }
0x1976   :  { %v1102_v24 = vsel %vm1090_vm10, %v1101_v23, %v1072_v63 }
0x1977   :  { %v1129_v25 = vmul.f32 %v1117_v13, %v1102_v24 }
0x1979   :  { %1130 = vadd.xlane.f32.xlu1 %v1129_v25  ;;  %v1093_v26 = vpop.xlane.xlu1 %1092 }
0x197a   :  { %v1094_v27 = vsel %vm1090_vm10, %v1093_v26, %v1064_v6 }
0x197b   :  { %v1121_v28 = vmul.f32 %v1117_v13, %v1094_v27 }
0x197d   :  { %1122 = vadd.xlane.f32.xlu1 %v1121_v28  ;;  %v1109_v32 = vpop.xlane.xlu1 %1108 }
0x197e   :  { %v1110_v33 = vsel %vm1090_vm10, %v1109_v32, %v1080_v10  ;;  %v224_v32 = vsel %vm223_vm1, -1.0, %v1366_v53 }
0x197f   :  { %v1137_v34 = vmul.f32 %v1117_v13, %v1110_v33 }
0x1981   :  { %1138 = vadd.xlane.f32.xlu1 %v1137_v34 }
0x1985   :  { %164 = vadd.xlane.f32.xlu1 %v163_v38 }
0x1992   :  { %v1127_v40 = vpop.xlane.xlu0 %1126 }
0x1993   :  { %v1128_v41 = vsel %vm1120_vm12, %v1127_v40, %v1098_v15 }
0x1994   :  { %v1155_v42 = vmul.f32 %v1147_v3, %v1128_v41 }
0x1996   :  { %v1135_v44 = vpop.xlane.xlu0 %1134  ;;  %1156 = vadd.xlane.f32.xlu1 %v1155_v42 }
0x1997   :  { %v1136_v46 = vsel %vm1120_vm12, %v1135_v44, %v1106_v18 }
0x1998   :  { %v1163_v47 = vmul.f32 %v1147_v3, %v1136_v46 }
0x199a   :  { %v1143_v48 = vpop.xlane.xlu0 %1142  ;;  %1164 = vadd.xlane.f32.xlu1 %v1163_v47 }
0x199b   :  { %v1144_v49 = vsel %vm1120_vm12, %v1143_v48, %v1114_v21 }
0x199c   :  { %v1171_v50 = vmul.f32 %v1147_v3, %v1144_v49 }
0x199e   :  { %1172 = vadd.xlane.f32.xlu1 %v1171_v50 }
0x1a02   :  { %v1131_v51 = vpop.xlane.xlu1 %1130 }
0x1a03   :  { %v1132_v52 = vsel %vm1120_vm12, %v1131_v51, %v1102_v24 }
0x1a04   :  { %v1159_v54 = vmul.f32 %v1147_v3, %v1132_v52 }
0x1a06   :  { %1160 = vadd.xlane.f32.xlu0 %v1159_v54  ;;  %v1123_v55 = vpop.xlane.xlu1 %1122 }
0x1a07   :  { %v1124_v57 = vsel %vm1120_vm12, %v1123_v55, %v1094_v27 }
0x1a08   :  { %v1151_v59 = vmul.f32 %v1147_v3, %v1124_v57 }
0x1a0a   :  { %1152 = vadd.xlane.f32.xlu0 %v1151_v59  ;;  %v1139_v60 = vpop.xlane.xlu1 %1138 }
0x1a0b   :  { %v1140_v61 = vsel %vm1120_vm12, %v1139_v60, %v1110_v33 }
0x1a0c   :  { %v1167_v63 = vmul.f32 %v1147_v3, %v1140_v61 }
0x1a0e   :  { %1168 = vadd.xlane.f32.xlu0 %v1167_v63  ;;  %v1723_v1 = vpop.xlane.xlu1 %164 }
0x1a0f   :  { %1363 = vrcp.f32 %v1723_v1  ;;  %vm1280_vm9 = vweird.f32 %v1723_v1 }
0x1a1c   :  { %v1730_v6 = vpop.eup %1363 }
0x1a1d   :  { %v170_v8 = vmul.f32 %v1730_v6, %v168_v4 }
0x1a1f   :  { %171 = vst [vmem:[#allocation2 + $0x30] sm:$0xff] %v170_v8  ;;  %v1157_v9 = vpop.xlane.xlu1 %1156 }
0x1a20   :  { %v1158_v13 = vsel %vm1150_vm15, %v1157_v9, %v1128_v41 }
0x1a23   :  { %v1165_v10 = vpop.xlane.xlu1 %1164 }
0x1a24   :  { %v1166_v16 = vsel %vm1150_vm15, %v1165_v10, %v1136_v46 }
0x1a26   :  { %v1176_v11 = vld [vmem:[#allocation2 + $0x30] ss:$0 sm:$0xff]  ;;  %v1210_v34 = vld [vmem:[#allocation2 + $0x31] ss:$0 sm:$0xff] }
0x1a27   :  { %v1177_v12 = vxor.u32 2147483648, %v1176_v11  ;;  %v1173_v15 = vpop.xlane.xlu1 %1172  ;;  %v1211_v36 = vxor.u32 2147483648, %v1210_v34 }
0x1a28   :  { %v1174_v18 = vsel %vm1150_vm15, %v1173_v15, %v1144_v49 }
0x1a29   :  { %v1185_v14 = vmul.f32 %v1177_v12, %v1158_v13  ;;  %v1193_v17 = vmul.f32 %v1177_v12, %v1166_v16  ;;  %v1201_v19 = vmul.f32 %v1177_v12, %v1174_v18  ;;  %v1205_v33 = vmul.f32 %v1177_v12, %v224_v32 }
0x1a2b   :  { %1186 = vadd.xlane.f32.xlu1 %v1185_v14 }
0x1a2f   :  { %1194 = vadd.xlane.f32.xlu1 %v1193_v17 }
0x1a33   :  { %1202 = vadd.xlane.f32.xlu1 %v1201_v19 }
0x1a8f   :  { %v1161_v20 = vpop.xlane.xlu0 %1160 }
0x1a90   :  { %v1162_v21 = vsel %vm1150_vm15, %v1161_v20, %v1132_v52 }
0x1a91   :  { %v1189_v22 = vmul.f32 %v1177_v12, %v1162_v21 }
0x1a93   :  { %v1153_v23 = vpop.xlane.xlu0 %1152  ;;  %1190 = vadd.xlane.f32.xlu0 %v1189_v22 }
0x1a94   :  { %v1154_v27 = vsel %vm1150_vm15, %v1153_v23, %v1124_v57 }
0x1a95   :  { %v1181_v28 = vmul.f32 %v1177_v12, %v1154_v27 }
0x1a97   :  { %v1169_v24 = vpop.xlane.xlu0 %1168 }
0x1a98   :  { %v1170_v25 = vsel %vm1150_vm15, %v1169_v24, %v1140_v61 }
0x1a99   :  { %v1197_v26 = vmul.f32 %v1177_v12, %v1170_v25 }
0x1a9b   :  { %1198 = vadd.xlane.f32.xlu0 %v1197_v26 }
0x1a9f   :  { %1182 = vadd.xlane.f32.xlu0 %v1181_v28 }
0x1aa3   :  { %1206 = vadd.xlane.f32.xlu0 %v1205_v33 }
0x1ab4   :  { %v1187_v38 = vpop.xlane.xlu1 %1186 }
0x1ab5   :  { %v1188_v39 = vsel %vm1180_vm0, %v1187_v38, %v1158_v13 }
0x1ab6   :  { %v1219_v3 = vmul.f32 %v1211_v36, %v1188_v39 }
0x1ab8   :  { %1220 = vadd.xlane.f32.xlu0 %v1219_v3  ;;  %v1195_v40 = vpop.xlane.xlu1 %1194 }
0x1ab9   :  { %v1196_v30 = vsel %vm1180_vm0, %v1195_v40, %v1166_v16 }
0x1aba   :  { %v1227_v41 = vmul.f32 %v1211_v36, %v1196_v30 }
0x1abc   :  { %1228 = vadd.xlane.f32.xlu0 %v1227_v41  ;;  %v1203_v53 = vpop.xlane.xlu1 %1202 }
0x1abd   :  { %v1204_v42 = vsel %vm1180_vm0, %v1203_v53, %v1174_v18 }
0x1abe   :  { %v1235_v44 = vmul.f32 %v1211_v36, %v1204_v42 }
0x1ac0   :  { %1236 = vadd.xlane.f32.xlu0 %v1235_v44 }
0x1b1c   :  { %v1191_v46 = vpop.xlane.xlu0 %1190 }
0x1b1d   :  { %v1192_v47 = vsel %vm1180_vm0, %v1191_v46, %v1162_v21 }
0x1b1e   :  { %v1223_v48 = vmul.f32 %v1211_v36, %v1192_v47 }
0x1b20   :  { %1224 = vadd.xlane.f32.xlu1 %v1223_v48 }
0x1b24   :  { %v1199_v49 = vpop.xlane.xlu0 %1198 }
0x1b25   :  { %v1200_v50 = vsel %vm1180_vm0, %v1199_v49, %v1170_v25 }
0x1b26   :  { %v1231_v51 = vmul.f32 %v1211_v36, %v1200_v50 }
0x1b28   :  { %v1183_v52 = vpop.xlane.xlu0 %1182  ;;  %1232 = vadd.xlane.f32.xlu1 %v1231_v51 }
0x1b29   :  { %v1184_v54 = vsel %vm1180_vm0, %v1183_v52, %v1154_v27 }
0x1b2a   :  { %v1215_v55 = vmul.f32 %v1211_v36, %v1184_v54 }
0x1b2c   :  { %v1207_v57 = vpop.xlane.xlu0 %1206  ;;  %1216 = vadd.xlane.f32.xlu1 %v1215_v55 }
0x1b2d   :  { %v1208_v59 = vsel %vm1180_vm0, %v1207_v57, %v224_v32 }
0x1b2e   :  { %v1239_v60 = vmul.f32 %v1211_v36, %v1208_v59 }
0x1b30   :  { %1240 = vadd.xlane.f32.xlu1 %v1239_v60 }
0x1b41   :  { %v1221_v61 = vpop.xlane.xlu0 %1220 }
0x1b42   :  { %v1222_v63 = vsel %vm1214_vm2, %v1221_v61, %v1188_v39 }
0x1b43   :  { %v1249_v4 = vmul.f32 %v1416_v45, %v1222_v63 }
0x1b45   :  { %v1251_v8 = vsel %vm1250_vm3, %v1222_v63, %v1249_v4  ;;  %v1229_v9 = vpop.xlane.xlu0 %1228 }
0x1b46   :  { %1327 = vst [vmem:[%s1815_s1 + $0x8] sm:$0xff] %v1251_v8  ;;  %v1230_v10 = vsel %vm1214_vm2, %v1229_v9, %v1196_v30 }
0x1b47   :  { %v1261_v11 = vmul.f32 %v1473_v37, %v1230_v10 }
0x1b49   :  { %v1263_v12 = vsel %vm1262_vm4, %v1230_v10, %v1261_v11  ;;  %v1237_v13 = vpop.xlane.xlu0 %1236 }
0x1b4a   :  { %1331 = vst [vmem:[%s1815_s1 + $0x18] sm:$0xff] %v1263_v12  ;;  %v1238_v43 = vsel %vm1214_vm2, %v1237_v13, %v1204_v42 }
0x1b4b   :  { %v1273_v45 = vmul.f32 %v1601_v31, %v1238_v43 }
0x1b4d   :  { %v1275_v14 = vsel %vm1274_vm5, %v1238_v43, %v1273_v45 }
0x1b4e   :  { %1335 = vst [vmem:[%s1815_s1 + $0x28] sm:$0xff] %v1275_v14 }
0x1ba9   :  { %v1225_v37 = vpop.xlane.xlu1 %1224 }
0x1baa   :  { %v1226_v35 = vsel %vm1214_vm2, %v1225_v37, %v1192_v47 }
0x1bab   :  { %v1255_v15 = vmul.f32 %v1441_v0, %v1226_v35 }
0x1bad   :  { %v1257_v16 = vsel %vm1256_vm6, %v1226_v35, %v1255_v15 }
0x1bae   :  { %1329 = vst [vmem:[%s1815_s1 + $0x10] sm:$0xff] %v1257_v16 }
0x1bb1   :  { %v1233_v31 = vpop.xlane.xlu1 %1232 }
0x1bb2   :  { %v1234_v29 = vsel %vm1214_vm2, %v1233_v31, %v1200_v50 }
0x1bb3   :  { %v1267_v17 = vmul.f32 %v1509_v58, %v1234_v29 }
0x1bb5   :  { %v1269_v18 = vsel %vm1268_vm7, %v1234_v29, %v1267_v17  ;;  %v1217_v19 = vpop.xlane.xlu1 %1216 }
0x1bb6   :  { %1333 = vst [vmem:[%s1815_s1 + $0x20] sm:$0xff] %v1269_v18  ;;  %v1218_v62 = vsel %vm1214_vm2, %v1217_v19, %v1184_v54 }
0x1bb7   :  { %v1244_v0 = vmul.f32 %v1394_v7, %v1218_v62 }
0x1bb9   :  { %v1246_v20 = vsel %vm1245_vm8, %v1218_v62, %v1244_v0  ;;  %v1241_v21 = vpop.xlane.xlu1 %1240 }
0x1bba   :  { %1325 = vst [vmem:[%s1815_s1] sm:$0xff] %v1246_v20  ;;  %v1242_v56 = vsel %vm1214_vm2, %v1241_v21, %v1208_v59 }
0x1bbb   :  { %v1279_v58 = vmul.f32 %v1730_v6, %v1242_v56 }
0x1bbd   :  { %v1281_v22 = vsel %vm1280_vm9, %v1242_v56, %v1279_v58 }
0x1bbe   :  { %1337 = vst [vmem:[%s1815_s1 + $0x30] sm:$0xff] %v1281_v22 }

// kernel: gpr_forward.1
= control target key start
LH: loop header
LB: loop body
LE: loop exit
PB: predicated region body
PF: predicated region fallthrough
CT: control target
= control target key end

     0   :  { %10 = vsyncpa [#allocation3], 0  ;;  %s4017_s0 = inlined_call_operand.vmem [shape: f32[72,2], index: 0, kind: input, shape index: {}]   ;;  %s4018_s1 = inlined_call_operand.vmem [shape: f32[2,128], index: 1, kind: input, shape index: {}]   ;;  %s4019_s2 = inlined_call_operand.vmem [shape: f32[25,10], index: 2, kind: input, shape index: {}]   ;;  %s4020_s3 = inlined_call_operand.vmem [shape: f32[10,25], index: 3, kind: input, shape index: {}]   ;;  %s4021_s4 = inlined_call_operand.vmem [shape: f32[12], index: 4, kind: input, shape index: {}]   ;;  %s4022_s5 = inlined_call_operand.vmem [shape: f32[72,128], index: 5, kind: output, shape index: {}]  }
   0x1   :  { %s25_s20 = sshll.u32 %s4021_s4, 4  ;;  %s26_s20 = int_to_ptr.vmem [resolvable:$true] %s25_s20 }
   0x2   :  { %s2761_s21 = scalar_lea.vmem %s26_s20, 16  ;;  %p2766_p1 = scmp.lt.s32.totalorder %s26_s20, %s26_s20 }
   0x3   :  { %p2762_p0 = scmp.ne.s32.totalorder %s26_s20, %s2761_s21  ;;  %p2767_p2 = scmp.lt.s32.totalorder %s2761_s21, %s2761_s21 }
   0x5   :  { %p2768_p3 = por %p2767_p2, %p2766_p1 }
   0x7   :  { %p2769_p4 = pnand %p2768_p3, %p2762_p0 }
   0x9   :  { %2772 = shalt.err (!%p2769_p4)
}
   0xa   :  { %s2775_s22 = smov [#allocation2]  }
   0xb   :  { %28 = dma.vmem_to_smem %s26_s20, 16, %s2775_s22, [#allocation3]  }
   0xc   :  { %2773 = dma.done.wait [#allocation3], 16  }
   0xd   :  { %2774 = vsyncadd [#allocation3], 4294967280 }
   0xe   :  { %32 = sfence }
   0xf   :  { %v34_v0 = vld [vmem:[%s4017_s0 + $0x8] sm:$0xff]  ;;  %v33_v1 = vld [vmem:[%s4017_s0] sm:$0xff]  ;;  %v4032_v2 = vmov 0   ;;  %v4025_v3 = vmov 1   ;;  %v35_v4 = vld [vmem:[%s4017_s0 + $0x10] sm:$0xff]  ;;  %v4030_v11 = vmov 0.0   ;;  %v4023_v20 = vlaneseq }
  0x10   :  { %2378 = vset.pattern.permute.xlu1 %v4032_v2  ;;  %2376 = vset.pattern.permute.xlu0 %v4032_v2  ;;  %v36_v5 = vld [vmem:[%s4017_s0 + $0x18] sm:$0xff]  ;;  %v37_v6 = vld [vmem:[%s4017_s0 + $0x20] sm:$0xff]  ;;  %v2848_v7 = vld [vmem:[%s4019_s2 + $0x8] sm:$0xff]  ;;  %vm226_vm0 = vcmask 1041408   ;;  %vm193_vm1 = vcmask 1044480   ;;  %vm2779_vm2 = vmmov 0  }
  0x11   :  { %56 = vperm.xlu1 %2378, %v34_v0   ;;  %51 = vperm.xlu0 %2376, %v33_v1   ;;  %v2853_v8 = vld [vmem:[%s4019_s2] sm:$0xff]  ;;  %v195_v9 = vrot.slane %v2848_v7, 3  ;;  %v38_v10 = vld [vmem:[%s4017_s0 + $0x28] sm:$0xff]  ;;  %v39_v14 = vld [vmem:[%s4017_s0 + $0x30] sm:$0xff]  ;;  %v4027_v19 = vmov 2   ;;  %v2901_v21 = vshrl.u32 %v4023_v20, 7 }
  0x12   :  { %2248 = vmatprep.subr.mxu0 %v4030_v11  ;;  %v194_v12 = vrot.slane %v2853_v8, 3  ;;  %2355 = vmatprep.subr.mxu1 %v4030_v11  ;;  %v40_v15 = vld [vmem:[%s4017_s0 + $0x38] sm:$0xff]  ;;  %v41_v16 = vld [vmem:[%s4017_s0 + $0x40] sm:$0xff]  ;;  %v2883_v17 = vld [vmem:[%s4020_s3 + $0x8] sm:$0x3]  ;;  %s2781_s0 = smov 125  }
  0x13   :  { %2249 = vmatpush3.msk.msra.mxu0 %vm226_vm0, %v195_v9  ;;  %2357 = vmatpush3.msk.msra.mxu1 %vm226_vm0, %v195_v9  ;;  %v2890_v18 = vld [vmem:[%s4020_s3] sm:$0xff]  ;;  %v2904_v22 = vsub.s32 0, %v2901_v21  ;;  %v2910_v24 = vsub.s32 1, %v2901_v21  ;;  %v4024_v30 = vsub.s32 2, %v2901_v21  ;;  %vm198_vm3 = vcmask 80896   ;;  %s2191_s24 = sld [smem:[#allocation2 + $0x6]] }
  0x14   :  { %2250 = vmatprep.subr.mxu0 %v4030_v11  ;;  %v196_v13 = vsel %vm193_vm1, %v194_v12, %v195_v9  ;;  %2252 = vmatprep.mubr.msk.f32.mxu0 %vm2779_vm2, %v4030_v11  ;;  %v42_v23 = vld [vmem:[%s4018_s1] sm:$0x3]  ;;  %s2190_s1 = sld [smem:[#allocation2 + $0x5]]  ;;  %s2783_s29 = smov 114  }
  0x15   :  { %2379 = vset.pattern.permute.xlu1 %v4025_v3  ;;  %2377 = vset.pattern.permute.xlu0 %v4025_v3  ;;  %v2913_v25 = vrot.slane %v42_v23, %v2904_v22  ;;  %v2917_v28 = vrot.slane %v2853_v8, %v2904_v22  ;;  %v2923_v31 = vrot.slane %v2853_v8, %v2910_v24  ;;  %s2192_s25 = sld [smem:[#allocation2 + $0x7]] }
  0x16   :  { %112 = vperm.xlu1 %2379, %v34_v0   ;;  %108 = vperm.xlu0 %2377, %v33_v1   ;;  %v2926_v32 = vrot.slane %v42_v23, %v2910_v24  ;;  %v2934_v37 = vrot.slane %v2853_v8, %v4024_v30  ;;  %s2193_s26 = sld [smem:[#allocation2 + $0x8]] }
  0x17   :  { %2251 = vmatpush3.msra.mxu0 %v196_v13  ;;  %2356 = vmatprep.subr.mxu1 %v4030_v11  ;;  %s2194_s4 = sld [smem:[#allocation2 + $0x9]] }
  0x18   :  { %2267 = vmatprep.mubr.msk.f32.mxu1 %vm2779_vm2, %v4030_v11  ;;  %2358 = vmatpush3.msra.mxu1 %v196_v13  ;;  %s966_s7 = sld [smem:[#allocation2]] }
  0x19   :  { %2279 = vmatprep.subr.mxu1 %v4030_v11  ;;  %s2187_s8 = sld [smem:[#allocation2 + $0x2]] }
  0x1a   :  { %2380 = vset.pattern.permute.xlu1 %v4032_v2  ;;  %116 = vperm.xlu0 %2377, %v35_v4   ;;  %s2188_s9 = sld [smem:[#allocation2 + $0x3]] }
  0x1b   :  { %61 = vperm.xlu1 %2380, %v35_v4   ;;  %s2189_s10 = sld [smem:[#allocation2 + $0x4]] }
  0x1c   :  { %s3643_s11 = sld [smem:[#allocation2 + $0xa]] }
  0x1d   :  { %s3650_s12 = sld [smem:[#allocation2 + $0xb]] }
  0x1e   :  { %120 = vperm.xlu0 %2377, %v36_v5  }
  0x1f   :  { %66 = vperm.xlu1 %2380, %v36_v5  }
  0x22   :  { %124 = vperm.xlu0 %2377, %v37_v6  }
  0x23   :  { %71 = vperm.xlu1 %2380, %v37_v6  }
  0x26   :  { %128 = vperm.xlu0 %2377, %v38_v10  }
  0x27   :  { %76 = vperm.xlu1 %2380, %v38_v10  }
  0x2a   :  { %132 = vperm.xlu0 %2377, %v39_v14  }
  0x2b   :  { %81 = vperm.xlu1 %2380, %v39_v14  }
  0x2e   :  { %136 = vperm.xlu0 %2377, %v40_v15  }
  0x2f   :  { %86 = vperm.xlu1 %2380, %v40_v15  }
  0x32   :  { %140 = vperm.xlu0 %2377, %v41_v16  }
  0x33   :  { %91 = vperm.xlu1 %2380, %v41_v16  }
  0x36   :  { %670 = vperm.xlu0 %2377, %v2883_v17  }
  0x37   :  { %656 = vperm.xlu1 %2380, %v2883_v17  }
  0x3a   :  { %666 = vperm.xlu0 %2377, %v2890_v18  }
  0x3b   :  { %651 = vperm.xlu1 %2380, %v2890_v18  }
  0x3e   :  { %2382 = vset.pattern.permute.xlu0 %v4027_v19 }
  0x3f   :  { %2381 = vset.pattern.permute.xlu1 %v4027_v19  ;;  %682 = vperm.xlu0 %2382, %v2890_v18  }
  0x40   :  { %686 = vperm.xlu1 %2381, %v2883_v17  }
  0x44   :  { %701 = vrot.lane.b32.xlu1 %v2890_v18, %s2781_s0 }
  0x48   :  { %703 = vrot.lane.b32.xlu1 %v2883_v17, %s2781_s0 }
  0x8c   :  { %v52_v26 = vpop.permute.xlu0 %51  ;;  %v57_v27 = vpop.permute.xlu1 %56 }
  0x8d   :  { %v922_v29 = vsub.f32 %v57_v27, %v2913_v25  ;;  %v921_v33 = vsub.f32 %v52_v26, %v2913_v25  ;;  %v99_v34 = vmul.f32 %v2917_v28, %v57_v27  ;;  %v98_v35 = vmul.f32 %v2917_v28, %v52_v26 }
  0x8f   :  { %v940_v36 = vmul.f32 %v922_v29, %v922_v29  ;;  %v939_v44 = vmul.f32 %v921_v33, %v921_v33 }
  0x91   :  { %v109_v38 = vpop.permute.xlu0 %108  ;;  %v113_v39 = vpop.permute.xlu1 %112 }
  0x92   :  { %v147_v40 = vmul.f32 %v2923_v31, %v109_v38  ;;  %v930_v41 = vsub.f32 %v109_v38, %v2926_v32  ;;  %v148_v42 = vmul.f32 %v2923_v31, %v113_v39  ;;  %v931_v43 = vsub.f32 %v113_v39, %v2926_v32 }
  0x94   :  { %v156_v45 = vadd.f32 %v147_v40, %v98_v35  ;;  %v948_v46 = vmul.f32 %v930_v41, %v930_v41  ;;  %v157_v47 = vadd.f32 %v148_v42, %v99_v34  ;;  %v949_v48 = vmul.f32 %v931_v43, %v931_v43 }
  0x95   :  { %v117_v49 = vpop.permute.xlu0 %116 }
  0x96   :  { %v169_v50 = vadd.f32 %v2934_v37, %v156_v45  ;;  %v2941_v51 = vadd.f32 %v948_v46, %v939_v44  ;;  %v170_v52 = vadd.f32 %v2934_v37, %v157_v47  ;;  %v2944_v53 = vadd.f32 %v949_v48, %v940_v36  ;;  %v62_v54 = vpop.permute.xlu1 %61 }
  0x97   :  { %v149_v55 = vmul.f32 %v2923_v31, %v117_v49  ;;  %v932_v56 = vsub.f32 %v117_v49, %v2926_v32  ;;  %v100_v57 = vmul.f32 %v2917_v28, %v62_v54  ;;  %v923_v58 = vsub.f32 %v62_v54, %v2913_v25 }
  0x98   :  { %2475 = vtanh.f32 %v169_v50 }
  0x99   :  { %v950_v59 = vmul.f32 %v932_v56, %v932_v56  ;;  %v158_v60 = vadd.f32 %v149_v55, %v100_v57  ;;  %v941_v61 = vmul.f32 %v923_v58, %v923_v58  ;;  %v121_v62 = vpop.permute.xlu0 %120  ;;  %2477 = vtanh.f32 %v170_v52 }
  0x9a   :  { %v150_v63 = vmul.f32 %v2923_v31, %v121_v62  ;;  %v933_v0 = vsub.f32 %v121_v62, %v2926_v32  ;;  %v67_v1 = vpop.permute.xlu1 %66 }
  0x9b   :  { %v2952_v4 = vadd.f32 %v950_v59, %v941_v61  ;;  %v101_v5 = vmul.f32 %v2917_v28, %v67_v1  ;;  %v924_v6 = vsub.f32 %v67_v1, %v2913_v25  ;;  %v171_v8 = vadd.f32 %v2934_v37, %v158_v60 }
  0x9c   :  { %v951_v9 = vmul.f32 %v933_v0, %v933_v0 }
  0x9d   :  { %v159_v10 = vadd.f32 %v150_v63, %v101_v5  ;;  %v942_v12 = vmul.f32 %v924_v6, %v924_v6  ;;  %v125_v13 = vpop.permute.xlu0 %124  ;;  %2479 = vtanh.f32 %v171_v8 }
  0x9e   :  { %v151_v14 = vmul.f32 %v2923_v31, %v125_v13  ;;  %v934_v15 = vsub.f32 %v125_v13, %v2926_v32  ;;  %v72_v16 = vpop.permute.xlu1 %71 }
  0x9f   :  { %v2959_v23 = vadd.f32 %v951_v9, %v942_v12  ;;  %v102_v26 = vmul.f32 %v2917_v28, %v72_v16  ;;  %v925_v27 = vsub.f32 %v72_v16, %v2913_v25  ;;  %v172_v29 = vadd.f32 %v2934_v37, %v159_v10 }
  0xa0   :  { %v952_v33 = vmul.f32 %v934_v15, %v934_v15 }
  0xa1   :  { %4069 = vst [vmem:[#allocation5_spill] sm:$0xff] %v2959_v23  ;;  %v160_v34 = vadd.f32 %v151_v14, %v102_v26  ;;  %v943_v35 = vmul.f32 %v925_v27, %v925_v27  ;;  %v129_v36 = vpop.permute.xlu0 %128  ;;  %2481 = vtanh.f32 %v172_v29 }
  0xa2   :  { %v152_v38 = vmul.f32 %v2923_v31, %v129_v36  ;;  %v935_v39 = vsub.f32 %v129_v36, %v2926_v32  ;;  %v77_v40 = vpop.permute.xlu1 %76 }
  0xa3   :  { %v2966_v41 = vadd.f32 %v952_v33, %v943_v35  ;;  %v103_v42 = vmul.f32 %v2917_v28, %v77_v40  ;;  %v926_v43 = vsub.f32 %v77_v40, %v2913_v25  ;;  %v173_v44 = vadd.f32 %v2934_v37, %v160_v34 }
  0xa4   :  { %v953_v45 = vmul.f32 %v935_v39, %v935_v39 }
  0xa5   :  { %4070 = vst [vmem:[#allocation6_spill] sm:$0xff] %v2966_v41  ;;  %v2476_v46 = vpop.eup %2475  ;;  %v161_v47 = vadd.f32 %v152_v38, %v103_v42  ;;  %v944_v48 = vmul.f32 %v926_v43, %v926_v43  ;;  %v133_v49 = vpop.permute.xlu0 %132  ;;  %2483 = vtanh.f32 %v173_v44 }
  0xa6   :  { %v153_v50 = vmul.f32 %v2923_v31, %v133_v49  ;;  %v936_v52 = vsub.f32 %v133_v49, %v2926_v32  ;;  %v82_v54 = vpop.permute.xlu1 %81  ;;  %2253 = vmatmul.mubr.msk.f32.vlgmr.msra.gmra.mxu0 %vm198_vm3, %v2476_v46  ;;  %v2478_v55 = vpop.eup %2477 }
  0xa7   :  { %v174_v56 = vadd.f32 %v2934_v37, %v161_v47  ;;  %v2975_v57 = vadd.f32 %v953_v45, %v944_v48  ;;  %v104_v58 = vmul.f32 %v2917_v28, %v82_v54  ;;  %v927_v59 = vsub.f32 %v82_v54, %v2913_v25  ;;  %2255 = vmatprep.mubr.msk.f32.mxu0 %vm2779_vm2, %v4030_v11 }
  0xa8   :  { %v954_v60 = vmul.f32 %v936_v52, %v936_v52 }
  0xa9   :  { %4071 = vst [vmem:[#allocation7_spill] sm:$0xff] %v2975_v57  ;;  %2485 = vtanh.f32 %v174_v56  ;;  %v162_v61 = vadd.f32 %v153_v50, %v104_v58  ;;  %v945_v62 = vmul.f32 %v927_v59, %v927_v59  ;;  %v137_v63 = vpop.permute.xlu0 %136 }
  0xaa   :  { %v154_v0 = vmul.f32 %v2923_v31, %v137_v63  ;;  %v937_v1 = vsub.f32 %v137_v63, %v2926_v32  ;;  %v87_v5 = vpop.permute.xlu1 %86  ;;  %2256 = vmatmul.mubr.msk.f32.gmra.mxu0 %vm198_vm3, %v2478_v55  ;;  %v2480_v13 = vpop.eup %2479  ;;  %v3026_v63 = vstv %s2191_s24 }
  0xab   :  { %v175_v6 = vadd.f32 %v2934_v37, %v162_v61  ;;  %v2985_v8 = vadd.f32 %v954_v60, %v945_v62  ;;  %v105_v9 = vmul.f32 %v2917_v28, %v87_v5  ;;  %v928_v10 = vsub.f32 %v87_v5, %v2913_v25  ;;  %2258 = vmatprep.mubr.msk.f32.mxu0 %vm2779_vm2, %v4030_v11 }
  0xac   :  { %v955_v12 = vmul.f32 %v937_v1, %v937_v1  ;;  %v3024_v62 = vstv %s2190_s1  ;;  %v3032_v1 = vstv %s2192_s25  ;;  %v3036_v5 = vmul.f32 %v3026_v63, %v2975_v57 }
  0xad   :  { %4072 = vst [vmem:[#allocation8_spill] sm:$0xff] %v2985_v8  ;;  %2487 = vtanh.f32 %v175_v6  ;;  %v163_v14 = vadd.f32 %v154_v0, %v105_v9  ;;  %v946_v15 = vmul.f32 %v928_v10, %v928_v10  ;;  %v141_v16 = vpop.permute.xlu0 %140  ;;  %v3030_v0 = vmul.f32 %v3024_v62, %v2975_v57  ;;  %4076 = vst [vmem:[#allocation12_spill] sm:$0xff] %v3032_v1 }
  0xae   :  { %v155_v26 = vmul.f32 %v2923_v31, %v141_v16  ;;  %v938_v27 = vsub.f32 %v141_v16, %v2926_v32  ;;  %v92_v29 = vpop.permute.xlu1 %91  ;;  %2259 = vmatmul.mubr.msk.f32.gmra.mxu0 %vm198_vm3, %v2480_v13  ;;  %v2482_v39 = vpop.eup %2481  ;;  %4077 = vst [vmem:[#allocation13_spill] sm:$0xff] %v3036_v5  ;;  %v3040_v6 = vmul.f32 %v3032_v1, %v2975_v57  ;;  %v3042_v10 = vstv %s2193_s26 }
  0xaf   :  { %v176_v33 = vadd.f32 %v2934_v37, %v163_v14  ;;  %v2995_v34 = vadd.f32 %v955_v12, %v946_v15  ;;  %v106_v35 = vmul.f32 %v2917_v28, %v92_v29  ;;  %v929_v36 = vsub.f32 %v92_v29, %v2913_v25  ;;  %2261 = vmatprep.mubr.msk.f32.mxu0 %vm2779_vm2, %v4030_v11 }
  0xb0   :  { %v956_v38 = vmul.f32 %v938_v27, %v938_v27  ;;  %4075 = vst [vmem:[#allocation11_spill] sm:$0xff] %v3030_v0  ;;  %4078 = vst [vmem:[#allocation14_spill] sm:$0xff] %v3040_v6  ;;  %v3045_v12 = vstv %s2194_s4  ;;  %v3049_v13 = vmul.f32 %v3042_v10, %v2975_v57  ;;  %v3058_v16 = vmul.f32 %v3024_v62, %v2966_v41 }
  0xb1   :  { %4073 = vst [vmem:[#allocation9_spill] sm:$0xff] %v2995_v34  ;;  %2489 = vtanh.f32 %v176_v33  ;;  %v164_v31 = vadd.f32 %v155_v26, %v106_v35  ;;  %v947_v40 = vmul.f32 %v929_v36, %v929_v36  ;;  %v671_v42 = vpop.permute.xlu0 %670  ;;  %v3054_v15 = vmul.f32 %v3045_v12, %v2975_v57 }
  0xb2   :  { %v657_v43 = vpop.permute.xlu1 %656  ;;  %2262 = vmatmul.mubr.msk.f32.gmra.mxu0 %vm198_vm3, %v2482_v39  ;;  %v2484_v28 = vpop.eup %2483  ;;  %v678_v48 = vmul.f32 %v2926_v32, %v671_v42  ;;  %4079 = vst [vmem:[#allocation15_spill] sm:$0xff] %v3049_v13  ;;  %4081 = vst [vmem:[#allocation17_spill] sm:$0xff] %v3058_v16  ;;  %v3063_v26 = vmul.f32 %v3026_v63, %v2966_v41  ;;  %v3067_v27 = vmul.f32 %v3032_v1, %v2966_v41  ;;  %v4108_v5 = vmov 9  }
  0xb3   :  { %v177_v44 = vadd.f32 %v2934_v37, %v164_v31  ;;  %v3003_v45 = vadd.f32 %v956_v38, %v947_v40  ;;  %2264 = vmatprep.mubr.msk.f32.mxu0 %vm2779_vm2, %v4030_v11  ;;  %v664_v49 = vmul.f32 %v2913_v25, %v657_v43  ;;  %4080 = vst [vmem:[#allocation16_spill] sm:$0xff] %v3054_v15  ;;  %v4109_v0 = vmov 6  }
  0xb4   :  { %4082 = vst [vmem:[#allocation18_spill] sm:$0xff] %v3063_v26  ;;  %4083 = vst [vmem:[#allocation19_spill] sm:$0xff] %v3067_v27  ;;  %v3071_v29 = vmul.f32 %v3042_v10, %v2966_v41  ;;  %v3075_v33 = vmul.f32 %v3024_v62, %v2995_v34  ;;  %v3079_v35 = vmul.f32 %v3045_v12, %v2966_v41 }
  0xb5   :  { %4074 = vst [vmem:[#allocation10_spill] sm:$0xff] %v3003_v45  ;;  %2491 = vtanh.f32 %v177_v44  ;;  %v667_v46 = vpop.permute.xlu0 %666  ;;  %v680_v58 = vadd.f32 %v678_v48, %v664_v49  ;;  %v3083_v36 = vmul.f32 %v3026_v63, %v2995_v34  ;;  %v3087_v38 = vmul.f32 %v3032_v1, %v2995_v34 }
  0xb6   :  { %v2486_v47 = vpop.eup %2485  ;;  %v677_v50 = vmul.f32 %v2926_v32, %v667_v46  ;;  %v652_v52 = vpop.permute.xlu1 %651  ;;  %2265 = vmatmul.mubr.msk.f32.gmra.mxu0 %vm198_vm3, %v2484_v28  ;;  %4084 = vst [vmem:[#allocation20_spill] sm:$0xff] %v3071_v29  ;;  %4085 = vst [vmem:[#allocation21_spill] sm:$0xff] %v3075_v33  ;;  %v3091_v39 = vmul.f32 %v3042_v10, %v2995_v34  ;;  %v3095_v31 = vmul.f32 %v3045_v12, %v2995_v34  ;;  %v4106_v34 = vmov 8  }
  0xb7   :  { %v663_v37 = vmul.f32 %v2913_v25, %v652_v52  ;;  %2268 = vmatmul.mubr.msk.f32.vlgmr.msra.gmra.mxu1 %vm198_vm3, %v2486_v47  ;;  %4086 = vst [vmem:[#allocation22_spill] sm:$0xff] %v3079_v35  ;;  %4087 = vst [vmem:[#allocation23_spill] sm:$0xff] %v3083_v36  ;;  %v3099_v40 = vmul.f32 %v3024_v62, %v2985_v8  ;;  %v3103_v42 = vmul.f32 %v3026_v63, %v2985_v8  ;;  %v45_v52 = vld [vmem:[%s4019_s2 + $0x10] sm:$0xff] }
  0xb8   :  { %2270 = vmatprep.mubr.msk.f32.mxu1 %vm2779_vm2, %v4030_v11  ;;  %4088 = vst [vmem:[#allocation24_spill] sm:$0xff] %v3087_v38  ;;  %4089 = vst [vmem:[#allocation25_spill] sm:$0xff] %v3091_v39  ;;  %v3107_v43 = vmul.f32 %v3032_v1, %v2985_v8  ;;  %v3111_v44 = vmul.f32 %v3042_v10, %v2985_v8  ;;  %v3115_v28 = vmul.f32 %v3045_v12, %v2985_v8 }
  0xb9   :  { %v679_v54 = vadd.f32 %v677_v50, %v663_v37  ;;  %4090 = vst [vmem:[#allocation26_spill] sm:$0xff] %v3095_v31  ;;  %4091 = vst [vmem:[#allocation27_spill] sm:$0xff] %v3099_v40  ;;  %v3119_v46 = vmul.f32 %v3024_v62, %v3003_v45  ;;  %v3123_v47 = vmul.f32 %v3026_v63, %v3003_v45  ;;  %v354_v37 = vrot.slane %v45_v52, 6 }
  0xba   :  { %v2488_v55 = vpop.eup %2487  ;;  %v683_v56 = vpop.permute.xlu0 %682  ;;  %4092 = vst [vmem:[#allocation28_spill] sm:$0xff] %v3103_v42  ;;  %4093 = vst [vmem:[#allocation29_spill] sm:$0xff] %v3107_v43  ;;  %v3127_v48 = vmul.f32 %v3032_v1, %v3003_v45  ;;  %v3131_v49 = vmul.f32 %v3042_v10, %v3003_v45  ;;  %v3135_v50 = vmul.f32 %v3045_v12, %v3003_v45  ;;  %v4107_v40 = vmov 5  }
  0xbb   :  { %v687_v59 = vpop.permute.xlu1 %686  ;;  %2271 = vmatmul.mubr.msk.f32.gmra.mxu1 %vm198_vm3, %v2488_v55  ;;  %v689_v60 = vadd.f32 %v683_v56, %v679_v54  ;;  %4094 = vst [vmem:[#allocation30_spill] sm:$0xff] %v3111_v44  ;;  %4095 = vst [vmem:[#allocation31_spill] sm:$0xff] %v3115_v28  ;;  %v353_v54 = vrot.slane %v2848_v7, 6  ;;  %v3498_v28 = vstv %s2189_s10  ;;  %v1553_v57 = vmul.f32 %v3026_v63, %v2941_v51 }
  0xbc   :  { %v690_v61 = vadd.f32 %v687_v59, %v680_v58  ;;  %2273 = vmatprep.mubr.msk.f32.mxu1 %vm2779_vm2, %v4030_v11  ;;  %4096 = vst [vmem:[#allocation32_spill] sm:$0xff] %v3119_v46  ;;  %4097 = vst [vmem:[#allocation33_spill] sm:$0xff] %v3123_v47  ;;  %2280 = vmatpush3.msk.msra.mxu1 %vm226_vm0, %v354_v37  ;;  %v2782_v58 = vmov 13   ;;  %v1361_v8 = vmul.f32 %v3498_v28, %v2941_v51 }
  0xbd   :  { %4098 = vst [vmem:[#allocation34_spill] sm:$0xff] %v3127_v48  ;;  %4099 = vst [vmem:[#allocation35_spill] sm:$0xff] %v3131_v49  ;;  %2281 = vmatprep.subr.mxu1 %v4030_v11  ;;  %v355_v55 = vsel %vm226_vm0, %v353_v54, %v354_v37  ;;  %2383 = vset.pattern.permute.xlu0 %v2782_v58  ;;  %v1745_v27 = vmul.f32 %v3042_v10, %v2941_v51 }
  0xbe   :  { %v2490_v32 = vpop.eup %2489  ;;  %2493 = vtanh.f32 %v690_v61  ;;  %4100 = vst [vmem:[#allocation36_spill] sm:$0xff] %v3135_v50  ;;  %2282 = vmatpush3.msra.mxu1 %v355_v55  ;;  %698 = vperm.xlu0 %2383, %v2883_v17  }
  0xbf   :  { %2274 = vmatmul.mubr.msk.f32.gmra.mxu1 %vm198_vm3, %v2490_v32  ;;  %2495 = vtanh.f32 %v689_v60  ;;  %v702_v56 = vpop.permute.xlu1 %701  ;;  %2384 = vset.pattern.permute.xlu1 %v2782_v58  ;;  %v4029_v60 = vsub.s32 5, %v2901_v21 }
  0xc0   :  { %2276 = vmatprep.mubr.msk.f32.mxu1 %vm2779_vm2, %v4030_v11  ;;  %2314 = vmatprep.mubr.msk.f32.mxu0 %vm198_vm3, %v702_v56 }
  0xc1   :  { %694 = vperm.xlu1 %2384, %v2890_v18   ;;  %v190_v61 = vrot.slane %v2848_v7, %v4029_v60 }
  0xc2   :  { %v2492_v25 = vpop.eup %2491  ;;  %799 = vrot.lane.b32.xlu0 %v2883_v17, %s2783_s29 }
  0xc3   :  { %2277 = vmatmul.mubr.msk.f32.gmra.mxu1 %vm198_vm3, %v2492_v25  ;;  %v704_v59 = vpop.permute.xlu1 %703 }
  0xc4   :  { %2283 = vmatprep.mubr.msk.f32.mxu1 %vm2779_vm2, %v4030_v11 }
  0xc5   :  { %797 = vrot.lane.b32.xlu1 %v2890_v18, %s2783_s29 }
  0xcb   :  { %v2494_v9 = vpop.eup %2493 }
  0xcc   :  { %2310 = vmatprep.subr.msk.mxu0 %vm226_vm0, %v2494_v9  ;;  %v2496_v14 = vpop.eup %2495 }
  0xcd   :  { %2311 = vmatpush3.msk.msra.mxu0 %vm226_vm0, %v2494_v9 }
  0xce   :  { %2312 = vmatprep.subr.mxu0 %v2496_v14 }
  0xcf   :  { %2313 = vmatpush3.msra.mxu0 %v2496_v14 }
  0xd0   :  { %2324 = vmatprep.subr.mxu0 %v4030_v11  ;;  %2315 = vmatmul.mubr.msk.f32.vlgmr.msra.gmra.mxu0 %vm198_vm3, %v704_v59 }
  0xd1   :  { %2328 = vmatprep.mubr.msk.f32.mxu0 %vm2779_vm2, %v4030_v11 }
 0x166   :  { %v295_v32 = vpop.f32.mrf.mxu0 }
 0x167   :  { %v296_v25 = vadd.f32 %v295_v32, %v190_v61 }
 0x168   :  { %v2254_v9 = vpop.f32.mrf.mxu0 }
 0x169   :  { %2497 = vtanh.f32 %v296_v25 }
 0x16a   :  { %v300_v14 = vpop.f32.mrf.mxu0 }
 0x16b   :  { %v301_v52 = vadd.f32 %v300_v14, %v190_v61 }
 0x16c   :  { %v2257_v37 = vpop.f32.mrf.mxu0 }
 0x16d   :  { %2499 = vtanh.f32 %v301_v52 }
 0x16e   :  { %v305_v54 = vpop.f32.mrf.mxu0 }
 0x16f   :  { %v306_v55 = vadd.f32 %v305_v54, %v190_v61 }
 0x170   :  { %v2260_v56 = vpop.f32.mrf.mxu0 }
 0x171   :  { %2501 = vtanh.f32 %v306_v55 }
 0x172   :  { %v310_v58 = vpop.f32.mrf.mxu0 }
 0x173   :  { %v311_v59 = vadd.f32 %v310_v58, %v190_v61 }
 0x174   :  { %v2263_v20 = vpop.f32.mrf.mxu0 }
 0x175   :  { %2503 = vtanh.f32 %v311_v59 }
 0x176   :  { %v2498_v30 = vpop.eup %2497  ;;  %v315_v3 = vpop.f32.mrf.mxu0 }
 0x177   :  { %v316_v19 = vadd.f32 %v315_v3, %v190_v61  ;;  %v320_v7 = vpop.f32.mrf.mxu1  ;;  %2284 = vmatmul.mubr.msk.f32.vlgmr.msra.gmra.mxu1 %vm198_vm3, %v2498_v30 }
 0x178   :  { %v2266_v32 = vpop.f32.mrf.mxu0  ;;  %2286 = vmatprep.mubr.msk.f32.mxu1 %vm2779_vm2, %v4030_v11  ;;  %v321_v25 = vadd.f32 %v320_v7, %v190_v61 }
 0x179   :  { %2505 = vtanh.f32 %v316_v19  ;;  %v2269_v9 = vpop.f32.mrf.mxu1 }
 0x17a   :  { %v2500_v14 = vpop.eup %2499  ;;  %2507 = vtanh.f32 %v321_v25 }
 0x17b   :  { %v325_v52 = vpop.f32.mrf.mxu1  ;;  %2287 = vmatmul.mubr.msk.f32.gmra.mxu1 %vm198_vm3, %v2500_v14  ;;  %v699_v14 = vpop.permute.xlu0 %698 }
 0x17c   :  { %2289 = vmatprep.mubr.msk.f32.mxu1 %vm2779_vm2, %v4030_v11  ;;  %v326_v20 = vadd.f32 %v325_v52, %v190_v61  ;;  %v695_v52 = vpop.permute.xlu1 %694 }
 0x17d   :  { %v2272_v3 = vpop.f32.mrf.mxu1 }
 0x17e   :  { %v2502_v37 = vpop.eup %2501  ;;  %2509 = vtanh.f32 %v326_v20 }
 0x17f   :  { %v330_v54 = vpop.f32.mrf.mxu1  ;;  %2290 = vmatmul.mubr.msk.f32.gmra.mxu1 %vm198_vm3, %v2502_v37 }
 0x180   :  { %2292 = vmatprep.mubr.msk.f32.mxu1 %vm2779_vm2, %v4030_v11  ;;  %v331_v19 = vadd.f32 %v330_v54, %v190_v61 }
 0x181   :  { %v2275_v30 = vpop.f32.mrf.mxu1 }
 0x182   :  { %v2504_v55 = vpop.eup %2503  ;;  %2511 = vtanh.f32 %v331_v19  ;;  %v798_v19 = vpop.permute.xlu1 %797 }
 0x183   :  { %v335_v56 = vpop.f32.mrf.mxu1  ;;  %2293 = vmatmul.mubr.msk.f32.gmra.mxu1 %vm198_vm3, %v2504_v55 }
 0x184   :  { %2295 = vmatprep.mubr.msk.f32.mxu1 %vm2779_vm2, %v4030_v11  ;;  %v336_v58 = vadd.f32 %v335_v56, %v190_v61  ;;  %v800_v56 = vpop.permute.xlu0 %799 }
 0x185   :  { %v2278_v59 = vpop.f32.mrf.mxu1 }
 0x186   :  { %v2506_v7 = vpop.eup %2505  ;;  %2513 = vtanh.f32 %v336_v58  ;;  %v2169_v58 = vld [vmem:[%s4019_s2 + $0x18] ss:$0 sm:$0xff]  ;;  %s2186_s2 = sld [smem:[#allocation2 + $0x1]] }
 0x187   :  { %2296 = vmatmul.mubr.msk.f32.gmra.mxu1 %vm198_vm3, %v2506_v7  ;;  %v2508_v32 = vpop.eup %2507 }
 0x188   :  { %2298 = vmatprep.mubr.msk.f32.mxu1 %vm2779_vm2, %v4030_v11 }
 0x18b   :  { %2299 = vmatmul.mubr.msk.f32.gmra.mxu1 %vm198_vm3, %v2508_v32  ;;  %v2510_v25 = vpop.eup %2509 }
 0x18c   :  { %2301 = vmatprep.mubr.msk.f32.mxu1 %vm2779_vm2, %v4030_v11 }
 0x18f   :  { %2302 = vmatmul.mubr.msk.f32.gmra.mxu1 %vm198_vm3, %v2510_v25  ;;  %v2512_v61 = vpop.eup %2511 }
 0x190   :  { %2304 = vmatprep.mubr.msk.f32.mxu1 %vm2779_vm2, %v4030_v11  ;;  %v2316_v20 = vpop.f32.mrf.mxu0 }
 0x191   :  { %v784_v3 = vadd.f32 %v2316_v20, %v699_v14 }
 0x192   :  { %v778_v37 = vpop.f32.mrf.mxu0 }
 0x193   :  { %2305 = vmatmul.mubr.msk.f32.gmra.mxu1 %vm198_vm3, %v2512_v61  ;;  %v2514_v9 = vpop.eup %2513  ;;  %2515 = vtanh.f32 %v784_v3  ;;  %v779_v54 = vadd.f32 %v778_v37, %v695_v52 }
 0x194   :  { %2307 = vmatprep.mubr.msk.f32.mxu1 %vm2779_vm2, %v4030_v11 }
 0x195   :  { %2517 = vtanh.f32 %v779_v54 }
 0x197   :  { %2308 = vmatmul.mubr.msk.f32.gmra.mxu1 %vm198_vm3, %v2514_v9 }
 0x198   :  { %2321 = vmatprep.mubr.msk.f32.mxu1 %vm198_vm3, %v798_v19 }
 0x1a0   :  { %v2516_v30 = vpop.eup %2515 }
 0x1a1   :  { %2317 = vmatprep.subr.msk.mxu1 %vm226_vm0, %v2516_v30 }
 0x1a2   :  { %v2518_v55 = vpop.eup %2517  ;;  %2318 = vmatpush3.msk.msra.mxu1 %vm226_vm0, %v2516_v30 }
 0x1a3   :  { %2319 = vmatprep.subr.mxu1 %v2518_v55 }
 0x1a4   :  { %2320 = vmatpush3.msra.mxu1 %v2518_v55 }
 0x1a5   :  { %2322 = vmatmul.mubr.msk.f32.vlgmr.msra.gmra.mxu1 %vm198_vm3, %v800_v56 }
 0x237   :  { %v452_v59 = vpop.f32.mrf.mxu1 }
 0x238   :  { %v453_v7 = vadd.f32 %v2169_v58, %v452_v59 }
 0x239   :  { %v2285_v32 = vpop.f32.mrf.mxu1 }
 0x23a   :  { %v496_v25 = vsel %vm198_vm3, %v453_v7, -inf }
 0x23b   :  { %497 = vmax.xlane.f32.xlu1 %v496_v25  ;;  %v457_v61 = vpop.f32.mrf.mxu1 }
 0x23c   :  { %v458_v9 = vadd.f32 %v2169_v58, %v457_v61 }
 0x23d   :  { %v2288_v14 = vpop.f32.mrf.mxu1 }
 0x23e   :  { %v499_v52 = vsel %vm198_vm3, %v458_v9, -inf }
 0x23f   :  { %500 = vmax.xlane.f32.xlu0 %v499_v52  ;;  %v462_v20 = vpop.f32.mrf.mxu1 }
 0x240   :  { %v463_v3 = vadd.f32 %v2169_v58, %v462_v20 }
 0x241   :  { %v2291_v37 = vpop.f32.mrf.mxu1 }
 0x242   :  { %v502_v54 = vsel %vm198_vm3, %v463_v3, -inf }
 0x243   :  { %503 = vmax.xlane.f32.xlu0 %v502_v54  ;;  %v467_v19 = vpop.f32.mrf.mxu1 }
 0x244   :  { %v468_v30 = vadd.f32 %v2169_v58, %v467_v19 }
 0x245   :  { %v2294_v55 = vpop.f32.mrf.mxu1 }
 0x246   :  { %v505_v56 = vsel %vm198_vm3, %v468_v30, -inf }
 0x247   :  { %506 = vmax.xlane.f32.xlu1 %v505_v56  ;;  %v472_v59 = vpop.f32.mrf.mxu1 }
 0x248   :  { %v473_v32 = vadd.f32 %v2169_v58, %v472_v59 }
 0x249   :  { %v2297_v25 = vpop.f32.mrf.mxu1 }
 0x24a   :  { %v508_v61 = vsel %vm198_vm3, %v473_v32, -inf }
 0x24b   :  { %509 = vmax.xlane.f32.xlu0 %v508_v61  ;;  %v477_v14 = vpop.f32.mrf.mxu1 }
 0x24c   :  { %v478_v52 = vadd.f32 %v2169_v58, %v477_v14  ;;  %v2784_v14 = vmov 24  }
 0x24d   :  { %v2300_v60 = vpop.f32.mrf.mxu1  ;;  %2385 = vset.pattern.permute.xlu1 %v2784_v14  ;;  %2386 = vset.pattern.permute.xlu0 %v2784_v14 }
 0x24e   :  { %v511_v20 = vsel %vm198_vm3, %v478_v52, -inf }
 0x24f   :  { %512 = vmax.xlane.f32.xlu1 %v511_v20  ;;  %v482_v37 = vpop.f32.mrf.mxu1 }
 0x250   :  { %v483_v54 = vadd.f32 %v2169_v58, %v482_v37 }
 0x251   :  { %v2303_v11 = vpop.f32.mrf.mxu1 }
 0x252   :  { %v514_v19 = vsel %vm198_vm3, %v483_v54, -inf }
 0x253   :  { %515 = vmax.xlane.f32.xlu0 %v514_v19  ;;  %v487_v55 = vpop.f32.mrf.mxu1 }
 0x254   :  { %v488_v56 = vadd.f32 %v2169_v58, %v487_v55 }
 0x255   :  { %v2306_v2 = vpop.f32.mrf.mxu1 }
 0x256   :  { %v517_v59 = vsel %vm198_vm3, %v488_v56, -inf }
 0x257   :  { %518 = vmax.xlane.f32.xlu1 %v517_v59  ;;  %v492_v25 = vpop.f32.mrf.mxu1 }
 0x258   :  { %v493_v61 = vadd.f32 %v2169_v58, %v492_v25 }
 0x259   :  { %v2309_v50 = vpop.f32.mrf.mxu1 }
 0x25a   :  { %v520_v60 = vsel %vm198_vm3, %v493_v61, -inf }
 0x25b   :  { %521 = vmax.xlane.f32.xlu0 %v520_v60 }
 0x2c4   :  { %v498_v20 = vpop.xlane.xlu1 %497 }
 0x2c5   :  { %v523_v11 = vsub.f32 %v453_v7, %v498_v20 }
 0x2c7   :  { %v532_v37 = vmul.f32 1.442695, %v523_v11 }
 0x2c8   :  { %v501_v49 = vpop.xlane.xlu0 %500 }
 0x2c9   :  { %2519 = vpow2.f32 %v532_v37  ;;  %v524_v19 = vsub.f32 %v458_v9, %v501_v49 }
 0x2cb   :  { %v534_v55 = vmul.f32 1.442695, %v524_v19 }
 0x2cc   :  { %v504_v2 = vpop.xlane.xlu0 %503 }
 0x2cd   :  { %2521 = vpow2.f32 %v534_v55  ;;  %v525_v48 = vsub.f32 %v463_v3, %v504_v2 }
 0x2cf   :  { %v536_v59 = vmul.f32 1.442695, %v525_v48 }
 0x2d0   :  { %v507_v47 = vpop.xlane.xlu1 %506 }
 0x2d1   :  { %2523 = vpow2.f32 %v536_v59  ;;  %v526_v50 = vsub.f32 %v468_v30, %v507_v47 }
 0x2d3   :  { %v538_v58 = vmul.f32 1.442695, %v526_v50 }
 0x2d4   :  { %v510_v25 = vpop.xlane.xlu0 %509 }
 0x2d5   :  { %2525 = vpow2.f32 %v538_v58  ;;  %v527_v60 = vsub.f32 %v473_v32, %v510_v25 }
 0x2d6   :  { %v2520_v46 = vpop.eup %2519 }
 0x2d7   :  { %v540_v14 = vmul.f32 1.442695, %v527_v60  ;;  %v550_v7 = vsel %vm198_vm3, %v2520_v46, 0.0 }
 0x2d8   :  { %v513_v20 = vpop.xlane.xlu1 %512  ;;  %551 = vadd.xlane.f32.xlu1 %v550_v7 }
 0x2d9   :  { %2527 = vpow2.f32 %v540_v14  ;;  %v528_v49 = vsub.f32 %v478_v52, %v513_v20 }
 0x2da   :  { %v2522_v9 = vpop.eup %2521 }
 0x2db   :  { %v542_v11 = vmul.f32 1.442695, %v528_v49  ;;  %v553_v3 = vsel %vm198_vm3, %v2522_v9, 0.0 }
 0x2dc   :  { %554 = vadd.xlane.f32.xlu0 %v553_v3  ;;  %v516_v48 = vpop.xlane.xlu0 %515 }
 0x2dd   :  { %2529 = vpow2.f32 %v542_v11  ;;  %v529_v47 = vsub.f32 %v483_v54, %v516_v48  ;;  %v4101_v48 = vmov 0  }
 0x2de   :  { %v2524_v30 = vpop.eup %2523 }
 0x2df   :  { %v544_v37 = vmul.f32 1.442695, %v529_v47  ;;  %v556_v32 = vsel %vm198_vm3, %v2524_v30, 0.0  ;;  %v4102_v47 = vmov 2  }
 0x2e0   :  { %v519_v19 = vpop.xlane.xlu1 %518  ;;  %557 = vadd.xlane.f32.xlu1 %v556_v32 }
 0x2e1   :  { %2531 = vpow2.f32 %v544_v37  ;;  %v530_v55 = vsub.f32 %v488_v56, %v519_v19 }
 0x2e2   :  { %v2526_v2 = vpop.eup %2525 }
 0x2e3   :  { %v546_v59 = vmul.f32 1.442695, %v530_v55  ;;  %v559_v52 = vsel %vm198_vm3, %v2526_v2, 0.0 }
 0x2e4   :  { %560 = vadd.xlane.f32.xlu0 %v559_v52  ;;  %v522_v50 = vpop.xlane.xlu0 %521 }
 0x2e5   :  { %2533 = vpow2.f32 %v546_v59  ;;  %v531_v58 = vsub.f32 %v493_v61, %v522_v50 }
 0x2e6   :  { %v2528_v25 = vpop.eup %2527 }
 0x2e7   :  { %v548_v60 = vmul.f32 1.442695, %v531_v58  ;;  %v562_v54 = vsel %vm198_vm3, %v2528_v25, 0.0 }
 0x2e8   :  { %563 = vadd.xlane.f32.xlu1 %v562_v54 }
 0x2e9   :  { %2535 = vpow2.f32 %v548_v60 }
 0x2ea   :  { %v2530_v14 = vpop.eup %2529 }
 0x2eb   :  { %v565_v7 = vsel %vm198_vm3, %v2530_v14, 0.0 }
 0x2ec   :  { %566 = vadd.xlane.f32.xlu0 %v565_v7 }
 0x2ee   :  { %v3203_v20 = vpop.eup %2531 }
 0x2ef   :  { %v568_v56 = vsel %vm198_vm3, %v3203_v20, 0.0 }
 0x2f0   :  { %569 = vadd.xlane.f32.xlu1 %v568_v56 }
 0x2f2   :  { %v3207_v49 = vpop.eup %2533 }
 0x2f3   :  { %v571_v61 = vsel %vm198_vm3, %v3207_v49, 0.0 }
 0x2f4   :  { %572 = vadd.xlane.f32.xlu0 %v571_v61 }
 0x2f6   :  { %v3211_v11 = vpop.eup %2535 }
 0x2f7   :  { %v574_v3 = vsel %vm198_vm3, %v3211_v11, 0.0 }
 0x2f8   :  { %575 = vadd.xlane.f32.xlu1 %v574_v3 }
 0x309   :  { %794 = vperm.xlu1 %2385, %v2883_v17  }
 0x30a   :  { %790 = vperm.xlu0 %2386, %v2890_v18  }
 0x30d   :  { %2387 = vset.pattern.permute.xlu1 %v4101_v48 }
 0x30e   :  { %2389 = vset.pattern.permute.xlu0 %v4102_v47 }
 0x361   :  { %v552_v37 = vpop.xlane.xlu1 %551 }
 0x362   :  { %2537 = vrcp.f32 %v552_v37 }
 0x365   :  { %v555_v32 = vpop.xlane.xlu0 %554 }
 0x366   :  { %2539 = vrcp.f32 %v555_v32 }
 0x369   :  { %v558_v19 = vpop.xlane.xlu1 %557 }
 0x36a   :  { %2541 = vrcp.f32 %v558_v19 }
 0x36d   :  { %v561_v55 = vpop.xlane.xlu0 %560 }
 0x36e   :  { %2543 = vrcp.f32 %v561_v55 }
 0x36f   :  { %v2538_v59 = vpop.eup %2537 }
 0x370   :  { %v3219_v52 = vmul.f32 %v2538_v59, %v2520_v46 }
 0x371   :  { %v564_v50 = vpop.xlane.xlu1 %563 }
 0x372   :  { %2545 = vrcp.f32 %v564_v50  ;;  %v595_v17 = vmul.f32 %v3219_v52, %v3219_v52 }
 0x373   :  { %v2540_v18 = vpop.eup %2539 }
 0x374   :  { %v604_v58 = vsel %vm198_vm3, %v595_v17, 0.0  ;;  %v3224_v60 = vmul.f32 %v2540_v18, %v2522_v9 }
 0x375   :  { %605 = vadd.xlane.f32.xlu0 %v604_v58  ;;  %v567_v54 = vpop.xlane.xlu0 %566 }
 0x376   :  { %2547 = vrcp.f32 %v567_v54  ;;  %v596_v7 = vmul.f32 %v3224_v60, %v3224_v60 }
 0x377   :  { %v2542_v56 = vpop.eup %2541 }
 0x378   :  { %v607_v46 = vsel %vm198_vm3, %v596_v7, 0.0  ;;  %v3229_v61 = vmul.f32 %v2542_v56, %v2524_v30  ;;  %v2323_v30 = vpop.f32.mrf.mxu1 }
 0x379   :  { %v570_v3 = vpop.xlane.xlu1 %569  ;;  %608 = vadd.xlane.f32.xlu1 %v607_v46 }
 0x37a   :  { %2549 = vrcp.f32 %v570_v3  ;;  %v597_v37 = vmul.f32 %v3229_v61, %v3229_v61  ;;  %v874_v7 = vpop.f32.mrf.mxu1 }
 0x37b   :  { %v2544_v32 = vpop.eup %2543 }
 0x37c   :  { %v610_v9 = vsel %vm198_vm3, %v597_v37, 0.0  ;;  %v3234_v19 = vmul.f32 %v2544_v32, %v2526_v2 }
 0x37d   :  { %611 = vadd.xlane.f32.xlu0 %v610_v9  ;;  %v573_v55 = vpop.xlane.xlu0 %572 }
 0x37e   :  { %2551 = vrcp.f32 %v573_v55  ;;  %v598_v59 = vmul.f32 %v3234_v19, %v3234_v19 }
 0x37f   :  { %v2546_v50 = vpop.eup %2545 }
 0x380   :  { %v613_v17 = vsel %vm198_vm3, %v598_v59, 0.0  ;;  %v3239_v18 = vmul.f32 %v2546_v50, %v2528_v25 }
 0x381   :  { %v576_v58 = vpop.xlane.xlu1 %575  ;;  %614 = vadd.xlane.f32.xlu1 %v613_v17 }
 0x382   :  { %2553 = vrcp.f32 %v576_v58  ;;  %v599_v54 = vmul.f32 %v3239_v18, %v3239_v18 }
 0x383   :  { %v2548_v2 = vpop.eup %2547 }
 0x384   :  { %v616_v56 = vsel %vm198_vm3, %v599_v54, 0.0  ;;  %v3244_v46 = vmul.f32 %v2548_v2, %v2530_v14 }
 0x385   :  { %617 = vadd.xlane.f32.xlu0 %v616_v56  ;;  %v795_v3 = vpop.permute.xlu1 %794  ;;  %v791_v37 = vpop.permute.xlu0 %790 }
 0x386   :  { %v880_v32 = vadd.f32 %v2323_v30, %v795_v3  ;;  %v875_v9 = vadd.f32 %v874_v7, %v791_v37  ;;  %v600_v25 = vmul.f32 %v3244_v46, %v3244_v46 }
 0x387   :  { %v2550_v55 = vpop.eup %2549 }
 0x388   :  { %v883_v59 = vsel %vm226_vm0, %v880_v32, -inf  ;;  %v619_v50 = vsel %vm198_vm3, %v600_v25, 0.0  ;;  %v3251_v17 = vmul.f32 %v2550_v55, %v3203_v20 }
 0x389   :  { %v884_v58 = vmax.f32 %v875_v9, %v883_v59  ;;  %620 = vadd.xlane.f32.xlu1 %v619_v50 }
 0x38a   :  { %v601_v14 = vmul.f32 %v3251_v17, %v3251_v17 }
 0x38b   :  { %v2552_v54 = vpop.eup %2551  ;;  %v885_v2 = vrot.slane %v884_v58, 4 }
 0x38c   :  { %v622_v30 = vsel %vm198_vm3, %v601_v14, 0.0  ;;  %v3257_v7 = vmul.f32 %v2552_v54, %v3207_v49 }
 0x38d   :  { %v886_v56 = vmax.f32 %v884_v58, %v885_v2  ;;  %623 = vadd.xlane.f32.xlu0 %v622_v30 }
 0x38e   :  { %v602_v3 = vmul.f32 %v3257_v7, %v3257_v7 }
 0x38f   :  { %v2554_v37 = vpop.eup %2553  ;;  %v887_v20 = vrot.slane %v886_v56, 2 }
 0x390   :  { %v625_v25 = vsel %vm198_vm3, %v602_v3, 0.0  ;;  %v3263_v55 = vmul.f32 %v2554_v37, %v3211_v11 }
 0x391   :  { %v888_v59 = vmax.f32 %v886_v56, %v887_v20  ;;  %626 = vadd.xlane.f32.xlu1 %v625_v25 }
 0x392   :  { %v603_v50 = vmul.f32 %v3263_v55, %v3263_v55 }
 0x393   :  { %v889_v14 = vrot.slane %v888_v59, 1 }
 0x394   :  { %v628_v49 = vsel %vm198_vm3, %v603_v50, 0.0 }
 0x395   :  { %v890_v58 = vmax.f32 %v888_v59, %v889_v14  ;;  %629 = vadd.xlane.f32.xlu1 %v628_v49 }
 0x397   :  { %v891_v54 = vsub.f32 %v875_v9, %v890_v58  ;;  %v892_v2 = vsub.f32 %v880_v32, %v890_v58 }
 0x399   :  { %v893_v30 = vmul.f32 1.442695, %v891_v54  ;;  %v895_v45 = vmul.f32 1.442695, %v892_v2 }
 0x39b   :  { %2555 = vpow2.f32 %v893_v30 }
 0x39c   :  { %2557 = vpow2.f32 %v895_v45 }
 0x3a8   :  { %v2556_v3 = vpop.eup %2555 }
 0x3a9   :  { %v2558_v31 = vpop.eup %2557 }
 0x3aa   :  { %v897_v11 = vsel %vm226_vm0, %v2558_v31, 0.0 }
 0x3ab   :  { %v898_v56 = vadd.f32 %v2556_v3, %v897_v11 }
 0x3ad   :  { %v899_v37 = vrot.slane %v898_v56, 4 }
 0x3af   :  { %v900_v20 = vadd.f32 %v899_v37, %v898_v56 }
 0x3b1   :  { %v901_v25 = vrot.slane %v900_v20, 2 }
 0x3b3   :  { %v902_v39 = vadd.f32 %v901_v25, %v900_v20 }
 0x3b5   :  { %v903_v38 = vrot.slane %v902_v39, 1 }
 0x3b7   :  { %v904_v36 = vadd.f32 %v903_v38, %v902_v39 }
 0x3b9   :  { %2559 = vrcp.f32 %v904_v36  ;;  %v4103_v36 = vmov 0.0  }
 0x3c6   :  { %v2560_v59 = vpop.eup %2559 }
 0x3c7   :  { %v906_v50 = vmul.f32 %v2560_v59, %v2556_v3  ;;  %v907_v9 = vmul.f32 %v2560_v59, %v2558_v31 }
 0x3c9   :  { %v908_v32 = vmul.f32 %v906_v50, %v906_v50  ;;  %v909_v14 = vmul.f32 %v907_v9, %v907_v9 }
 0x3cb   :  { %v910_v49 = vsel %vm226_vm0, %v909_v14, 0.0  ;;  %v4104_v14 = vmov 1  }
 0x3cc   :  { %v911_v45 = vadd.f32 %v910_v49, %v908_v32 }
 0x3ce   :  { %v912_v58 = vrot.slane %v911_v45, 4 }
 0x3d0   :  { %v913_v54 = vadd.f32 %v912_v58, %v911_v45 }
 0x3d2   :  { %v914_v2 = vrot.slane %v913_v54, 2 }
 0x3d4   :  { %v915_v30 = vadd.f32 %v914_v2, %v913_v54  ;;  %v4046_v54 = vmov 4  }
 0x3d6   :  { %v916_v11 = vrot.slane %v915_v30, 1 }
 0x3d8   :  { %v917_v33 = vadd.f32 %v916_v11, %v915_v30 }
 0x3da   :  { %2561 = vrsqrt.f32 %v917_v33 }
 0x3e7   :  { %v2562_v56 = vpop.eup %2561 }
 0x3e8   :  { %v3270_v37 = vmul.f32 %v2562_v56, %v907_v9  ;;  %v3272_v38 = vmul.f32 %v2562_v56, %v906_v50 }
 0x3ea   :  { %2325 = vmatpush3.msk.msra.mxu0 %vm226_vm0, %v3270_v37 }
 0x3eb   :  { %2326 = vmatprep.subr.mxu0 %v4103_v36 }
 0x3ec   :  { %2327 = vmatpush3.msra.mxu0 %v3272_v38 }
 0x3fe   :  { %v606_v39 = vpop.xlane.xlu0 %605 }
 0x3ff   :  { %2563 = vrsqrt.f32 %v606_v39 }
 0x402   :  { %v609_v31 = vpop.xlane.xlu1 %608 }
 0x403   :  { %2565 = vrsqrt.f32 %v609_v31  ;;  %v4038_v31 = vmov 6  }
 0x406   :  { %v612_v3 = vpop.xlane.xlu0 %611 }
 0x407   :  { %2567 = vrsqrt.f32 %v612_v3 }
 0x40a   :  { %v615_v20 = vpop.xlane.xlu1 %614 }
 0x40b   :  { %2569 = vrsqrt.f32 %v615_v20 }
 0x40c   :  { %v2564_v33 = vpop.eup %2563 }
 0x40d   :  { %v3279_v25 = vmul.f32 %v2564_v33, %v3219_v52  ;;  %v4036_v52 = vmov 3  }
 0x40e   :  { %v618_v59 = vpop.xlane.xlu0 %617 }
 0x40f   :  { %2571 = vrsqrt.f32 %v618_v59  ;;  %1197 = vperm.xlu0 %2389, %v3279_v25   ;;  %997 = vperm.xlu1 %2387, %v3279_v25  }
 0x410   :  { %v2566_v50 = vpop.eup %2565  ;;  %2329 = vmatmul.mubr.msk.f32.vlgmr.msra.gmra.mxu0 %vm198_vm3, %v3279_v25 }
 0x411   :  { %v3286_v9 = vmul.f32 %v2566_v50, %v3224_v60  ;;  %2331 = vmatprep.mubr.msk.f32.mxu0 %vm2779_vm2, %v4103_v36 }
 0x412   :  { %v621_v32 = vpop.xlane.xlu1 %620 }
 0x413   :  { %2573 = vrsqrt.f32 %v621_v32  ;;  %2390 = vset.pattern.permute.xlu0 %v4036_v52  ;;  %2388 = vset.pattern.permute.xlu1 %v4104_v14  ;;  %v4048_v32 = vmov 8  }
 0x414   :  { %v2568_v49 = vpop.eup %2567  ;;  %2332 = vmatmul.mubr.msk.f32.gmra.mxu0 %vm198_vm3, %v3286_v9  ;;  %1293 = vperm.xlu0 %2390, %v3279_v25  }
 0x415   :  { %v3296_v45 = vmul.f32 %v2568_v49, %v3229_v61  ;;  %1101 = vperm.xlu1 %2388, %v3279_v25   ;;  %2334 = vmatprep.mubr.msk.f32.mxu0 %vm2779_vm2, %v4103_v36 }
 0x416   :  { %v624_v60 = vpop.xlane.xlu0 %623 }
 0x417   :  { %2575 = vrsqrt.f32 %v624_v60 }
 0x418   :  { %v2570_v58 = vpop.eup %2569  ;;  %2335 = vmatmul.mubr.msk.f32.gmra.mxu0 %vm198_vm3, %v3296_v45  ;;  %2391 = vset.pattern.permute.xlu0 %v4046_v54 }
 0x419   :  { %v3305_v2 = vmul.f32 %v2570_v58, %v3234_v19  ;;  %1105 = vperm.xlu1 %2388, %v3286_v9   ;;  %1389 = vperm.xlu0 %2391, %v3279_v25   ;;  %v4042_v19 = vmov 5  }
 0x41a   :  { %v627_v61 = vpop.xlane.xlu1 %626  ;;  %2337 = vmatprep.mubr.msk.f32.mxu0 %vm2779_vm2, %v4103_v36 }
 0x41b   :  { %2577 = vrsqrt.f32 %v627_v61  ;;  %v3470_v61 = vstv %s966_s7 }
 0x41c   :  { %v2572_v30 = vpop.eup %2571  ;;  %2338 = vmatmul.mubr.msk.f32.gmra.mxu0 %vm198_vm3, %v3305_v2 }
 0x41d   :  { %v3314_v11 = vmul.f32 %v2572_v30, %v3239_v18  ;;  %2398 = vset.pattern.permute.xlu1 %v4102_v47  ;;  %2392 = vset.pattern.permute.xlu0 %v4042_v19 }
 0x41e   :  { %1201 = vperm.xlu1 %2398, %v3286_v9   ;;  %v630_v56 = vpop.xlane.xlu1 %629  ;;  %1485 = vperm.xlu0 %2392, %v3279_v25  }
 0x41f   :  { %2579 = vrsqrt.f32 %v630_v56  ;;  %2340 = vmatprep.mubr.msk.f32.mxu0 %vm2779_vm2, %v4103_v36 }
 0x420   :  { %v2574_v39 = vpop.eup %2573  ;;  %2341 = vmatmul.mubr.msk.f32.gmra.mxu0 %vm198_vm3, %v3314_v11 }
 0x421   :  { %v3325_v18 = vmul.f32 %v2574_v39, %v3244_v46  ;;  %2343 = vmatprep.mubr.msk.f32.mxu0 %vm2779_vm2, %v4103_v36  ;;  %v4044_v46 = vmov 7  }
 0x422   :  { %2399 = vset.pattern.permute.xlu1 %v4036_v52  ;;  %2393 = vset.pattern.permute.xlu0 %v4038_v31 }
 0x423   :  { %1297 = vperm.xlu1 %2399, %v3286_v9   ;;  %1581 = vperm.xlu0 %2393, %v3279_v25  }
 0x424   :  { %v2576_v3 = vpop.eup %2575  ;;  %2344 = vmatmul.mubr.msk.f32.gmra.mxu0 %vm198_vm3, %v3325_v18 }
 0x425   :  { %v3336_v20 = vmul.f32 %v2576_v3, %v3251_v17  ;;  %2346 = vmatprep.mubr.msk.f32.mxu0 %vm2779_vm2, %v4103_v36 }
 0x427   :  { %2400 = vset.pattern.permute.xlu1 %v4046_v54  ;;  %2394 = vset.pattern.permute.xlu0 %v4044_v46 }
 0x428   :  { %v2578_v33 = vpop.eup %2577  ;;  %1393 = vperm.xlu1 %2400, %v3286_v9   ;;  %2347 = vmatmul.mubr.msk.f32.gmra.mxu0 %vm198_vm3, %v3336_v20 }
 0x429   :  { %v3346_v59 = vmul.f32 %v2578_v33, %v3257_v7  ;;  %1677 = vperm.xlu0 %2394, %v3279_v25   ;;  %2349 = vmatprep.mubr.msk.f32.mxu0 %vm2779_vm2, %v4103_v36  ;;  %v4040_v7 = vmov 9   ;;  %v969_v33 = vmul.f32 %v3470_v61, %v2944_v53 }
 0x42b   :  { %v979_v43 = vmul.f32 1.442695, %v969_v33 }
 0x42c   :  { %v2580_v17 = vpop.eup %2579  ;;  %2401 = vset.pattern.permute.xlu1 %v4042_v19  ;;  %2350 = vmatmul.mubr.msk.f32.gmra.mxu0 %vm198_vm3, %v3346_v59 }
 0x42d   :  { %v3355_v50 = vmul.f32 %v2580_v17, %v3263_v55  ;;  %2395 = vset.pattern.permute.xlu0 %v4048_v32  ;;  %1489 = vperm.xlu1 %2401, %v3286_v9   ;;  %v968_v17 = vmul.f32 %v3470_v61, %v2941_v51 }
 0x42e   :  { %1773 = vperm.xlu0 %2395, %v3279_v25   ;;  %2352 = vmatprep.mubr.msk.f32.mxu0 %vm2779_vm2, %v4103_v36 }
 0x42f   :  { %4105 = vst [vmem:[#allocation37_spill] sm:$0xff] %v3355_v50  ;;  %v977_v42 = vmul.f32 1.442695, %v968_v17  ;;  %v1457_v17 = vmul.f32 %v3024_v62, %v2941_v51 }
 0x430   :  { %2353 = vmatmul.mubr.msk.f32.gmra.mxu0 %vm198_vm3, %v3355_v50  ;;  %v1426_v50 = vsub.s32 4, %v2901_v21 }
 0x431   :  { %2402 = vset.pattern.permute.xlu1 %v4038_v31 }
 0x432   :  { %2396 = vset.pattern.permute.xlu0 %v4040_v7  ;;  %1585 = vperm.xlu1 %2402, %v3286_v9  }
 0x433   :  { %1869 = vperm.xlu0 %2396, %v3279_v25  }
 0x436   :  { %2403 = vset.pattern.permute.xlu1 %v4044_v46 }
 0x437   :  { %2397 = vset.pattern.permute.xlu0 %v4101_v48  ;;  %1681 = vperm.xlu1 %2403, %v3286_v9  }
 0x438   :  { %1002 = vperm.xlu0 %2397, %v3286_v9  }
 0x43b   :  { %2404 = vset.pattern.permute.xlu1 %v4048_v32 }
 0x43c   :  { %2418 = vset.pattern.permute.xlu0 %v4102_v47  ;;  %1777 = vperm.xlu1 %2404, %v3286_v9  }
 0x43d   :  { %1209 = vperm.xlu0 %2418, %v3305_v2  }
 0x440   :  { %2405 = vset.pattern.permute.xlu1 %v4040_v7 }
 0x441   :  { %2419 = vset.pattern.permute.xlu0 %v4036_v52  ;;  %1873 = vperm.xlu1 %2405, %v3286_v9  }
 0x442   :  { %1305 = vperm.xlu0 %2419, %v3305_v2  }
 0x445   :  { %2406 = vset.pattern.permute.xlu1 %v4101_v48 }
 0x446   :  { %2420 = vset.pattern.permute.xlu0 %v4046_v54  ;;  %1007 = vperm.xlu1 %2406, %v3296_v45  }
 0x447   :  { %1401 = vperm.xlu0 %2420, %v3305_v2  }
 0x44a   :  { %2407 = vset.pattern.permute.xlu1 %v4104_v14 }
 0x44b   :  { %2421 = vset.pattern.permute.xlu0 %v4042_v19  ;;  %1109 = vperm.xlu1 %2407, %v3296_v45  }
 0x44c   :  { %1497 = vperm.xlu0 %2421, %v3305_v2  }
 0x44f   :  { %2408 = vset.pattern.permute.xlu1 %v4102_v47 }
 0x450   :  { %2422 = vset.pattern.permute.xlu0 %v4038_v31  ;;  %1205 = vperm.xlu1 %2408, %v3296_v45  }
 0x451   :  { %1593 = vperm.xlu0 %2422, %v3305_v2  }
 0x454   :  { %2409 = vset.pattern.permute.xlu1 %v4036_v52 }
 0x455   :  { %2423 = vset.pattern.permute.xlu0 %v4044_v46  ;;  %1301 = vperm.xlu1 %2409, %v3296_v45  }
 0x456   :  { %1689 = vperm.xlu0 %2423, %v3305_v2  }
 0x459   :  { %2410 = vset.pattern.permute.xlu1 %v4046_v54 }
 0x45a   :  { %2424 = vset.pattern.permute.xlu0 %v4048_v32  ;;  %1397 = vperm.xlu1 %2410, %v3296_v45  }
 0x45b   :  { %1785 = vperm.xlu0 %2424, %v3305_v2  }
 0x45e   :  { %2411 = vset.pattern.permute.xlu1 %v4042_v19 }
 0x45f   :  { %2425 = vset.pattern.permute.xlu0 %v4040_v7  ;;  %1493 = vperm.xlu1 %2411, %v3296_v45  }
 0x460   :  { %1881 = vperm.xlu0 %2425, %v3305_v2  }
 0x463   :  { %2412 = vset.pattern.permute.xlu1 %v4038_v31 }
 0x464   :  { %2427 = vset.pattern.permute.xlu0 %v4104_v14  ;;  %1589 = vperm.xlu1 %2412, %v3296_v45  }
 0x465   :  { %1117 = vperm.xlu0 %2427, %v3314_v11  }
 0x468   :  { %2413 = vset.pattern.permute.xlu1 %v4044_v46 }
 0x469   :  { %1685 = vperm.xlu1 %2413, %v3296_v45   ;;  %2438 = vset.pattern.permute.xlu0 %v4102_v47 }
 0x46a   :  { %1217 = vperm.xlu0 %2438, %v3325_v18  }
 0x46d   :  { %2414 = vset.pattern.permute.xlu1 %v4048_v32 }
 0x46e   :  { %1781 = vperm.xlu1 %2414, %v3296_v45   ;;  %2439 = vset.pattern.permute.xlu0 %v4036_v52 }
 0x46f   :  { %1313 = vperm.xlu0 %2439, %v3325_v18  }
 0x472   :  { %2415 = vset.pattern.permute.xlu1 %v4040_v7 }
 0x473   :  { %1877 = vperm.xlu1 %2415, %v3296_v45   ;;  %2440 = vset.pattern.permute.xlu0 %v4046_v54 }
 0x474   :  { %1409 = vperm.xlu0 %2440, %v3325_v18  }
 0x477   :  { %2416 = vset.pattern.permute.xlu1 %v4101_v48 }
 0x478   :  { %1012 = vperm.xlu1 %2416, %v3305_v2   ;;  %2441 = vset.pattern.permute.xlu0 %v4042_v19 }
 0x479   :  { %1505 = vperm.xlu0 %2441, %v3325_v18  }
 0x47c   :  { %2417 = vset.pattern.permute.xlu1 %v4104_v14 }
 0x47d   :  { %1113 = vperm.xlu1 %2417, %v3305_v2   ;;  %2442 = vset.pattern.permute.xlu0 %v4038_v31  ;;  %v3465_v2 = vstv %s2186_s2 }
 0x47e   :  { %1601 = vperm.xlu0 %2442, %v3325_v18   ;;  %v1073_v30 = vmul.f32 %v3465_v2, %v2941_v51  ;;  %v1074_v3 = vmul.f32 %v3465_v2, %v2944_v53 }
 0x481   :  { %2426 = vset.pattern.permute.xlu1 %v4101_v48 }
 0x482   :  { %2443 = vset.pattern.permute.xlu0 %v4044_v46  ;;  %1017 = vperm.xlu1 %2426, %v3314_v11  }
 0x483   :  { %1697 = vperm.xlu0 %2443, %v3325_v18  }
 0x486   :  { %2428 = vset.pattern.permute.xlu1 %v4102_v47 }
 0x487   :  { %2444 = vset.pattern.permute.xlu0 %v4048_v32  ;;  %1213 = vperm.xlu1 %2428, %v3314_v11  }
 0x488   :  { %1793 = vperm.xlu0 %2444, %v3325_v18  }
 0x48a   :  { %v3436_v55 = vpop.permute.xlu1 %997  ;;  %v3438_v36 = vpop.permute.xlu0 %1197 }
 0x48b   :  { %2429 = vset.pattern.permute.xlu1 %v4036_v52 }
 0x48c   :  { %2445 = vset.pattern.permute.xlu0 %v4040_v7  ;;  %1309 = vperm.xlu1 %2429, %v3314_v11  }
 0x48d   :  { %1889 = vperm.xlu0 %2445, %v3325_v18  }
 0x48f   :  { %v3444_v25 = vpop.permute.xlu0 %1293 }
 0x490   :  { %v3446_v9 = vpop.permute.xlu1 %1101  ;;  %2430 = vset.pattern.permute.xlu1 %v4046_v54 }
 0x491   :  { %2457 = vset.pattern.permute.xlu0 %v4104_v14  ;;  %1405 = vperm.xlu1 %2430, %v3314_v11  }
 0x492   :  { %1129 = vperm.xlu0 %2457, %v3346_v59  }
 0x494   :  { %v3452_v49 = vpop.permute.xlu1 %1105  ;;  %v3454_v45 = vpop.permute.xlu0 %1389 }
 0x495   :  { %2431 = vset.pattern.permute.xlu1 %v4042_v19  ;;  %v3492_v19 = vstv %s2188_s9 }
 0x496   :  { %2458 = vset.pattern.permute.xlu0 %v4102_v47  ;;  %1501 = vperm.xlu1 %2431, %v3314_v11  }
 0x497   :  { %1225 = vperm.xlu0 %2458, %v3346_v59  }
 0x499   :  { %v3460_v60 = vpop.permute.xlu1 %1201  ;;  %v3462_v58 = vpop.permute.xlu0 %1485 }
 0x49a   :  { %2432 = vset.pattern.permute.xlu1 %v4038_v31  ;;  %v1082_v31 = vmul.f32 1.442695, %v1073_v30  ;;  %v1266_v30 = vmul.f32 %v3492_v19, %v2944_v53 }
 0x49b   :  { %2459 = vset.pattern.permute.xlu0 %v4036_v52  ;;  %1597 = vperm.xlu1 %2432, %v3314_v11   ;;  %v3487_v52 = vstv %s2187_s8 }
 0x49c   :  { %1321 = vperm.xlu0 %2459, %v3346_v59   ;;  %v1170_v7 = vmul.f32 %v3487_v52, %v2944_v53  ;;  %v1169_v32 = vmul.f32 %v3487_v52, %v2941_v51  ;;  %2581 = vpow2.f32 %v1082_v31  ;;  %v1276_v6 = vmul.f32 1.442695, %v1266_v30 }
 0x49d   :  { %v1362_v31 = vmul.f32 %v3498_v28, %v2944_v53 }
 0x49e   :  { %v3474_v56 = vpop.permute.xlu1 %1297  ;;  %v3476_v39 = vpop.permute.xlu0 %1581  ;;  %v1180_v15 = vmul.f32 1.442695, %v1170_v7  ;;  %v1178_v33 = vmul.f32 1.442695, %v1169_v32  ;;  %v1370_v32 = vmul.f32 1.442695, %v1361_v8 }
 0x49f   :  { %2433 = vset.pattern.permute.xlu1 %v4044_v46  ;;  %v1084_v46 = vmul.f32 1.442695, %v1074_v3  ;;  %v1265_v3 = vmul.f32 %v3492_v19, %v2941_v51  ;;  %v1372_v30 = vmul.f32 1.442695, %v1362_v31  ;;  %v1562_v8 = vmul.f32 1.442695, %v1553_v57 }
 0x4a0   :  { %2460 = vset.pattern.permute.xlu0 %v4046_v54  ;;  %1693 = vperm.xlu1 %2433, %v3314_v11   ;;  %v1554_v57 = vmul.f32 %v3026_v63, %v2944_v53  ;;  %v3547_v31 = vrot.slane %v3272_v38, %v2904_v22 }
 0x4a1   :  { %1417 = vperm.xlu0 %2460, %v3346_v59   ;;  %2583 = vpow2.f32 %v1084_v46  ;;  %v1274_v46 = vmul.f32 1.442695, %v1265_v3  ;;  %v3537_v3 = vrot.slane %v3272_v38, %v2910_v24 }
 0x4a2   :  { %2585 = vpow2.f32 %v979_v43  ;;  %v1458_v43 = vmul.f32 %v3024_v62, %v2944_v53  ;;  %4112 = vst [vmem:[#allocation39_spill] sm:$0xff] %v3547_v31  ;;  %v1564_v23 = vmul.f32 1.442695, %v1554_v57  ;;  %v1746_v57 = vmul.f32 %v3042_v10, %v2944_v53 }
 0x4a3   :  { %v3494_v54 = vpop.permute.xlu1 %1393  ;;  %2587 = vpow2.f32 %v977_v42  ;;  %v1466_v42 = vmul.f32 1.442695, %v1457_v17  ;;  %4111 = vst [vmem:[#allocation38_spill] sm:$0xff] %v3537_v3  ;;  %v1649_v17 = vmul.f32 %v3032_v1, %v2941_v51 }
 0x4a4   :  { %2434 = vset.pattern.permute.xlu1 %v4106_v34  ;;  %v3501_v44 = vpop.permute.xlu0 %1677  ;;  %2589 = vpow2.f32 %v1180_v15 }
 0x4a5   :  { %2461 = vset.pattern.permute.xlu0 %v4107_v40  ;;  %1789 = vperm.xlu1 %2434, %v3314_v11   ;;  %2591 = vpow2.f32 %v1178_v33  ;;  %v1330_v33 = vsub.s32 3, %v2901_v21 }
 0x4a6   :  { %1513 = vperm.xlu0 %2461, %v3346_v59   ;;  %2593 = vpow2.f32 %v1276_v6  ;;  %v1468_v6 = vmul.f32 1.442695, %v1458_v43  ;;  %v1141_v43 = vmul.f32 %v3537_v3, %v3452_v49 }
 0x4a7   :  { %2595 = vpow2.f32 %v1274_v46  ;;  %v4113_v46 = vsub.s32 2, %v2901_v21  ;;  %v3571_v41 = vrot.slane %v3272_v38, %v1330_v33  ;;  %v1841_v33 = vmul.f32 %v3045_v12, %v2941_v51 }
 0x4a8   :  { %v3514_v13 = vpop.permute.xlu1 %1489  ;;  %2597 = vpow2.f32 %v1370_v32 }
 0x4a9   :  { %2435 = vset.pattern.permute.xlu1 %v4108_v5  ;;  %v3519_v7 = vpop.permute.xlu0 %1773  ;;  %2599 = vpow2.f32 %v1466_v42  ;;  %v3552_v32 = vrot.slane %v3272_v38, %v4113_v46  ;;  %v1140_v42 = vmul.f32 %v3537_v3, %v3446_v9  ;;  %v2582_v29 = vpop.eup %2581  ;;  %v1044_v46 = vmul.f32 %v3547_v31, %v3436_v55 }
 0x4aa   :  { %2462 = vset.pattern.permute.xlu0 %v4109_v0  ;;  %1885 = vperm.xlu1 %2435, %v3314_v11   ;;  %v4110_v11 = vmov 7   ;;  %2601 = vpow2.f32 %v1372_v30  ;;  %v1650_v55 = vmul.f32 %v3032_v1, %v2944_v53  ;;  %v1754_v3 = vmul.f32 1.442695, %v1745_v27 }
 0x4ab   :  { %1609 = vperm.xlu0 %2462, %v3346_v59   ;;  %2603 = vpow2.f32 %v1562_v8  ;;  %v1237_v9 = vmul.f32 %v3552_v32, %v3460_v60 }
 0x4ac   :  { %2605 = vpow2.f32 %v1468_v6  ;;  %v1149_v6 = vmul.f32 %v2582_v29, %v1140_v42  ;;  %v1236_v29 = vmul.f32 %v3552_v32, %v3438_v36  ;;  %v1660_v27 = vmul.f32 1.442695, %v1650_v55 }
 0x4ad   :  { %v3528_v35 = vpop.permute.xlu1 %1585  ;;  %2607 = vpow2.f32 %v1564_v23 }
 0x4ae   :  { %2436 = vset.pattern.permute.xlu1 %v4101_v48  ;;  %v3531_v15 = vpop.permute.xlu0 %1869  ;;  %v2584_v16 = vpop.eup %2583 }
 0x4af   :  { %2463 = vset.pattern.permute.xlu0 %v4110_v11  ;;  %1022 = vperm.xlu1 %2436, %v3325_v18   ;;  %v2586_v8 = vpop.eup %2585  ;;  %v1150_v11 = vmul.f32 %v2584_v16, %v1141_v43 }
 0x4b0   :  { %1705 = vperm.xlu0 %2463, %v3346_v59   ;;  %v2588_v60 = vpop.eup %2587 }
 0x4b1   :  { %v1053_v1 = vmul.f32 %v2588_v60, %v1044_v46  ;;  %v4114_v60 = vsub.s32 5, %v2901_v21 }
 0x4b2   :  { %v3558_v30 = vpop.permute.xlu1 %1681 }
 0x4b3   :  { %2437 = vset.pattern.permute.xlu1 %v4104_v14  ;;  %v1003_v26 = vpop.permute.xlu0 %1002  ;;  %v1158_v43 = vadd.f32 %v1149_v6, %v1053_v1  ;;  %v1842_v1 = vmul.f32 %v3045_v12, %v2944_v53  ;;  %v3605_v6 = vrot.slane %v3272_v38, %v4114_v60 }
 0x4b4   :  { %v1045_v49 = vmul.f32 %v3547_v31, %v1003_v26  ;;  %2464 = vset.pattern.permute.xlu0 %v4106_v34  ;;  %1121 = vperm.xlu1 %2437, %v3325_v18   ;;  %v1658_v26 = vmul.f32 1.442695, %v1649_v17  ;;  %v2590_v34 = vpop.eup %2589  ;;  %v1333_v18 = vmul.f32 %v3571_v41, %v3474_v56  ;;  %v3589_v56 = vrot.slane %v3272_v38, %v1426_v50 }
 0x4b5   :  { %1801 = vperm.xlu0 %2464, %v3346_v59   ;;  %v1246_v16 = vmul.f32 %v2590_v34, %v1237_v9  ;;  %v2592_v42 = vpop.eup %2591  ;;  %v1850_v50 = vmul.f32 1.442695, %v1841_v33  ;;  %v1332_v9 = vmul.f32 %v3571_v41, %v3444_v25  ;;  %v1714_v33 = vsub.s32 7, %v2901_v21 }
 0x4b6   :  { %v1054_v31 = vmul.f32 %v2586_v8, %v1045_v49  ;;  %v2594_v51 = vpop.eup %2593  ;;  %2609 = vpow2.f32 %v1658_v26  ;;  %v1245_v23 = vmul.f32 %v2592_v42, %v1236_v29  ;;  %v1756_v49 = vmul.f32 1.442695, %v1746_v57 }
 0x4b7   :  { %v3583_v0 = vpop.permute.xlu1 %1777  ;;  %v2596_v34 = vpop.eup %2595  ;;  %v1342_v36 = vmul.f32 %v2594_v51, %v1333_v18  ;;  %2611 = vpow2.f32 %v1754_v3  ;;  %v1428_v18 = vmul.f32 %v3589_v56, %v3454_v45  ;;  %v1525_v57 = vmul.f32 %v3605_v6, %v3514_v13 }
 0x4b8   :  { %v1159_v17 = vadd.f32 %v1150_v11, %v1054_v31  ;;  %2446 = vset.pattern.permute.xlu1 %v4101_v48  ;;  %v1429_v11 = vmul.f32 %v3589_v56, %v3494_v54  ;;  %v2598_v31 = vpop.eup %2597  ;;  %v1618_v54 = vsub.s32 6, %v2901_v21  ;;  %2613 = vpow2.f32 %v1660_v27 }
 0x4b9   :  { %2473 = vset.pattern.permute.xlu0 %v4108_v5  ;;  %1027 = vperm.xlu1 %2446, %v3336_v20   ;;  %v2600_v55 = vpop.eup %2599  ;;  %v1254_v25 = vadd.f32 %v1245_v23, %v1158_v43  ;;  %2615 = vpow2.f32 %v1850_v50  ;;  %v1524_v27 = vmul.f32 %v3605_v6, %v3462_v58  ;;  %v3633_v50 = vrot.slane %v3270_v37, %v2904_v22 }
 0x4ba   :  { %v1255_v46 = vadd.f32 %v1246_v16, %v1159_v17  ;;  %1897 = vperm.xlu0 %2473, %v3346_v59   ;;  %v2602_v26 = vpop.eup %2601  ;;  %v1341_v16 = vmul.f32 %v2596_v34, %v1332_v9  ;;  %v1852_v17 = vmul.f32 1.442695, %v1842_v1  ;;  %v3618_v51 = vrot.slane %v3272_v38, %v1618_v54 }
 0x4bb   :  { %v1438_v53 = vmul.f32 %v2602_v26, %v1429_v11  ;;  %v2604_v29 = vpop.eup %2603  ;;  %2617 = vpow2.f32 %v1756_v49  ;;  %v3626_v34 = vrot.slane %v3272_v38, %v1714_v33  ;;  %v3639_v38 = vrot.slane %v3270_v37, %v2910_v24 }
 0x4bc   :  { %v3600_v8 = vpop.permute.xlu1 %1873  ;;  %v1351_v3 = vadd.f32 %v1342_v36, %v1255_v46  ;;  %v2606_v42 = vpop.eup %2605  ;;  %v1350_v46 = vadd.f32 %v1341_v16, %v1254_v25  ;;  %v1437_v36 = vmul.f32 %v2598_v31, %v1428_v18  ;;  %v1620_v13 = vmul.f32 %v3618_v51, %v3476_v39 }
 0x4bd   :  { %2447 = vset.pattern.permute.xlu1 %v4104_v14  ;;  %v1534_v11 = vmul.f32 %v2606_v42, %v1525_v57  ;;  %v1621_v58 = vmul.f32 %v3618_v51, %v3528_v35  ;;  %2619 = vpow2.f32 %v1852_v17  ;;  %v1533_v31 = vmul.f32 %v2600_v55, %v1524_v27  ;;  %v2608_v39 = vpop.eup %2607 }
 0x4be   :  { %1125 = vperm.xlu1 %2447, %v3336_v20   ;;  %v1447_v45 = vadd.f32 %v1438_v53, %v1351_v3  ;;  %v1716_v23 = vmul.f32 %v3626_v34, %v3501_v44  ;;  %v1446_v49 = vadd.f32 %v1437_v36, %v1350_v46  ;;  %v1629_v60 = vmul.f32 %v2604_v29, %v1620_v13 }
 0x4bf   :  { %v1812_v22 = vmul.f32 %v3633_v50, %v3519_v7  ;;  %v1630_v55 = vmul.f32 %v2608_v39, %v1621_v58  ;;  %v1717_v44 = vmul.f32 %v3626_v34, %v3558_v30  ;;  %v4115_v54 = vmov 3  }
 0x4c0   :  { %v1543_v9 = vadd.f32 %v1534_v11, %v1447_v45  ;;  %v970_v37 = vmul.f32 %v3470_v61, %v2952_v4  ;;  %v1075_v3 = vmul.f32 %v3465_v2, %v2952_v4  ;;  %v1542_v26 = vadd.f32 %v1533_v31, %v1446_v49 }
 0x4c1   :  { %v3620_v43 = vpop.permute.xlu1 %1007  ;;  %v1908_v7 = vmul.f32 %v3639_v38, %v3531_v15  ;;  %v1171_v53 = vmul.f32 %v3487_v52, %v2952_v4  ;;  %v4116_v33 = vlaneseq  ;;  %v1813_v42 = vmul.f32 %v3633_v50, %v3583_v0 }
 0x4c2   :  { %2448 = vset.pattern.permute.xlu1 %v4102_v47  ;;  %v1639_v18 = vadd.f32 %v1630_v55, %v1543_v9  ;;  %v1638_v29 = vadd.f32 %v1629_v60, %v1542_v26  ;;  %v981_v46 = vmul.f32 1.442695, %v970_v37  ;;  %v1086_v15 = vmul.f32 1.442695, %v1075_v3 }
 0x4c3   :  { %1221 = vperm.xlu1 %2448, %v3336_v20   ;;  %v2610_v35 = vpop.eup %2609  ;;  %v3662_v57 = vand.u32 127, %v4116_v33  ;;  %v4117_v36 = vmov 4   ;;  %v1267_v13 = vmul.f32 %v3492_v19, %v2952_v4  ;;  %v1182_v9 = vmul.f32 1.442695, %v1171_v53 }
 0x4c4   :  { %v2612_v24 = vpop.eup %2611  ;;  %v1725_v25 = vmul.f32 %v2610_v35, %v1716_v23  ;;  %v1363_v23 = vmul.f32 %v3498_v28, %v2952_v4  ;;  %v3675_v39 = vstv %s3643_s11  ;;  %v2088_v49 = vadd.s32 8, %v2901_v21 }
 0x4c5   :  { %v2614_v30 = vpop.eup %2613  ;;  %v1821_v16 = vmul.f32 %v2612_v24, %v1812_v22  ;;  %vm2098_vm4 = vcmp.eq.s32.totalorder %v2901_v21, %v3662_v57  ;;  %v1909_v22 = vmul.f32 %v3639_v38, %v3600_v8  ;;  %v3683_v55 = vstv %s3650_s12 }
 0x4c6   :  { %v3641_v1 = vpop.permute.xlu1 %1109  ;;  %v1726_v17 = vmul.f32 %v2614_v30, %v1717_v44  ;;  %v2616_v45 = vpop.eup %2615  ;;  %v1734_v11 = vadd.f32 %v1725_v25, %v1638_v29  ;;  %v1278_v24 = vmul.f32 1.442695, %v1267_v13  ;;  %v1459_v3 = vmul.f32 %v3024_v62, %v2952_v4 }
 0x4c7   :  { %2449 = vset.pattern.permute.xlu1 %v4115_v54  ;;  %v1917_v58 = vmul.f32 %v2616_v45, %v1908_v7  ;;  %2621 = vpow2.f32 %v1086_v15  ;;  %v2127_v8 = vsel %vm2098_vm4, %v3683_v55, 0.0  ;;  %v1374_v53 = vmul.f32 1.442695, %v1363_v23  ;;  %v4118_v45 = vld [vmem:[#allocation12_spill] sm:$0xff]  ;;  %v3699_v15 = vpop.permute.xlu0 %1209 }
 0x4c8   :  { %1317 = vperm.xlu1 %2449, %v3336_v20   ;;  %v1735_v31 = vadd.f32 %v1726_v17, %v1639_v18  ;;  %v2618_v0 = vpop.eup %2617  ;;  %v1830_v35 = vadd.f32 %v1821_v16, %v1734_v11  ;;  %2623 = vpow2.f32 %v981_v46  ;;  %v1555_v33 = vmul.f32 %v3026_v63, %v2952_v4 }
 0x4c9   :  { %v1822_v60 = vmul.f32 %v2618_v0, %v1813_v42  ;;  %2625 = vpow2.f32 %v1182_v9  ;;  %vm2099_vm5 = vcmp.eq.s32.totalorder %v2088_v49, %v3662_v57  ;;  %v1470_v42 = vmul.f32 1.442695, %v1459_v3 }
 0x4ca   :  { %v2620_v26 = vpop.eup %2619  ;;  %v1926_v7 = vadd.f32 %v1917_v58, %v1830_v35  ;;  %v1651_v46 = vmul.f32 %v4118_v45, %v2952_v4  ;;  %2627 = vpow2.f32 %v1278_v24  ;;  %v2128_v23 = vsel %vm2099_vm5, %v3683_v55, 0.0 }
 0x4cb   :  { %v3666_v27 = vpop.permute.xlu1 %1205  ;;  %v1831_v25 = vadd.f32 %v1822_v60, %v1735_v31  ;;  %v1918_v29 = vmul.f32 %v2620_v26, %v1909_v22  ;;  %v4119_v9 = vmov 6   ;;  %2629 = vpow2.f32 %v1374_v53 }
 0x4cc   :  { %2450 = vset.pattern.permute.xlu1 %v4117_v36  ;;  %v1566_v35 = vmul.f32 1.442695, %v1555_v33  ;;  %v1747_v60 = vmul.f32 %v3042_v10, %v2952_v4  ;;  %2631 = vpow2.f32 %v1470_v42  ;;  %v1662_v24 = vmul.f32 1.442695, %v1651_v46 }
 0x4cd   :  { %1413 = vperm.xlu1 %2450, %v3336_v20   ;;  %v1927_v11 = vadd.f32 %v1918_v29, %v1831_v25  ;;  %v3712_v25 = vpop.permute.xlu0 %1305  ;;  %v1843_v53 = vmul.f32 %v3045_v12, %v2952_v4  ;;  %v4122_v29 = vld [vmem:[#allocation39_spill] sm:$0xff] }
 0x4ce   :  { %2633 = vpow2.f32 %v1566_v35 }
 0x4cf   :  { %2635 = vpow2.f32 %v1662_v24  ;;  %v1854_v4 = vmul.f32 1.442695, %v1843_v53 }
 0x4d0   :  { %v2022_v44 = vpop.f32.mrf.mxu0  ;;  %v1302_v37 = vpop.permute.xlu1 %1301 }
 0x4d1   :  { %v2068_v18 = vmul.f32 %v3675_v39, %v2022_v44  ;;  %2451 = vset.pattern.permute.xlu1 %v4107_v40 }
 0x4d2   :  { %v2330_v30 = vpop.f32.mrf.mxu0  ;;  %1509 = vperm.xlu1 %2451, %v3336_v20  }
 0x4d3   :  { %v2077_v16 = vmul.f32 %v2068_v18, %v1926_v7  ;;  %v4120_v7 = vld [vmem:[#allocation38_spill] sm:$0xff]  ;;  %v1758_v30 = vmul.f32 1.442695, %v1747_v60  ;;  %v3731_v60 = vpop.permute.xlu0 %1401 }
 0x4d4   :  { %v2027_v17 = vpop.f32.mrf.mxu0  ;;  %v1142_v18 = vmul.f32 %v4120_v7, %v3641_v1  ;;  %v1238_v1 = vmul.f32 %v3552_v32, %v3666_v27 }
 0x4d5   :  { %v2136_v13 = vadd.f32 %v2127_v8, %v2077_v16  ;;  %v2069_v58 = vmul.f32 %v3675_v39, %v2027_v17  ;;  %v1398_v31 = vpop.permute.xlu1 %1397  ;;  %v4121_v8 = vmov 7   ;;  %v1046_v16 = vmul.f32 %v4122_v29, %v3620_v43  ;;  %v2622_v17 = vpop.eup %2621 }
 0x4d6   :  { %v2333_v0 = vpop.f32.mrf.mxu0  ;;  %2452 = vset.pattern.permute.xlu1 %v4119_v9  ;;  %v2624_v46 = vpop.eup %2623  ;;  %2637 = vpow2.f32 %v1758_v30  ;;  %v1430_v27 = vmul.f32 %v3589_v56, %v1398_v31 }
 0x4d7   :  { %2145 = vst [vmem:[%s4022_s5] sm:$0xff] %v2136_v13  ;;  %v2078_v49 = vmul.f32 %v2069_v58, %v1927_v11  ;;  %1605 = vperm.xlu1 %2452, %v3336_v20   ;;  %v1151_v13 = vmul.f32 %v2622_v17, %v1142_v18  ;;  %v1334_v11 = vmul.f32 %v3571_v41, %v1302_v37  ;;  %2639 = vpow2.f32 %v1854_v4  ;;  %v3751_v4 = vpop.permute.xlu0 %1497 }
 0x4d8   :  { %v3710_v22 = vpop.f32.mrf.mxu0  ;;  %v1055_v35 = vmul.f32 %v2624_v46, %v1046_v16 }
 0x4d9   :  { %v2137_v44 = vadd.f32 %v2128_v23, %v2078_v49  ;;  %v2626_v23 = vpop.eup %2625  ;;  %v4123_v49 = vmov 8  }
 0x4da   :  { %v1494_v3 = vpop.permute.xlu1 %1493  ;;  %v2336_v26 = vpop.f32.mrf.mxu0  ;;  %v1247_v43 = vmul.f32 %v2626_v23, %v1238_v1  ;;  %v1160_v30 = vadd.f32 %v1151_v13, %v1055_v35 }
 0x4db   :  { %2146 = vst [vmem:[%s4022_s5 + $0x8] sm:$0xff] %v2137_v44  ;;  %2453 = vset.pattern.permute.xlu1 %v4121_v8  ;;  %v2628_v24 = vpop.eup %2627  ;;  %v4125_v26 = vld [vmem:[#allocation5_spill] sm:$0xff]  ;;  %v1526_v17 = vmul.f32 %v3605_v6, %v1494_v3 }
 0x4dc   :  { %v3722_v33 = vpop.f32.mrf.mxu0  ;;  %1701 = vperm.xlu1 %2453, %v3336_v20   ;;  %v971_v18 = vmul.f32 %v3470_v61, %v4125_v26  ;;  %v1343_v53 = vmul.f32 %v2628_v24, %v1334_v11  ;;  %v2630_v16 = vpop.eup %2629  ;;  %v1076_v31 = vmul.f32 %v3465_v2, %v4125_v26  ;;  %v1256_v46 = vadd.f32 %v1247_v43, %v1160_v30 }
 0x4dd   :  { %v1439_v23 = vmul.f32 %v2630_v16, %v1430_v27  ;;  %v2632_v13 = vpop.eup %2631  ;;  %v1172_v3 = vmul.f32 %v3487_v52, %v4125_v26  ;;  %v1268_v30 = vmul.f32 %v3492_v19, %v4125_v26 }
 0x4de   :  { %v2339_v42 = vpop.f32.mrf.mxu0  ;;  %v1352_v35 = vadd.f32 %v1343_v53, %v1256_v46  ;;  %v1535_v24 = vmul.f32 %v2632_v13, %v1526_v17  ;;  %v983_v27 = vmul.f32 1.442695, %v971_v18  ;;  %v1364_v18 = vmul.f32 %v3498_v28, %v4125_v26 }
 0x4df   :  { %v1590_v58 = vpop.permute.xlu1 %1589 }
 0x4e0   :  { %v2042_v0 = vpop.f32.mrf.mxu0  ;;  %2454 = vset.pattern.permute.xlu1 %v4123_v49  ;;  %v1184_v49 = vmul.f32 1.442695, %v1172_v3  ;;  %2641 = vpow2.f32 %v983_v27  ;;  %v3766_v3 = vpop.permute.xlu0 %1593  ;;  %v1376_v27 = vmul.f32 1.442695, %v1364_v18  ;;  %v1748_v18 = vmul.f32 %v3042_v10, %v4125_v26 }
 0x4e1   :  { %v3735_v44 = vmul.f32 %v3675_v39, %v2042_v0  ;;  %1797 = vperm.xlu1 %2454, %v3336_v20   ;;  %v1622_v0 = vmul.f32 %v3618_v51, %v1590_v58  ;;  %v2634_v58 = vpop.eup %2633 }
 0x4e2   :  { %v2342_v37 = vpop.f32.mrf.mxu0 }
 0x4e3   :  { %4124 = vst [vmem:[#allocation12_spill] sm:$0xff] %v3735_v44  ;;  %v1631_v44 = vmul.f32 %v2634_v58, %v1622_v0  ;;  %v1460_v0 = vmul.f32 %v3024_v62, %v4125_v26 }
 0x4e4   :  { %v1686_v42 = vpop.permute.xlu1 %1685  ;;  %v2047_v1 = vpop.f32.mrf.mxu0 }
 0x4e5   :  { %v3745_v37 = vmul.f32 %v3675_v39, %v2047_v1  ;;  %2455 = vset.pattern.permute.xlu1 %v4108_v5  ;;  %v1718_v43 = vmul.f32 %v3626_v34, %v1686_v42  ;;  %v1088_v1 = vmul.f32 1.442695, %v1076_v31 }
 0x4e6   :  { %v2345_v11 = vpop.f32.mrf.mxu0  ;;  %1893 = vperm.xlu1 %2455, %v3336_v20   ;;  %v2636_v20 = vpop.eup %2635 }
 0x4e7   :  { %4126 = vst [vmem:[#allocation38_spill] sm:$0xff] %v3745_v37  ;;  %v1448_v37 = vadd.f32 %v1439_v23, %v1352_v35  ;;  %v1727_v46 = vmul.f32 %v2636_v20, %v1718_v43  ;;  %v2638_v31 = vpop.eup %2637  ;;  %v1280_v23 = vmul.f32 1.442695, %v1268_v30  ;;  %2643 = vpow2.f32 %v1088_v1 }
 0x4e8   :  { %v2052_v16 = vpop.f32.mrf.mxu0  ;;  %2645 = vpow2.f32 %v1184_v49  ;;  %v2640_v1 = vpop.eup %2639 }
 0x4e9   :  { %v3757_v5 = vmul.f32 %v3675_v39, %v2052_v16  ;;  %v1782_v11 = vpop.permute.xlu1 %1781  ;;  %v1544_v42 = vadd.f32 %v1535_v24, %v1448_v37  ;;  %v2089_v37 = vadd.s32 16, %v2901_v21  ;;  %v4127_v16 = vld [vmem:[#allocation37_spill] sm:$0xff]  ;;  %2647 = vpow2.f32 %v1280_v23 }
 0x4ea   :  { %v1814_v53 = vmul.f32 %v3633_v50, %v1782_v11  ;;  %2456 = vset.pattern.permute.xlu1 %v4101_v48  ;;  %v2348_v17 = vpop.f32.mrf.mxu0  ;;  %v1652_v11 = vmul.f32 %v4118_v45, %v4125_v26  ;;  %2649 = vpow2.f32 %v1376_v27  ;;  %v1844_v45 = vmul.f32 %v3045_v12, %v4125_v26 }
 0x4eb   :  { %1032 = vperm.xlu1 %2456, %v3346_v59   ;;  %v1640_v35 = vadd.f32 %v1631_v44, %v1544_v42  ;;  %v1556_v59 = vmul.f32 %v3026_v63, %v4125_v26  ;;  %v1472_v44 = vmul.f32 1.442695, %v1460_v0  ;;  %vm2100_vm6 = vcmp.eq.s32.totalorder %v2089_v37, %v3662_v57 }
 0x4ec   :  { %v2057_v13 = vpop.f32.mrf.mxu0  ;;  %v1823_v48 = vmul.f32 %v2638_v31, %v1814_v53  ;;  %v2070_v31 = vmul.f32 %v3675_v39, %v3710_v22  ;;  %v1856_v26 = vmul.f32 1.442695, %v1844_v45 }
 0x4ed   :  { %v3769_v58 = vmul.f32 %v3675_v39, %v2057_v13  ;;  %v1736_v30 = vadd.f32 %v1727_v46, %v1640_v35  ;;  %v1568_v49 = vmul.f32 1.442695, %v1556_v59  ;;  %v3784_v46 = vpop.permute.xlu0 %1689  ;;  %v2129_v13 = vsel %vm2100_vm6, %v3683_v55, 0.0  ;;  %v4128_v35 = vld [vmem:[#allocation6_spill] sm:$0xff] }
 0x4ee   :  { %v1878_v24 = vpop.permute.xlu1 %1877  ;;  %v2351_v43 = vpop.f32.mrf.mxu0  ;;  %v972_v10 = vmul.f32 %v3470_v61, %v4128_v35  ;;  %2651 = vpow2.f32 %v1472_v44  ;;  %v1077_v37 = vmul.f32 %v3465_v2, %v4128_v35  ;;  %v1760_v59 = vmul.f32 1.442695, %v1748_v18 }
 0x4ef   :  { %v1910_v62 = vmul.f32 %v3639_v38, %v1878_v24  ;;  %1037 = vperm.xlu1 %2456, %v4127_v16   ;;  %v1832_v53 = vadd.f32 %v1823_v48, %v1736_v30  ;;  %v1664_v48 = vmul.f32 1.442695, %v1652_v11  ;;  %v1173_v12 = vmul.f32 %v3487_v52, %v4128_v35  ;;  %v2642_v43 = vpop.eup %2641 }
 0x4f0   :  { %v2062_v20 = vpop.f32.mrf.mxu0  ;;  %2653 = vpow2.f32 %v1568_v49  ;;  %v985_v30 = vmul.f32 1.442695, %v972_v10  ;;  %v1239_v44 = vmul.f32 %v3552_v32, %v3699_v15  ;;  %v1335_v49 = vmul.f32 %v3571_v41, %v3712_v25 }
 0x4f1   :  { %v1919_v63 = vmul.f32 %v2640_v1, %v1910_v62  ;;  %v3780_v17 = vmul.f32 %v3675_v39, %v2062_v20  ;;  %v1269_v62 = vmul.f32 %v3492_v19, %v4128_v35  ;;  %2655 = vpow2.f32 %v1664_v48  ;;  %v1786_v11 = vpop.permute.xlu0 %1785 }
 0x4f2   :  { %v2354_v42 = vpop.f32.mrf.mxu0  ;;  %v1090_v20 = vmul.f32 1.442695, %v1077_v37  ;;  %2657 = vpow2.f32 %v1760_v59  ;;  %v1527_v48 = vmul.f32 %v3605_v6, %v3751_v4  ;;  %v1719_v4 = vmul.f32 %v3626_v34, %v3784_v46 }
 0x4f3   :  { %v1928_v23 = vadd.f32 %v1919_v63, %v1832_v53  ;;  %v1013_v0 = vpop.permute.xlu1 %1012  ;;  %2465 = vset.pattern.permute.xlu1 %v4104_v14  ;;  %v1365_v63 = vmul.f32 %v3498_v28, %v4128_v35  ;;  %2659 = vpow2.f32 %v1856_v26  ;;  %v2090_v46 = vadd.s32 24, %v2901_v21 }
 0x4f4   :  { %1133 = vperm.xlu1 %2465, %v4127_v16   ;;  %v1047_v24 = vmul.f32 %v4122_v29, %v1013_v0  ;;  %v2644_v1 = vpop.eup %2643  ;;  %2661 = vpow2.f32 %v985_v30  ;;  %v1431_v0 = vmul.f32 %v3589_v56, %v3731_v60  ;;  %v1623_v60 = vmul.f32 %v3618_v51, %v3766_v3 }
 0x4f5   :  { %v2079_v22 = vmul.f32 %v2070_v31, %v1928_v23  ;;  %v2646_v42 = vpop.eup %2645  ;;  %v1282_v31 = vmul.f32 1.442695, %v1269_v62  ;;  %2663 = vpow2.f32 %v1090_v20  ;;  %v1378_v25 = vmul.f32 1.442695, %v1365_v63  ;;  %v1882_v37 = vpop.permute.xlu0 %1881 }
 0x4f6   :  { %v1056_v15 = vmul.f32 %v2642_v43, %v1047_v24  ;;  %v2648_v45 = vpop.eup %2647  ;;  %v1248_v23 = vmul.f32 %v2646_v42, %v1239_v44  ;;  %v1815_v44 = vmul.f32 %v3633_v50, %v1786_v11  ;;  %vm2101_vm7 = vcmp.eq.s32.totalorder %v2090_v46, %v3662_v57 }
 0x4f7   :  { %v2138_v14 = vadd.f32 %v2129_v13, %v2079_v22  ;;  %v1344_v35 = vmul.f32 %v2648_v45, %v1335_v49  ;;  %v2650_v59 = vpop.eup %2649 }
 0x4f8   :  { %v1114_v27 = vpop.permute.xlu1 %1113  ;;  %2466 = vset.pattern.permute.xlu1 %v4102_v47  ;;  %v1186_v47 = vmul.f32 1.442695, %v1173_v12  ;;  %v1440_v12 = vmul.f32 %v2650_v59, %v1431_v0 }
 0x4f9   :  { %2147 = vst [vmem:[%s4022_s5 + $0x10] sm:$0xff] %v2138_v14  ;;  %v1143_v53 = vmul.f32 %v4120_v7, %v1114_v27  ;;  %1229 = vperm.xlu1 %2466, %v4127_v16   ;;  %v1118_v3 = vpop.permute.xlu0 %1117 }
 0x4fa   :  { %2665 = vpow2.f32 %v1186_v47  ;;  %v1144_v11 = vmul.f32 %v4120_v7, %v1118_v3 }
 0x4fb   :  { %v1152_v18 = vmul.f32 %v2644_v1, %v1143_v53  ;;  %2667 = vpow2.f32 %v1282_v31  ;;  %v2652_v14 = vpop.eup %2651 }
 0x4fc   :  { %2669 = vpow2.f32 %v1378_v25  ;;  %v1536_v27 = vmul.f32 %v2652_v14, %v1527_v48 }
 0x4fd   :  { %v1161_v13 = vadd.f32 %v1152_v18, %v1056_v15  ;;  %v1018_v10 = vpop.permute.xlu1 %1017  ;;  %2467 = vset.pattern.permute.xlu1 %v4115_v54  ;;  %v4129_v54 = vld [vmem:[#allocation17_spill] sm:$0xff]  ;;  %v2654_v62 = vpop.eup %2653  ;;  %v1911_v18 = vmul.f32 %v3639_v38, %v1882_v37 }
 0x4fe   :  { %1325 = vperm.xlu1 %2467, %v4127_v16   ;;  %v1474_v43 = vmul.f32 1.442695, %v4129_v54  ;;  %v1632_v1 = vmul.f32 %v2654_v62, %v1623_v60  ;;  %v2656_v53 = vpop.eup %2655  ;;  %v1048_v47 = vmul.f32 %v4122_v29, %v1018_v10  ;;  %v2071_v54 = vmul.f32 %v3675_v39, %v3722_v33  ;;  %v4132_v39 = vld [vmem:[#allocation20_spill] sm:$0xff] }
 0x4ff   :  { %v1257_v22 = vadd.f32 %v1248_v23, %v1161_v13  ;;  %v2658_v49 = vpop.eup %2657  ;;  %v1728_v15 = vmul.f32 %v2656_v53, %v1719_v4  ;;  %v2130_v4 = vsel %vm2101_vm7, %v3683_v55, 0.0  ;;  %v1762_v33 = vmul.f32 1.442695, %v4132_v39 }
 0x500   :  { %2671 = vpow2.f32 %v1474_v43  ;;  %v2660_v45 = vpop.eup %2659  ;;  %v1824_v13 = vmul.f32 %v2658_v49, %v1815_v44 }
 0x501   :  { %v1353_v26 = vadd.f32 %v1344_v35, %v1257_v22  ;;  %v2662_v0 = vpop.eup %2661  ;;  %v1920_v22 = vmul.f32 %v2660_v45, %v1911_v18 }
 0x502   :  { %v1214_v24 = vpop.permute.xlu1 %1213  ;;  %2468 = vset.pattern.permute.xlu1 %v4117_v36  ;;  %v4130_v36 = vld [vmem:[#allocation18_spill] sm:$0xff]  ;;  %v2664_v25 = vpop.eup %2663  ;;  %v1057_v35 = vmul.f32 %v2662_v0, %v1048_v47 }
 0x503   :  { %v1449_v30 = vadd.f32 %v1440_v12, %v1353_v26  ;;  %1421 = vperm.xlu1 %2468, %v4127_v16   ;;  %v1570_v63 = vmul.f32 1.442695, %v4130_v36  ;;  %v1240_v23 = vmul.f32 %v3552_v32, %v1214_v24  ;;  %v4131_v26 = vld [vmem:[#allocation19_spill] sm:$0xff] }
 0x504   :  { %v1666_v14 = vmul.f32 1.442695, %v4131_v26 }
 0x505   :  { %v1545_v20 = vadd.f32 %v1536_v27, %v1449_v30  ;;  %2673 = vpow2.f32 %v1570_v63 }
 0x506   :  { %2675 = vpow2.f32 %v1666_v14 }
 0x507   :  { %v1641_v42 = vadd.f32 %v1632_v1, %v1545_v20  ;;  %v1310_v31 = vpop.permute.xlu1 %1309  ;;  %2469 = vset.pattern.permute.xlu1 %v4107_v40  ;;  %v2666_v37 = vpop.eup %2665  ;;  %v1153_v40 = vmul.f32 %v2664_v25, %v1144_v11  ;;  %2677 = vpow2.f32 %v1762_v33 }
 0x508   :  { %1517 = vperm.xlu1 %2469, %v4127_v16   ;;  %v1336_v48 = vmul.f32 %v3571_v41, %v1310_v31  ;;  %v1249_v12 = vmul.f32 %v2666_v37, %v1240_v23  ;;  %v2668_v24 = vpop.eup %2667  ;;  %v4133_v31 = vmov 8  }
 0x509   :  { %v1737_v10 = vadd.f32 %v1728_v15, %v1641_v42  ;;  %v1162_v30 = vadd.f32 %v1153_v40, %v1057_v35  ;;  %v2670_v1 = vpop.eup %2669  ;;  %v4135_v35 = vmov 9  }
 0x50a   :  { %v1345_v62 = vmul.f32 %v2668_v24, %v1336_v48  ;;  %v4136_v48 = vld [vmem:[#allocation7_spill] sm:$0xff] }
 0x50b   :  { %v1833_v59 = vadd.f32 %v1824_v13, %v1737_v10  ;;  %v1258_v3 = vadd.f32 %v1249_v12, %v1162_v30  ;;  %v973_v37 = vmul.f32 %v3470_v61, %v4136_v48  ;;  %v1270_v24 = vmul.f32 %v3492_v19, %v4136_v48 }
 0x50c   :  { %v1406_v60 = vpop.permute.xlu1 %1405  ;;  %2470 = vset.pattern.permute.xlu1 %v4119_v9  ;;  %v3845_v9 = vpop.permute.xlu0 %1217 }
 0x50d   :  { %v1929_v43 = vadd.f32 %v1920_v22, %v1833_v59  ;;  %v1432_v27 = vmul.f32 %v3589_v56, %v1406_v60  ;;  %1613 = vperm.xlu1 %2470, %v4127_v16   ;;  %v1354_v36 = vadd.f32 %v1345_v62, %v1258_v3  ;;  %v2672_v49 = vpop.eup %2671  ;;  %v1078_v59 = vmul.f32 %v3465_v2, %v4136_v48 }
 0x50e   :  { %v1174_v60 = vmul.f32 %v3487_v52, %v4136_v48  ;;  %v987_v14 = vmul.f32 1.442695, %v973_v37  ;;  %v1366_v62 = vmul.f32 %v3498_v28, %v4136_v48  ;;  %v1284_v3 = vmul.f32 1.442695, %v1270_v24  ;;  %v4143_v24 = vld [vmem:[#allocation16_spill] sm:$0xff] }
 0x50f   :  { %v2080_v44 = vmul.f32 %v2071_v54, %v1929_v43  ;;  %v1441_v20 = vmul.f32 %v2670_v1, %v1432_v27  ;;  %v1092_v27 = vmul.f32 1.442695, %v1078_v59 }
 0x510   :  { %v3856_v11 = vpop.permute.xlu0 %1313  ;;  %v1380_v39 = vmul.f32 1.442695, %v1366_v62 }
 0x511   :  { %v2139_v53 = vadd.f32 %v2130_v4, %v2080_v44  ;;  %v1502_v47 = vpop.permute.xlu1 %1501  ;;  %2471 = vset.pattern.permute.xlu1 %v4121_v8  ;;  %v1450_v15 = vadd.f32 %v1441_v20, %v1354_v36  ;;  %v4134_v8 = vld [vmem:[#allocation22_spill] sm:$0xff]  ;;  %v2091_v20 = vadd.s32 32, %v2901_v21 }
 0x512   :  { %v1528_v63 = vmul.f32 %v3605_v6, %v1502_v47  ;;  %1709 = vperm.xlu1 %2471, %v4127_v16   ;;  %v1858_v45 = vmul.f32 1.442695, %v4134_v8  ;;  %v2674_v0 = vpop.eup %2673 }
 0x513   :  { %2148 = vst [vmem:[%s4022_s5 + $0x18] sm:$0xff] %v2139_v53  ;;  %v2676_v40 = vpop.eup %2675  ;;  %vm2102_vm8 = vcmp.eq.s32.totalorder %v2091_v20, %v3662_v57 }
 0x514   :  { %v1537_v18 = vmul.f32 %v2672_v49, %v1528_v63  ;;  %2679 = vpow2.f32 %v1858_v45  ;;  %v1410_v12 = vpop.permute.xlu0 %1409  ;;  %v2678_v30 = vpop.eup %2677  ;;  %v4137_v63 = vld [vmem:[#allocation11_spill] sm:$0xff]  ;;  %v2131_v45 = vsel %vm2102_vm8, %v3683_v55, 0.0 }
 0x515   :  { %2681 = vpow2.f32 %v987_v14  ;;  %v1476_v49 = vmul.f32 1.442695, %v4137_v63  ;;  %v1241_v14 = vmul.f32 %v3552_v32, %v3845_v9 }
 0x516   :  { %v1546_v46 = vadd.f32 %v1537_v18, %v1450_v15  ;;  %v1598_v42 = vpop.permute.xlu1 %1597  ;;  %2472 = vset.pattern.permute.xlu1 %v4133_v31  ;;  %2683 = vpow2.f32 %v1092_v27 }
 0x517   :  { %v1624_v23 = vmul.f32 %v3618_v51, %v1598_v42  ;;  %1805 = vperm.xlu1 %2472, %v4127_v16  }
 0x518   :  { %v1506_v1 = vpop.permute.xlu0 %1505 }
 0x519   :  { %v1633_v13 = vmul.f32 %v2674_v0, %v1624_v23  ;;  %v4139_v23 = vld [vmem:[#allocation14_spill] sm:$0xff] }
 0x51a   :  { %v1668_v0 = vmul.f32 1.442695, %v4139_v23 }
 0x51b   :  { %v1642_v10 = vadd.f32 %v1633_v13, %v1546_v46  ;;  %v1694_v25 = vpop.permute.xlu1 %1693  ;;  %2474 = vset.pattern.permute.xlu1 %v4135_v35  ;;  %v4138_v46 = vld [vmem:[#allocation13_spill] sm:$0xff]  ;;  %v4140_v13 = vld [vmem:[#allocation12_spill] sm:$0xff] }
 0x51c   :  { %v1720_v22 = vmul.f32 %v3626_v34, %v1694_v25  ;;  %1901 = vperm.xlu1 %2474, %v4127_v16   ;;  %v1188_v16 = vmul.f32 1.442695, %v1174_v60  ;;  %v1602_v18 = vpop.permute.xlu0 %1601  ;;  %v1572_v42 = vmul.f32 1.442695, %v4138_v46  ;;  %v4141_v25 = vld [vmem:[#allocation15_spill] sm:$0xff]  ;;  %v1529_v46 = vmul.f32 %v3605_v6, %v1506_v1 }
 0x51d   :  { %v1764_v35 = vmul.f32 1.442695, %v4141_v25 }
 0x51e   :  { %v1729_v26 = vmul.f32 %v2676_v40, %v1720_v22  ;;  %2685 = vpow2.f32 %v1188_v16  ;;  %v4142_v40 = vld [vmem:[#allocation8_spill] sm:$0xff]  ;;  %v1337_v16 = vmul.f32 %v3571_v41, %v3856_v11 }
 0x51f   :  { %2687 = vpow2.f32 %v1284_v3  ;;  %v1079_v60 = vmul.f32 %v3465_v2, %v4142_v40  ;;  %v1271_v20 = vmul.f32 %v3492_v19, %v4142_v40  ;;  %v1367_v11 = vmul.f32 %v3498_v28, %v4142_v40 }
 0x520   :  { %v1738_v54 = vadd.f32 %v1729_v26, %v1642_v10  ;;  %v1790_v43 = vpop.permute.xlu1 %1789  ;;  %2689 = vpow2.f32 %v1380_v39  ;;  %v1698_v22 = vpop.permute.xlu0 %1697 }
 0x521   :  { %v1816_v4 = vmul.f32 %v3633_v50, %v1790_v43  ;;  %v2680_v36 = vpop.eup %2679  ;;  %2691 = vpow2.f32 %v1476_v49  ;;  %v1094_v3 = vmul.f32 1.442695, %v1079_v60  ;;  %v1382_v25 = vmul.f32 1.442695, %v1367_v11 }
 0x522   :  { %2693 = vpow2.f32 %v1572_v42  ;;  %v2682_v26 = vpop.eup %2681 }
 0x523   :  { %v1825_v44 = vmul.f32 %v2678_v30, %v1816_v4  ;;  %2695 = vpow2.f32 %v1668_v0  ;;  %v2684_v27 = vpop.eup %2683  ;;  %v974_v4 = vmul.f32 %v3470_v61, %v4142_v40  ;;  %v1175_v30 = vmul.f32 %v3487_v52, %v4142_v40 }
 0x524   :  { %2697 = vpow2.f32 %v1764_v35  ;;  %v1794_v63 = vpop.permute.xlu0 %1793  ;;  %v1625_v0 = vmul.f32 %v3618_v51, %v1602_v18  ;;  %v4144_v18 = vld [vmem:[#allocation27_spill] sm:$0xff] }
 0x525   :  { %v1834_v53 = vadd.f32 %v1825_v44, %v1738_v54  ;;  %v1886_v47 = vpop.permute.xlu1 %1885  ;;  %v1860_v54 = vmul.f32 1.442695, %v4143_v24  ;;  %v989_v49 = vmul.f32 1.442695, %v974_v4  ;;  %v1817_v60 = vmul.f32 %v3633_v50, %v1794_v63 }
 0x526   :  { %v1912_v33 = vmul.f32 %v3639_v38, %v1886_v47  ;;  %v1433_v47 = vmul.f32 %v3589_v56, %v1410_v12  ;;  %v1478_v24 = vmul.f32 1.442695, %v4144_v18 }
 0x527   :  { %2699 = vpow2.f32 %v1860_v54 }
 0x528   :  { %v1921_v15 = vmul.f32 %v2680_v36, %v1912_v33  ;;  %2701 = vpow2.f32 %v1094_v3  ;;  %v1890_v1 = vpop.permute.xlu0 %1889 }
 0x529   :  { %2703 = vpow2.f32 %v989_v49 }
 0x52a   :  { %v1930_v31 = vadd.f32 %v1921_v15, %v1834_v53  ;;  %v1023_v8 = vpop.permute.xlu1 %1022 }
 0x52b   :  { %v1049_v37 = vmul.f32 %v4122_v29, %v1023_v8  ;;  %v2686_v44 = vpop.eup %2685 }
 0x52c   :  { %v2081_v10 = vmul.f32 %v4140_v13, %v1930_v31  ;;  %v1250_v53 = vmul.f32 %v2686_v44, %v1241_v14  ;;  %v2688_v36 = vpop.eup %2687  ;;  %v1190_v31 = vmul.f32 1.442695, %v1175_v30  ;;  %v3911_v3 = vpop.permute.xlu0 %1129 }
 0x52d   :  { %v1058_v9 = vmul.f32 %v2682_v26, %v1049_v37  ;;  %v1346_v15 = vmul.f32 %v2688_v36, %v1337_v16  ;;  %v2690_v8 = vpop.eup %2689 }
 0x52e   :  { %v2140_v48 = vadd.f32 %v2131_v45, %v2081_v10  ;;  %v1286_v45 = vmul.f32 1.442695, %v1271_v20  ;;  %v1442_v23 = vmul.f32 %v2690_v8, %v1433_v47  ;;  %v2692_v13 = vpop.eup %2691  ;;  %2705 = vpow2.f32 %v1190_v31  ;;  %v4146_v31 = vld [vmem:[#allocation38_spill] sm:$0xff] }
 0x52f   :  { %v1122_v59 = vpop.permute.xlu1 %1121  ;;  %v1538_v35 = vmul.f32 %v2692_v13, %v1529_v46 }
 0x530   :  { %2149 = vst [vmem:[%s4022_s5 + $0x20] sm:$0xff] %v2140_v48  ;;  %v1145_v43 = vmul.f32 %v4120_v7, %v1122_v59  ;;  %v1721_v48 = vmul.f32 %v3626_v34, %v1698_v22  ;;  %v2694_v59 = vpop.eup %2693  ;;  %2707 = vpow2.f32 %v1286_v45 }
 0x531   :  { %v1634_v40 = vmul.f32 %v2694_v59, %v1625_v0  ;;  %v2696_v14 = vpop.eup %2695  ;;  %2709 = vpow2.f32 %v1382_v25 }
 0x532   :  { %v1154_v62 = vmul.f32 %v2684_v27, %v1145_v43  ;;  %v1730_v54 = vmul.f32 %v2696_v14, %v1721_v48  ;;  %v1913_v43 = vmul.f32 %v3639_v38, %v1890_v1  ;;  %v2092_v27 = vadd.s32 40, %v2901_v21  ;;  %v2698_v30 = vpop.eup %2697 }
 0x533   :  { %v1826_v16 = vmul.f32 %v2698_v30, %v1817_v60  ;;  %2711 = vpow2.f32 %v1478_v24  ;;  %v4148_v24 = vld [vmem:[#allocation30_spill] sm:$0xff] }
 0x534   :  { %v1163_v39 = vadd.f32 %v1154_v62, %v1058_v9  ;;  %v1028_v33 = vpop.permute.xlu1 %1027  ;;  %v2700_v62 = vpop.eup %2699  ;;  %vm2103_vm9 = vcmp.eq.s32.totalorder %v2092_v27, %v3662_v57 }
 0x535   :  { %v1922_v44 = vmul.f32 %v2700_v62, %v1913_v43  ;;  %v1050_v49 = vmul.f32 %v4122_v29, %v1028_v33  ;;  %v2132_v46 = vsel %vm2103_vm9, %v3683_v55, 0.0  ;;  %v4147_v33 = vld [vmem:[#allocation29_spill] sm:$0xff] }
 0x536   :  { %v1259_v42 = vadd.f32 %v1250_v53, %v1163_v39  ;;  %v4145_v39 = vld [vmem:[#allocation28_spill] sm:$0xff]  ;;  %v1670_v48 = vmul.f32 1.442695, %v4147_v33 }
 0x537   :  { %v1574_v36 = vmul.f32 1.442695, %v4145_v39 }
 0x538   :  { %v1355_v12 = vadd.f32 %v1346_v15, %v1259_v42  ;;  %v2702_v15 = vpop.eup %2701 }
 0x539   :  { %v1126_v10 = vpop.permute.xlu1 %1125  ;;  %v2704_v42 = vpop.eup %2703  ;;  %2713 = vpow2.f32 %v1574_v36 }
 0x53a   :  { %v1451_v37 = vadd.f32 %v1442_v23, %v1355_v12  ;;  %v1146_v53 = vmul.f32 %v4120_v7, %v1126_v10  ;;  %v3921_v12 = vpop.permute.xlu0 %1225  ;;  %v1059_v10 = vmul.f32 %v2704_v42, %v1050_v49  ;;  %2715 = vpow2.f32 %v1670_v48 }
 0x53b   :  { %v2706_v0 = vpop.eup %2705 }
 0x53c   :  { %v1547_v26 = vadd.f32 %v1538_v35, %v1451_v37  ;;  %v1155_v45 = vmul.f32 %v2702_v15, %v1146_v53  ;;  %v4150_v53 = vld [vmem:[#allocation31_spill] sm:$0xff] }
 0x53d   :  { %v2708_v37 = vpop.eup %2707 }
 0x53e   :  { %v1643_v4 = vadd.f32 %v1634_v40, %v1547_v26  ;;  %v1222_v22 = vpop.permute.xlu1 %1221  ;;  %v2710_v1 = vpop.eup %2709  ;;  %v1164_v40 = vadd.f32 %v1155_v45, %v1059_v10 }
 0x53f   :  { %v1242_v11 = vmul.f32 %v3552_v32, %v1222_v22  ;;  %v3929_v27 = vpop.permute.xlu0 %1321 }
 0x540   :  { %v1739_v9 = vadd.f32 %v1730_v54, %v1643_v4  ;;  %v1766_v54 = vmul.f32 1.442695, %v4148_v24  ;;  %v2712_v43 = vpop.eup %2711  ;;  %v4152_v24 = vld [vmem:[#allocation23_spill] sm:$0xff] }
 0x541   :  { %v1251_v25 = vmul.f32 %v2706_v0, %v1242_v11 }
 0x542   :  { %v1835_v20 = vadd.f32 %v1826_v16, %v1739_v9  ;;  %2717 = vpow2.f32 %v1766_v54  ;;  %v4149_v9 = vld [vmem:[#allocation9_spill] sm:$0xff]  ;;  %v1576_v54 = vmul.f32 1.442695, %v4152_v24 }
 0x543   :  { %v1318_v47 = vpop.permute.xlu1 %1317  ;;  %v1260_v26 = vadd.f32 %v1251_v25, %v1164_v40  ;;  %v1080_v62 = vmul.f32 %v3465_v2, %v4149_v9  ;;  %v975_v36 = vmul.f32 %v3470_v61, %v4149_v9  ;;  %v3938_v49 = vpop.permute.xlu0 %1417  ;;  %v1176_v11 = vmul.f32 %v3487_v52, %v4149_v9 }
 0x544   :  { %v1931_v63 = vadd.f32 %v1922_v44, %v1835_v20  ;;  %v1338_v23 = vmul.f32 %v3571_v41, %v1318_v47  ;;  %v1862_v47 = vmul.f32 1.442695, %v4150_v53  ;;  %v1272_v42 = vmul.f32 %v3492_v19, %v4149_v9  ;;  %v4156_v53 = vld [vmem:[#allocation25_spill] sm:$0xff] }
 0x545   :  { %v991_v45 = vmul.f32 1.442695, %v975_v36  ;;  %v1368_v10 = vmul.f32 %v3498_v28, %v4149_v9  ;;  %v2093_v40 = vadd.s32 48, %v2901_v21  ;;  %v4153_v9 = vld [vmem:[#allocation24_spill] sm:$0xff] }
 0x546   :  { %v2082_v8 = vmul.f32 %v4146_v31, %v1931_v63  ;;  %v1347_v60 = vmul.f32 %v2708_v37, %v1338_v23  ;;  %v2714_v63 = vpop.eup %2713  ;;  %2719 = vpow2.f32 %v1862_v47  ;;  %v1288_v33 = vmul.f32 1.442695, %v1272_v42 }
 0x547   :  { %v2716_v0 = vpop.eup %2715  ;;  %v3947_v25 = vpop.permute.xlu0 %1513  ;;  %vm2104_vm10 = vcmp.eq.s32.totalorder %v2093_v40, %v3662_v57  ;;  %vm2113_vm11 = vcmp.lt.s32.totalorder %v2093_v40, 50  ;;  %v1672_v21 = vmul.f32 1.442695, %v4153_v9  ;;  %v1768_v47 = vmul.f32 1.442695, %v4156_v53 }
 0x548   :  { %v2141_v13 = vadd.f32 %v2132_v46, %v2082_v8  ;;  %v1414_v35 = vpop.permute.xlu1 %1413  ;;  %v1356_v4 = vadd.f32 %v1347_v60, %v1260_v26  ;;  %v1096_v46 = vmul.f32 1.442695, %v1080_v62  ;;  %v4151_v26 = vld [vmem:[#allocation21_spill] sm:$0xff]  ;;  %vm3956_vm12 = vmand %vm2104_vm10, %vm2113_vm11 }
 0x549   :  { %v1434_v59 = vmul.f32 %v3589_v56, %v1414_v35 }
 0x54a   :  { %2150 = vst [vmem:[%s4022_s5 + $0x28] sm:$0xff] %v2141_v13  ;;  %v1192_v13 = vmul.f32 1.442695, %v1176_v11  ;;  %2721 = vpow2.f32 %v1096_v46 }
 0x54b   :  { %v1443_v14 = vmul.f32 %v2710_v1, %v1434_v59  ;;  %2723 = vpow2.f32 %v991_v45  ;;  %v1384_v59 = vmul.f32 1.442695, %v1368_v10 }
 0x54c   :  { %2725 = vpow2.f32 %v1192_v13 }
 0x54d   :  { %v1510_v18 = vpop.permute.xlu1 %1509  ;;  %v1452_v30 = vadd.f32 %v1443_v14, %v1356_v4  ;;  %2727 = vpow2.f32 %v1288_v33  ;;  %v1480_v14 = vmul.f32 1.442695, %v4151_v26 }
 0x54e   :  { %v1530_v22 = vmul.f32 %v3605_v6, %v1510_v18  ;;  %2729 = vpow2.f32 %v1384_v59 }
 0x54f   :  { %v2718_v60 = vpop.eup %2717  ;;  %2731 = vpow2.f32 %v1480_v14 }
 0x550   :  { %v1539_v16 = vmul.f32 %v2712_v43, %v1530_v22  ;;  %v1610_v43 = vpop.permute.xlu0 %1609  ;;  %2733 = vpow2.f32 %v1576_v54 }
 0x551   :  { %2735 = vpow2.f32 %v1672_v21  ;;  %v1627_v54 = vmul.f32 %v3618_v51, %v1610_v43  ;;  %v4159_v43 = vld [vmem:[#allocation32_spill] sm:$0xff] }
 0x552   :  { %v1548_v44 = vadd.f32 %v1539_v16, %v1452_v30  ;;  %v1606_v20 = vpop.permute.xlu1 %1605  ;;  %2737 = vpow2.f32 %v1768_v47 }
 0x553   :  { %v1626_v39 = vmul.f32 %v3618_v51, %v1606_v20  ;;  %v2720_v16 = vpop.eup %2719  ;;  %v1147_v20 = vmul.f32 %v4120_v7, %v3911_v3  ;;  %v2133_v3 = vsel %vm3956_vm12, %v3683_v55, 0.0 }
 0x554   :  { %v1706_v57 = vpop.permute.xlu0 %1705 }
 0x555   :  { %v1635_v15 = vmul.f32 %v2714_v63, %v1626_v39  ;;  %v4157_v39 = vld [vmem:[#allocation26_spill] sm:$0xff] }
 0x556   :  { %v1864_v36 = vmul.f32 1.442695, %v4157_v39 }
 0x557   :  { %v1644_v31 = vadd.f32 %v1635_v15, %v1548_v44  ;;  %v1702_v8 = vpop.permute.xlu1 %1701  ;;  %v4158_v15 = vld [vmem:[#allocation10_spill] sm:$0xff] }
 0x558   :  { %v1722_v23 = vmul.f32 %v3626_v34, %v1702_v8  ;;  %v976_v46 = vmul.f32 %v3470_v61, %v4158_v15  ;;  %v1081_v42 = vmul.f32 %v3465_v2, %v4158_v15  ;;  %v1243_v8 = vmul.f32 %v3552_v32, %v3921_v12  ;;  %v1802_v40 = vpop.permute.xlu0 %1801 }
 0x559   :  { %v1177_v61 = vmul.f32 %v3487_v52, %v4158_v15  ;;  %v1339_v2 = vmul.f32 %v3571_v41, %v3929_v27  ;;  %v1273_v55 = vmul.f32 %v3492_v19, %v4158_v15  ;;  %2739 = vpow2.f32 %v1864_v36 }
 0x55a   :  { %v1731_v35 = vmul.f32 %v2716_v0, %v1722_v23  ;;  %v993_v33 = vmul.f32 1.442695, %v976_v46  ;;  %v1531_v19 = vmul.f32 %v3605_v6, %v3947_v25  ;;  %v1482_v36 = vmul.f32 1.442695, %v4159_v43 }
 0x55b   :  { %v1194_v27 = vmul.f32 1.442695, %v1177_v61 }
 0x55c   :  { %v1740_v48 = vadd.f32 %v1731_v35, %v1644_v31  ;;  %v1798_v37 = vpop.permute.xlu1 %1797  ;;  %v2722_v31 = vpop.eup %2721 }
 0x55d   :  { %v1818_v1 = vmul.f32 %v3633_v50, %v1798_v37  ;;  %v2724_v23 = vpop.eup %2723  ;;  %v1156_v13 = vmul.f32 %v2722_v31, %v1147_v20  ;;  %v1098_v37 = vmul.f32 1.442695, %v1081_v42  ;;  %v1819_v20 = vmul.f32 %v3633_v50, %v1802_v40 }
 0x55e   :  { %v2726_v12 = vpop.eup %2725 }
 0x55f   :  { %v1827_v18 = vmul.f32 %v2718_v60, %v1818_v1  ;;  %v1252_v59 = vmul.f32 %v2726_v12, %v1243_v8  ;;  %v2728_v1 = vpop.eup %2727  ;;  %v1369_v60 = vmul.f32 %v3498_v28, %v4158_v15  ;;  %2741 = vpow2.f32 %v1098_v37 }
 0x560   :  { %v1348_v26 = vmul.f32 %v2728_v1, %v1339_v2  ;;  %2743 = vpow2.f32 %v993_v33  ;;  %v1723_v28 = vmul.f32 %v3626_v34, %v1706_v57  ;;  %v4161_v1 = vld [vmem:[#allocation34_spill] sm:$0xff] }
 0x561   :  { %v1836_v4 = vadd.f32 %v1827_v18, %v1740_v48  ;;  %v1894_v22 = vpop.permute.xlu1 %1893  ;;  %v2730_v18 = vpop.eup %2729  ;;  %2745 = vpow2.f32 %v1194_v27  ;;  %v1674_v40 = vmul.f32 1.442695, %v4161_v1 }
 0x562   :  { %v1914_v30 = vmul.f32 %v3639_v38, %v1894_v22 }
 0x564   :  { %v1923_v44 = vmul.f32 %v2720_v16, %v1914_v30  ;;  %v2732_v30 = vpop.eup %2731  ;;  %v1386_v16 = vmul.f32 1.442695, %v1369_v60 }
 0x565   :  { %v1540_v9 = vmul.f32 %v2732_v30, %v1531_v19  ;;  %v2734_v62 = vpop.eup %2733  ;;  %v4162_v19 = vld [vmem:[#allocation35_spill] sm:$0xff] }
 0x566   :  { %v1932_v63 = vadd.f32 %v1923_v44, %v1836_v4  ;;  %v1033_v11 = vpop.permute.xlu1 %1032  ;;  %v1898_v44 = vpop.permute.xlu0 %1897  ;;  %v1636_v25 = vmul.f32 %v2734_v62, %v1627_v54 }
 0x567   :  { %v1051_v45 = vmul.f32 %v4122_v29, %v1033_v11  ;;  %v2736_v47 = vpop.eup %2735  ;;  %v1915_v11 = vmul.f32 %v3639_v38, %v1898_v44 }
 0x568   :  { %v2083_v0 = vmul.f32 %v3757_v5, %v1932_v63  ;;  %v1435_v5 = vmul.f32 %v3589_v56, %v3938_v49  ;;  %v1290_v49 = vmul.f32 1.442695, %v1273_v55  ;;  %v1732_v63 = vmul.f32 %v2736_v47, %v1723_v28  ;;  %v2738_v46 = vpop.eup %2737 }
 0x569   :  { %v1060_v10 = vmul.f32 %v2724_v23, %v1051_v45  ;;  %v1828_v42 = vmul.f32 %v2738_v46, %v1819_v20  ;;  %v2740_v31 = vpop.eup %2739 }
 0x56a   :  { %v2142_v35 = vadd.f32 %v2133_v3, %v2083_v0  ;;  %v1038_v48 = vpop.permute.xlu1 %1037  ;;  %v1444_v24 = vmul.f32 %v2730_v18, %v1435_v5  ;;  %2747 = vpow2.f32 %v1290_v49  ;;  %v1924_v3 = vmul.f32 %v2740_v31, %v1915_v11  ;;  %v4160_v0 = vld [vmem:[#allocation33_spill] sm:$0xff] }
 0x56b   :  { %v1165_v52 = vadd.f32 %v1156_v13, %v1060_v10  ;;  %2749 = vpow2.f32 %v1386_v16  ;;  %v1578_v61 = vmul.f32 1.442695, %v4160_v0  ;;  %v1052_v13 = vmul.f32 %v4122_v29, %v1038_v48  ;;  %v4163_v16 = vld [vmem:[#allocation36_spill] sm:$0xff] }
 0x56c   :  { %2151 = vst [vmem:[%s4022_s5 + $0x30] sm:$0xff] %v2142_v35  ;;  %2751 = vpow2.f32 %v1482_v36  ;;  %v2742_v10 = vpop.eup %2741 }
 0x56d   :  { %v1261_v14 = vadd.f32 %v1252_v59, %v1165_v52  ;;  %v2744_v35 = vpop.eup %2743  ;;  %2753 = vpow2.f32 %v1578_v61 }
 0x56e   :  { %v2746_v55 = vpop.eup %2745  ;;  %2755 = vpow2.f32 %v1674_v40 }
 0x56f   :  { %v1357_v4 = vadd.f32 %v1348_v26, %v1261_v14  ;;  %v1134_v22 = vpop.permute.xlu1 %1133  ;;  %v1770_v14 = vmul.f32 1.442695, %v4162_v19 }
 0x570   :  { %v1148_v8 = vmul.f32 %v4120_v7, %v1134_v22  ;;  %v1061_v7 = vmul.f32 %v2744_v35, %v1052_v13 }
 0x571   :  { %v1453_v21 = vadd.f32 %v1444_v24, %v1357_v4  ;;  %2757 = vpow2.f32 %v1770_v14 }
 0x572   :  { %v1157_v33 = vmul.f32 %v2742_v10, %v1148_v8 }
 0x573   :  { %v1549_v53 = vadd.f32 %v1540_v9, %v1453_v21 }
 0x574   :  { %v1230_v39 = vpop.permute.xlu1 %1229  ;;  %v1166_v29 = vadd.f32 %v1157_v33, %v1061_v7 }
 0x575   :  { %v1645_v15 = vadd.f32 %v1636_v25, %v1549_v53  ;;  %v1244_v2 = vmul.f32 %v3552_v32, %v1230_v39 }
 0x577   :  { %v1741_v57 = vadd.f32 %v1732_v63, %v1645_v15  ;;  %v1253_v5 = vmul.f32 %v2746_v55, %v1244_v2  ;;  %v2748_v27 = vpop.eup %2747 }
 0x578   :  { %v2750_v60 = vpop.eup %2749 }
 0x579   :  { %v1837_v45 = vadd.f32 %v1828_v42, %v1741_v57  ;;  %v1326_v23 = vpop.permute.xlu1 %1325  ;;  %v2752_v24 = vpop.eup %2751 }
 0x57a   :  { %v1340_v37 = vmul.f32 %v3571_v41, %v1326_v23  ;;  %v1262_v41 = vadd.f32 %v1253_v5, %v1166_v29  ;;  %v2754_v28 = vpop.eup %2753 }
 0x57b   :  { %v1933_v12 = vadd.f32 %v1924_v3, %v1837_v45  ;;  %v2756_v20 = vpop.eup %2755 }
 0x57c   :  { %v1349_v48 = vmul.f32 %v2748_v27, %v1340_v37 }
 0x57d   :  { %v2084_v59 = vmul.f32 %v3769_v58, %v1933_v12 }
 0x57e   :  { %v1422_v52 = vpop.permute.xlu1 %1421  ;;  %v1358_v18 = vadd.f32 %v1349_v48, %v1262_v41  ;;  %v2758_v43 = vpop.eup %2757 }
 0x57f   :  { %2152 = vst [vmem:[%s4022_s5 + $0x38] sm:$0xff] %v2084_v59  ;;  %v1436_v32 = vmul.f32 %v3589_v56, %v1422_v52  ;;  %v1866_v56 = vmul.f32 1.442695, %v4163_v16 }
 0x581   :  { %v1445_v26 = vmul.f32 %v2750_v60, %v1436_v32  ;;  %2759 = vpow2.f32 %v1866_v56 }
 0x583   :  { %v1518_v58 = vpop.permute.xlu1 %1517  ;;  %v1454_v54 = vadd.f32 %v1445_v26, %v1358_v18 }
 0x584   :  { %v1532_v49 = vmul.f32 %v3605_v6, %v1518_v58 }
 0x586   :  { %v1541_v4 = vmul.f32 %v2752_v24, %v1532_v49 }
 0x588   :  { %v1550_v22 = vadd.f32 %v1541_v4, %v1454_v54  ;;  %v1614_v30 = vpop.permute.xlu1 %1613 }
 0x589   :  { %v1628_v9 = vmul.f32 %v3618_v51, %v1614_v30 }
 0x58b   :  { %v1637_v21 = vmul.f32 %v2754_v28, %v1628_v9 }
 0x58d   :  { %v1646_v62 = vadd.f32 %v1637_v21, %v1550_v22  ;;  %v1710_v44 = vpop.permute.xlu1 %1709 }
 0x58e   :  { %v1724_v25 = vmul.f32 %v3626_v34, %v1710_v44  ;;  %v2760_v51 = vpop.eup %2759 }
 0x590   :  { %v1733_v53 = vmul.f32 %v2756_v20, %v1724_v25 }
 0x592   :  { %v1742_v6 = vadd.f32 %v1733_v53, %v1646_v62  ;;  %v1806_v47 = vpop.permute.xlu1 %1805 }
 0x593   :  { %v1820_v39 = vmul.f32 %v3633_v50, %v1806_v47 }
 0x595   :  { %v1829_v36 = vmul.f32 %v2758_v43, %v1820_v39 }
 0x597   :  { %v1838_v63 = vadd.f32 %v1829_v36, %v1742_v6  ;;  %v1902_v11 = vpop.permute.xlu1 %1901 }
 0x598   :  { %v1916_v15 = vmul.f32 %v3639_v38, %v1902_v11 }
 0x59a   :  { %v1925_v46 = vmul.f32 %v2760_v51, %v1916_v15 }
 0x59c   :  { %v1934_v42 = vadd.f32 %v1925_v46, %v1838_v63 }
 0x59e   :  { %v2085_v57 = vmul.f32 %v3780_v17, %v1934_v42 }
 0x5a0   :  { %2153 = vst [vmem:[%s4022_s5 + $0x40] sm:$0xff] %v2085_v57 }
 0x5a1   :  { %2158 = vsyncpa [#allocation3], 1 }

</bundles_post_ra>
